<compile_context>
chip_gen: v7x
topology: tpu7x:2x2x1
jax: 0.10.0
libtpu: 0.0.40
codegen_flags: <defaults>
</compile_context>

<pallas_src>
import math
from functools import partial

import jax
import jax.numpy as jnp
from jax.experimental import pallas as pl

# ----------------------------------------------------------------------------
# Model hyper-parameters (small, consistent with the reference module globals)
# ----------------------------------------------------------------------------
num_layers = 2
d_model = 32
num_heads = 4
d_k = d_model // num_heads
d_ff = 64
seq_len = 8
LN_EPS = 1e-6

# Flat parameter ordering shared by the wrapper and the kernel signature.
_PARAM_ORDER = (
    "enc_ln1_g", "enc_ln1_b", "enc_wqkv", "enc_bqkv", "enc_w0", "enc_b0",
    "enc_ln2_g", "enc_ln2_b", "enc_w1", "enc_b1", "enc_w2", "enc_b2",
    "enc_lnf_g", "enc_lnf_b",
    "dec_ln1_g", "dec_ln1_b", "dec_wqkv1", "dec_bqkv1", "dec_w01", "dec_b01",
    "dec_ln2_g", "dec_ln2_b", "dec_wq2", "dec_bq2", "dec_wkv2", "dec_bkv2",
    "dec_w02", "dec_b02",
    "dec_ln3_g", "dec_ln3_b", "dec_w1", "dec_b1", "dec_w2", "dec_b2",
    "dec_lnf_g", "dec_lnf_b",
    "out_w", "out_b",
)


# ----------------------------------------------------------------------------
# Fused whole-forward Pallas kernel
# ----------------------------------------------------------------------------
def _transformer_kernel(
    src_ref, trg_ref, e_bias_ref, d_bias_ref,
    enc_ln1_g, enc_ln1_b, enc_wqkv, enc_bqkv, enc_w0, enc_b0,
    enc_ln2_g, enc_ln2_b, enc_w1, enc_b1, enc_w2, enc_b2,
    enc_lnf_g, enc_lnf_b,
    dec_ln1_g, dec_ln1_b, dec_wqkv1, dec_bqkv1, dec_w01, dec_b01,
    dec_ln2_g, dec_ln2_b, dec_wq2, dec_bq2, dec_wkv2, dec_bkv2,
    dec_w02, dec_b02,
    dec_ln3_g, dec_ln3_b, dec_w1, dec_b1, dec_w2, dec_b2,
    dec_lnf_g, dec_lnf_b,
    out_w, out_b,
    o_ref,
    *, batch, src_len, trg_len,
):
    f32 = jnp.float32
    bf16 = jnp.bfloat16
    scale = 1.0 / math.sqrt(d_k)

    def layer_norm(x, g, b):
        # f32 statistics (v5e EUP/VPU have no bf16); g/b are (1, d_model).
        mu = jnp.mean(x, axis=-1, keepdims=True)
        var = jnp.mean((x - mu) ** 2, axis=-1, keepdims=True)
        return (x - mu) / jnp.sqrt(var + LN_EPS) * g + b

    def linear(x, w, b, relu=False):
        # bf16 MXU operands, f32 accumulation; b is (1, N) f32.
        y = jnp.dot(x.astype(bf16), w, preferred_element_type=f32) + b
        return jnp.maximum(y, 0.0) if relu else y

    def attention(q, k, v, bias, lq, lk):
        # q: (batch*lq, d_model) f32; k, v: (batch*lk, d_model) f32
        # bias: (batch, lq, lk) additive f32 (-1e9 where masked, 0 elsewhere)
        rows = []
        for b in range(batch):                      # static unroll (tiny model)
            qb = q[b * lq:(b + 1) * lq, :]
            kb = k[b * lk:(b + 1) * lk, :]
            vb = v[b * lk:(b + 1) * lk, :]
            heads = []
            for h in range(num_heads):              # heads split via lane slices
                sl = slice(h * d_k, (h + 1) * d_k)
                s = jnp.einsum(
                    "qd,kd->qk",
                    qb[:, sl].astype(bf16), kb[:, sl].astype(bf16),
                    preferred_element_type=f32) * scale
                s = s + bias[b]
                s = s - jnp.max(s, axis=-1, keepdims=True)
                p = jnp.exp(s)
                p = p * pl.reciprocal(jnp.sum(p, axis=-1, keepdims=True),
                                      approx=True)
                heads.append(jnp.dot(p.astype(bf16), vb[:, sl].astype(bf16),
                                     preferred_element_type=f32))
            rows.append(jnp.concatenate(heads, axis=-1))    # (lq, d_model)
        return jnp.concatenate(rows, axis=0)                # (batch*lq, d_model)

    e_bias = e_bias_ref[...]
    d_bias = d_bias_ref[...]

    # ---------------- Encoder ----------------
    x = src_ref[...]
    for l in range(num_layers):
        x1 = layer_norm(x, enc_ln1_g[l], enc_ln1_b[l])
        qkv = linear(x1, enc_wqkv[l], enc_bqkv[l])          # fused QKV (N=96)
        q = qkv[:, 0:d_model]
        k = qkv[:, d_model:2 * d_model]
        v = qkv[:, 2 * d_model:3 * d_model]
        att = attention(q, k, v, e_bias, src_len, src_len)
        x = x + linear(att, enc_w0[l], enc_b0[l])
        x2 = layer_norm(x, enc_ln2_g[l], enc_ln2_b[l])
        hid = linear(x2, enc_w1[l], enc_b1[l], relu=True)   # fused FFN
        x = x + linear(hid, enc_w2[l], enc_b2[l])
    e_out = layer_norm(x, enc_lnf_g[...], enc_lnf_b[...])

    # ---------------- Decoder ----------------
    y = trg_ref[...]
    for l in range(num_layers):
        # masked self-attention
        y1 = layer_norm(y, dec_ln1_g[l], dec_ln1_b[l])
        qkv = linear(y1, dec_wqkv1[l], dec_bqkv1[l])
        q = qkv[:, 0:d_model]
        k = qkv[:, d_model:2 * d_model]
        v = qkv[:, 2 * d_model:3 * d_model]
        att = attention(q, k, v, d_bias, trg_len, trg_len)
        y = y + linear(att, dec_w01[l], dec_b01[l])
        # cross-attention (Q from decoder, fused K|V from encoder output)
        y2 = layer_norm(y, dec_ln2_g[l], dec_ln2_b[l])
        q2 = linear(y2, dec_wq2[l], dec_bq2[l])
        kv = linear(e_out, dec_wkv2[l], dec_bkv2[l])
        k2 = kv[:, 0:d_model]
        v2 = kv[:, d_model:2 * d_model]
        att2 = attention(q2, k2, v2, e_bias, trg_len, src_len)
        y = y + linear(att2, dec_w02[l], dec_b02[l])
        # feed-forward
        y3 = layer_norm(y, dec_ln3_g[l], dec_ln3_b[l])
        hid = linear(y3, dec_w1[l], dec_b1[l], relu=True)
        y = y + linear(hid, dec_w2[l], dec_b2[l])
    d_out = layer_norm(y, dec_lnf_g[...], dec_lnf_b[...])

    # -------- Output head (vocab lane-padded to 128) + log-softmax, fused ----
    logits = jnp.dot(d_out.astype(bf16), out_w[...],
                     preferred_element_type=f32) + out_b[...]
    m = jnp.max(logits, axis=-1, keepdims=True)
    sh = logits - m
    lse = jnp.log(jnp.sum(jnp.exp(sh), axis=-1, keepdims=True))
    o_ref[...] = sh - lse


def _full_spec(shape):
    nd = len(shape)
    return pl.BlockSpec(shape, lambda i, _nd=nd: (0,) * _nd)


# ----------------------------------------------------------------------------
# Forward pass (JAX glue + one fused pallas_call)
# ----------------------------------------------------------------------------
def transformer_forward(params, iter_, src_input, trg_input, e_mask, d_mask):
    B, Ls = src_input.shape
    _, Lt = trg_input.shape
    trg_vocab = params["trg_emb"].shape[0]
    v_pad = params["out_w"].shape[1]

    # Embedding lookup + positional encoding (gather stays in XLA glue).
    src = jnp.take(params["src_emb"], src_input, axis=0) * math.sqrt(d_model)
    trg = jnp.take(params["trg_emb"], trg_input, axis=0) * math.sqrt(d_model)
    src = src + params["pe"][None, :Ls, :]
    trg = trg + params["pe"][None, :Lt, :]

    # Compact additive mask biases (built once per forward, no int broadcast).
    neg = jnp.float32(-1e9)
    e_bias = jnp.broadcast_to(
        jnp.where(e_mask == 0, neg, jnp.float32(0.0)).astype(jnp.float32),
        (B, Lt, Ls))                                  # Ls == Lt == seq_len here
    d_bias = jnp.where(d_mask == 0, neg, jnp.float32(0.0)).astype(jnp.float32)

    inputs = [
        src.reshape(B * Ls, d_model).astype(jnp.float32),
        trg.reshape(B * Lt, d_model).astype(jnp.float32),
        e_bias,
        d_bias,
    ] + [params[name] for name in _PARAM_ORDER]

    kernel = partial(_transformer_kernel, batch=B, src_len=Ls, trg_len=Lt)
    logp = pl.pallas_call(
        kernel,
        out_shape=jax.ShapeDtypeStruct((B * Lt, v_pad), jnp.float32),
        grid=(1,),
        in_specs=[_full_spec(a.shape) for a in inputs],
        out_specs=_full_spec((B * Lt, v_pad)),
    )(*inputs)

    # Strip the lane padding and restore (B, L, vocab).
    return logp[:, :trg_vocab].reshape(B, Lt, trg_vocab)


# ----------------------------------------------------------------------------
# Deterministic parameter initialization
# ----------------------------------------------------------------------------
def init_params(key, src_vocab, trg_vocab):
    keys = iter(jax.random.split(key, 256))

    def nrm(shape, scale=0.02, dtype=jnp.float32):
        return (jax.random.normal(next(keys), shape, jnp.float32) * scale).astype(dtype)

    def ones(shape):
        return jnp.ones(shape, jnp.float32)

    def zeros(shape):
        return jnp.zeros(shape, jnp.float32)

    L = num_layers
    p = {
        "src_emb": nrm((src_vocab, d_model), 1.0),
        "trg_emb": nrm((trg_vocab, d_model), 1.0),
    }

    # Positional encoding (same formula as the reference PositionalEncoder:
    # exponent uses the raw dimension index i, as in the original repo).
    pos = jnp.arange(seq_len, dtype=jnp.float32)[:, None]
    idx = jnp.arange(d_model, dtype=jnp.float32)[None, :]
    angle = pos / jnp.power(10000.0, (2.0 * idx) / d_model)
    p["pe"] = jnp.where(jnp.arange(d_model)[None, :] % 2 == 0,
                        jnp.sin(angle), jnp.cos(angle)).astype(jnp.float32)

    # ---- encoder (per-layer params stacked along leading num_layers dim) ----
    p["enc_ln1_g"] = ones((L, 1, d_model)); p["enc_ln1_b"] = zeros((L, 1, d_model))
    p["enc_wqkv"] = nrm((L, d_model, 3 * d_model), dtype=jnp.bfloat16)
    p["enc_bqkv"] = nrm((L, 1, 3 * d_model))
    p["enc_w0"] = nrm((L, d_model, d_model), dtype=jnp.bfloat16)
    p["enc_b0"] = nrm((L, 1, d_model))
    p["enc_ln2_g"] = ones((L, 1, d_model)); p["enc_ln2_b"] = zeros((L, 1, d_model))
    p["enc_w1"] = nrm((L, d_model, d_ff), dtype=jnp.bfloat16)
    p["enc_b1"] = nrm((L, 1, d_ff))
    p["enc_w2"] = nrm((L, d_ff, d_model), dtype=jnp.bfloat16)
    p["enc_b2"] = nrm((L, 1, d_model))
    p["enc_lnf_g"] = ones((1, d_model)); p["enc_lnf_b"] = zeros((1, d_model))

    # ---- decoder ----
    p["dec_ln1_g"] = ones((L, 1, d_model)); p["dec_ln1_b"] = zeros((L, 1, d_model))
    p["dec_wqkv1"] = nrm((L, d_model, 3 * d_model), dtype=jnp.bfloat16)
    p["dec_bqkv1"] = nrm((L, 1, 3 * d_model))
    p["dec_w01"] = nrm((L, d_model, d_model), dtype=jnp.bfloat16)
    p["dec_b01"] = nrm((L, 1, d_model))
    p["dec_ln2_g"] = ones((L, 1, d_model)); p["dec_ln2_b"] = zeros((L, 1, d_model))
    p["dec_wq2"] = nrm((L, d_model, d_model), dtype=jnp.bfloat16)
    p["dec_bq2"] = nrm((L, 1, d_model))
    p["dec_wkv2"] = nrm((L, d_model, 2 * d_model), dtype=jnp.bfloat16)
    p["dec_bkv2"] = nrm((L, 1, 2 * d_model))
    p["dec_w02"] = nrm((L, d_model, d_model), dtype=jnp.bfloat16)
    p["dec_b02"] = nrm((L, 1, d_model))
    p["dec_ln3_g"] = ones((L, 1, d_model)); p["dec_ln3_b"] = zeros((L, 1, d_model))
    p["dec_w1"] = nrm((L, d_model, d_ff), dtype=jnp.bfloat16)
    p["dec_b1"] = nrm((L, 1, d_ff))
    p["dec_w2"] = nrm((L, d_ff, d_model), dtype=jnp.bfloat16)
    p["dec_b2"] = nrm((L, 1, d_model))
    p["dec_lnf_g"] = ones((1, d_model)); p["dec_lnf_b"] = zeros((1, d_model))

    # ---- output head, lane-padded to a multiple of 128 ----
    v_pad = max(128, ((trg_vocab + 127) // 128) * 128)
    out_w = nrm((d_model, trg_vocab))
    out_b = nrm((trg_vocab,))
    out_w = jnp.pad(out_w, ((0, 0), (0, v_pad - trg_vocab)))
    out_b = jnp.pad(out_b, (0, v_pad - trg_vocab), constant_values=-1e9)
    p["out_w"] = out_w.astype(jnp.bfloat16)
    p["out_b"] = out_b.reshape(1, v_pad).astype(jnp.float32)
    return p


# ----------------------------------------------------------------------------
# Main
# ----------------------------------------------------------------------------
if __name__ == "__main__":
    src_vocab_size = 50
    trg_vocab_size = 60
    B, L = 2, seq_len
    pad_id = 0

    key = jax.random.PRNGKey(0)
    k_par, k_src, k_trg = jax.random.split(key, 3)

    params = init_params(k_par, src_vocab_size, trg_vocab_size)

    src_input = jax.random.randint(k_src, (B, L), 1, src_vocab_size, dtype=jnp.int32)
    trg_input = jax.random.randint(k_trg, (B, L), 1, trg_vocab_size, dtype=jnp.int32)
    # add a little padding on one sequence
    src_input = src_input.at[1, -2:].set(pad_id)
    trg_input = trg_input.at[1, -1:].set(pad_id)

    # e_mask: (B, 1, L) ; d_mask: (B, L, L) with causal (no-peek) mask
    e_mask = (src_input != pad_id)[:, None, :].astype(jnp.int32)
    nopeak = jnp.tril(jnp.ones((L, L), jnp.int32))
    d_mask = ((trg_input != pad_id)[:, None, :].astype(jnp.int32) * nopeak[None, :, :])

    fwd = jax.jit(transformer_forward, static_argnums=(1,))
    out = fwd(params, 0, src_input, trg_input, e_mask, d_mask)
    out = jax.block_until_ready(out)

    assert out.shape == (B, L, trg_vocab_size)
    assert bool(jnp.all(jnp.isfinite(out)))
    # log-softmax rows should sum (in prob space) to ~1
    assert bool(jnp.allclose(jnp.sum(jnp.exp(out), axis=-1), 1.0, atol=1e-4))

    print("KERNEL_OK")
</pallas_src>

<mosaic_0001>
module attributes {stable_mosaic.version = 11 : i64} {
  func.func @_transformer_kernel(%arg0: i32, %arg1: memref<16x32xf32, #tpu.memory_space<vmem>>, %arg2: memref<16x32xf32, #tpu.memory_space<vmem>>, %arg3: memref<2x8x8xf32, #tpu.memory_space<vmem>>, %arg4: memref<2x8x8xf32, #tpu.memory_space<vmem>>, %arg5: memref<2x1x32xf32, #tpu.memory_space<vmem>>, %arg6: memref<2x1x32xf32, #tpu.memory_space<vmem>>, %arg7: memref<2x32x96xbf16, #tpu.memory_space<vmem>>, %arg8: memref<2x1x96xf32, #tpu.memory_space<vmem>>, %arg9: memref<2x32x32xbf16, #tpu.memory_space<vmem>>, %arg10: memref<2x1x32xf32, #tpu.memory_space<vmem>>, %arg11: memref<2x1x32xf32, #tpu.memory_space<vmem>>, %arg12: memref<2x1x32xf32, #tpu.memory_space<vmem>>, %arg13: memref<2x32x64xbf16, #tpu.memory_space<vmem>>, %arg14: memref<2x1x64xf32, #tpu.memory_space<vmem>>, %arg15: memref<2x64x32xbf16, #tpu.memory_space<vmem>>, %arg16: memref<2x1x32xf32, #tpu.memory_space<vmem>>, %arg17: memref<1x32xf32, #tpu.memory_space<vmem>>, %arg18: memref<1x32xf32, #tpu.memory_space<vmem>>, %arg19: memref<2x1x32xf32, #tpu.memory_space<vmem>>, %arg20: memref<2x1x32xf32, #tpu.memory_space<vmem>>, %arg21: memref<2x32x96xbf16, #tpu.memory_space<vmem>>, %arg22: memref<2x1x96xf32, #tpu.memory_space<vmem>>, %arg23: memref<2x32x32xbf16, #tpu.memory_space<vmem>>, %arg24: memref<2x1x32xf32, #tpu.memory_space<vmem>>, %arg25: memref<2x1x32xf32, #tpu.memory_space<vmem>>, %arg26: memref<2x1x32xf32, #tpu.memory_space<vmem>>, %arg27: memref<2x32x32xbf16, #tpu.memory_space<vmem>>, %arg28: memref<2x1x32xf32, #tpu.memory_space<vmem>>, %arg29: memref<2x32x64xbf16, #tpu.memory_space<vmem>>, %arg30: memref<2x1x64xf32, #tpu.memory_space<vmem>>, %arg31: memref<2x32x32xbf16, #tpu.memory_space<vmem>>, %arg32: memref<2x1x32xf32, #tpu.memory_space<vmem>>, %arg33: memref<2x1x32xf32, #tpu.memory_space<vmem>>, %arg34: memref<2x1x32xf32, #tpu.memory_space<vmem>>, %arg35: memref<2x32x64xbf16, #tpu.memory_space<vmem>>, %arg36: memref<2x1x64xf32, #tpu.memory_space<vmem>>, %arg37: memref<2x64x32xbf16, #tpu.memory_space<vmem>>, %arg38: memref<2x1x32xf32, #tpu.memory_space<vmem>>, %arg39: memref<1x32xf32, #tpu.memory_space<vmem>>, %arg40: memref<1x32xf32, #tpu.memory_space<vmem>>, %arg41: memref<32x128xbf16, #tpu.memory_space<vmem>>, %arg42: memref<1x128xf32, #tpu.memory_space<vmem>>, %arg43: memref<16x128xf32, #tpu.memory_space<vmem>>) attributes {dimension_semantics = [#tpu.dimension_semantics<arbitrary>], iteration_bounds = array<i64: 1>, scalar_prefetch = 0 : i64, scratch_operands = 0 : i64, tpu.core_type = #tpu.core_type<tc>, window_params = [{pipeline_mode = #tpu.pipeline_mode<synchronous>, transform_indices = @transform_0, window_bounds = array<i64: 16, 32>}, {pipeline_mode = #tpu.pipeline_mode<synchronous>, transform_indices = @transform_1, window_bounds = array<i64: 16, 32>}, {pipeline_mode = #tpu.pipeline_mode<synchronous>, transform_indices = @transform_2, window_bounds = array<i64: 2, 8, 8>}, {pipeline_mode = #tpu.pipeline_mode<synchronous>, transform_indices = @transform_3, window_bounds = array<i64: 2, 8, 8>}, {pipeline_mode = #tpu.pipeline_mode<synchronous>, transform_indices = @transform_4, window_bounds = array<i64: 2, 1, 32>}, {pipeline_mode = #tpu.pipeline_mode<synchronous>, transform_indices = @transform_5, window_bounds = array<i64: 2, 1, 32>}, {pipeline_mode = #tpu.pipeline_mode<synchronous>, transform_indices = @transform_6, window_bounds = array<i64: 2, 32, 96>}, {pipeline_mode = #tpu.pipeline_mode<synchronous>, transform_indices = @transform_7, window_bounds = array<i64: 2, 1, 96>}, {pipeline_mode = #tpu.pipeline_mode<synchronous>, transform_indices = @transform_8, window_bounds = array<i64: 2, 32, 32>}, {pipeline_mode = #tpu.pipeline_mode<synchronous>, transform_indices = @transform_9, window_bounds = array<i64: 2, 1, 32>}, {pipeline_mode = #tpu.pipeline_mode<synchronous>, transform_indices = @transform_10, window_bounds = array<i64: 2, 1, 32>}, {pipeline_mode = #tpu.pipeline_mode<synchronous>, transform_indices = @transform_11, window_bounds = array<i64: 2, 1, 32>}, {pipeline_mode = #tpu.pipeline_mode<synchronous>, transform_indices = @transform_12, window_bounds = array<i64: 2, 32, 64>}, {pipeline_mode = #tpu.pipeline_mode<synchronous>, transform_indices = @transform_13, window_bounds = array<i64: 2, 1, 64>}, {pipeline_mode = #tpu.pipeline_mode<synchronous>, transform_indices = @transform_14, window_bounds = array<i64: 2, 64, 32>}, {pipeline_mode = #tpu.pipeline_mode<synchronous>, transform_indices = @transform_15, window_bounds = array<i64: 2, 1, 32>}, {pipeline_mode = #tpu.pipeline_mode<synchronous>, transform_indices = @transform_16, window_bounds = array<i64: 1, 32>}, {pipeline_mode = #tpu.pipeline_mode<synchronous>, transform_indices = @transform_17, window_bounds = array<i64: 1, 32>}, {pipeline_mode = #tpu.pipeline_mode<synchronous>, transform_indices = @transform_18, window_bounds = array<i64: 2, 1, 32>}, {pipeline_mode = #tpu.pipeline_mode<synchronous>, transform_indices = @transform_19, window_bounds = array<i64: 2, 1, 32>}, {pipeline_mode = #tpu.pipeline_mode<synchronous>, transform_indices = @transform_20, window_bounds = array<i64: 2, 32, 96>}, {pipeline_mode = #tpu.pipeline_mode<synchronous>, transform_indices = @transform_21, window_bounds = array<i64: 2, 1, 96>}, {pipeline_mode = #tpu.pipeline_mode<synchronous>, transform_indices = @transform_22, window_bounds = array<i64: 2, 32, 32>}, {pipeline_mode = #tpu.pipeline_mode<synchronous>, transform_indices = @transform_23, window_bounds = array<i64: 2, 1, 32>}, {pipeline_mode = #tpu.pipeline_mode<synchronous>, transform_indices = @transform_24, window_bounds = array<i64: 2, 1, 32>}, {pipeline_mode = #tpu.pipeline_mode<synchronous>, transform_indices = @transform_25, window_bounds = array<i64: 2, 1, 32>}, {pipeline_mode = #tpu.pipeline_mode<synchronous>, transform_indices = @transform_26, window_bounds = array<i64: 2, 32, 32>}, {pipeline_mode = #tpu.pipeline_mode<synchronous>, transform_indices = @transform_27, window_bounds = array<i64: 2, 1, 32>}, {pipeline_mode = #tpu.pipeline_mode<synchronous>, transform_indices = @transform_28, window_bounds = array<i64: 2, 32, 64>}, {pipeline_mode = #tpu.pipeline_mode<synchronous>, transform_indices = @transform_29, window_bounds = array<i64: 2, 1, 64>}, {pipeline_mode = #tpu.pipeline_mode<synchronous>, transform_indices = @transform_30, window_bounds = array<i64: 2, 32, 32>}, {pipeline_mode = #tpu.pipeline_mode<synchronous>, transform_indices = @transform_31, window_bounds = array<i64: 2, 1, 32>}, {pipeline_mode = #tpu.pipeline_mode<synchronous>, transform_indices = @transform_32, window_bounds = array<i64: 2, 1, 32>}, {pipeline_mode = #tpu.pipeline_mode<synchronous>, transform_indices = @transform_33, window_bounds = array<i64: 2, 1, 32>}, {pipeline_mode = #tpu.pipeline_mode<synchronous>, transform_indices = @transform_34, window_bounds = array<i64: 2, 32, 64>}, {pipeline_mode = #tpu.pipeline_mode<synchronous>, transform_indices = @transform_35, window_bounds = array<i64: 2, 1, 64>}, {pipeline_mode = #tpu.pipeline_mode<synchronous>, transform_indices = @transform_36, window_bounds = array<i64: 2, 64, 32>}, {pipeline_mode = #tpu.pipeline_mode<synchronous>, transform_indices = @transform_37, window_bounds = array<i64: 2, 1, 32>}, {pipeline_mode = #tpu.pipeline_mode<synchronous>, transform_indices = @transform_38, window_bounds = array<i64: 1, 32>}, {pipeline_mode = #tpu.pipeline_mode<synchronous>, transform_indices = @transform_39, window_bounds = array<i64: 1, 32>}, {pipeline_mode = #tpu.pipeline_mode<synchronous>, transform_indices = @transform_40, window_bounds = array<i64: 32, 128>}, {pipeline_mode = #tpu.pipeline_mode<synchronous>, transform_indices = @transform_41, window_bounds = array<i64: 1, 128>}, {pipeline_mode = #tpu.pipeline_mode<synchronous>, transform_indices = @transform_42, window_bounds = array<i64: 16, 128>}]} {
    %c0 = arith.constant 0 : index
    %c0_0 = arith.constant 0 : index
    %c0_1 = arith.constant 0 : index
    %0 = vector.load %arg3[%c0, %c0_0, %c0_1] : memref<2x8x8xf32, #tpu.memory_space<vmem>>, vector<2x8x8xf32>
    %c0_2 = arith.constant 0 : index
    %c0_3 = arith.constant 0 : index
    %c0_4 = arith.constant 0 : index
    %1 = vector.load %arg4[%c0_2, %c0_3, %c0_4] : memref<2x8x8xf32, #tpu.memory_space<vmem>>, vector<2x8x8xf32>
    %c0_5 = arith.constant 0 : index
    %c0_6 = arith.constant 0 : index
    %2 = vector.load %arg1[%c0_5, %c0_6] : memref<16x32xf32, #tpu.memory_space<vmem>>, vector<16x32xf32>
    %c0_7 = arith.constant 0 : index
    %c0_8 = arith.constant 0 : index
    %c0_9 = arith.constant 0 : index
    %3 = vector.load %arg5[%c0_7, %c0_8, %c0_9] : memref<2x1x32xf32, #tpu.memory_space<vmem>>, vector<1x1x32xf32>
    %4 = vector.shape_cast %3 : vector<1x1x32xf32> to vector<1x32xf32>
    %c0_10 = arith.constant 0 : index
    %c0_11 = arith.constant 0 : index
    %c0_12 = arith.constant 0 : index
    %5 = vector.load %arg6[%c0_10, %c0_11, %c0_12] : memref<2x1x32xf32, #tpu.memory_space<vmem>>, vector<1x1x32xf32>
    %6 = vector.shape_cast %5 : vector<1x1x32xf32> to vector<1x32xf32>
    %cst = arith.constant dense<0.000000e+00> : vector<16xf32>
    %7 = vector.multi_reduction <add>, %2, %cst [1] : vector<16x32xf32> to vector<16xf32>
    %8 = vector.shape_cast %7 : vector<16xf32> to vector<16x1xf32>
    %cst_13 = arith.constant 3.200000e+01 : f32
    %9 = vector.broadcast %cst_13 : f32 to vector<16x1xf32>
    %10 = arith.divf %8, %9 : vector<16x1xf32>
    %11 = vector.broadcast %10 : vector<16x1xf32> to vector<16x32xf32>
    %12 = arith.subf %2, %11 : vector<16x32xf32>
    %13 = arith.mulf %12, %12 : vector<16x32xf32>
    %cst_14 = arith.constant dense<0.000000e+00> : vector<16xf32>
    %14 = vector.multi_reduction <add>, %13, %cst_14 [1] : vector<16x32xf32> to vector<16xf32>
    %15 = vector.shape_cast %14 : vector<16xf32> to vector<16x1xf32>
    %cst_15 = arith.constant 3.200000e+01 : f32
    %16 = vector.broadcast %cst_15 : f32 to vector<16x1xf32>
    %17 = arith.divf %15, %16 : vector<16x1xf32>
    %18 = vector.broadcast %10 : vector<16x1xf32> to vector<16x32xf32>
    %19 = arith.subf %2, %18 : vector<16x32xf32>
    %cst_16 = arith.constant 9.99999997E-7 : f32
    %20 = vector.broadcast %cst_16 : f32 to vector<16x1xf32>
    %21 = arith.addf %17, %20 : vector<16x1xf32>
    %22 = math.sqrt %21 : vector<16x1xf32>
    %23 = vector.broadcast %22 : vector<16x1xf32> to vector<16x32xf32>
    %24 = arith.divf %19, %23 : vector<16x32xf32>
    %25 = vector.broadcast %4 : vector<1x32xf32> to vector<16x32xf32>
    %26 = arith.mulf %24, %25 : vector<16x32xf32>
    %27 = vector.broadcast %6 : vector<1x32xf32> to vector<16x32xf32>
    %28 = arith.addf %26, %27 : vector<16x32xf32>
    %c0_17 = arith.constant 0 : index
    %c0_18 = arith.constant 0 : index
    %c0_19 = arith.constant 0 : index
    %29 = vector.load %arg7[%c0_17, %c0_18, %c0_19] : memref<2x32x96xbf16, #tpu.memory_space<vmem>>, vector<1x32x96xbf16>
    %30 = vector.shape_cast %29 : vector<1x32x96xbf16> to vector<32x96xbf16>
    %c0_20 = arith.constant 0 : index
    %c0_21 = arith.constant 0 : index
    %c0_22 = arith.constant 0 : index
    %31 = vector.load %arg8[%c0_20, %c0_21, %c0_22] : memref<2x1x96xf32, #tpu.memory_space<vmem>>, vector<1x1x96xf32>
    %32 = vector.shape_cast %31 : vector<1x1x96xf32> to vector<1x96xf32>
    %33 = arith.truncf %28 : vector<16x32xf32> to vector<16x32xbf16>
    %cst_23 = arith.constant dense<0.000000e+00> : vector<16x96xf32>
    %34 = tpu.matmul %33, %30, %cst_23 {dimension_numbers = #tpu.dot_dimension_numbers<[1], [0], [0], [1], [0, 0, 1, 1], [], []>} : vector<16x32xbf16>, vector<32x96xbf16>, vector<16x96xf32> -> vector<16x96xf32>
    %35 = vector.broadcast %32 : vector<1x96xf32> to vector<16x96xf32>
    %36 = arith.addf %34, %35 : vector<16x96xf32>
    %37 = vector.extract_strided_slice %36 {offsets = [0, 0], sizes = [16, 32], strides = [1, 1]} : vector<16x96xf32> to vector<16x32xf32>
    %38 = vector.extract_strided_slice %36 {offsets = [0, 32], sizes = [16, 32], strides = [1, 1]} : vector<16x96xf32> to vector<16x32xf32>
    %39 = vector.extract_strided_slice %36 {offsets = [0, 64], sizes = [16, 32], strides = [1, 1]} : vector<16x96xf32> to vector<16x32xf32>
    %40 = vector.extract_strided_slice %37 {offsets = [0, 0], sizes = [8, 32], strides = [1, 1]} : vector<16x32xf32> to vector<8x32xf32>
    %41 = vector.extract_strided_slice %38 {offsets = [0, 0], sizes = [8, 32], strides = [1, 1]} : vector<16x32xf32> to vector<8x32xf32>
    %42 = vector.extract_strided_slice %39 {offsets = [0, 0], sizes = [8, 32], strides = [1, 1]} : vector<16x32xf32> to vector<8x32xf32>
    %43 = vector.extract_strided_slice %40 {offsets = [0, 0], sizes = [8, 8], strides = [1, 1]} : vector<8x32xf32> to vector<8x8xf32>
    %44 = arith.truncf %43 : vector<8x8xf32> to vector<8x8xbf16>
    %45 = vector.extract_strided_slice %41 {offsets = [0, 0], sizes = [8, 8], strides = [1, 1]} : vector<8x32xf32> to vector<8x8xf32>
    %46 = arith.truncf %45 : vector<8x8xf32> to vector<8x8xbf16>
    "tpu.trace_start"() <{level = 10 : i32, message = "qd,kd->qk"}> : () -> ()
    %cst_24 = arith.constant dense<0.000000e+00> : vector<8x8xf32>
    %47 = tpu.matmul %44, %46, %cst_24 {dimension_numbers = #tpu.dot_dimension_numbers<[1], [1], [0], [0], [0, 0, 1, 0], [], []>} : vector<8x8xbf16>, vector<8x8xbf16>, vector<8x8xf32> -> vector<8x8xf32>
    "tpu.trace_stop"() : () -> ()
    %cst_25 = arith.constant 0.353553385 : f32
    %48 = vector.broadcast %cst_25 : f32 to vector<8x8xf32>
    %49 = arith.mulf %47, %48 : vector<8x8xf32>
    %50 = vector.extract_strided_slice %0 {offsets = [0, 0, 0], sizes = [1, 8, 8], strides = [1, 1, 1]} : vector<2x8x8xf32> to vector<1x8x8xf32>
    %51 = vector.shape_cast %50 : vector<1x8x8xf32> to vector<8x8xf32>
    %52 = arith.addf %49, %51 : vector<8x8xf32>
    %cst_26 = arith.constant dense<0xFF800000> : vector<8xf32>
    %53 = vector.multi_reduction <maximumf>, %52, %cst_26 [1] : vector<8x8xf32> to vector<8xf32>
    %54 = vector.shape_cast %53 : vector<8xf32> to vector<8x1xf32>
    %55 = vector.broadcast %54 : vector<8x1xf32> to vector<8x8xf32>
    %56 = arith.subf %52, %55 : vector<8x8xf32>
    %57 = math.exp %56 : vector<8x8xf32>
    %cst_27 = arith.constant dense<0.000000e+00> : vector<8xf32>
    %58 = vector.multi_reduction <add>, %57, %cst_27 [1] : vector<8x8xf32> to vector<8xf32>
    %59 = vector.shape_cast %58 : vector<8xf32> to vector<8x1xf32>
    %60 = tpu.reciprocal %59 {approx = true} : vector<8x1xf32> -> vector<8x1xf32>
    %61 = vector.broadcast %60 : vector<8x1xf32> to vector<8x8xf32>
    %62 = arith.mulf %57, %61 : vector<8x8xf32>
    %63 = arith.truncf %62 : vector<8x8xf32> to vector<8x8xbf16>
    %64 = vector.extract_strided_slice %42 {offsets = [0, 0], sizes = [8, 8], strides = [1, 1]} : vector<8x32xf32> to vector<8x8xf32>
    %65 = arith.truncf %64 : vector<8x8xf32> to vector<8x8xbf16>
    %cst_28 = arith.constant dense<0.000000e+00> : vector<8x8xf32>
    %66 = tpu.matmul %63, %65, %cst_28 {dimension_numbers = #tpu.dot_dimension_numbers<[1], [0], [0], [1], [0, 0, 1, 1], [], []>} : vector<8x8xbf16>, vector<8x8xbf16>, vector<8x8xf32> -> vector<8x8xf32>
    %67 = vector.extract_strided_slice %40 {offsets = [0, 8], sizes = [8, 8], strides = [1, 1]} : vector<8x32xf32> to vector<8x8xf32>
    %68 = arith.truncf %67 : vector<8x8xf32> to vector<8x8xbf16>
    %69 = vector.extract_strided_slice %41 {offsets = [0, 8], sizes = [8, 8], strides = [1, 1]} : vector<8x32xf32> to vector<8x8xf32>
    %70 = arith.truncf %69 : vector<8x8xf32> to vector<8x8xbf16>
    "tpu.trace_start"() <{level = 10 : i32, message = "qd,kd->qk"}> : () -> ()
    %cst_29 = arith.constant dense<0.000000e+00> : vector<8x8xf32>
    %71 = tpu.matmul %68, %70, %cst_29 {dimension_numbers = #tpu.dot_dimension_numbers<[1], [1], [0], [0], [0, 0, 1, 0], [], []>} : vector<8x8xbf16>, vector<8x8xbf16>, vector<8x8xf32> -> vector<8x8xf32>
    "tpu.trace_stop"() : () -> ()
    %cst_30 = arith.constant 0.353553385 : f32
    %72 = vector.broadcast %cst_30 : f32 to vector<8x8xf32>
    %73 = arith.mulf %71, %72 : vector<8x8xf32>
    %74 = vector.extract_strided_slice %0 {offsets = [0, 0, 0], sizes = [1, 8, 8], strides = [1, 1, 1]} : vector<2x8x8xf32> to vector<1x8x8xf32>
    %75 = vector.shape_cast %74 : vector<1x8x8xf32> to vector<8x8xf32>
    %76 = arith.addf %73, %75 : vector<8x8xf32>
    %cst_31 = arith.constant dense<0xFF800000> : vector<8xf32>
    %77 = vector.multi_reduction <maximumf>, %76, %cst_31 [1] : vector<8x8xf32> to vector<8xf32>
    %78 = vector.shape_cast %77 : vector<8xf32> to vector<8x1xf32>
    %79 = vector.broadcast %78 : vector<8x1xf32> to vector<8x8xf32>
    %80 = arith.subf %76, %79 : vector<8x8xf32>
    %81 = math.exp %80 : vector<8x8xf32>
    %cst_32 = arith.constant dense<0.000000e+00> : vector<8xf32>
    %82 = vector.multi_reduction <add>, %81, %cst_32 [1] : vector<8x8xf32> to vector<8xf32>
    %83 = vector.shape_cast %82 : vector<8xf32> to vector<8x1xf32>
    %84 = tpu.reciprocal %83 {approx = true} : vector<8x1xf32> -> vector<8x1xf32>
    %85 = vector.broadcast %84 : vector<8x1xf32> to vector<8x8xf32>
    %86 = arith.mulf %81, %85 : vector<8x8xf32>
    %87 = arith.truncf %86 : vector<8x8xf32> to vector<8x8xbf16>
    %88 = vector.extract_strided_slice %42 {offsets = [0, 8], sizes = [8, 8], strides = [1, 1]} : vector<8x32xf32> to vector<8x8xf32>
    %89 = arith.truncf %88 : vector<8x8xf32> to vector<8x8xbf16>
    %cst_33 = arith.constant dense<0.000000e+00> : vector<8x8xf32>
    %90 = tpu.matmul %87, %89, %cst_33 {dimension_numbers = #tpu.dot_dimension_numbers<[1], [0], [0], [1], [0, 0, 1, 1], [], []>} : vector<8x8xbf16>, vector<8x8xbf16>, vector<8x8xf32> -> vector<8x8xf32>
    %91 = vector.extract_strided_slice %40 {offsets = [0, 16], sizes = [8, 8], strides = [1, 1]} : vector<8x32xf32> to vector<8x8xf32>
    %92 = arith.truncf %91 : vector<8x8xf32> to vector<8x8xbf16>
    %93 = vector.extract_strided_slice %41 {offsets = [0, 16], sizes = [8, 8], strides = [1, 1]} : vector<8x32xf32> to vector<8x8xf32>
    %94 = arith.truncf %93 : vector<8x8xf32> to vector<8x8xbf16>
    "tpu.trace_start"() <{level = 10 : i32, message = "qd,kd->qk"}> : () -> ()
    %cst_34 = arith.constant dense<0.000000e+00> : vector<8x8xf32>
    %95 = tpu.matmul %92, %94, %cst_34 {dimension_numbers = #tpu.dot_dimension_numbers<[1], [1], [0], [0], [0, 0, 1, 0], [], []>} : vector<8x8xbf16>, vector<8x8xbf16>, vector<8x8xf32> -> vector<8x8xf32>
    "tpu.trace_stop"() : () -> ()
    %cst_35 = arith.constant 0.353553385 : f32
    %96 = vector.broadcast %cst_35 : f32 to vector<8x8xf32>
    %97 = arith.mulf %95, %96 : vector<8x8xf32>
    %98 = vector.extract_strided_slice %0 {offsets = [0, 0, 0], sizes = [1, 8, 8], strides = [1, 1, 1]} : vector<2x8x8xf32> to vector<1x8x8xf32>
    %99 = vector.shape_cast %98 : vector<1x8x8xf32> to vector<8x8xf32>
    %100 = arith.addf %97, %99 : vector<8x8xf32>
    %cst_36 = arith.constant dense<0xFF800000> : vector<8xf32>
    %101 = vector.multi_reduction <maximumf>, %100, %cst_36 [1] : vector<8x8xf32> to vector<8xf32>
    %102 = vector.shape_cast %101 : vector<8xf32> to vector<8x1xf32>
    %103 = vector.broadcast %102 : vector<8x1xf32> to vector<8x8xf32>
    %104 = arith.subf %100, %103 : vector<8x8xf32>
    %105 = math.exp %104 : vector<8x8xf32>
    %cst_37 = arith.constant dense<0.000000e+00> : vector<8xf32>
    %106 = vector.multi_reduction <add>, %105, %cst_37 [1] : vector<8x8xf32> to vector<8xf32>
    %107 = vector.shape_cast %106 : vector<8xf32> to vector<8x1xf32>
    %108 = tpu.reciprocal %107 {approx = true} : vector<8x1xf32> -> vector<8x1xf32>
    %109 = vector.broadcast %108 : vector<8x1xf32> to vector<8x8xf32>
    %110 = arith.mulf %105, %109 : vector<8x8xf32>
    %111 = arith.truncf %110 : vector<8x8xf32> to vector<8x8xbf16>
    %112 = vector.extract_strided_slice %42 {offsets = [0, 16], sizes = [8, 8], strides = [1, 1]} : vector<8x32xf32> to vector<8x8xf32>
    %113 = arith.truncf %112 : vector<8x8xf32> to vector<8x8xbf16>
    %cst_38 = arith.constant dense<0.000000e+00> : vector<8x8xf32>
    %114 = tpu.matmul %111, %113, %cst_38 {dimension_numbers = #tpu.dot_dimension_numbers<[1], [0], [0], [1], [0, 0, 1, 1], [], []>} : vector<8x8xbf16>, vector<8x8xbf16>, vector<8x8xf32> -> vector<8x8xf32>
    %115 = vector.extract_strided_slice %40 {offsets = [0, 24], sizes = [8, 8], strides = [1, 1]} : vector<8x32xf32> to vector<8x8xf32>
    %116 = arith.truncf %115 : vector<8x8xf32> to vector<8x8xbf16>
    %117 = vector.extract_strided_slice %41 {offsets = [0, 24], sizes = [8, 8], strides = [1, 1]} : vector<8x32xf32> to vector<8x8xf32>
    %118 = arith.truncf %117 : vector<8x8xf32> to vector<8x8xbf16>
    "tpu.trace_start"() <{level = 10 : i32, message = "qd,kd->qk"}> : () -> ()
    %cst_39 = arith.constant dense<0.000000e+00> : vector<8x8xf32>
    %119 = tpu.matmul %116, %118, %cst_39 {dimension_numbers = #tpu.dot_dimension_numbers<[1], [1], [0], [0], [0, 0, 1, 0], [], []>} : vector<8x8xbf16>, vector<8x8xbf16>, vector<8x8xf32> -> vector<8x8xf32>
    "tpu.trace_stop"() : () -> ()
    %cst_40 = arith.constant 0.353553385 : f32
    %120 = vector.broadcast %cst_40 : f32 to vector<8x8xf32>
    %121 = arith.mulf %119, %120 : vector<8x8xf32>
    %122 = vector.extract_strided_slice %0 {offsets = [0, 0, 0], sizes = [1, 8, 8], strides = [1, 1, 1]} : vector<2x8x8xf32> to vector<1x8x8xf32>
    %123 = vector.shape_cast %122 : vector<1x8x8xf32> to vector<8x8xf32>
    %124 = arith.addf %121, %123 : vector<8x8xf32>
    %cst_41 = arith.constant dense<0xFF800000> : vector<8xf32>
    %125 = vector.multi_reduction <maximumf>, %124, %cst_41 [1] : vector<8x8xf32> to vector<8xf32>
    %126 = vector.shape_cast %125 : vector<8xf32> to vector<8x1xf32>
    %127 = vector.broadcast %126 : vector<8x1xf32> to vector<8x8xf32>
    %128 = arith.subf %124, %127 : vector<8x8xf32>
    %129 = math.exp %128 : vector<8x8xf32>
    %cst_42 = arith.constant dense<0.000000e+00> : vector<8xf32>
    %130 = vector.multi_reduction <add>, %129, %cst_42 [1] : vector<8x8xf32> to vector<8xf32>
    %131 = vector.shape_cast %130 : vector<8xf32> to vector<8x1xf32>
    %132 = tpu.reciprocal %131 {approx = true} : vector<8x1xf32> -> vector<8x1xf32>
    %133 = vector.broadcast %132 : vector<8x1xf32> to vector<8x8xf32>
    %134 = arith.mulf %129, %133 : vector<8x8xf32>
    %135 = arith.truncf %134 : vector<8x8xf32> to vector<8x8xbf16>
    %136 = vector.extract_strided_slice %42 {offsets = [0, 24], sizes = [8, 8], strides = [1, 1]} : vector<8x32xf32> to vector<8x8xf32>
    %137 = arith.truncf %136 : vector<8x8xf32> to vector<8x8xbf16>
    %cst_43 = arith.constant dense<0.000000e+00> : vector<8x8xf32>
    %138 = tpu.matmul %135, %137, %cst_43 {dimension_numbers = #tpu.dot_dimension_numbers<[1], [0], [0], [1], [0, 0, 1, 1], [], []>} : vector<8x8xbf16>, vector<8x8xbf16>, vector<8x8xf32> -> vector<8x8xf32>
    %139 = tpu.concatenate %66, %90, %114, %138 in 1 : vector<8x8xf32>, vector<8x8xf32>, vector<8x8xf32>, vector<8x8xf32> -> vector<8x32xf32>
    %140 = vector.extract_strided_slice %37 {offsets = [8, 0], sizes = [8, 32], strides = [1, 1]} : vector<16x32xf32> to vector<8x32xf32>
    %141 = vector.extract_strided_slice %38 {offsets = [8, 0], sizes = [8, 32], strides = [1, 1]} : vector<16x32xf32> to vector<8x32xf32>
    %142 = vector.extract_strided_slice %39 {offsets = [8, 0], sizes = [8, 32], strides = [1, 1]} : vector<16x32xf32> to vector<8x32xf32>
    %143 = vector.extract_strided_slice %140 {offsets = [0, 0], sizes = [8, 8], strides = [1, 1]} : vector<8x32xf32> to vector<8x8xf32>
    %144 = arith.truncf %143 : vector<8x8xf32> to vector<8x8xbf16>
    %145 = vector.extract_strided_slice %141 {offsets = [0, 0], sizes = [8, 8], strides = [1, 1]} : vector<8x32xf32> to vector<8x8xf32>
    %146 = arith.truncf %145 : vector<8x8xf32> to vector<8x8xbf16>
    "tpu.trace_start"() <{level = 10 : i32, message = "qd,kd->qk"}> : () -> ()
    %cst_44 = arith.constant dense<0.000000e+00> : vector<8x8xf32>
    %147 = tpu.matmul %144, %146, %cst_44 {dimension_numbers = #tpu.dot_dimension_numbers<[1], [1], [0], [0], [0, 0, 1, 0], [], []>} : vector<8x8xbf16>, vector<8x8xbf16>, vector<8x8xf32> -> vector<8x8xf32>
    "tpu.trace_stop"() : () -> ()
    %cst_45 = arith.constant 0.353553385 : f32
    %148 = vector.broadcast %cst_45 : f32 to vector<8x8xf32>
    %149 = arith.mulf %147, %148 : vector<8x8xf32>
    %150 = vector.extract_strided_slice %0 {offsets = [1, 0, 0], sizes = [1, 8, 8], strides = [1, 1, 1]} : vector<2x8x8xf32> to vector<1x8x8xf32>
    %151 = vector.shape_cast %150 : vector<1x8x8xf32> to vector<8x8xf32>
    %152 = arith.addf %149, %151 : vector<8x8xf32>
    %cst_46 = arith.constant dense<0xFF800000> : vector<8xf32>
    %153 = vector.multi_reduction <maximumf>, %152, %cst_46 [1] : vector<8x8xf32> to vector<8xf32>
    %154 = vector.shape_cast %153 : vector<8xf32> to vector<8x1xf32>
    %155 = vector.broadcast %154 : vector<8x1xf32> to vector<8x8xf32>
    %156 = arith.subf %152, %155 : vector<8x8xf32>
    %157 = math.exp %156 : vector<8x8xf32>
    %cst_47 = arith.constant dense<0.000000e+00> : vector<8xf32>
    %158 = vector.multi_reduction <add>, %157, %cst_47 [1] : vector<8x8xf32> to vector<8xf32>
    %159 = vector.shape_cast %158 : vector<8xf32> to vector<8x1xf32>
    %160 = tpu.reciprocal %159 {approx = true} : vector<8x1xf32> -> vector<8x1xf32>
    %161 = vector.broadcast %160 : vector<8x1xf32> to vector<8x8xf32>
    %162 = arith.mulf %157, %161 : vector<8x8xf32>
    %163 = arith.truncf %162 : vector<8x8xf32> to vector<8x8xbf16>
    %164 = vector.extract_strided_slice %142 {offsets = [0, 0], sizes = [8, 8], strides = [1, 1]} : vector<8x32xf32> to vector<8x8xf32>
    %165 = arith.truncf %164 : vector<8x8xf32> to vector<8x8xbf16>
    %cst_48 = arith.constant dense<0.000000e+00> : vector<8x8xf32>
    %166 = tpu.matmul %163, %165, %cst_48 {dimension_numbers = #tpu.dot_dimension_numbers<[1], [0], [0], [1], [0, 0, 1, 1], [], []>} : vector<8x8xbf16>, vector<8x8xbf16>, vector<8x8xf32> -> vector<8x8xf32>
    %167 = vector.extract_strided_slice %140 {offsets = [0, 8], sizes = [8, 8], strides = [1, 1]} : vector<8x32xf32> to vector<8x8xf32>
    %168 = arith.truncf %167 : vector<8x8xf32> to vector<8x8xbf16>
    %169 = vector.extract_strided_slice %141 {offsets = [0, 8], sizes = [8, 8], strides = [1, 1]} : vector<8x32xf32> to vector<8x8xf32>
    %170 = arith.truncf %169 : vector<8x8xf32> to vector<8x8xbf16>
    "tpu.trace_start"() <{level = 10 : i32, message = "qd,kd->qk"}> : () -> ()
    %cst_49 = arith.constant dense<0.000000e+00> : vector<8x8xf32>
    %171 = tpu.matmul %168, %170, %cst_49 {dimension_numbers = #tpu.dot_dimension_numbers<[1], [1], [0], [0], [0, 0, 1, 0], [], []>} : vector<8x8xbf16>, vector<8x8xbf16>, vector<8x8xf32> -> vector<8x8xf32>
    "tpu.trace_stop"() : () -> ()
    %cst_50 = arith.constant 0.353553385 : f32
    %172 = vector.broadcast %cst_50 : f32 to vector<8x8xf32>
    %173 = arith.mulf %171, %172 : vector<8x8xf32>
    %174 = vector.extract_strided_slice %0 {offsets = [1, 0, 0], sizes = [1, 8, 8], strides = [1, 1, 1]} : vector<2x8x8xf32> to vector<1x8x8xf32>
    %175 = vector.shape_cast %174 : vector<1x8x8xf32> to vector<8x8xf32>
    %176 = arith.addf %173, %175 : vector<8x8xf32>
    %cst_51 = arith.constant dense<0xFF800000> : vector<8xf32>
    %177 = vector.multi_reduction <maximumf>, %176, %cst_51 [1] : vector<8x8xf32> to vector<8xf32>
    %178 = vector.shape_cast %177 : vector<8xf32> to vector<8x1xf32>
    %179 = vector.broadcast %178 : vector<8x1xf32> to vector<8x8xf32>
    %180 = arith.subf %176, %179 : vector<8x8xf32>
    %181 = math.exp %180 : vector<8x8xf32>
    %cst_52 = arith.constant dense<0.000000e+00> : vector<8xf32>
    %182 = vector.multi_reduction <add>, %181, %cst_52 [1] : vector<8x8xf32> to vector<8xf32>
    %183 = vector.shape_cast %182 : vector<8xf32> to vector<8x1xf32>
    %184 = tpu.reciprocal %183 {approx = true} : vector<8x1xf32> -> vector<8x1xf32>
    %185 = vector.broadcast %184 : vector<8x1xf32> to vector<8x8xf32>
    %186 = arith.mulf %181, %185 : vector<8x8xf32>
    %187 = arith.truncf %186 : vector<8x8xf32> to vector<8x8xbf16>
    %188 = vector.extract_strided_slice %142 {offsets = [0, 8], sizes = [8, 8], strides = [1, 1]} : vector<8x32xf32> to vector<8x8xf32>
    %189 = arith.truncf %188 : vector<8x8xf32> to vector<8x8xbf16>
    %cst_53 = arith.constant dense<0.000000e+00> : vector<8x8xf32>
    %190 = tpu.matmul %187, %189, %cst_53 {dimension_numbers = #tpu.dot_dimension_numbers<[1], [0], [0], [1], [0, 0, 1, 1], [], []>} : vector<8x8xbf16>, vector<8x8xbf16>, vector<8x8xf32> -> vector<8x8xf32>
    %191 = vector.extract_strided_slice %140 {offsets = [0, 16], sizes = [8, 8], strides = [1, 1]} : vector<8x32xf32> to vector<8x8xf32>
    %192 = arith.truncf %191 : vector<8x8xf32> to vector<8x8xbf16>
    %193 = vector.extract_strided_slice %141 {offsets = [0, 16], sizes = [8, 8], strides = [1, 1]} : vector<8x32xf32> to vector<8x8xf32>
    %194 = arith.truncf %193 : vector<8x8xf32> to vector<8x8xbf16>
    "tpu.trace_start"() <{level = 10 : i32, message = "qd,kd->qk"}> : () -> ()
    %cst_54 = arith.constant dense<0.000000e+00> : vector<8x8xf32>
    %195 = tpu.matmul %192, %194, %cst_54 {dimension_numbers = #tpu.dot_dimension_numbers<[1], [1], [0], [0], [0, 0, 1, 0], [], []>} : vector<8x8xbf16>, vector<8x8xbf16>, vector<8x8xf32> -> vector<8x8xf32>
    "tpu.trace_stop"() : () -> ()
    %cst_55 = arith.constant 0.353553385 : f32
    %196 = vector.broadcast %cst_55 : f32 to vector<8x8xf32>
    %197 = arith.mulf %195, %196 : vector<8x8xf32>
    %198 = vector.extract_strided_slice %0 {offsets = [1, 0, 0], sizes = [1, 8, 8], strides = [1, 1, 1]} : vector<2x8x8xf32> to vector<1x8x8xf32>
    %199 = vector.shape_cast %198 : vector<1x8x8xf32> to vector<8x8xf32>
    %200 = arith.addf %197, %199 : vector<8x8xf32>
    %cst_56 = arith.constant dense<0xFF800000> : vector<8xf32>
    %201 = vector.multi_reduction <maximumf>, %200, %cst_56 [1] : vector<8x8xf32> to vector<8xf32>
    %202 = vector.shape_cast %201 : vector<8xf32> to vector<8x1xf32>
    %203 = vector.broadcast %202 : vector<8x1xf32> to vector<8x8xf32>
    %204 = arith.subf %200, %203 : vector<8x8xf32>
    %205 = math.exp %204 : vector<8x8xf32>
    %cst_57 = arith.constant dense<0.000000e+00> : vector<8xf32>
    %206 = vector.multi_reduction <add>, %205, %cst_57 [1] : vector<8x8xf32> to vector<8xf32>
    %207 = vector.shape_cast %206 : vector<8xf32> to vector<8x1xf32>
    %208 = tpu.reciprocal %207 {approx = true} : vector<8x1xf32> -> vector<8x1xf32>
    %209 = vector.broadcast %208 : vector<8x1xf32> to vector<8x8xf32>
    %210 = arith.mulf %205, %209 : vector<8x8xf32>
    %211 = arith.truncf %210 : vector<8x8xf32> to vector<8x8xbf16>
    %212 = vector.extract_strided_slice %142 {offsets = [0, 16], sizes = [8, 8], strides = [1, 1]} : vector<8x32xf32> to vector<8x8xf32>
    %213 = arith.truncf %212 : vector<8x8xf32> to vector<8x8xbf16>
    %cst_58 = arith.constant dense<0.000000e+00> : vector<8x8xf32>
    %214 = tpu.matmul %211, %213, %cst_58 {dimension_numbers = #tpu.dot_dimension_numbers<[1], [0], [0], [1], [0, 0, 1, 1], [], []>} : vector<8x8xbf16>, vector<8x8xbf16>, vector<8x8xf32> -> vector<8x8xf32>
    %215 = vector.extract_strided_slice %140 {offsets = [0, 24], sizes = [8, 8], strides = [1, 1]} : vector<8x32xf32> to vector<8x8xf32>
    %216 = arith.truncf %215 : vector<8x8xf32> to vector<8x8xbf16>
    %217 = vector.extract_strided_slice %141 {offsets = [0, 24], sizes = [8, 8], strides = [1, 1]} : vector<8x32xf32> to vector<8x8xf32>
    %218 = arith.truncf %217 : vector<8x8xf32> to vector<8x8xbf16>
    "tpu.trace_start"() <{level = 10 : i32, message = "qd,kd->qk"}> : () -> ()
    %cst_59 = arith.constant dense<0.000000e+00> : vector<8x8xf32>
    %219 = tpu.matmul %216, %218, %cst_59 {dimension_numbers = #tpu.dot_dimension_numbers<[1], [1], [0], [0], [0, 0, 1, 0], [], []>} : vector<8x8xbf16>, vector<8x8xbf16>, vector<8x8xf32> -> vector<8x8xf32>
    "tpu.trace_stop"() : () -> ()
    %cst_60 = arith.constant 0.353553385 : f32
    %220 = vector.broadcast %cst_60 : f32 to vector<8x8xf32>
    %221 = arith.mulf %219, %220 : vector<8x8xf32>
    %222 = vector.extract_strided_slice %0 {offsets = [1, 0, 0], sizes = [1, 8, 8], strides = [1, 1, 1]} : vector<2x8x8xf32> to vector<1x8x8xf32>
    %223 = vector.shape_cast %222 : vector<1x8x8xf32> to vector<8x8xf32>
    %224 = arith.addf %221, %223 : vector<8x8xf32>
    %cst_61 = arith.constant dense<0xFF800000> : vector<8xf32>
    %225 = vector.multi_reduction <maximumf>, %224, %cst_61 [1] : vector<8x8xf32> to vector<8xf32>
    %226 = vector.shape_cast %225 : vector<8xf32> to vector<8x1xf32>
    %227 = vector.broadcast %226 : vector<8x1xf32> to vector<8x8xf32>
    %228 = arith.subf %224, %227 : vector<8x8xf32>
    %229 = math.exp %228 : vector<8x8xf32>
    %cst_62 = arith.constant dense<0.000000e+00> : vector<8xf32>
    %230 = vector.multi_reduction <add>, %229, %cst_62 [1] : vector<8x8xf32> to vector<8xf32>
    %231 = vector.shape_cast %230 : vector<8xf32> to vector<8x1xf32>
    %232 = tpu.reciprocal %231 {approx = true} : vector<8x1xf32> -> vector<8x1xf32>
    %233 = vector.broadcast %232 : vector<8x1xf32> to vector<8x8xf32>
    %234 = arith.mulf %229, %233 : vector<8x8xf32>
    %235 = arith.truncf %234 : vector<8x8xf32> to vector<8x8xbf16>
    %236 = vector.extract_strided_slice %142 {offsets = [0, 24], sizes = [8, 8], strides = [1, 1]} : vector<8x32xf32> to vector<8x8xf32>
    %237 = arith.truncf %236 : vector<8x8xf32> to vector<8x8xbf16>
    %cst_63 = arith.constant dense<0.000000e+00> : vector<8x8xf32>
    %238 = tpu.matmul %235, %237, %cst_63 {dimension_numbers = #tpu.dot_dimension_numbers<[1], [0], [0], [1], [0, 0, 1, 1], [], []>} : vector<8x8xbf16>, vector<8x8xbf16>, vector<8x8xf32> -> vector<8x8xf32>
    %239 = tpu.concatenate %166, %190, %214, %238 in 1 : vector<8x8xf32>, vector<8x8xf32>, vector<8x8xf32>, vector<8x8xf32> -> vector<8x32xf32>
    %240 = tpu.concatenate %139, %239 in 0 : vector<8x32xf32>, vector<8x32xf32> -> vector<16x32xf32>
    %c0_64 = arith.constant 0 : index
    %c0_65 = arith.constant 0 : index
    %c0_66 = arith.constant 0 : index
    %241 = vector.load %arg9[%c0_64, %c0_65, %c0_66] : memref<2x32x32xbf16, #tpu.memory_space<vmem>>, vector<1x32x32xbf16>
    %242 = vector.shape_cast %241 : vector<1x32x32xbf16> to vector<32x32xbf16>
    %c0_67 = arith.constant 0 : index
    %c0_68 = arith.constant 0 : index
    %c0_69 = arith.constant 0 : index
    %243 = vector.load %arg10[%c0_67, %c0_68, %c0_69] : memref<2x1x32xf32, #tpu.memory_space<vmem>>, vector<1x1x32xf32>
    %244 = vector.shape_cast %243 : vector<1x1x32xf32> to vector<1x32xf32>
    %245 = arith.truncf %240 : vector<16x32xf32> to vector<16x32xbf16>
    %cst_70 = arith.constant dense<0.000000e+00> : vector<16x32xf32>
    %246 = tpu.matmul %245, %242, %cst_70 {dimension_numbers = #tpu.dot_dimension_numbers<[1], [0], [0], [1], [0, 0, 1, 1], [], []>} : vector<16x32xbf16>, vector<32x32xbf16>, vector<16x32xf32> -> vector<16x32xf32>
    %247 = vector.broadcast %244 : vector<1x32xf32> to vector<16x32xf32>
    %248 = arith.addf %246, %247 : vector<16x32xf32>
    %249 = arith.addf %2, %248 : vector<16x32xf32>
    %c0_71 = arith.constant 0 : index
    %c0_72 = arith.constant 0 : index
    %c0_73 = arith.constant 0 : index
    %250 = vector.load %arg11[%c0_71, %c0_72, %c0_73] : memref<2x1x32xf32, #tpu.memory_space<vmem>>, vector<1x1x32xf32>
    %251 = vector.shape_cast %250 : vector<1x1x32xf32> to vector<1x32xf32>
    %c0_74 = arith.constant 0 : index
    %c0_75 = arith.constant 0 : index
    %c0_76 = arith.constant 0 : index
    %252 = vector.load %arg12[%c0_74, %c0_75, %c0_76] : memref<2x1x32xf32, #tpu.memory_space<vmem>>, vector<1x1x32xf32>
    %253 = vector.shape_cast %252 : vector<1x1x32xf32> to vector<1x32xf32>
    %cst_77 = arith.constant dense<0.000000e+00> : vector<16xf32>
    %254 = vector.multi_reduction <add>, %249, %cst_77 [1] : vector<16x32xf32> to vector<16xf32>
    %255 = vector.shape_cast %254 : vector<16xf32> to vector<16x1xf32>
    %cst_78 = arith.constant 3.200000e+01 : f32
    %256 = vector.broadcast %cst_78 : f32 to vector<16x1xf32>
    %257 = arith.divf %255, %256 : vector<16x1xf32>
    %258 = vector.broadcast %257 : vector<16x1xf32> to vector<16x32xf32>
    %259 = arith.subf %249, %258 : vector<16x32xf32>
    %260 = arith.mulf %259, %259 : vector<16x32xf32>
    %cst_79 = arith.constant dense<0.000000e+00> : vector<16xf32>
    %261 = vector.multi_reduction <add>, %260, %cst_79 [1] : vector<16x32xf32> to vector<16xf32>
    %262 = vector.shape_cast %261 : vector<16xf32> to vector<16x1xf32>
    %cst_80 = arith.constant 3.200000e+01 : f32
    %263 = vector.broadcast %cst_80 : f32 to vector<16x1xf32>
    %264 = arith.divf %262, %263 : vector<16x1xf32>
    %265 = vector.broadcast %257 : vector<16x1xf32> to vector<16x32xf32>
    %266 = arith.subf %249, %265 : vector<16x32xf32>
    %cst_81 = arith.constant 9.99999997E-7 : f32
    %267 = vector.broadcast %cst_81 : f32 to vector<16x1xf32>
    %268 = arith.addf %264, %267 : vector<16x1xf32>
    %269 = math.sqrt %268 : vector<16x1xf32>
    %270 = vector.broadcast %269 : vector<16x1xf32> to vector<16x32xf32>
    %271 = arith.divf %266, %270 : vector<16x32xf32>
    %272 = vector.broadcast %251 : vector<1x32xf32> to vector<16x32xf32>
    %273 = arith.mulf %271, %272 : vector<16x32xf32>
    %274 = vector.broadcast %253 : vector<1x32xf32> to vector<16x32xf32>
    %275 = arith.addf %273, %274 : vector<16x32xf32>
    %c0_82 = arith.constant 0 : index
    %c0_83 = arith.constant 0 : index
    %c0_84 = arith.constant 0 : index
    %276 = vector.load %arg13[%c0_82, %c0_83, %c0_84] : memref<2x32x64xbf16, #tpu.memory_space<vmem>>, vector<1x32x64xbf16>
    %277 = vector.shape_cast %276 : vector<1x32x64xbf16> to vector<32x64xbf16>
    %c0_85 = arith.constant 0 : index
    %c0_86 = arith.constant 0 : index
    %c0_87 = arith.constant 0 : index
    %278 = vector.load %arg14[%c0_85, %c0_86, %c0_87] : memref<2x1x64xf32, #tpu.memory_space<vmem>>, vector<1x1x64xf32>
    %279 = vector.shape_cast %278 : vector<1x1x64xf32> to vector<1x64xf32>
    %280 = arith.truncf %275 : vector<16x32xf32> to vector<16x32xbf16>
    %cst_88 = arith.constant dense<0.000000e+00> : vector<16x64xf32>
    %281 = tpu.matmul %280, %277, %cst_88 {dimension_numbers = #tpu.dot_dimension_numbers<[1], [0], [0], [1], [0, 0, 1, 1], [], []>} : vector<16x32xbf16>, vector<32x64xbf16>, vector<16x64xf32> -> vector<16x64xf32>
    %282 = vector.broadcast %279 : vector<1x64xf32> to vector<16x64xf32>
    %283 = arith.addf %281, %282 : vector<16x64xf32>
    %cst_89 = arith.constant 0.000000e+00 : f32
    %284 = vector.broadcast %cst_89 : f32 to vector<16x64xf32>
    %285 = arith.maximumf %283, %284 : vector<16x64xf32>
    %c0_90 = arith.constant 0 : index
    %c0_91 = arith.constant 0 : index
    %c0_92 = arith.constant 0 : index
    %286 = vector.load %arg15[%c0_90, %c0_91, %c0_92] : memref<2x64x32xbf16, #tpu.memory_space<vmem>>, vector<1x64x32xbf16>
    %287 = vector.shape_cast %286 : vector<1x64x32xbf16> to vector<64x32xbf16>
    %c0_93 = arith.constant 0 : index
    %c0_94 = arith.constant 0 : index
    %c0_95 = arith.constant 0 : index
    %288 = vector.load %arg16[%c0_93, %c0_94, %c0_95] : memref<2x1x32xf32, #tpu.memory_space<vmem>>, vector<1x1x32xf32>
    %289 = vector.shape_cast %288 : vector<1x1x32xf32> to vector<1x32xf32>
    %290 = arith.truncf %285 : vector<16x64xf32> to vector<16x64xbf16>
    %cst_96 = arith.constant dense<0.000000e+00> : vector<16x32xf32>
    %291 = tpu.matmul %290, %287, %cst_96 {dimension_numbers = #tpu.dot_dimension_numbers<[1], [0], [0], [1], [0, 0, 1, 1], [], []>} : vector<16x64xbf16>, vector<64x32xbf16>, vector<16x32xf32> -> vector<16x32xf32>
    %292 = vector.broadcast %289 : vector<1x32xf32> to vector<16x32xf32>
    %293 = arith.addf %291, %292 : vector<16x32xf32>
    %294 = arith.addf %249, %293 : vector<16x32xf32>
    %c1 = arith.constant 1 : index
    %c0_97 = arith.constant 0 : index
    %c0_98 = arith.constant 0 : index
    %295 = vector.load %arg5[%c1, %c0_97, %c0_98] : memref<2x1x32xf32, #tpu.memory_space<vmem>>, vector<1x1x32xf32>
    %296 = vector.shape_cast %295 : vector<1x1x32xf32> to vector<1x32xf32>
    %c1_99 = arith.constant 1 : index
    %c0_100 = arith.constant 0 : index
    %c0_101 = arith.constant 0 : index
    %297 = vector.load %arg6[%c1_99, %c0_100, %c0_101] : memref<2x1x32xf32, #tpu.memory_space<vmem>>, vector<1x1x32xf32>
    %298 = vector.shape_cast %297 : vector<1x1x32xf32> to vector<1x32xf32>
    %cst_102 = arith.constant dense<0.000000e+00> : vector<16xf32>
    %299 = vector.multi_reduction <add>, %294, %cst_102 [1] : vector<16x32xf32> to vector<16xf32>
    %300 = vector.shape_cast %299 : vector<16xf32> to vector<16x1xf32>
    %cst_103 = arith.constant 3.200000e+01 : f32
    %301 = vector.broadcast %cst_103 : f32 to vector<16x1xf32>
    %302 = arith.divf %300, %301 : vector<16x1xf32>
    %303 = vector.broadcast %302 : vector<16x1xf32> to vector<16x32xf32>
    %304 = arith.subf %294, %303 : vector<16x32xf32>
    %305 = arith.mulf %304, %304 : vector<16x32xf32>
    %cst_104 = arith.constant dense<0.000000e+00> : vector<16xf32>
    %306 = vector.multi_reduction <add>, %305, %cst_104 [1] : vector<16x32xf32> to vector<16xf32>
    %307 = vector.shape_cast %306 : vector<16xf32> to vector<16x1xf32>
    %cst_105 = arith.constant 3.200000e+01 : f32
    %308 = vector.broadcast %cst_105 : f32 to vector<16x1xf32>
    %309 = arith.divf %307, %308 : vector<16x1xf32>
    %310 = vector.broadcast %302 : vector<16x1xf32> to vector<16x32xf32>
    %311 = arith.subf %294, %310 : vector<16x32xf32>
    %cst_106 = arith.constant 9.99999997E-7 : f32
    %312 = vector.broadcast %cst_106 : f32 to vector<16x1xf32>
    %313 = arith.addf %309, %312 : vector<16x1xf32>
    %314 = math.sqrt %313 : vector<16x1xf32>
    %315 = vector.broadcast %314 : vector<16x1xf32> to vector<16x32xf32>
    %316 = arith.divf %311, %315 : vector<16x32xf32>
    %317 = vector.broadcast %296 : vector<1x32xf32> to vector<16x32xf32>
    %318 = arith.mulf %316, %317 : vector<16x32xf32>
    %319 = vector.broadcast %298 : vector<1x32xf32> to vector<16x32xf32>
    %320 = arith.addf %318, %319 : vector<16x32xf32>
    %c1_107 = arith.constant 1 : index
    %c0_108 = arith.constant 0 : index
    %c0_109 = arith.constant 0 : index
    %321 = vector.load %arg7[%c1_107, %c0_108, %c0_109] : memref<2x32x96xbf16, #tpu.memory_space<vmem>>, vector<1x32x96xbf16>
    %322 = vector.shape_cast %321 : vector<1x32x96xbf16> to vector<32x96xbf16>
    %c1_110 = arith.constant 1 : index
    %c0_111 = arith.constant 0 : index
    %c0_112 = arith.constant 0 : index
    %323 = vector.load %arg8[%c1_110, %c0_111, %c0_112] : memref<2x1x96xf32, #tpu.memory_space<vmem>>, vector<1x1x96xf32>
    %324 = vector.shape_cast %323 : vector<1x1x96xf32> to vector<1x96xf32>
    %325 = arith.truncf %320 : vector<16x32xf32> to vector<16x32xbf16>
    %cst_113 = arith.constant dense<0.000000e+00> : vector<16x96xf32>
    %326 = tpu.matmul %325, %322, %cst_113 {dimension_numbers = #tpu.dot_dimension_numbers<[1], [0], [0], [1], [0, 0, 1, 1], [], []>} : vector<16x32xbf16>, vector<32x96xbf16>, vector<16x96xf32> -> vector<16x96xf32>
    %327 = vector.broadcast %324 : vector<1x96xf32> to vector<16x96xf32>
    %328 = arith.addf %326, %327 : vector<16x96xf32>
    %329 = vector.extract_strided_slice %328 {offsets = [0, 0], sizes = [16, 32], strides = [1, 1]} : vector<16x96xf32> to vector<16x32xf32>
    %330 = vector.extract_strided_slice %328 {offsets = [0, 32], sizes = [16, 32], strides = [1, 1]} : vector<16x96xf32> to vector<16x32xf32>
    %331 = vector.extract_strided_slice %328 {offsets = [0, 64], sizes = [16, 32], strides = [1, 1]} : vector<16x96xf32> to vector<16x32xf32>
    %332 = vector.extract_strided_slice %329 {offsets = [0, 0], sizes = [8, 32], strides = [1, 1]} : vector<16x32xf32> to vector<8x32xf32>
    %333 = vector.extract_strided_slice %330 {offsets = [0, 0], sizes = [8, 32], strides = [1, 1]} : vector<16x32xf32> to vector<8x32xf32>
    %334 = vector.extract_strided_slice %331 {offsets = [0, 0], sizes = [8, 32], strides = [1, 1]} : vector<16x32xf32> to vector<8x32xf32>
    %335 = vector.extract_strided_slice %332 {offsets = [0, 0], sizes = [8, 8], strides = [1, 1]} : vector<8x32xf32> to vector<8x8xf32>
    %336 = arith.truncf %335 : vector<8x8xf32> to vector<8x8xbf16>
    %337 = vector.extract_strided_slice %333 {offsets = [0, 0], sizes = [8, 8], strides = [1, 1]} : vector<8x32xf32> to vector<8x8xf32>
    %338 = arith.truncf %337 : vector<8x8xf32> to vector<8x8xbf16>
    "tpu.trace_start"() <{level = 10 : i32, message = "qd,kd->qk"}> : () -> ()
    %cst_114 = arith.constant dense<0.000000e+00> : vector<8x8xf32>
    %339 = tpu.matmul %336, %338, %cst_114 {dimension_numbers = #tpu.dot_dimension_numbers<[1], [1], [0], [0], [0, 0, 1, 0], [], []>} : vector<8x8xbf16>, vector<8x8xbf16>, vector<8x8xf32> -> vector<8x8xf32>
    "tpu.trace_stop"() : () -> ()
    %cst_115 = arith.constant 0.353553385 : f32
    %340 = vector.broadcast %cst_115 : f32 to vector<8x8xf32>
    %341 = arith.mulf %339, %340 : vector<8x8xf32>
    %342 = vector.extract_strided_slice %0 {offsets = [0, 0, 0], sizes = [1, 8, 8], strides = [1, 1, 1]} : vector<2x8x8xf32> to vector<1x8x8xf32>
    %343 = vector.shape_cast %342 : vector<1x8x8xf32> to vector<8x8xf32>
    %344 = arith.addf %341, %343 : vector<8x8xf32>
    %cst_116 = arith.constant dense<0xFF800000> : vector<8xf32>
    %345 = vector.multi_reduction <maximumf>, %344, %cst_116 [1] : vector<8x8xf32> to vector<8xf32>
    %346 = vector.shape_cast %345 : vector<8xf32> to vector<8x1xf32>
    %347 = vector.broadcast %346 : vector<8x1xf32> to vector<8x8xf32>
    %348 = arith.subf %344, %347 : vector<8x8xf32>
    %349 = math.exp %348 : vector<8x8xf32>
    %cst_117 = arith.constant dense<0.000000e+00> : vector<8xf32>
    %350 = vector.multi_reduction <add>, %349, %cst_117 [1] : vector<8x8xf32> to vector<8xf32>
    %351 = vector.shape_cast %350 : vector<8xf32> to vector<8x1xf32>
    %352 = tpu.reciprocal %351 {approx = true} : vector<8x1xf32> -> vector<8x1xf32>
    %353 = vector.broadcast %352 : vector<8x1xf32> to vector<8x8xf32>
    %354 = arith.mulf %349, %353 : vector<8x8xf32>
    %355 = arith.truncf %354 : vector<8x8xf32> to vector<8x8xbf16>
    %356 = vector.extract_strided_slice %334 {offsets = [0, 0], sizes = [8, 8], strides = [1, 1]} : vector<8x32xf32> to vector<8x8xf32>
    %357 = arith.truncf %356 : vector<8x8xf32> to vector<8x8xbf16>
    %cst_118 = arith.constant dense<0.000000e+00> : vector<8x8xf32>
    %358 = tpu.matmul %355, %357, %cst_118 {dimension_numbers = #tpu.dot_dimension_numbers<[1], [0], [0], [1], [0, 0, 1, 1], [], []>} : vector<8x8xbf16>, vector<8x8xbf16>, vector<8x8xf32> -> vector<8x8xf32>
    %359 = vector.extract_strided_slice %332 {offsets = [0, 8], sizes = [8, 8], strides = [1, 1]} : vector<8x32xf32> to vector<8x8xf32>
    %360 = arith.truncf %359 : vector<8x8xf32> to vector<8x8xbf16>
    %361 = vector.extract_strided_slice %333 {offsets = [0, 8], sizes = [8, 8], strides = [1, 1]} : vector<8x32xf32> to vector<8x8xf32>
    %362 = arith.truncf %361 : vector<8x8xf32> to vector<8x8xbf16>
    "tpu.trace_start"() <{level = 10 : i32, message = "qd,kd->qk"}> : () -> ()
    %cst_119 = arith.constant dense<0.000000e+00> : vector<8x8xf32>
    %363 = tpu.matmul %360, %362, %cst_119 {dimension_numbers = #tpu.dot_dimension_numbers<[1], [1], [0], [0], [0, 0, 1, 0], [], []>} : vector<8x8xbf16>, vector<8x8xbf16>, vector<8x8xf32> -> vector<8x8xf32>
    "tpu.trace_stop"() : () -> ()
    %cst_120 = arith.constant 0.353553385 : f32
    %364 = vector.broadcast %cst_120 : f32 to vector<8x8xf32>
    %365 = arith.mulf %363, %364 : vector<8x8xf32>
    %366 = vector.extract_strided_slice %0 {offsets = [0, 0, 0], sizes = [1, 8, 8], strides = [1, 1, 1]} : vector<2x8x8xf32> to vector<1x8x8xf32>
    %367 = vector.shape_cast %366 : vector<1x8x8xf32> to vector<8x8xf32>
    %368 = arith.addf %365, %367 : vector<8x8xf32>
    %cst_121 = arith.constant dense<0xFF800000> : vector<8xf32>
    %369 = vector.multi_reduction <maximumf>, %368, %cst_121 [1] : vector<8x8xf32> to vector<8xf32>
    %370 = vector.shape_cast %369 : vector<8xf32> to vector<8x1xf32>
    %371 = vector.broadcast %370 : vector<8x1xf32> to vector<8x8xf32>
    %372 = arith.subf %368, %371 : vector<8x8xf32>
    %373 = math.exp %372 : vector<8x8xf32>
    %cst_122 = arith.constant dense<0.000000e+00> : vector<8xf32>
    %374 = vector.multi_reduction <add>, %373, %cst_122 [1] : vector<8x8xf32> to vector<8xf32>
    %375 = vector.shape_cast %374 : vector<8xf32> to vector<8x1xf32>
    %376 = tpu.reciprocal %375 {approx = true} : vector<8x1xf32> -> vector<8x1xf32>
    %377 = vector.broadcast %376 : vector<8x1xf32> to vector<8x8xf32>
    %378 = arith.mulf %373, %377 : vector<8x8xf32>
    %379 = arith.truncf %378 : vector<8x8xf32> to vector<8x8xbf16>
    %380 = vector.extract_strided_slice %334 {offsets = [0, 8], sizes = [8, 8], strides = [1, 1]} : vector<8x32xf32> to vector<8x8xf32>
    %381 = arith.truncf %380 : vector<8x8xf32> to vector<8x8xbf16>
    %cst_123 = arith.constant dense<0.000000e+00> : vector<8x8xf32>
    %382 = tpu.matmul %379, %381, %cst_123 {dimension_numbers = #tpu.dot_dimension_numbers<[1], [0], [0], [1], [0, 0, 1, 1], [], []>} : vector<8x8xbf16>, vector<8x8xbf16>, vector<8x8xf32> -> vector<8x8xf32>
    %383 = vector.extract_strided_slice %332 {offsets = [0, 16], sizes = [8, 8], strides = [1, 1]} : vector<8x32xf32> to vector<8x8xf32>
    %384 = arith.truncf %383 : vector<8x8xf32> to vector<8x8xbf16>
    %385 = vector.extract_strided_slice %333 {offsets = [0, 16], sizes = [8, 8], strides = [1, 1]} : vector<8x32xf32> to vector<8x8xf32>
    %386 = arith.truncf %385 : vector<8x8xf32> to vector<8x8xbf16>
    "tpu.trace_start"() <{level = 10 : i32, message = "qd,kd->qk"}> : () -> ()
    %cst_124 = arith.constant dense<0.000000e+00> : vector<8x8xf32>
    %387 = tpu.matmul %384, %386, %cst_124 {dimension_numbers = #tpu.dot_dimension_numbers<[1], [1], [0], [0], [0, 0, 1, 0], [], []>} : vector<8x8xbf16>, vector<8x8xbf16>, vector<8x8xf32> -> vector<8x8xf32>
    "tpu.trace_stop"() : () -> ()
    %cst_125 = arith.constant 0.353553385 : f32
    %388 = vector.broadcast %cst_125 : f32 to vector<8x8xf32>
    %389 = arith.mulf %387, %388 : vector<8x8xf32>
    %390 = vector.extract_strided_slice %0 {offsets = [0, 0, 0], sizes = [1, 8, 8], strides = [1, 1, 1]} : vector<2x8x8xf32> to vector<1x8x8xf32>
    %391 = vector.shape_cast %390 : vector<1x8x8xf32> to vector<8x8xf32>
    %392 = arith.addf %389, %391 : vector<8x8xf32>
    %cst_126 = arith.constant dense<0xFF800000> : vector<8xf32>
    %393 = vector.multi_reduction <maximumf>, %392, %cst_126 [1] : vector<8x8xf32> to vector<8xf32>
    %394 = vector.shape_cast %393 : vector<8xf32> to vector<8x1xf32>
    %395 = vector.broadcast %394 : vector<8x1xf32> to vector<8x8xf32>
    %396 = arith.subf %392, %395 : vector<8x8xf32>
    %397 = math.exp %396 : vector<8x8xf32>
    %cst_127 = arith.constant dense<0.000000e+00> : vector<8xf32>
    %398 = vector.multi_reduction <add>, %397, %cst_127 [1] : vector<8x8xf32> to vector<8xf32>
    %399 = vector.shape_cast %398 : vector<8xf32> to vector<8x1xf32>
    %400 = tpu.reciprocal %399 {approx = true} : vector<8x1xf32> -> vector<8x1xf32>
    %401 = vector.broadcast %400 : vector<8x1xf32> to vector<8x8xf32>
    %402 = arith.mulf %397, %401 : vector<8x8xf32>
    %403 = arith.truncf %402 : vector<8x8xf32> to vector<8x8xbf16>
    %404 = vector.extract_strided_slice %334 {offsets = [0, 16], sizes = [8, 8], strides = [1, 1]} : vector<8x32xf32> to vector<8x8xf32>
    %405 = arith.truncf %404 : vector<8x8xf32> to vector<8x8xbf16>
    %cst_128 = arith.constant dense<0.000000e+00> : vector<8x8xf32>
    %406 = tpu.matmul %403, %405, %cst_128 {dimension_numbers = #tpu.dot_dimension_numbers<[1], [0], [0], [1], [0, 0, 1, 1], [], []>} : vector<8x8xbf16>, vector<8x8xbf16>, vector<8x8xf32> -> vector<8x8xf32>
    %407 = vector.extract_strided_slice %332 {offsets = [0, 24], sizes = [8, 8], strides = [1, 1]} : vector<8x32xf32> to vector<8x8xf32>
    %408 = arith.truncf %407 : vector<8x8xf32> to vector<8x8xbf16>
    %409 = vector.extract_strided_slice %333 {offsets = [0, 24], sizes = [8, 8], strides = [1, 1]} : vector<8x32xf32> to vector<8x8xf32>
    %410 = arith.truncf %409 : vector<8x8xf32> to vector<8x8xbf16>
    "tpu.trace_start"() <{level = 10 : i32, message = "qd,kd->qk"}> : () -> ()
    %cst_129 = arith.constant dense<0.000000e+00> : vector<8x8xf32>
    %411 = tpu.matmul %408, %410, %cst_129 {dimension_numbers = #tpu.dot_dimension_numbers<[1], [1], [0], [0], [0, 0, 1, 0], [], []>} : vector<8x8xbf16>, vector<8x8xbf16>, vector<8x8xf32> -> vector<8x8xf32>
    "tpu.trace_stop"() : () -> ()
    %cst_130 = arith.constant 0.353553385 : f32
    %412 = vector.broadcast %cst_130 : f32 to vector<8x8xf32>
    %413 = arith.mulf %411, %412 : vector<8x8xf32>
    %414 = vector.extract_strided_slice %0 {offsets = [0, 0, 0], sizes = [1, 8, 8], strides = [1, 1, 1]} : vector<2x8x8xf32> to vector<1x8x8xf32>
    %415 = vector.shape_cast %414 : vector<1x8x8xf32> to vector<8x8xf32>
    %416 = arith.addf %413, %415 : vector<8x8xf32>
    %cst_131 = arith.constant dense<0xFF800000> : vector<8xf32>
    %417 = vector.multi_reduction <maximumf>, %416, %cst_131 [1] : vector<8x8xf32> to vector<8xf32>
    %418 = vector.shape_cast %417 : vector<8xf32> to vector<8x1xf32>
    %419 = vector.broadcast %418 : vector<8x1xf32> to vector<8x8xf32>
    %420 = arith.subf %416, %419 : vector<8x8xf32>
    %421 = math.exp %420 : vector<8x8xf32>
    %cst_132 = arith.constant dense<0.000000e+00> : vector<8xf32>
    %422 = vector.multi_reduction <add>, %421, %cst_132 [1] : vector<8x8xf32> to vector<8xf32>
    %423 = vector.shape_cast %422 : vector<8xf32> to vector<8x1xf32>
    %424 = tpu.reciprocal %423 {approx = true} : vector<8x1xf32> -> vector<8x1xf32>
    %425 = vector.broadcast %424 : vector<8x1xf32> to vector<8x8xf32>
    %426 = arith.mulf %421, %425 : vector<8x8xf32>
    %427 = arith.truncf %426 : vector<8x8xf32> to vector<8x8xbf16>
    %428 = vector.extract_strided_slice %334 {offsets = [0, 24], sizes = [8, 8], strides = [1, 1]} : vector<8x32xf32> to vector<8x8xf32>
    %429 = arith.truncf %428 : vector<8x8xf32> to vector<8x8xbf16>
    %cst_133 = arith.constant dense<0.000000e+00> : vector<8x8xf32>
    %430 = tpu.matmul %427, %429, %cst_133 {dimension_numbers = #tpu.dot_dimension_numbers<[1], [0], [0], [1], [0, 0, 1, 1], [], []>} : vector<8x8xbf16>, vector<8x8xbf16>, vector<8x8xf32> -> vector<8x8xf32>
    %431 = tpu.concatenate %358, %382, %406, %430 in 1 : vector<8x8xf32>, vector<8x8xf32>, vector<8x8xf32>, vector<8x8xf32> -> vector<8x32xf32>
    %432 = vector.extract_strided_slice %329 {offsets = [8, 0], sizes = [8, 32], strides = [1, 1]} : vector<16x32xf32> to vector<8x32xf32>
    %433 = vector.extract_strided_slice %330 {offsets = [8, 0], sizes = [8, 32], strides = [1, 1]} : vector<16x32xf32> to vector<8x32xf32>
    %434 = vector.extract_strided_slice %331 {offsets = [8, 0], sizes = [8, 32], strides = [1, 1]} : vector<16x32xf32> to vector<8x32xf32>
    %435 = vector.extract_strided_slice %432 {offsets = [0, 0], sizes = [8, 8], strides = [1, 1]} : vector<8x32xf32> to vector<8x8xf32>
    %436 = arith.truncf %435 : vector<8x8xf32> to vector<8x8xbf16>
    %437 = vector.extract_strided_slice %433 {offsets = [0, 0], sizes = [8, 8], strides = [1, 1]} : vector<8x32xf32> to vector<8x8xf32>
    %438 = arith.truncf %437 : vector<8x8xf32> to vector<8x8xbf16>
    "tpu.trace_start"() <{level = 10 : i32, message = "qd,kd->qk"}> : () -> ()
    %cst_134 = arith.constant dense<0.000000e+00> : vector<8x8xf32>
    %439 = tpu.matmul %436, %438, %cst_134 {dimension_numbers = #tpu.dot_dimension_numbers<[1], [1], [0], [0], [0, 0, 1, 0], [], []>} : vector<8x8xbf16>, vector<8x8xbf16>, vector<8x8xf32> -> vector<8x8xf32>
    "tpu.trace_stop"() : () -> ()
    %cst_135 = arith.constant 0.353553385 : f32
    %440 = vector.broadcast %cst_135 : f32 to vector<8x8xf32>
    %441 = arith.mulf %439, %440 : vector<8x8xf32>
    %442 = vector.extract_strided_slice %0 {offsets = [1, 0, 0], sizes = [1, 8, 8], strides = [1, 1, 1]} : vector<2x8x8xf32> to vector<1x8x8xf32>
    %443 = vector.shape_cast %442 : vector<1x8x8xf32> to vector<8x8xf32>
    %444 = arith.addf %441, %443 : vector<8x8xf32>
    %cst_136 = arith.constant dense<0xFF800000> : vector<8xf32>
    %445 = vector.multi_reduction <maximumf>, %444, %cst_136 [1] : vector<8x8xf32> to vector<8xf32>
    %446 = vector.shape_cast %445 : vector<8xf32> to vector<8x1xf32>
    %447 = vector.broadcast %446 : vector<8x1xf32> to vector<8x8xf32>
    %448 = arith.subf %444, %447 : vector<8x8xf32>
    %449 = math.exp %448 : vector<8x8xf32>
    %cst_137 = arith.constant dense<0.000000e+00> : vector<8xf32>
    %450 = vector.multi_reduction <add>, %449, %cst_137 [1] : vector<8x8xf32> to vector<8xf32>
    %451 = vector.shape_cast %450 : vector<8xf32> to vector<8x1xf32>
    %452 = tpu.reciprocal %451 {approx = true} : vector<8x1xf32> -> vector<8x1xf32>
    %453 = vector.broadcast %452 : vector<8x1xf32> to vector<8x8xf32>
    %454 = arith.mulf %449, %453 : vector<8x8xf32>
    %455 = arith.truncf %454 : vector<8x8xf32> to vector<8x8xbf16>
    %456 = vector.extract_strided_slice %434 {offsets = [0, 0], sizes = [8, 8], strides = [1, 1]} : vector<8x32xf32> to vector<8x8xf32>
    %457 = arith.truncf %456 : vector<8x8xf32> to vector<8x8xbf16>
    %cst_138 = arith.constant dense<0.000000e+00> : vector<8x8xf32>
    %458 = tpu.matmul %455, %457, %cst_138 {dimension_numbers = #tpu.dot_dimension_numbers<[1], [0], [0], [1], [0, 0, 1, 1], [], []>} : vector<8x8xbf16>, vector<8x8xbf16>, vector<8x8xf32> -> vector<8x8xf32>
    %459 = vector.extract_strided_slice %432 {offsets = [0, 8], sizes = [8, 8], strides = [1, 1]} : vector<8x32xf32> to vector<8x8xf32>
    %460 = arith.truncf %459 : vector<8x8xf32> to vector<8x8xbf16>
    %461 = vector.extract_strided_slice %433 {offsets = [0, 8], sizes = [8, 8], strides = [1, 1]} : vector<8x32xf32> to vector<8x8xf32>
    %462 = arith.truncf %461 : vector<8x8xf32> to vector<8x8xbf16>
    "tpu.trace_start"() <{level = 10 : i32, message = "qd,kd->qk"}> : () -> ()
    %cst_139 = arith.constant dense<0.000000e+00> : vector<8x8xf32>
    %463 = tpu.matmul %460, %462, %cst_139 {dimension_numbers = #tpu.dot_dimension_numbers<[1], [1], [0], [0], [0, 0, 1, 0], [], []>} : vector<8x8xbf16>, vector<8x8xbf16>, vector<8x8xf32> -> vector<8x8xf32>
    "tpu.trace_stop"() : () -> ()
    %cst_140 = arith.constant 0.353553385 : f32
    %464 = vector.broadcast %cst_140 : f32 to vector<8x8xf32>
    %465 = arith.mulf %463, %464 : vector<8x8xf32>
    %466 = vector.extract_strided_slice %0 {offsets = [1, 0, 0], sizes = [1, 8, 8], strides = [1, 1, 1]} : vector<2x8x8xf32> to vector<1x8x8xf32>
    %467 = vector.shape_cast %466 : vector<1x8x8xf32> to vector<8x8xf32>
    %468 = arith.addf %465, %467 : vector<8x8xf32>
    %cst_141 = arith.constant dense<0xFF800000> : vector<8xf32>
    %469 = vector.multi_reduction <maximumf>, %468, %cst_141 [1] : vector<8x8xf32> to vector<8xf32>
    %470 = vector.shape_cast %469 : vector<8xf32> to vector<8x1xf32>
    %471 = vector.broadcast %470 : vector<8x1xf32> to vector<8x8xf32>
    %472 = arith.subf %468, %471 : vector<8x8xf32>
    %473 = math.exp %472 : vector<8x8xf32>
    %cst_142 = arith.constant dense<0.000000e+00> : vector<8xf32>
    %474 = vector.multi_reduction <add>, %473, %cst_142 [1] : vector<8x8xf32> to vector<8xf32>
    %475 = vector.shape_cast %474 : vector<8xf32> to vector<8x1xf32>
    %476 = tpu.reciprocal %475 {approx = true} : vector<8x1xf32> -> vector<8x1xf32>
    %477 = vector.broadcast %476 : vector<8x1xf32> to vector<8x8xf32>
    %478 = arith.mulf %473, %477 : vector<8x8xf32>
    %479 = arith.truncf %478 : vector<8x8xf32> to vector<8x8xbf16>
    %480 = vector.extract_strided_slice %434 {offsets = [0, 8], sizes = [8, 8], strides = [1, 1]} : vector<8x32xf32> to vector<8x8xf32>
    %481 = arith.truncf %480 : vector<8x8xf32> to vector<8x8xbf16>
    %cst_143 = arith.constant dense<0.000000e+00> : vector<8x8xf32>
    %482 = tpu.matmul %479, %481, %cst_143 {dimension_numbers = #tpu.dot_dimension_numbers<[1], [0], [0], [1], [0, 0, 1, 1], [], []>} : vector<8x8xbf16>, vector<8x8xbf16>, vector<8x8xf32> -> vector<8x8xf32>
    %483 = vector.extract_strided_slice %432 {offsets = [0, 16], sizes = [8, 8], strides = [1, 1]} : vector<8x32xf32> to vector<8x8xf32>
    %484 = arith.truncf %483 : vector<8x8xf32> to vector<8x8xbf16>
    %485 = vector.extract_strided_slice %433 {offsets = [0, 16], sizes = [8, 8], strides = [1, 1]} : vector<8x32xf32> to vector<8x8xf32>
    %486 = arith.truncf %485 : vector<8x8xf32> to vector<8x8xbf16>
    "tpu.trace_start"() <{level = 10 : i32, message = "qd,kd->qk"}> : () -> ()
    %cst_144 = arith.constant dense<0.000000e+00> : vector<8x8xf32>
    %487 = tpu.matmul %484, %486, %cst_144 {dimension_numbers = #tpu.dot_dimension_numbers<[1], [1], [0], [0], [0, 0, 1, 0], [], []>} : vector<8x8xbf16>, vector<8x8xbf16>, vector<8x8xf32> -> vector<8x8xf32>
    "tpu.trace_stop"() : () -> ()
    %cst_145 = arith.constant 0.353553385 : f32
    %488 = vector.broadcast %cst_145 : f32 to vector<8x8xf32>
    %489 = arith.mulf %487, %488 : vector<8x8xf32>
    %490 = vector.extract_strided_slice %0 {offsets = [1, 0, 0], sizes = [1, 8, 8], strides = [1, 1, 1]} : vector<2x8x8xf32> to vector<1x8x8xf32>
    %491 = vector.shape_cast %490 : vector<1x8x8xf32> to vector<8x8xf32>
    %492 = arith.addf %489, %491 : vector<8x8xf32>
    %cst_146 = arith.constant dense<0xFF800000> : vector<8xf32>
    %493 = vector.multi_reduction <maximumf>, %492, %cst_146 [1] : vector<8x8xf32> to vector<8xf32>
    %494 = vector.shape_cast %493 : vector<8xf32> to vector<8x1xf32>
    %495 = vector.broadcast %494 : vector<8x1xf32> to vector<8x8xf32>
    %496 = arith.subf %492, %495 : vector<8x8xf32>
    %497 = math.exp %496 : vector<8x8xf32>
    %cst_147 = arith.constant dense<0.000000e+00> : vector<8xf32>
    %498 = vector.multi_reduction <add>, %497, %cst_147 [1] : vector<8x8xf32> to vector<8xf32>
    %499 = vector.shape_cast %498 : vector<8xf32> to vector<8x1xf32>
    %500 = tpu.reciprocal %499 {approx = true} : vector<8x1xf32> -> vector<8x1xf32>
    %501 = vector.broadcast %500 : vector<8x1xf32> to vector<8x8xf32>
    %502 = arith.mulf %497, %501 : vector<8x8xf32>
    %503 = arith.truncf %502 : vector<8x8xf32> to vector<8x8xbf16>
    %504 = vector.extract_strided_slice %434 {offsets = [0, 16], sizes = [8, 8], strides = [1, 1]} : vector<8x32xf32> to vector<8x8xf32>
    %505 = arith.truncf %504 : vector<8x8xf32> to vector<8x8xbf16>
    %cst_148 = arith.constant dense<0.000000e+00> : vector<8x8xf32>
    %506 = tpu.matmul %503, %505, %cst_148 {dimension_numbers = #tpu.dot_dimension_numbers<[1], [0], [0], [1], [0, 0, 1, 1], [], []>} : vector<8x8xbf16>, vector<8x8xbf16>, vector<8x8xf32> -> vector<8x8xf32>
    %507 = vector.extract_strided_slice %432 {offsets = [0, 24], sizes = [8, 8], strides = [1, 1]} : vector<8x32xf32> to vector<8x8xf32>
    %508 = arith.truncf %507 : vector<8x8xf32> to vector<8x8xbf16>
    %509 = vector.extract_strided_slice %433 {offsets = [0, 24], sizes = [8, 8], strides = [1, 1]} : vector<8x32xf32> to vector<8x8xf32>
    %510 = arith.truncf %509 : vector<8x8xf32> to vector<8x8xbf16>
    "tpu.trace_start"() <{level = 10 : i32, message = "qd,kd->qk"}> : () -> ()
    %cst_149 = arith.constant dense<0.000000e+00> : vector<8x8xf32>
    %511 = tpu.matmul %508, %510, %cst_149 {dimension_numbers = #tpu.dot_dimension_numbers<[1], [1], [0], [0], [0, 0, 1, 0], [], []>} : vector<8x8xbf16>, vector<8x8xbf16>, vector<8x8xf32> -> vector<8x8xf32>
    "tpu.trace_stop"() : () -> ()
    %cst_150 = arith.constant 0.353553385 : f32
    %512 = vector.broadcast %cst_150 : f32 to vector<8x8xf32>
    %513 = arith.mulf %511, %512 : vector<8x8xf32>
    %514 = vector.extract_strided_slice %0 {offsets = [1, 0, 0], sizes = [1, 8, 8], strides = [1, 1, 1]} : vector<2x8x8xf32> to vector<1x8x8xf32>
    %515 = vector.shape_cast %514 : vector<1x8x8xf32> to vector<8x8xf32>
    %516 = arith.addf %513, %515 : vector<8x8xf32>
    %cst_151 = arith.constant dense<0xFF800000> : vector<8xf32>
    %517 = vector.multi_reduction <maximumf>, %516, %cst_151 [1] : vector<8x8xf32> to vector<8xf32>
    %518 = vector.shape_cast %517 : vector<8xf32> to vector<8x1xf32>
    %519 = vector.broadcast %518 : vector<8x1xf32> to vector<8x8xf32>
    %520 = arith.subf %516, %519 : vector<8x8xf32>
    %521 = math.exp %520 : vector<8x8xf32>
    %cst_152 = arith.constant dense<0.000000e+00> : vector<8xf32>
    %522 = vector.multi_reduction <add>, %521, %cst_152 [1] : vector<8x8xf32> to vector<8xf32>
    %523 = vector.shape_cast %522 : vector<8xf32> to vector<8x1xf32>
    %524 = tpu.reciprocal %523 {approx = true} : vector<8x1xf32> -> vector<8x1xf32>
    %525 = vector.broadcast %524 : vector<8x1xf32> to vector<8x8xf32>
    %526 = arith.mulf %521, %525 : vector<8x8xf32>
    %527 = arith.truncf %526 : vector<8x8xf32> to vector<8x8xbf16>
    %528 = vector.extract_strided_slice %434 {offsets = [0, 24], sizes = [8, 8], strides = [1, 1]} : vector<8x32xf32> to vector<8x8xf32>
    %529 = arith.truncf %528 : vector<8x8xf32> to vector<8x8xbf16>
    %cst_153 = arith.constant dense<0.000000e+00> : vector<8x8xf32>
    %530 = tpu.matmul %527, %529, %cst_153 {dimension_numbers = #tpu.dot_dimension_numbers<[1], [0], [0], [1], [0, 0, 1, 1], [], []>} : vector<8x8xbf16>, vector<8x8xbf16>, vector<8x8xf32> -> vector<8x8xf32>
    %531 = tpu.concatenate %458, %482, %506, %530 in 1 : vector<8x8xf32>, vector<8x8xf32>, vector<8x8xf32>, vector<8x8xf32> -> vector<8x32xf32>
    %532 = tpu.concatenate %431, %531 in 0 : vector<8x32xf32>, vector<8x32xf32> -> vector<16x32xf32>
    %c1_154 = arith.constant 1 : index
    %c0_155 = arith.constant 0 : index
    %c0_156 = arith.constant 0 : index
    %533 = vector.load %arg9[%c1_154, %c0_155, %c0_156] : memref<2x32x32xbf16, #tpu.memory_space<vmem>>, vector<1x32x32xbf16>
    %534 = vector.shape_cast %533 : vector<1x32x32xbf16> to vector<32x32xbf16>
    %c1_157 = arith.constant 1 : index
    %c0_158 = arith.constant 0 : index
    %c0_159 = arith.constant 0 : index
    %535 = vector.load %arg10[%c1_157, %c0_158, %c0_159] : memref<2x1x32xf32, #tpu.memory_space<vmem>>, vector<1x1x32xf32>
    %536 = vector.shape_cast %535 : vector<1x1x32xf32> to vector<1x32xf32>
    %537 = arith.truncf %532 : vector<16x32xf32> to vector<16x32xbf16>
    %cst_160 = arith.constant dense<0.000000e+00> : vector<16x32xf32>
    %538 = tpu.matmul %537, %534, %cst_160 {dimension_numbers = #tpu.dot_dimension_numbers<[1], [0], [0], [1], [0, 0, 1, 1], [], []>} : vector<16x32xbf16>, vector<32x32xbf16>, vector<16x32xf32> -> vector<16x32xf32>
    %539 = vector.broadcast %536 : vector<1x32xf32> to vector<16x32xf32>
    %540 = arith.addf %538, %539 : vector<16x32xf32>
    %541 = arith.addf %294, %540 : vector<16x32xf32>
    %c1_161 = arith.constant 1 : index
    %c0_162 = arith.constant 0 : index
    %c0_163 = arith.constant 0 : index
    %542 = vector.load %arg11[%c1_161, %c0_162, %c0_163] : memref<2x1x32xf32, #tpu.memory_space<vmem>>, vector<1x1x32xf32>
    %543 = vector.shape_cast %542 : vector<1x1x32xf32> to vector<1x32xf32>
    %c1_164 = arith.constant 1 : index
    %c0_165 = arith.constant 0 : index
    %c0_166 = arith.constant 0 : index
    %544 = vector.load %arg12[%c1_164, %c0_165, %c0_166] : memref<2x1x32xf32, #tpu.memory_space<vmem>>, vector<1x1x32xf32>
    %545 = vector.shape_cast %544 : vector<1x1x32xf32> to vector<1x32xf32>
    %cst_167 = arith.constant dense<0.000000e+00> : vector<16xf32>
    %546 = vector.multi_reduction <add>, %541, %cst_167 [1] : vector<16x32xf32> to vector<16xf32>
    %547 = vector.shape_cast %546 : vector<16xf32> to vector<16x1xf32>
    %cst_168 = arith.constant 3.200000e+01 : f32
    %548 = vector.broadcast %cst_168 : f32 to vector<16x1xf32>
    %549 = arith.divf %547, %548 : vector<16x1xf32>
    %550 = vector.broadcast %549 : vector<16x1xf32> to vector<16x32xf32>
    %551 = arith.subf %541, %550 : vector<16x32xf32>
    %552 = arith.mulf %551, %551 : vector<16x32xf32>
    %cst_169 = arith.constant dense<0.000000e+00> : vector<16xf32>
    %553 = vector.multi_reduction <add>, %552, %cst_169 [1] : vector<16x32xf32> to vector<16xf32>
    %554 = vector.shape_cast %553 : vector<16xf32> to vector<16x1xf32>
    %cst_170 = arith.constant 3.200000e+01 : f32
    %555 = vector.broadcast %cst_170 : f32 to vector<16x1xf32>
    %556 = arith.divf %554, %555 : vector<16x1xf32>
    %557 = vector.broadcast %549 : vector<16x1xf32> to vector<16x32xf32>
    %558 = arith.subf %541, %557 : vector<16x32xf32>
    %cst_171 = arith.constant 9.99999997E-7 : f32
    %559 = vector.broadcast %cst_171 : f32 to vector<16x1xf32>
    %560 = arith.addf %556, %559 : vector<16x1xf32>
    %561 = math.sqrt %560 : vector<16x1xf32>
    %562 = vector.broadcast %561 : vector<16x1xf32> to vector<16x32xf32>
    %563 = arith.divf %558, %562 : vector<16x32xf32>
    %564 = vector.broadcast %543 : vector<1x32xf32> to vector<16x32xf32>
    %565 = arith.mulf %563, %564 : vector<16x32xf32>
    %566 = vector.broadcast %545 : vector<1x32xf32> to vector<16x32xf32>
    %567 = arith.addf %565, %566 : vector<16x32xf32>
    %c1_172 = arith.constant 1 : index
    %c0_173 = arith.constant 0 : index
    %c0_174 = arith.constant 0 : index
    %568 = vector.load %arg13[%c1_172, %c0_173, %c0_174] : memref<2x32x64xbf16, #tpu.memory_space<vmem>>, vector<1x32x64xbf16>
    %569 = vector.shape_cast %568 : vector<1x32x64xbf16> to vector<32x64xbf16>
    %c1_175 = arith.constant 1 : index
    %c0_176 = arith.constant 0 : index
    %c0_177 = arith.constant 0 : index
    %570 = vector.load %arg14[%c1_175, %c0_176, %c0_177] : memref<2x1x64xf32, #tpu.memory_space<vmem>>, vector<1x1x64xf32>
    %571 = vector.shape_cast %570 : vector<1x1x64xf32> to vector<1x64xf32>
    %572 = arith.truncf %567 : vector<16x32xf32> to vector<16x32xbf16>
    %cst_178 = arith.constant dense<0.000000e+00> : vector<16x64xf32>
    %573 = tpu.matmul %572, %569, %cst_178 {dimension_numbers = #tpu.dot_dimension_numbers<[1], [0], [0], [1], [0, 0, 1, 1], [], []>} : vector<16x32xbf16>, vector<32x64xbf16>, vector<16x64xf32> -> vector<16x64xf32>
    %574 = vector.broadcast %571 : vector<1x64xf32> to vector<16x64xf32>
    %575 = arith.addf %573, %574 : vector<16x64xf32>
    %cst_179 = arith.constant 0.000000e+00 : f32
    %576 = vector.broadcast %cst_179 : f32 to vector<16x64xf32>
    %577 = arith.maximumf %575, %576 : vector<16x64xf32>
    %c1_180 = arith.constant 1 : index
    %c0_181 = arith.constant 0 : index
    %c0_182 = arith.constant 0 : index
    %578 = vector.load %arg15[%c1_180, %c0_181, %c0_182] : memref<2x64x32xbf16, #tpu.memory_space<vmem>>, vector<1x64x32xbf16>
    %579 = vector.shape_cast %578 : vector<1x64x32xbf16> to vector<64x32xbf16>
    %c1_183 = arith.constant 1 : index
    %c0_184 = arith.constant 0 : index
    %c0_185 = arith.constant 0 : index
    %580 = vector.load %arg16[%c1_183, %c0_184, %c0_185] : memref<2x1x32xf32, #tpu.memory_space<vmem>>, vector<1x1x32xf32>
    %581 = vector.shape_cast %580 : vector<1x1x32xf32> to vector<1x32xf32>
    %582 = arith.truncf %577 : vector<16x64xf32> to vector<16x64xbf16>
    %cst_186 = arith.constant dense<0.000000e+00> : vector<16x32xf32>
    %583 = tpu.matmul %582, %579, %cst_186 {dimension_numbers = #tpu.dot_dimension_numbers<[1], [0], [0], [1], [0, 0, 1, 1], [], []>} : vector<16x64xbf16>, vector<64x32xbf16>, vector<16x32xf32> -> vector<16x32xf32>
    %584 = vector.broadcast %581 : vector<1x32xf32> to vector<16x32xf32>
    %585 = arith.addf %583, %584 : vector<16x32xf32>
    %586 = arith.addf %541, %585 : vector<16x32xf32>
    %c0_187 = arith.constant 0 : index
    %c0_188 = arith.constant 0 : index
    %587 = vector.load %arg17[%c0_187, %c0_188] : memref<1x32xf32, #tpu.memory_space<vmem>>, vector<1x32xf32>
    %c0_189 = arith.constant 0 : index
    %c0_190 = arith.constant 0 : index
    %588 = vector.load %arg18[%c0_189, %c0_190] : memref<1x32xf32, #tpu.memory_space<vmem>>, vector<1x32xf32>
    %cst_191 = arith.constant dense<0.000000e+00> : vector<16xf32>
    %589 = vector.multi_reduction <add>, %586, %cst_191 [1] : vector<16x32xf32> to vector<16xf32>
    %590 = vector.shape_cast %589 : vector<16xf32> to vector<16x1xf32>
    %cst_192 = arith.constant 3.200000e+01 : f32
    %591 = vector.broadcast %cst_192 : f32 to vector<16x1xf32>
    %592 = arith.divf %590, %591 : vector<16x1xf32>
    %593 = vector.broadcast %592 : vector<16x1xf32> to vector<16x32xf32>
    %594 = arith.subf %586, %593 : vector<16x32xf32>
    %595 = arith.mulf %594, %594 : vector<16x32xf32>
    %cst_193 = arith.constant dense<0.000000e+00> : vector<16xf32>
    %596 = vector.multi_reduction <add>, %595, %cst_193 [1] : vector<16x32xf32> to vector<16xf32>
    %597 = vector.shape_cast %596 : vector<16xf32> to vector<16x1xf32>
    %cst_194 = arith.constant 3.200000e+01 : f32
    %598 = vector.broadcast %cst_194 : f32 to vector<16x1xf32>
    %599 = arith.divf %597, %598 : vector<16x1xf32>
    %600 = vector.broadcast %592 : vector<16x1xf32> to vector<16x32xf32>
    %601 = arith.subf %586, %600 : vector<16x32xf32>
    %cst_195 = arith.constant 9.99999997E-7 : f32
    %602 = vector.broadcast %cst_195 : f32 to vector<16x1xf32>
    %603 = arith.addf %599, %602 : vector<16x1xf32>
    %604 = math.sqrt %603 : vector<16x1xf32>
    %605 = vector.broadcast %604 : vector<16x1xf32> to vector<16x32xf32>
    %606 = arith.divf %601, %605 : vector<16x32xf32>
    %607 = vector.broadcast %587 : vector<1x32xf32> to vector<16x32xf32>
    %608 = arith.mulf %606, %607 : vector<16x32xf32>
    %609 = vector.broadcast %588 : vector<1x32xf32> to vector<16x32xf32>
    %610 = arith.addf %608, %609 : vector<16x32xf32>
    %c0_196 = arith.constant 0 : index
    %c0_197 = arith.constant 0 : index
    %611 = vector.load %arg2[%c0_196, %c0_197] : memref<16x32xf32, #tpu.memory_space<vmem>>, vector<16x32xf32>
    %c0_198 = arith.constant 0 : index
    %c0_199 = arith.constant 0 : index
    %c0_200 = arith.constant 0 : index
    %612 = vector.load %arg19[%c0_198, %c0_199, %c0_200] : memref<2x1x32xf32, #tpu.memory_space<vmem>>, vector<1x1x32xf32>
    %613 = vector.shape_cast %612 : vector<1x1x32xf32> to vector<1x32xf32>
    %c0_201 = arith.constant 0 : index
    %c0_202 = arith.constant 0 : index
    %c0_203 = arith.constant 0 : index
    %614 = vector.load %arg20[%c0_201, %c0_202, %c0_203] : memref<2x1x32xf32, #tpu.memory_space<vmem>>, vector<1x1x32xf32>
    %615 = vector.shape_cast %614 : vector<1x1x32xf32> to vector<1x32xf32>
    %cst_204 = arith.constant dense<0.000000e+00> : vector<16xf32>
    %616 = vector.multi_reduction <add>, %611, %cst_204 [1] : vector<16x32xf32> to vector<16xf32>
    %617 = vector.shape_cast %616 : vector<16xf32> to vector<16x1xf32>
    %cst_205 = arith.constant 3.200000e+01 : f32
    %618 = vector.broadcast %cst_205 : f32 to vector<16x1xf32>
    %619 = arith.divf %617, %618 : vector<16x1xf32>
    %620 = vector.broadcast %619 : vector<16x1xf32> to vector<16x32xf32>
    %621 = arith.subf %611, %620 : vector<16x32xf32>
    %622 = arith.mulf %621, %621 : vector<16x32xf32>
    %cst_206 = arith.constant dense<0.000000e+00> : vector<16xf32>
    %623 = vector.multi_reduction <add>, %622, %cst_206 [1] : vector<16x32xf32> to vector<16xf32>
    %624 = vector.shape_cast %623 : vector<16xf32> to vector<16x1xf32>
    %cst_207 = arith.constant 3.200000e+01 : f32
    %625 = vector.broadcast %cst_207 : f32 to vector<16x1xf32>
    %626 = arith.divf %624, %625 : vector<16x1xf32>
    %627 = vector.broadcast %619 : vector<16x1xf32> to vector<16x32xf32>
    %628 = arith.subf %611, %627 : vector<16x32xf32>
    %cst_208 = arith.constant 9.99999997E-7 : f32
    %629 = vector.broadcast %cst_208 : f32 to vector<16x1xf32>
    %630 = arith.addf %626, %629 : vector<16x1xf32>
    %631 = math.sqrt %630 : vector<16x1xf32>
    %632 = vector.broadcast %631 : vector<16x1xf32> to vector<16x32xf32>
    %633 = arith.divf %628, %632 : vector<16x32xf32>
    %634 = vector.broadcast %613 : vector<1x32xf32> to vector<16x32xf32>
    %635 = arith.mulf %633, %634 : vector<16x32xf32>
    %636 = vector.broadcast %615 : vector<1x32xf32> to vector<16x32xf32>
    %637 = arith.addf %635, %636 : vector<16x32xf32>
    %c0_209 = arith.constant 0 : index
    %c0_210 = arith.constant 0 : index
    %c0_211 = arith.constant 0 : index
    %638 = vector.load %arg21[%c0_209, %c0_210, %c0_211] : memref<2x32x96xbf16, #tpu.memory_space<vmem>>, vector<1x32x96xbf16>
    %639 = vector.shape_cast %638 : vector<1x32x96xbf16> to vector<32x96xbf16>
    %c0_212 = arith.constant 0 : index
    %c0_213 = arith.constant 0 : index
    %c0_214 = arith.constant 0 : index
    %640 = vector.load %arg22[%c0_212, %c0_213, %c0_214] : memref<2x1x96xf32, #tpu.memory_space<vmem>>, vector<1x1x96xf32>
    %641 = vector.shape_cast %640 : vector<1x1x96xf32> to vector<1x96xf32>
    %642 = arith.truncf %637 : vector<16x32xf32> to vector<16x32xbf16>
    %cst_215 = arith.constant dense<0.000000e+00> : vector<16x96xf32>
    %643 = tpu.matmul %642, %639, %cst_215 {dimension_numbers = #tpu.dot_dimension_numbers<[1], [0], [0], [1], [0, 0, 1, 1], [], []>} : vector<16x32xbf16>, vector<32x96xbf16>, vector<16x96xf32> -> vector<16x96xf32>
    %644 = vector.broadcast %641 : vector<1x96xf32> to vector<16x96xf32>
    %645 = arith.addf %643, %644 : vector<16x96xf32>
    %646 = vector.extract_strided_slice %645 {offsets = [0, 0], sizes = [16, 32], strides = [1, 1]} : vector<16x96xf32> to vector<16x32xf32>
    %647 = vector.extract_strided_slice %645 {offsets = [0, 32], sizes = [16, 32], strides = [1, 1]} : vector<16x96xf32> to vector<16x32xf32>
    %648 = vector.extract_strided_slice %645 {offsets = [0, 64], sizes = [16, 32], strides = [1, 1]} : vector<16x96xf32> to vector<16x32xf32>
    %649 = vector.extract_strided_slice %646 {offsets = [0, 0], sizes = [8, 32], strides = [1, 1]} : vector<16x32xf32> to vector<8x32xf32>
    %650 = vector.extract_strided_slice %647 {offsets = [0, 0], sizes = [8, 32], strides = [1, 1]} : vector<16x32xf32> to vector<8x32xf32>
    %651 = vector.extract_strided_slice %648 {offsets = [0, 0], sizes = [8, 32], strides = [1, 1]} : vector<16x32xf32> to vector<8x32xf32>
    %652 = vector.extract_strided_slice %649 {offsets = [0, 0], sizes = [8, 8], strides = [1, 1]} : vector<8x32xf32> to vector<8x8xf32>
    %653 = arith.truncf %652 : vector<8x8xf32> to vector<8x8xbf16>
    %654 = vector.extract_strided_slice %650 {offsets = [0, 0], sizes = [8, 8], strides = [1, 1]} : vector<8x32xf32> to vector<8x8xf32>
    %655 = arith.truncf %654 : vector<8x8xf32> to vector<8x8xbf16>
    "tpu.trace_start"() <{level = 10 : i32, message = "qd,kd->qk"}> : () -> ()
    %cst_216 = arith.constant dense<0.000000e+00> : vector<8x8xf32>
    %656 = tpu.matmul %653, %655, %cst_216 {dimension_numbers = #tpu.dot_dimension_numbers<[1], [1], [0], [0], [0, 0, 1, 0], [], []>} : vector<8x8xbf16>, vector<8x8xbf16>, vector<8x8xf32> -> vector<8x8xf32>
    "tpu.trace_stop"() : () -> ()
    %cst_217 = arith.constant 0.353553385 : f32
    %657 = vector.broadcast %cst_217 : f32 to vector<8x8xf32>
    %658 = arith.mulf %656, %657 : vector<8x8xf32>
    %659 = vector.extract_strided_slice %1 {offsets = [0, 0, 0], sizes = [1, 8, 8], strides = [1, 1, 1]} : vector<2x8x8xf32> to vector<1x8x8xf32>
    %660 = vector.shape_cast %659 : vector<1x8x8xf32> to vector<8x8xf32>
    %661 = arith.addf %658, %660 : vector<8x8xf32>
    %cst_218 = arith.constant dense<0xFF800000> : vector<8xf32>
    %662 = vector.multi_reduction <maximumf>, %661, %cst_218 [1] : vector<8x8xf32> to vector<8xf32>
    %663 = vector.shape_cast %662 : vector<8xf32> to vector<8x1xf32>
    %664 = vector.broadcast %663 : vector<8x1xf32> to vector<8x8xf32>
    %665 = arith.subf %661, %664 : vector<8x8xf32>
    %666 = math.exp %665 : vector<8x8xf32>
    %cst_219 = arith.constant dense<0.000000e+00> : vector<8xf32>
    %667 = vector.multi_reduction <add>, %666, %cst_219 [1] : vector<8x8xf32> to vector<8xf32>
    %668 = vector.shape_cast %667 : vector<8xf32> to vector<8x1xf32>
    %669 = tpu.reciprocal %668 {approx = true} : vector<8x1xf32> -> vector<8x1xf32>
    %670 = vector.broadcast %669 : vector<8x1xf32> to vector<8x8xf32>
    %671 = arith.mulf %666, %670 : vector<8x8xf32>
    %672 = arith.truncf %671 : vector<8x8xf32> to vector<8x8xbf16>
    %673 = vector.extract_strided_slice %651 {offsets = [0, 0], sizes = [8, 8], strides = [1, 1]} : vector<8x32xf32> to vector<8x8xf32>
    %674 = arith.truncf %673 : vector<8x8xf32> to vector<8x8xbf16>
    %cst_220 = arith.constant dense<0.000000e+00> : vector<8x8xf32>
    %675 = tpu.matmul %672, %674, %cst_220 {dimension_numbers = #tpu.dot_dimension_numbers<[1], [0], [0], [1], [0, 0, 1, 1], [], []>} : vector<8x8xbf16>, vector<8x8xbf16>, vector<8x8xf32> -> vector<8x8xf32>
    %676 = vector.extract_strided_slice %649 {offsets = [0, 8], sizes = [8, 8], strides = [1, 1]} : vector<8x32xf32> to vector<8x8xf32>
    %677 = arith.truncf %676 : vector<8x8xf32> to vector<8x8xbf16>
    %678 = vector.extract_strided_slice %650 {offsets = [0, 8], sizes = [8, 8], strides = [1, 1]} : vector<8x32xf32> to vector<8x8xf32>
    %679 = arith.truncf %678 : vector<8x8xf32> to vector<8x8xbf16>
    "tpu.trace_start"() <{level = 10 : i32, message = "qd,kd->qk"}> : () -> ()
    %cst_221 = arith.constant dense<0.000000e+00> : vector<8x8xf32>
    %680 = tpu.matmul %677, %679, %cst_221 {dimension_numbers = #tpu.dot_dimension_numbers<[1], [1], [0], [0], [0, 0, 1, 0], [], []>} : vector<8x8xbf16>, vector<8x8xbf16>, vector<8x8xf32> -> vector<8x8xf32>
    "tpu.trace_stop"() : () -> ()
    %cst_222 = arith.constant 0.353553385 : f32
    %681 = vector.broadcast %cst_222 : f32 to vector<8x8xf32>
    %682 = arith.mulf %680, %681 : vector<8x8xf32>
    %683 = vector.extract_strided_slice %1 {offsets = [0, 0, 0], sizes = [1, 8, 8], strides = [1, 1, 1]} : vector<2x8x8xf32> to vector<1x8x8xf32>
    %684 = vector.shape_cast %683 : vector<1x8x8xf32> to vector<8x8xf32>
    %685 = arith.addf %682, %684 : vector<8x8xf32>
    %cst_223 = arith.constant dense<0xFF800000> : vector<8xf32>
    %686 = vector.multi_reduction <maximumf>, %685, %cst_223 [1] : vector<8x8xf32> to vector<8xf32>
    %687 = vector.shape_cast %686 : vector<8xf32> to vector<8x1xf32>
    %688 = vector.broadcast %687 : vector<8x1xf32> to vector<8x8xf32>
    %689 = arith.subf %685, %688 : vector<8x8xf32>
    %690 = math.exp %689 : vector<8x8xf32>
    %cst_224 = arith.constant dense<0.000000e+00> : vector<8xf32>
    %691 = vector.multi_reduction <add>, %690, %cst_224 [1] : vector<8x8xf32> to vector<8xf32>
    %692 = vector.shape_cast %691 : vector<8xf32> to vector<8x1xf32>
    %693 = tpu.reciprocal %692 {approx = true} : vector<8x1xf32> -> vector<8x1xf32>
    %694 = vector.broadcast %693 : vector<8x1xf32> to vector<8x8xf32>
    %695 = arith.mulf %690, %694 : vector<8x8xf32>
    %696 = arith.truncf %695 : vector<8x8xf32> to vector<8x8xbf16>
    %697 = vector.extract_strided_slice %651 {offsets = [0, 8], sizes = [8, 8], strides = [1, 1]} : vector<8x32xf32> to vector<8x8xf32>
    %698 = arith.truncf %697 : vector<8x8xf32> to vector<8x8xbf16>
    %cst_225 = arith.constant dense<0.000000e+00> : vector<8x8xf32>
    %699 = tpu.matmul %696, %698, %cst_225 {dimension_numbers = #tpu.dot_dimension_numbers<[1], [0], [0], [1], [0, 0, 1, 1], [], []>} : vector<8x8xbf16>, vector<8x8xbf16>, vector<8x8xf32> -> vector<8x8xf32>
    %700 = vector.extract_strided_slice %649 {offsets = [0, 16], sizes = [8, 8], strides = [1, 1]} : vector<8x32xf32> to vector<8x8xf32>
    %701 = arith.truncf %700 : vector<8x8xf32> to vector<8x8xbf16>
    %702 = vector.extract_strided_slice %650 {offsets = [0, 16], sizes = [8, 8], strides = [1, 1]} : vector<8x32xf32> to vector<8x8xf32>
    %703 = arith.truncf %702 : vector<8x8xf32> to vector<8x8xbf16>
    "tpu.trace_start"() <{level = 10 : i32, message = "qd,kd->qk"}> : () -> ()
    %cst_226 = arith.constant dense<0.000000e+00> : vector<8x8xf32>
    %704 = tpu.matmul %701, %703, %cst_226 {dimension_numbers = #tpu.dot_dimension_numbers<[1], [1], [0], [0], [0, 0, 1, 0], [], []>} : vector<8x8xbf16>, vector<8x8xbf16>, vector<8x8xf32> -> vector<8x8xf32>
    "tpu.trace_stop"() : () -> ()
    %cst_227 = arith.constant 0.353553385 : f32
    %705 = vector.broadcast %cst_227 : f32 to vector<8x8xf32>
    %706 = arith.mulf %704, %705 : vector<8x8xf32>
    %707 = vector.extract_strided_slice %1 {offsets = [0, 0, 0], sizes = [1, 8, 8], strides = [1, 1, 1]} : vector<2x8x8xf32> to vector<1x8x8xf32>
    %708 = vector.shape_cast %707 : vector<1x8x8xf32> to vector<8x8xf32>
    %709 = arith.addf %706, %708 : vector<8x8xf32>
    %cst_228 = arith.constant dense<0xFF800000> : vector<8xf32>
    %710 = vector.multi_reduction <maximumf>, %709, %cst_228 [1] : vector<8x8xf32> to vector<8xf32>
    %711 = vector.shape_cast %710 : vector<8xf32> to vector<8x1xf32>
    %712 = vector.broadcast %711 : vector<8x1xf32> to vector<8x8xf32>
    %713 = arith.subf %709, %712 : vector<8x8xf32>
    %714 = math.exp %713 : vector<8x8xf32>
    %cst_229 = arith.constant dense<0.000000e+00> : vector<8xf32>
    %715 = vector.multi_reduction <add>, %714, %cst_229 [1] : vector<8x8xf32> to vector<8xf32>
    %716 = vector.shape_cast %715 : vector<8xf32> to vector<8x1xf32>
    %717 = tpu.reciprocal %716 {approx = true} : vector<8x1xf32> -> vector<8x1xf32>
    %718 = vector.broadcast %717 : vector<8x1xf32> to vector<8x8xf32>
    %719 = arith.mulf %714, %718 : vector<8x8xf32>
    %720 = arith.truncf %719 : vector<8x8xf32> to vector<8x8xbf16>
    %721 = vector.extract_strided_slice %651 {offsets = [0, 16], sizes = [8, 8], strides = [1, 1]} : vector<8x32xf32> to vector<8x8xf32>
    %722 = arith.truncf %721 : vector<8x8xf32> to vector<8x8xbf16>
    %cst_230 = arith.constant dense<0.000000e+00> : vector<8x8xf32>
    %723 = tpu.matmul %720, %722, %cst_230 {dimension_numbers = #tpu.dot_dimension_numbers<[1], [0], [0], [1], [0, 0, 1, 1], [], []>} : vector<8x8xbf16>, vector<8x8xbf16>, vector<8x8xf32> -> vector<8x8xf32>
    %724 = vector.extract_strided_slice %649 {offsets = [0, 24], sizes = [8, 8], strides = [1, 1]} : vector<8x32xf32> to vector<8x8xf32>
    %725 = arith.truncf %724 : vector<8x8xf32> to vector<8x8xbf16>
    %726 = vector.extract_strided_slice %650 {offsets = [0, 24], sizes = [8, 8], strides = [1, 1]} : vector<8x32xf32> to vector<8x8xf32>
    %727 = arith.truncf %726 : vector<8x8xf32> to vector<8x8xbf16>
    "tpu.trace_start"() <{level = 10 : i32, message = "qd,kd->qk"}> : () -> ()
    %cst_231 = arith.constant dense<0.000000e+00> : vector<8x8xf32>
    %728 = tpu.matmul %725, %727, %cst_231 {dimension_numbers = #tpu.dot_dimension_numbers<[1], [1], [0], [0], [0, 0, 1, 0], [], []>} : vector<8x8xbf16>, vector<8x8xbf16>, vector<8x8xf32> -> vector<8x8xf32>
    "tpu.trace_stop"() : () -> ()
    %cst_232 = arith.constant 0.353553385 : f32
    %729 = vector.broadcast %cst_232 : f32 to vector<8x8xf32>
    %730 = arith.mulf %728, %729 : vector<8x8xf32>
    %731 = vector.extract_strided_slice %1 {offsets = [0, 0, 0], sizes = [1, 8, 8], strides = [1, 1, 1]} : vector<2x8x8xf32> to vector<1x8x8xf32>
    %732 = vector.shape_cast %731 : vector<1x8x8xf32> to vector<8x8xf32>
    %733 = arith.addf %730, %732 : vector<8x8xf32>
    %cst_233 = arith.constant dense<0xFF800000> : vector<8xf32>
    %734 = vector.multi_reduction <maximumf>, %733, %cst_233 [1] : vector<8x8xf32> to vector<8xf32>
    %735 = vector.shape_cast %734 : vector<8xf32> to vector<8x1xf32>
    %736 = vector.broadcast %735 : vector<8x1xf32> to vector<8x8xf32>
    %737 = arith.subf %733, %736 : vector<8x8xf32>
    %738 = math.exp %737 : vector<8x8xf32>
    %cst_234 = arith.constant dense<0.000000e+00> : vector<8xf32>
    %739 = vector.multi_reduction <add>, %738, %cst_234 [1] : vector<8x8xf32> to vector<8xf32>
    %740 = vector.shape_cast %739 : vector<8xf32> to vector<8x1xf32>
    %741 = tpu.reciprocal %740 {approx = true} : vector<8x1xf32> -> vector<8x1xf32>
    %742 = vector.broadcast %741 : vector<8x1xf32> to vector<8x8xf32>
    %743 = arith.mulf %738, %742 : vector<8x8xf32>
    %744 = arith.truncf %743 : vector<8x8xf32> to vector<8x8xbf16>
    %745 = vector.extract_strided_slice %651 {offsets = [0, 24], sizes = [8, 8], strides = [1, 1]} : vector<8x32xf32> to vector<8x8xf32>
    %746 = arith.truncf %745 : vector<8x8xf32> to vector<8x8xbf16>
    %cst_235 = arith.constant dense<0.000000e+00> : vector<8x8xf32>
    %747 = tpu.matmul %744, %746, %cst_235 {dimension_numbers = #tpu.dot_dimension_numbers<[1], [0], [0], [1], [0, 0, 1, 1], [], []>} : vector<8x8xbf16>, vector<8x8xbf16>, vector<8x8xf32> -> vector<8x8xf32>
    %748 = tpu.concatenate %675, %699, %723, %747 in 1 : vector<8x8xf32>, vector<8x8xf32>, vector<8x8xf32>, vector<8x8xf32> -> vector<8x32xf32>
    %749 = vector.extract_strided_slice %646 {offsets = [8, 0], sizes = [8, 32], strides = [1, 1]} : vector<16x32xf32> to vector<8x32xf32>
    %750 = vector.extract_strided_slice %647 {offsets = [8, 0], sizes = [8, 32], strides = [1, 1]} : vector<16x32xf32> to vector<8x32xf32>
    %751 = vector.extract_strided_slice %648 {offsets = [8, 0], sizes = [8, 32], strides = [1, 1]} : vector<16x32xf32> to vector<8x32xf32>
    %752 = vector.extract_strided_slice %749 {offsets = [0, 0], sizes = [8, 8], strides = [1, 1]} : vector<8x32xf32> to vector<8x8xf32>
    %753 = arith.truncf %752 : vector<8x8xf32> to vector<8x8xbf16>
    %754 = vector.extract_strided_slice %750 {offsets = [0, 0], sizes = [8, 8], strides = [1, 1]} : vector<8x32xf32> to vector<8x8xf32>
    %755 = arith.truncf %754 : vector<8x8xf32> to vector<8x8xbf16>
    "tpu.trace_start"() <{level = 10 : i32, message = "qd,kd->qk"}> : () -> ()
    %cst_236 = arith.constant dense<0.000000e+00> : vector<8x8xf32>
    %756 = tpu.matmul %753, %755, %cst_236 {dimension_numbers = #tpu.dot_dimension_numbers<[1], [1], [0], [0], [0, 0, 1, 0], [], []>} : vector<8x8xbf16>, vector<8x8xbf16>, vector<8x8xf32> -> vector<8x8xf32>
    "tpu.trace_stop"() : () -> ()
    %cst_237 = arith.constant 0.353553385 : f32
    %757 = vector.broadcast %cst_237 : f32 to vector<8x8xf32>
    %758 = arith.mulf %756, %757 : vector<8x8xf32>
    %759 = vector.extract_strided_slice %1 {offsets = [1, 0, 0], sizes = [1, 8, 8], strides = [1, 1, 1]} : vector<2x8x8xf32> to vector<1x8x8xf32>
    %760 = vector.shape_cast %759 : vector<1x8x8xf32> to vector<8x8xf32>
    %761 = arith.addf %758, %760 : vector<8x8xf32>
    %cst_238 = arith.constant dense<0xFF800000> : vector<8xf32>
    %762 = vector.multi_reduction <maximumf>, %761, %cst_238 [1] : vector<8x8xf32> to vector<8xf32>
    %763 = vector.shape_cast %762 : vector<8xf32> to vector<8x1xf32>
    %764 = vector.broadcast %763 : vector<8x1xf32> to vector<8x8xf32>
    %765 = arith.subf %761, %764 : vector<8x8xf32>
    %766 = math.exp %765 : vector<8x8xf32>
    %cst_239 = arith.constant dense<0.000000e+00> : vector<8xf32>
    %767 = vector.multi_reduction <add>, %766, %cst_239 [1] : vector<8x8xf32> to vector<8xf32>
    %768 = vector.shape_cast %767 : vector<8xf32> to vector<8x1xf32>
    %769 = tpu.reciprocal %768 {approx = true} : vector<8x1xf32> -> vector<8x1xf32>
    %770 = vector.broadcast %769 : vector<8x1xf32> to vector<8x8xf32>
    %771 = arith.mulf %766, %770 : vector<8x8xf32>
    %772 = arith.truncf %771 : vector<8x8xf32> to vector<8x8xbf16>
    %773 = vector.extract_strided_slice %751 {offsets = [0, 0], sizes = [8, 8], strides = [1, 1]} : vector<8x32xf32> to vector<8x8xf32>
    %774 = arith.truncf %773 : vector<8x8xf32> to vector<8x8xbf16>
    %cst_240 = arith.constant dense<0.000000e+00> : vector<8x8xf32>
    %775 = tpu.matmul %772, %774, %cst_240 {dimension_numbers = #tpu.dot_dimension_numbers<[1], [0], [0], [1], [0, 0, 1, 1], [], []>} : vector<8x8xbf16>, vector<8x8xbf16>, vector<8x8xf32> -> vector<8x8xf32>
    %776 = vector.extract_strided_slice %749 {offsets = [0, 8], sizes = [8, 8], strides = [1, 1]} : vector<8x32xf32> to vector<8x8xf32>
    %777 = arith.truncf %776 : vector<8x8xf32> to vector<8x8xbf16>
    %778 = vector.extract_strided_slice %750 {offsets = [0, 8], sizes = [8, 8], strides = [1, 1]} : vector<8x32xf32> to vector<8x8xf32>
    %779 = arith.truncf %778 : vector<8x8xf32> to vector<8x8xbf16>
    "tpu.trace_start"() <{level = 10 : i32, message = "qd,kd->qk"}> : () -> ()
    %cst_241 = arith.constant dense<0.000000e+00> : vector<8x8xf32>
    %780 = tpu.matmul %777, %779, %cst_241 {dimension_numbers = #tpu.dot_dimension_numbers<[1], [1], [0], [0], [0, 0, 1, 0], [], []>} : vector<8x8xbf16>, vector<8x8xbf16>, vector<8x8xf32> -> vector<8x8xf32>
    "tpu.trace_stop"() : () -> ()
    %cst_242 = arith.constant 0.353553385 : f32
    %781 = vector.broadcast %cst_242 : f32 to vector<8x8xf32>
    %782 = arith.mulf %780, %781 : vector<8x8xf32>
    %783 = vector.extract_strided_slice %1 {offsets = [1, 0, 0], sizes = [1, 8, 8], strides = [1, 1, 1]} : vector<2x8x8xf32> to vector<1x8x8xf32>
    %784 = vector.shape_cast %783 : vector<1x8x8xf32> to vector<8x8xf32>
    %785 = arith.addf %782, %784 : vector<8x8xf32>
    %cst_243 = arith.constant dense<0xFF800000> : vector<8xf32>
    %786 = vector.multi_reduction <maximumf>, %785, %cst_243 [1] : vector<8x8xf32> to vector<8xf32>
    %787 = vector.shape_cast %786 : vector<8xf32> to vector<8x1xf32>
    %788 = vector.broadcast %787 : vector<8x1xf32> to vector<8x8xf32>
    %789 = arith.subf %785, %788 : vector<8x8xf32>
    %790 = math.exp %789 : vector<8x8xf32>
    %cst_244 = arith.constant dense<0.000000e+00> : vector<8xf32>
    %791 = vector.multi_reduction <add>, %790, %cst_244 [1] : vector<8x8xf32> to vector<8xf32>
    %792 = vector.shape_cast %791 : vector<8xf32> to vector<8x1xf32>
    %793 = tpu.reciprocal %792 {approx = true} : vector<8x1xf32> -> vector<8x1xf32>
    %794 = vector.broadcast %793 : vector<8x1xf32> to vector<8x8xf32>
    %795 = arith.mulf %790, %794 : vector<8x8xf32>
    %796 = arith.truncf %795 : vector<8x8xf32> to vector<8x8xbf16>
    %797 = vector.extract_strided_slice %751 {offsets = [0, 8], sizes = [8, 8], strides = [1, 1]} : vector<8x32xf32> to vector<8x8xf32>
    %798 = arith.truncf %797 : vector<8x8xf32> to vector<8x8xbf16>
    %cst_245 = arith.constant dense<0.000000e+00> : vector<8x8xf32>
    %799 = tpu.matmul %796, %798, %cst_245 {dimension_numbers = #tpu.dot_dimension_numbers<[1], [0], [0], [1], [0, 0, 1, 1], [], []>} : vector<8x8xbf16>, vector<8x8xbf16>, vector<8x8xf32> -> vector<8x8xf32>
    %800 = vector.extract_strided_slice %749 {offsets = [0, 16], sizes = [8, 8], strides = [1, 1]} : vector<8x32xf32> to vector<8x8xf32>
    %801 = arith.truncf %800 : vector<8x8xf32> to vector<8x8xbf16>
    %802 = vector.extract_strided_slice %750 {offsets = [0, 16], sizes = [8, 8], strides = [1, 1]} : vector<8x32xf32> to vector<8x8xf32>
    %803 = arith.truncf %802 : vector<8x8xf32> to vector<8x8xbf16>
    "tpu.trace_start"() <{level = 10 : i32, message = "qd,kd->qk"}> : () -> ()
    %cst_246 = arith.constant dense<0.000000e+00> : vector<8x8xf32>
    %804 = tpu.matmul %801, %803, %cst_246 {dimension_numbers = #tpu.dot_dimension_numbers<[1], [1], [0], [0], [0, 0, 1, 0], [], []>} : vector<8x8xbf16>, vector<8x8xbf16>, vector<8x8xf32> -> vector<8x8xf32>
    "tpu.trace_stop"() : () -> ()
    %cst_247 = arith.constant 0.353553385 : f32
    %805 = vector.broadcast %cst_247 : f32 to vector<8x8xf32>
    %806 = arith.mulf %804, %805 : vector<8x8xf32>
    %807 = vector.extract_strided_slice %1 {offsets = [1, 0, 0], sizes = [1, 8, 8], strides = [1, 1, 1]} : vector<2x8x8xf32> to vector<1x8x8xf32>
    %808 = vector.shape_cast %807 : vector<1x8x8xf32> to vector<8x8xf32>
    %809 = arith.addf %806, %808 : vector<8x8xf32>
    %cst_248 = arith.constant dense<0xFF800000> : vector<8xf32>
    %810 = vector.multi_reduction <maximumf>, %809, %cst_248 [1] : vector<8x8xf32> to vector<8xf32>
    %811 = vector.shape_cast %810 : vector<8xf32> to vector<8x1xf32>
    %812 = vector.broadcast %811 : vector<8x1xf32> to vector<8x8xf32>
    %813 = arith.subf %809, %812 : vector<8x8xf32>
    %814 = math.exp %813 : vector<8x8xf32>
    %cst_249 = arith.constant dense<0.000000e+00> : vector<8xf32>
    %815 = vector.multi_reduction <add>, %814, %cst_249 [1] : vector<8x8xf32> to vector<8xf32>
    %816 = vector.shape_cast %815 : vector<8xf32> to vector<8x1xf32>
    %817 = tpu.reciprocal %816 {approx = true} : vector<8x1xf32> -> vector<8x1xf32>
    %818 = vector.broadcast %817 : vector<8x1xf32> to vector<8x8xf32>
    %819 = arith.mulf %814, %818 : vector<8x8xf32>
    %820 = arith.truncf %819 : vector<8x8xf32> to vector<8x8xbf16>
    %821 = vector.extract_strided_slice %751 {offsets = [0, 16], sizes = [8, 8], strides = [1, 1]} : vector<8x32xf32> to vector<8x8xf32>
    %822 = arith.truncf %821 : vector<8x8xf32> to vector<8x8xbf16>
    %cst_250 = arith.constant dense<0.000000e+00> : vector<8x8xf32>
    %823 = tpu.matmul %820, %822, %cst_250 {dimension_numbers = #tpu.dot_dimension_numbers<[1], [0], [0], [1], [0, 0, 1, 1], [], []>} : vector<8x8xbf16>, vector<8x8xbf16>, vector<8x8xf32> -> vector<8x8xf32>
    %824 = vector.extract_strided_slice %749 {offsets = [0, 24], sizes = [8, 8], strides = [1, 1]} : vector<8x32xf32> to vector<8x8xf32>
    %825 = arith.truncf %824 : vector<8x8xf32> to vector<8x8xbf16>
    %826 = vector.extract_strided_slice %750 {offsets = [0, 24], sizes = [8, 8], strides = [1, 1]} : vector<8x32xf32> to vector<8x8xf32>
    %827 = arith.truncf %826 : vector<8x8xf32> to vector<8x8xbf16>
    "tpu.trace_start"() <{level = 10 : i32, message = "qd,kd->qk"}> : () -> ()
    %cst_251 = arith.constant dense<0.000000e+00> : vector<8x8xf32>
    %828 = tpu.matmul %825, %827, %cst_251 {dimension_numbers = #tpu.dot_dimension_numbers<[1], [1], [0], [0], [0, 0, 1, 0], [], []>} : vector<8x8xbf16>, vector<8x8xbf16>, vector<8x8xf32> -> vector<8x8xf32>
    "tpu.trace_stop"() : () -> ()
    %cst_252 = arith.constant 0.353553385 : f32
    %829 = vector.broadcast %cst_252 : f32 to vector<8x8xf32>
    %830 = arith.mulf %828, %829 : vector<8x8xf32>
    %831 = vector.extract_strided_slice %1 {offsets = [1, 0, 0], sizes = [1, 8, 8], strides = [1, 1, 1]} : vector<2x8x8xf32> to vector<1x8x8xf32>
    %832 = vector.shape_cast %831 : vector<1x8x8xf32> to vector<8x8xf32>
    %833 = arith.addf %830, %832 : vector<8x8xf32>
    %cst_253 = arith.constant dense<0xFF800000> : vector<8xf32>
    %834 = vector.multi_reduction <maximumf>, %833, %cst_253 [1] : vector<8x8xf32> to vector<8xf32>
    %835 = vector.shape_cast %834 : vector<8xf32> to vector<8x1xf32>
    %836 = vector.broadcast %835 : vector<8x1xf32> to vector<8x8xf32>
    %837 = arith.subf %833, %836 : vector<8x8xf32>
    %838 = math.exp %837 : vector<8x8xf32>
    %cst_254 = arith.constant dense<0.000000e+00> : vector<8xf32>
    %839 = vector.multi_reduction <add>, %838, %cst_254 [1] : vector<8x8xf32> to vector<8xf32>
    %840 = vector.shape_cast %839 : vector<8xf32> to vector<8x1xf32>
    %841 = tpu.reciprocal %840 {approx = true} : vector<8x1xf32> -> vector<8x1xf32>
    %842 = vector.broadcast %841 : vector<8x1xf32> to vector<8x8xf32>
    %843 = arith.mulf %838, %842 : vector<8x8xf32>
    %844 = arith.truncf %843 : vector<8x8xf32> to vector<8x8xbf16>
    %845 = vector.extract_strided_slice %751 {offsets = [0, 24], sizes = [8, 8], strides = [1, 1]} : vector<8x32xf32> to vector<8x8xf32>
    %846 = arith.truncf %845 : vector<8x8xf32> to vector<8x8xbf16>
    %cst_255 = arith.constant dense<0.000000e+00> : vector<8x8xf32>
    %847 = tpu.matmul %844, %846, %cst_255 {dimension_numbers = #tpu.dot_dimension_numbers<[1], [0], [0], [1], [0, 0, 1, 1], [], []>} : vector<8x8xbf16>, vector<8x8xbf16>, vector<8x8xf32> -> vector<8x8xf32>
    %848 = tpu.concatenate %775, %799, %823, %847 in 1 : vector<8x8xf32>, vector<8x8xf32>, vector<8x8xf32>, vector<8x8xf32> -> vector<8x32xf32>
    %849 = tpu.concatenate %748, %848 in 0 : vector<8x32xf32>, vector<8x32xf32> -> vector<16x32xf32>
    %c0_256 = arith.constant 0 : index
    %c0_257 = arith.constant 0 : index
    %c0_258 = arith.constant 0 : index
    %850 = vector.load %arg23[%c0_256, %c0_257, %c0_258] : memref<2x32x32xbf16, #tpu.memory_space<vmem>>, vector<1x32x32xbf16>
    %851 = vector.shape_cast %850 : vector<1x32x32xbf16> to vector<32x32xbf16>
    %c0_259 = arith.constant 0 : index
    %c0_260 = arith.constant 0 : index
    %c0_261 = arith.constant 0 : index
    %852 = vector.load %arg24[%c0_259, %c0_260, %c0_261] : memref<2x1x32xf32, #tpu.memory_space<vmem>>, vector<1x1x32xf32>
    %853 = vector.shape_cast %852 : vector<1x1x32xf32> to vector<1x32xf32>
    %854 = arith.truncf %849 : vector<16x32xf32> to vector<16x32xbf16>
    %cst_262 = arith.constant dense<0.000000e+00> : vector<16x32xf32>
    %855 = tpu.matmul %854, %851, %cst_262 {dimension_numbers = #tpu.dot_dimension_numbers<[1], [0], [0], [1], [0, 0, 1, 1], [], []>} : vector<16x32xbf16>, vector<32x32xbf16>, vector<16x32xf32> -> vector<16x32xf32>
    %856 = vector.broadcast %853 : vector<1x32xf32> to vector<16x32xf32>
    %857 = arith.addf %855, %856 : vector<16x32xf32>
    %858 = arith.addf %611, %857 : vector<16x32xf32>
    %c0_263 = arith.constant 0 : index
    %c0_264 = arith.constant 0 : index
    %c0_265 = arith.constant 0 : index
    %859 = vector.load %arg25[%c0_263, %c0_264, %c0_265] : memref<2x1x32xf32, #tpu.memory_space<vmem>>, vector<1x1x32xf32>
    %860 = vector.shape_cast %859 : vector<1x1x32xf32> to vector<1x32xf32>
    %c0_266 = arith.constant 0 : index
    %c0_267 = arith.constant 0 : index
    %c0_268 = arith.constant 0 : index
    %861 = vector.load %arg26[%c0_266, %c0_267, %c0_268] : memref<2x1x32xf32, #tpu.memory_space<vmem>>, vector<1x1x32xf32>
    %862 = vector.shape_cast %861 : vector<1x1x32xf32> to vector<1x32xf32>
    %cst_269 = arith.constant dense<0.000000e+00> : vector<16xf32>
    %863 = vector.multi_reduction <add>, %858, %cst_269 [1] : vector<16x32xf32> to vector<16xf32>
    %864 = vector.shape_cast %863 : vector<16xf32> to vector<16x1xf32>
    %cst_270 = arith.constant 3.200000e+01 : f32
    %865 = vector.broadcast %cst_270 : f32 to vector<16x1xf32>
    %866 = arith.divf %864, %865 : vector<16x1xf32>
    %867 = vector.broadcast %866 : vector<16x1xf32> to vector<16x32xf32>
    %868 = arith.subf %858, %867 : vector<16x32xf32>
    %869 = arith.mulf %868, %868 : vector<16x32xf32>
    %cst_271 = arith.constant dense<0.000000e+00> : vector<16xf32>
    %870 = vector.multi_reduction <add>, %869, %cst_271 [1] : vector<16x32xf32> to vector<16xf32>
    %871 = vector.shape_cast %870 : vector<16xf32> to vector<16x1xf32>
    %cst_272 = arith.constant 3.200000e+01 : f32
    %872 = vector.broadcast %cst_272 : f32 to vector<16x1xf32>
    %873 = arith.divf %871, %872 : vector<16x1xf32>
    %874 = vector.broadcast %866 : vector<16x1xf32> to vector<16x32xf32>
    %875 = arith.subf %858, %874 : vector<16x32xf32>
    %cst_273 = arith.constant 9.99999997E-7 : f32
    %876 = vector.broadcast %cst_273 : f32 to vector<16x1xf32>
    %877 = arith.addf %873, %876 : vector<16x1xf32>
    %878 = math.sqrt %877 : vector<16x1xf32>
    %879 = vector.broadcast %878 : vector<16x1xf32> to vector<16x32xf32>
    %880 = arith.divf %875, %879 : vector<16x32xf32>
    %881 = vector.broadcast %860 : vector<1x32xf32> to vector<16x32xf32>
    %882 = arith.mulf %880, %881 : vector<16x32xf32>
    %883 = vector.broadcast %862 : vector<1x32xf32> to vector<16x32xf32>
    %884 = arith.addf %882, %883 : vector<16x32xf32>
    %c0_274 = arith.constant 0 : index
    %c0_275 = arith.constant 0 : index
    %c0_276 = arith.constant 0 : index
    %885 = vector.load %arg27[%c0_274, %c0_275, %c0_276] : memref<2x32x32xbf16, #tpu.memory_space<vmem>>, vector<1x32x32xbf16>
    %886 = vector.shape_cast %885 : vector<1x32x32xbf16> to vector<32x32xbf16>
    %c0_277 = arith.constant 0 : index
    %c0_278 = arith.constant 0 : index
    %c0_279 = arith.constant 0 : index
    %887 = vector.load %arg28[%c0_277, %c0_278, %c0_279] : memref<2x1x32xf32, #tpu.memory_space<vmem>>, vector<1x1x32xf32>
    %888 = vector.shape_cast %887 : vector<1x1x32xf32> to vector<1x32xf32>
    %889 = arith.truncf %884 : vector<16x32xf32> to vector<16x32xbf16>
    %cst_280 = arith.constant dense<0.000000e+00> : vector<16x32xf32>
    %890 = tpu.matmul %889, %886, %cst_280 {dimension_numbers = #tpu.dot_dimension_numbers<[1], [0], [0], [1], [0, 0, 1, 1], [], []>} : vector<16x32xbf16>, vector<32x32xbf16>, vector<16x32xf32> -> vector<16x32xf32>
    %891 = vector.broadcast %888 : vector<1x32xf32> to vector<16x32xf32>
    %892 = arith.addf %890, %891 : vector<16x32xf32>
    %c0_281 = arith.constant 0 : index
    %c0_282 = arith.constant 0 : index
    %c0_283 = arith.constant 0 : index
    %893 = vector.load %arg29[%c0_281, %c0_282, %c0_283] : memref<2x32x64xbf16, #tpu.memory_space<vmem>>, vector<1x32x64xbf16>
    %894 = vector.shape_cast %893 : vector<1x32x64xbf16> to vector<32x64xbf16>
    %c0_284 = arith.constant 0 : index
    %c0_285 = arith.constant 0 : index
    %c0_286 = arith.constant 0 : index
    %895 = vector.load %arg30[%c0_284, %c0_285, %c0_286] : memref<2x1x64xf32, #tpu.memory_space<vmem>>, vector<1x1x64xf32>
    %896 = vector.shape_cast %895 : vector<1x1x64xf32> to vector<1x64xf32>
    %897 = arith.truncf %610 : vector<16x32xf32> to vector<16x32xbf16>
    %cst_287 = arith.constant dense<0.000000e+00> : vector<16x64xf32>
    %898 = tpu.matmul %897, %894, %cst_287 {dimension_numbers = #tpu.dot_dimension_numbers<[1], [0], [0], [1], [0, 0, 1, 1], [], []>} : vector<16x32xbf16>, vector<32x64xbf16>, vector<16x64xf32> -> vector<16x64xf32>
    %899 = vector.broadcast %896 : vector<1x64xf32> to vector<16x64xf32>
    %900 = arith.addf %898, %899 : vector<16x64xf32>
    %901 = vector.extract_strided_slice %900 {offsets = [0, 0], sizes = [16, 32], strides = [1, 1]} : vector<16x64xf32> to vector<16x32xf32>
    %902 = vector.extract_strided_slice %900 {offsets = [0, 32], sizes = [16, 32], strides = [1, 1]} : vector<16x64xf32> to vector<16x32xf32>
    %903 = vector.extract_strided_slice %892 {offsets = [0, 0], sizes = [8, 32], strides = [1, 1]} : vector<16x32xf32> to vector<8x32xf32>
    %904 = vector.extract_strided_slice %901 {offsets = [0, 0], sizes = [8, 32], strides = [1, 1]} : vector<16x32xf32> to vector<8x32xf32>
    %905 = vector.extract_strided_slice %902 {offsets = [0, 0], sizes = [8, 32], strides = [1, 1]} : vector<16x32xf32> to vector<8x32xf32>
    %906 = vector.extract_strided_slice %903 {offsets = [0, 0], sizes = [8, 8], strides = [1, 1]} : vector<8x32xf32> to vector<8x8xf32>
    %907 = arith.truncf %906 : vector<8x8xf32> to vector<8x8xbf16>
    %908 = vector.extract_strided_slice %904 {offsets = [0, 0], sizes = [8, 8], strides = [1, 1]} : vector<8x32xf32> to vector<8x8xf32>
    %909 = arith.truncf %908 : vector<8x8xf32> to vector<8x8xbf16>
    "tpu.trace_start"() <{level = 10 : i32, message = "qd,kd->qk"}> : () -> ()
    %cst_288 = arith.constant dense<0.000000e+00> : vector<8x8xf32>
    %910 = tpu.matmul %907, %909, %cst_288 {dimension_numbers = #tpu.dot_dimension_numbers<[1], [1], [0], [0], [0, 0, 1, 0], [], []>} : vector<8x8xbf16>, vector<8x8xbf16>, vector<8x8xf32> -> vector<8x8xf32>
    "tpu.trace_stop"() : () -> ()
    %cst_289 = arith.constant 0.353553385 : f32
    %911 = vector.broadcast %cst_289 : f32 to vector<8x8xf32>
    %912 = arith.mulf %910, %911 : vector<8x8xf32>
    %913 = vector.extract_strided_slice %0 {offsets = [0, 0, 0], sizes = [1, 8, 8], strides = [1, 1, 1]} : vector<2x8x8xf32> to vector<1x8x8xf32>
    %914 = vector.shape_cast %913 : vector<1x8x8xf32> to vector<8x8xf32>
    %915 = arith.addf %912, %914 : vector<8x8xf32>
    %cst_290 = arith.constant dense<0xFF800000> : vector<8xf32>
    %916 = vector.multi_reduction <maximumf>, %915, %cst_290 [1] : vector<8x8xf32> to vector<8xf32>
    %917 = vector.shape_cast %916 : vector<8xf32> to vector<8x1xf32>
    %918 = vector.broadcast %917 : vector<8x1xf32> to vector<8x8xf32>
    %919 = arith.subf %915, %918 : vector<8x8xf32>
    %920 = math.exp %919 : vector<8x8xf32>
    %cst_291 = arith.constant dense<0.000000e+00> : vector<8xf32>
    %921 = vector.multi_reduction <add>, %920, %cst_291 [1] : vector<8x8xf32> to vector<8xf32>
    %922 = vector.shape_cast %921 : vector<8xf32> to vector<8x1xf32>
    %923 = tpu.reciprocal %922 {approx = true} : vector<8x1xf32> -> vector<8x1xf32>
    %924 = vector.broadcast %923 : vector<8x1xf32> to vector<8x8xf32>
    %925 = arith.mulf %920, %924 : vector<8x8xf32>
    %926 = arith.truncf %925 : vector<8x8xf32> to vector<8x8xbf16>
    %927 = vector.extract_strided_slice %905 {offsets = [0, 0], sizes = [8, 8], strides = [1, 1]} : vector<8x32xf32> to vector<8x8xf32>
    %928 = arith.truncf %927 : vector<8x8xf32> to vector<8x8xbf16>
    %cst_292 = arith.constant dense<0.000000e+00> : vector<8x8xf32>
    %929 = tpu.matmul %926, %928, %cst_292 {dimension_numbers = #tpu.dot_dimension_numbers<[1], [0], [0], [1], [0, 0, 1, 1], [], []>} : vector<8x8xbf16>, vector<8x8xbf16>, vector<8x8xf32> -> vector<8x8xf32>
    %930 = vector.extract_strided_slice %903 {offsets = [0, 8], sizes = [8, 8], strides = [1, 1]} : vector<8x32xf32> to vector<8x8xf32>
    %931 = arith.truncf %930 : vector<8x8xf32> to vector<8x8xbf16>
    %932 = vector.extract_strided_slice %904 {offsets = [0, 8], sizes = [8, 8], strides = [1, 1]} : vector<8x32xf32> to vector<8x8xf32>
    %933 = arith.truncf %932 : vector<8x8xf32> to vector<8x8xbf16>
    "tpu.trace_start"() <{level = 10 : i32, message = "qd,kd->qk"}> : () -> ()
    %cst_293 = arith.constant dense<0.000000e+00> : vector<8x8xf32>
    %934 = tpu.matmul %931, %933, %cst_293 {dimension_numbers = #tpu.dot_dimension_numbers<[1], [1], [0], [0], [0, 0, 1, 0], [], []>} : vector<8x8xbf16>, vector<8x8xbf16>, vector<8x8xf32> -> vector<8x8xf32>
    "tpu.trace_stop"() : () -> ()
    %cst_294 = arith.constant 0.353553385 : f32
    %935 = vector.broadcast %cst_294 : f32 to vector<8x8xf32>
    %936 = arith.mulf %934, %935 : vector<8x8xf32>
    %937 = vector.extract_strided_slice %0 {offsets = [0, 0, 0], sizes = [1, 8, 8], strides = [1, 1, 1]} : vector<2x8x8xf32> to vector<1x8x8xf32>
    %938 = vector.shape_cast %937 : vector<1x8x8xf32> to vector<8x8xf32>
    %939 = arith.addf %936, %938 : vector<8x8xf32>
    %cst_295 = arith.constant dense<0xFF800000> : vector<8xf32>
    %940 = vector.multi_reduction <maximumf>, %939, %cst_295 [1] : vector<8x8xf32> to vector<8xf32>
    %941 = vector.shape_cast %940 : vector<8xf32> to vector<8x1xf32>
    %942 = vector.broadcast %941 : vector<8x1xf32> to vector<8x8xf32>
    %943 = arith.subf %939, %942 : vector<8x8xf32>
    %944 = math.exp %943 : vector<8x8xf32>
    %cst_296 = arith.constant dense<0.000000e+00> : vector<8xf32>
    %945 = vector.multi_reduction <add>, %944, %cst_296 [1] : vector<8x8xf32> to vector<8xf32>
    %946 = vector.shape_cast %945 : vector<8xf32> to vector<8x1xf32>
    %947 = tpu.reciprocal %946 {approx = true} : vector<8x1xf32> -> vector<8x1xf32>
    %948 = vector.broadcast %947 : vector<8x1xf32> to vector<8x8xf32>
    %949 = arith.mulf %944, %948 : vector<8x8xf32>
    %950 = arith.truncf %949 : vector<8x8xf32> to vector<8x8xbf16>
    %951 = vector.extract_strided_slice %905 {offsets = [0, 8], sizes = [8, 8], strides = [1, 1]} : vector<8x32xf32> to vector<8x8xf32>
    %952 = arith.truncf %951 : vector<8x8xf32> to vector<8x8xbf16>
    %cst_297 = arith.constant dense<0.000000e+00> : vector<8x8xf32>
    %953 = tpu.matmul %950, %952, %cst_297 {dimension_numbers = #tpu.dot_dimension_numbers<[1], [0], [0], [1], [0, 0, 1, 1], [], []>} : vector<8x8xbf16>, vector<8x8xbf16>, vector<8x8xf32> -> vector<8x8xf32>
    %954 = vector.extract_strided_slice %903 {offsets = [0, 16], sizes = [8, 8], strides = [1, 1]} : vector<8x32xf32> to vector<8x8xf32>
    %955 = arith.truncf %954 : vector<8x8xf32> to vector<8x8xbf16>
    %956 = vector.extract_strided_slice %904 {offsets = [0, 16], sizes = [8, 8], strides = [1, 1]} : vector<8x32xf32> to vector<8x8xf32>
    %957 = arith.truncf %956 : vector<8x8xf32> to vector<8x8xbf16>
    "tpu.trace_start"() <{level = 10 : i32, message = "qd,kd->qk"}> : () -> ()
    %cst_298 = arith.constant dense<0.000000e+00> : vector<8x8xf32>
    %958 = tpu.matmul %955, %957, %cst_298 {dimension_numbers = #tpu.dot_dimension_numbers<[1], [1], [0], [0], [0, 0, 1, 0], [], []>} : vector<8x8xbf16>, vector<8x8xbf16>, vector<8x8xf32> -> vector<8x8xf32>
    "tpu.trace_stop"() : () -> ()
    %cst_299 = arith.constant 0.353553385 : f32
    %959 = vector.broadcast %cst_299 : f32 to vector<8x8xf32>
    %960 = arith.mulf %958, %959 : vector<8x8xf32>
    %961 = vector.extract_strided_slice %0 {offsets = [0, 0, 0], sizes = [1, 8, 8], strides = [1, 1, 1]} : vector<2x8x8xf32> to vector<1x8x8xf32>
    %962 = vector.shape_cast %961 : vector<1x8x8xf32> to vector<8x8xf32>
    %963 = arith.addf %960, %962 : vector<8x8xf32>
    %cst_300 = arith.constant dense<0xFF800000> : vector<8xf32>
    %964 = vector.multi_reduction <maximumf>, %963, %cst_300 [1] : vector<8x8xf32> to vector<8xf32>
    %965 = vector.shape_cast %964 : vector<8xf32> to vector<8x1xf32>
    %966 = vector.broadcast %965 : vector<8x1xf32> to vector<8x8xf32>
    %967 = arith.subf %963, %966 : vector<8x8xf32>
    %968 = math.exp %967 : vector<8x8xf32>
    %cst_301 = arith.constant dense<0.000000e+00> : vector<8xf32>
    %969 = vector.multi_reduction <add>, %968, %cst_301 [1] : vector<8x8xf32> to vector<8xf32>
    %970 = vector.shape_cast %969 : vector<8xf32> to vector<8x1xf32>
    %971 = tpu.reciprocal %970 {approx = true} : vector<8x1xf32> -> vector<8x1xf32>
    %972 = vector.broadcast %971 : vector<8x1xf32> to vector<8x8xf32>
    %973 = arith.mulf %968, %972 : vector<8x8xf32>
    %974 = arith.truncf %973 : vector<8x8xf32> to vector<8x8xbf16>
    %975 = vector.extract_strided_slice %905 {offsets = [0, 16], sizes = [8, 8], strides = [1, 1]} : vector<8x32xf32> to vector<8x8xf32>
    %976 = arith.truncf %975 : vector<8x8xf32> to vector<8x8xbf16>
    %cst_302 = arith.constant dense<0.000000e+00> : vector<8x8xf32>
    %977 = tpu.matmul %974, %976, %cst_302 {dimension_numbers = #tpu.dot_dimension_numbers<[1], [0], [0], [1], [0, 0, 1, 1], [], []>} : vector<8x8xbf16>, vector<8x8xbf16>, vector<8x8xf32> -> vector<8x8xf32>
    %978 = vector.extract_strided_slice %903 {offsets = [0, 24], sizes = [8, 8], strides = [1, 1]} : vector<8x32xf32> to vector<8x8xf32>
    %979 = arith.truncf %978 : vector<8x8xf32> to vector<8x8xbf16>
    %980 = vector.extract_strided_slice %904 {offsets = [0, 24], sizes = [8, 8], strides = [1, 1]} : vector<8x32xf32> to vector<8x8xf32>
    %981 = arith.truncf %980 : vector<8x8xf32> to vector<8x8xbf16>
    "tpu.trace_start"() <{level = 10 : i32, message = "qd,kd->qk"}> : () -> ()
    %cst_303 = arith.constant dense<0.000000e+00> : vector<8x8xf32>
    %982 = tpu.matmul %979, %981, %cst_303 {dimension_numbers = #tpu.dot_dimension_numbers<[1], [1], [0], [0], [0, 0, 1, 0], [], []>} : vector<8x8xbf16>, vector<8x8xbf16>, vector<8x8xf32> -> vector<8x8xf32>
    "tpu.trace_stop"() : () -> ()
    %cst_304 = arith.constant 0.353553385 : f32
    %983 = vector.broadcast %cst_304 : f32 to vector<8x8xf32>
    %984 = arith.mulf %982, %983 : vector<8x8xf32>
    %985 = vector.extract_strided_slice %0 {offsets = [0, 0, 0], sizes = [1, 8, 8], strides = [1, 1, 1]} : vector<2x8x8xf32> to vector<1x8x8xf32>
    %986 = vector.shape_cast %985 : vector<1x8x8xf32> to vector<8x8xf32>
    %987 = arith.addf %984, %986 : vector<8x8xf32>
    %cst_305 = arith.constant dense<0xFF800000> : vector<8xf32>
    %988 = vector.multi_reduction <maximumf>, %987, %cst_305 [1] : vector<8x8xf32> to vector<8xf32>
    %989 = vector.shape_cast %988 : vector<8xf32> to vector<8x1xf32>
    %990 = vector.broadcast %989 : vector<8x1xf32> to vector<8x8xf32>
    %991 = arith.subf %987, %990 : vector<8x8xf32>
    %992 = math.exp %991 : vector<8x8xf32>
    %cst_306 = arith.constant dense<0.000000e+00> : vector<8xf32>
    %993 = vector.multi_reduction <add>, %992, %cst_306 [1] : vector<8x8xf32> to vector<8xf32>
    %994 = vector.shape_cast %993 : vector<8xf32> to vector<8x1xf32>
    %995 = tpu.reciprocal %994 {approx = true} : vector<8x1xf32> -> vector<8x1xf32>
    %996 = vector.broadcast %995 : vector<8x1xf32> to vector<8x8xf32>
    %997 = arith.mulf %992, %996 : vector<8x8xf32>
    %998 = arith.truncf %997 : vector<8x8xf32> to vector<8x8xbf16>
    %999 = vector.extract_strided_slice %905 {offsets = [0, 24], sizes = [8, 8], strides = [1, 1]} : vector<8x32xf32> to vector<8x8xf32>
    %1000 = arith.truncf %999 : vector<8x8xf32> to vector<8x8xbf16>
    %cst_307 = arith.constant dense<0.000000e+00> : vector<8x8xf32>
    %1001 = tpu.matmul %998, %1000, %cst_307 {dimension_numbers = #tpu.dot_dimension_numbers<[1], [0], [0], [1], [0, 0, 1, 1], [], []>} : vector<8x8xbf16>, vector<8x8xbf16>, vector<8x8xf32> -> vector<8x8xf32>
    %1002 = tpu.concatenate %929, %953, %977, %1001 in 1 : vector<8x8xf32>, vector<8x8xf32>, vector<8x8xf32>, vector<8x8xf32> -> vector<8x32xf32>
    %1003 = vector.extract_strided_slice %892 {offsets = [8, 0], sizes = [8, 32], strides = [1, 1]} : vector<16x32xf32> to vector<8x32xf32>
    %1004 = vector.extract_strided_slice %901 {offsets = [8, 0], sizes = [8, 32], strides = [1, 1]} : vector<16x32xf32> to vector<8x32xf32>
    %1005 = vector.extract_strided_slice %902 {offsets = [8, 0], sizes = [8, 32], strides = [1, 1]} : vector<16x32xf32> to vector<8x32xf32>
    %1006 = vector.extract_strided_slice %1003 {offsets = [0, 0], sizes = [8, 8], strides = [1, 1]} : vector<8x32xf32> to vector<8x8xf32>
    %1007 = arith.truncf %1006 : vector<8x8xf32> to vector<8x8xbf16>
    %1008 = vector.extract_strided_slice %1004 {offsets = [0, 0], sizes = [8, 8], strides = [1, 1]} : vector<8x32xf32> to vector<8x8xf32>
    %1009 = arith.truncf %1008 : vector<8x8xf32> to vector<8x8xbf16>
    "tpu.trace_start"() <{level = 10 : i32, message = "qd,kd->qk"}> : () -> ()
    %cst_308 = arith.constant dense<0.000000e+00> : vector<8x8xf32>
    %1010 = tpu.matmul %1007, %1009, %cst_308 {dimension_numbers = #tpu.dot_dimension_numbers<[1], [1], [0], [0], [0, 0, 1, 0], [], []>} : vector<8x8xbf16>, vector<8x8xbf16>, vector<8x8xf32> -> vector<8x8xf32>
    "tpu.trace_stop"() : () -> ()
    %cst_309 = arith.constant 0.353553385 : f32
    %1011 = vector.broadcast %cst_309 : f32 to vector<8x8xf32>
    %1012 = arith.mulf %1010, %1011 : vector<8x8xf32>
    %1013 = vector.extract_strided_slice %0 {offsets = [1, 0, 0], sizes = [1, 8, 8], strides = [1, 1, 1]} : vector<2x8x8xf32> to vector<1x8x8xf32>
    %1014 = vector.shape_cast %1013 : vector<1x8x8xf32> to vector<8x8xf32>
    %1015 = arith.addf %1012, %1014 : vector<8x8xf32>
    %cst_310 = arith.constant dense<0xFF800000> : vector<8xf32>
    %1016 = vector.multi_reduction <maximumf>, %1015, %cst_310 [1] : vector<8x8xf32> to vector<8xf32>
    %1017 = vector.shape_cast %1016 : vector<8xf32> to vector<8x1xf32>
    %1018 = vector.broadcast %1017 : vector<8x1xf32> to vector<8x8xf32>
    %1019 = arith.subf %1015, %1018 : vector<8x8xf32>
    %1020 = math.exp %1019 : vector<8x8xf32>
    %cst_311 = arith.constant dense<0.000000e+00> : vector<8xf32>
    %1021 = vector.multi_reduction <add>, %1020, %cst_311 [1] : vector<8x8xf32> to vector<8xf32>
    %1022 = vector.shape_cast %1021 : vector<8xf32> to vector<8x1xf32>
    %1023 = tpu.reciprocal %1022 {approx = true} : vector<8x1xf32> -> vector<8x1xf32>
    %1024 = vector.broadcast %1023 : vector<8x1xf32> to vector<8x8xf32>
    %1025 = arith.mulf %1020, %1024 : vector<8x8xf32>
    %1026 = arith.truncf %1025 : vector<8x8xf32> to vector<8x8xbf16>
    %1027 = vector.extract_strided_slice %1005 {offsets = [0, 0], sizes = [8, 8], strides = [1, 1]} : vector<8x32xf32> to vector<8x8xf32>
    %1028 = arith.truncf %1027 : vector<8x8xf32> to vector<8x8xbf16>
    %cst_312 = arith.constant dense<0.000000e+00> : vector<8x8xf32>
    %1029 = tpu.matmul %1026, %1028, %cst_312 {dimension_numbers = #tpu.dot_dimension_numbers<[1], [0], [0], [1], [0, 0, 1, 1], [], []>} : vector<8x8xbf16>, vector<8x8xbf16>, vector<8x8xf32> -> vector<8x8xf32>
    %1030 = vector.extract_strided_slice %1003 {offsets = [0, 8], sizes = [8, 8], strides = [1, 1]} : vector<8x32xf32> to vector<8x8xf32>
    %1031 = arith.truncf %1030 : vector<8x8xf32> to vector<8x8xbf16>
    %1032 = vector.extract_strided_slice %1004 {offsets = [0, 8], sizes = [8, 8], strides = [1, 1]} : vector<8x32xf32> to vector<8x8xf32>
    %1033 = arith.truncf %1032 : vector<8x8xf32> to vector<8x8xbf16>
    "tpu.trace_start"() <{level = 10 : i32, message = "qd,kd->qk"}> : () -> ()
    %cst_313 = arith.constant dense<0.000000e+00> : vector<8x8xf32>
    %1034 = tpu.matmul %1031, %1033, %cst_313 {dimension_numbers = #tpu.dot_dimension_numbers<[1], [1], [0], [0], [0, 0, 1, 0], [], []>} : vector<8x8xbf16>, vector<8x8xbf16>, vector<8x8xf32> -> vector<8x8xf32>
    "tpu.trace_stop"() : () -> ()
    %cst_314 = arith.constant 0.353553385 : f32
    %1035 = vector.broadcast %cst_314 : f32 to vector<8x8xf32>
    %1036 = arith.mulf %1034, %1035 : vector<8x8xf32>
    %1037 = vector.extract_strided_slice %0 {offsets = [1, 0, 0], sizes = [1, 8, 8], strides = [1, 1, 1]} : vector<2x8x8xf32> to vector<1x8x8xf32>
    %1038 = vector.shape_cast %1037 : vector<1x8x8xf32> to vector<8x8xf32>
    %1039 = arith.addf %1036, %1038 : vector<8x8xf32>
    %cst_315 = arith.constant dense<0xFF800000> : vector<8xf32>
    %1040 = vector.multi_reduction <maximumf>, %1039, %cst_315 [1] : vector<8x8xf32> to vector<8xf32>
    %1041 = vector.shape_cast %1040 : vector<8xf32> to vector<8x1xf32>
    %1042 = vector.broadcast %1041 : vector<8x1xf32> to vector<8x8xf32>
    %1043 = arith.subf %1039, %1042 : vector<8x8xf32>
    %1044 = math.exp %1043 : vector<8x8xf32>
    %cst_316 = arith.constant dense<0.000000e+00> : vector<8xf32>
    %1045 = vector.multi_reduction <add>, %1044, %cst_316 [1] : vector<8x8xf32> to vector<8xf32>
    %1046 = vector.shape_cast %1045 : vector<8xf32> to vector<8x1xf32>
    %1047 = tpu.reciprocal %1046 {approx = true} : vector<8x1xf32> -> vector<8x1xf32>
    %1048 = vector.broadcast %1047 : vector<8x1xf32> to vector<8x8xf32>
    %1049 = arith.mulf %1044, %1048 : vector<8x8xf32>
    %1050 = arith.truncf %1049 : vector<8x8xf32> to vector<8x8xbf16>
    %1051 = vector.extract_strided_slice %1005 {offsets = [0, 8], sizes = [8, 8], strides = [1, 1]} : vector<8x32xf32> to vector<8x8xf32>
    %1052 = arith.truncf %1051 : vector<8x8xf32> to vector<8x8xbf16>
    %cst_317 = arith.constant dense<0.000000e+00> : vector<8x8xf32>
    %1053 = tpu.matmul %1050, %1052, %cst_317 {dimension_numbers = #tpu.dot_dimension_numbers<[1], [0], [0], [1], [0, 0, 1, 1], [], []>} : vector<8x8xbf16>, vector<8x8xbf16>, vector<8x8xf32> -> vector<8x8xf32>
    %1054 = vector.extract_strided_slice %1003 {offsets = [0, 16], sizes = [8, 8], strides = [1, 1]} : vector<8x32xf32> to vector<8x8xf32>
    %1055 = arith.truncf %1054 : vector<8x8xf32> to vector<8x8xbf16>
    %1056 = vector.extract_strided_slice %1004 {offsets = [0, 16], sizes = [8, 8], strides = [1, 1]} : vector<8x32xf32> to vector<8x8xf32>
    %1057 = arith.truncf %1056 : vector<8x8xf32> to vector<8x8xbf16>
    "tpu.trace_start"() <{level = 10 : i32, message = "qd,kd->qk"}> : () -> ()
    %cst_318 = arith.constant dense<0.000000e+00> : vector<8x8xf32>
    %1058 = tpu.matmul %1055, %1057, %cst_318 {dimension_numbers = #tpu.dot_dimension_numbers<[1], [1], [0], [0], [0, 0, 1, 0], [], []>} : vector<8x8xbf16>, vector<8x8xbf16>, vector<8x8xf32> -> vector<8x8xf32>
    "tpu.trace_stop"() : () -> ()
    %cst_319 = arith.constant 0.353553385 : f32
    %1059 = vector.broadcast %cst_319 : f32 to vector<8x8xf32>
    %1060 = arith.mulf %1058, %1059 : vector<8x8xf32>
    %1061 = vector.extract_strided_slice %0 {offsets = [1, 0, 0], sizes = [1, 8, 8], strides = [1, 1, 1]} : vector<2x8x8xf32> to vector<1x8x8xf32>
    %1062 = vector.shape_cast %1061 : vector<1x8x8xf32> to vector<8x8xf32>
    %1063 = arith.addf %1060, %1062 : vector<8x8xf32>
    %cst_320 = arith.constant dense<0xFF800000> : vector<8xf32>
    %1064 = vector.multi_reduction <maximumf>, %1063, %cst_320 [1] : vector<8x8xf32> to vector<8xf32>
    %1065 = vector.shape_cast %1064 : vector<8xf32> to vector<8x1xf32>
    %1066 = vector.broadcast %1065 : vector<8x1xf32> to vector<8x8xf32>
    %1067 = arith.subf %1063, %1066 : vector<8x8xf32>
    %1068 = math.exp %1067 : vector<8x8xf32>
    %cst_321 = arith.constant dense<0.000000e+00> : vector<8xf32>
    %1069 = vector.multi_reduction <add>, %1068, %cst_321 [1] : vector<8x8xf32> to vector<8xf32>
    %1070 = vector.shape_cast %1069 : vector<8xf32> to vector<8x1xf32>
    %1071 = tpu.reciprocal %1070 {approx = true} : vector<8x1xf32> -> vector<8x1xf32>
    %1072 = vector.broadcast %1071 : vector<8x1xf32> to vector<8x8xf32>
    %1073 = arith.mulf %1068, %1072 : vector<8x8xf32>
    %1074 = arith.truncf %1073 : vector<8x8xf32> to vector<8x8xbf16>
    %1075 = vector.extract_strided_slice %1005 {offsets = [0, 16], sizes = [8, 8], strides = [1, 1]} : vector<8x32xf32> to vector<8x8xf32>
    %1076 = arith.truncf %1075 : vector<8x8xf32> to vector<8x8xbf16>
    %cst_322 = arith.constant dense<0.000000e+00> : vector<8x8xf32>
    %1077 = tpu.matmul %1074, %1076, %cst_322 {dimension_numbers = #tpu.dot_dimension_numbers<[1], [0], [0], [1], [0, 0, 1, 1], [], []>} : vector<8x8xbf16>, vector<8x8xbf16>, vector<8x8xf32> -> vector<8x8xf32>
    %1078 = vector.extract_strided_slice %1003 {offsets = [0, 24], sizes = [8, 8], strides = [1, 1]} : vector<8x32xf32> to vector<8x8xf32>
    %1079 = arith.truncf %1078 : vector<8x8xf32> to vector<8x8xbf16>
    %1080 = vector.extract_strided_slice %1004 {offsets = [0, 24], sizes = [8, 8], strides = [1, 1]} : vector<8x32xf32> to vector<8x8xf32>
    %1081 = arith.truncf %1080 : vector<8x8xf32> to vector<8x8xbf16>
    "tpu.trace_start"() <{level = 10 : i32, message = "qd,kd->qk"}> : () -> ()
    %cst_323 = arith.constant dense<0.000000e+00> : vector<8x8xf32>
    %1082 = tpu.matmul %1079, %1081, %cst_323 {dimension_numbers = #tpu.dot_dimension_numbers<[1], [1], [0], [0], [0, 0, 1, 0], [], []>} : vector<8x8xbf16>, vector<8x8xbf16>, vector<8x8xf32> -> vector<8x8xf32>
    "tpu.trace_stop"() : () -> ()
    %cst_324 = arith.constant 0.353553385 : f32
    %1083 = vector.broadcast %cst_324 : f32 to vector<8x8xf32>
    %1084 = arith.mulf %1082, %1083 : vector<8x8xf32>
    %1085 = vector.extract_strided_slice %0 {offsets = [1, 0, 0], sizes = [1, 8, 8], strides = [1, 1, 1]} : vector<2x8x8xf32> to vector<1x8x8xf32>
    %1086 = vector.shape_cast %1085 : vector<1x8x8xf32> to vector<8x8xf32>
    %1087 = arith.addf %1084, %1086 : vector<8x8xf32>
    %cst_325 = arith.constant dense<0xFF800000> : vector<8xf32>
    %1088 = vector.multi_reduction <maximumf>, %1087, %cst_325 [1] : vector<8x8xf32> to vector<8xf32>
    %1089 = vector.shape_cast %1088 : vector<8xf32> to vector<8x1xf32>
    %1090 = vector.broadcast %1089 : vector<8x1xf32> to vector<8x8xf32>
    %1091 = arith.subf %1087, %1090 : vector<8x8xf32>
    %1092 = math.exp %1091 : vector<8x8xf32>
    %cst_326 = arith.constant dense<0.000000e+00> : vector<8xf32>
    %1093 = vector.multi_reduction <add>, %1092, %cst_326 [1] : vector<8x8xf32> to vector<8xf32>
    %1094 = vector.shape_cast %1093 : vector<8xf32> to vector<8x1xf32>
    %1095 = tpu.reciprocal %1094 {approx = true} : vector<8x1xf32> -> vector<8x1xf32>
    %1096 = vector.broadcast %1095 : vector<8x1xf32> to vector<8x8xf32>
    %1097 = arith.mulf %1092, %1096 : vector<8x8xf32>
    %1098 = arith.truncf %1097 : vector<8x8xf32> to vector<8x8xbf16>
    %1099 = vector.extract_strided_slice %1005 {offsets = [0, 24], sizes = [8, 8], strides = [1, 1]} : vector<8x32xf32> to vector<8x8xf32>
    %1100 = arith.truncf %1099 : vector<8x8xf32> to vector<8x8xbf16>
    %cst_327 = arith.constant dense<0.000000e+00> : vector<8x8xf32>
    %1101 = tpu.matmul %1098, %1100, %cst_327 {dimension_numbers = #tpu.dot_dimension_numbers<[1], [0], [0], [1], [0, 0, 1, 1], [], []>} : vector<8x8xbf16>, vector<8x8xbf16>, vector<8x8xf32> -> vector<8x8xf32>
    %1102 = tpu.concatenate %1029, %1053, %1077, %1101 in 1 : vector<8x8xf32>, vector<8x8xf32>, vector<8x8xf32>, vector<8x8xf32> -> vector<8x32xf32>
    %1103 = tpu.concatenate %1002, %1102 in 0 : vector<8x32xf32>, vector<8x32xf32> -> vector<16x32xf32>
    %c0_328 = arith.constant 0 : index
    %c0_329 = arith.constant 0 : index
    %c0_330 = arith.constant 0 : index
    %1104 = vector.load %arg31[%c0_328, %c0_329, %c0_330] : memref<2x32x32xbf16, #tpu.memory_space<vmem>>, vector<1x32x32xbf16>
    %1105 = vector.shape_cast %1104 : vector<1x32x32xbf16> to vector<32x32xbf16>
    %c0_331 = arith.constant 0 : index
    %c0_332 = arith.constant 0 : index
    %c0_333 = arith.constant 0 : index
    %1106 = vector.load %arg32[%c0_331, %c0_332, %c0_333] : memref<2x1x32xf32, #tpu.memory_space<vmem>>, vector<1x1x32xf32>
    %1107 = vector.shape_cast %1106 : vector<1x1x32xf32> to vector<1x32xf32>
    %1108 = arith.truncf %1103 : vector<16x32xf32> to vector<16x32xbf16>
    %cst_334 = arith.constant dense<0.000000e+00> : vector<16x32xf32>
    %1109 = tpu.matmul %1108, %1105, %cst_334 {dimension_numbers = #tpu.dot_dimension_numbers<[1], [0], [0], [1], [0, 0, 1, 1], [], []>} : vector<16x32xbf16>, vector<32x32xbf16>, vector<16x32xf32> -> vector<16x32xf32>
    %1110 = vector.broadcast %1107 : vector<1x32xf32> to vector<16x32xf32>
    %1111 = arith.addf %1109, %1110 : vector<16x32xf32>
    %1112 = arith.addf %858, %1111 : vector<16x32xf32>
    %c0_335 = arith.constant 0 : index
    %c0_336 = arith.constant 0 : index
    %c0_337 = arith.constant 0 : index
    %1113 = vector.load %arg33[%c0_335, %c0_336, %c0_337] : memref<2x1x32xf32, #tpu.memory_space<vmem>>, vector<1x1x32xf32>
    %1114 = vector.shape_cast %1113 : vector<1x1x32xf32> to vector<1x32xf32>
    %c0_338 = arith.constant 0 : index
    %c0_339 = arith.constant 0 : index
    %c0_340 = arith.constant 0 : index
    %1115 = vector.load %arg34[%c0_338, %c0_339, %c0_340] : memref<2x1x32xf32, #tpu.memory_space<vmem>>, vector<1x1x32xf32>
    %1116 = vector.shape_cast %1115 : vector<1x1x32xf32> to vector<1x32xf32>
    %cst_341 = arith.constant dense<0.000000e+00> : vector<16xf32>
    %1117 = vector.multi_reduction <add>, %1112, %cst_341 [1] : vector<16x32xf32> to vector<16xf32>
    %1118 = vector.shape_cast %1117 : vector<16xf32> to vector<16x1xf32>
    %cst_342 = arith.constant 3.200000e+01 : f32
    %1119 = vector.broadcast %cst_342 : f32 to vector<16x1xf32>
    %1120 = arith.divf %1118, %1119 : vector<16x1xf32>
    %1121 = vector.broadcast %1120 : vector<16x1xf32> to vector<16x32xf32>
    %1122 = arith.subf %1112, %1121 : vector<16x32xf32>
    %1123 = arith.mulf %1122, %1122 : vector<16x32xf32>
    %cst_343 = arith.constant dense<0.000000e+00> : vector<16xf32>
    %1124 = vector.multi_reduction <add>, %1123, %cst_343 [1] : vector<16x32xf32> to vector<16xf32>
    %1125 = vector.shape_cast %1124 : vector<16xf32> to vector<16x1xf32>
    %cst_344 = arith.constant 3.200000e+01 : f32
    %1126 = vector.broadcast %cst_344 : f32 to vector<16x1xf32>
    %1127 = arith.divf %1125, %1126 : vector<16x1xf32>
    %1128 = vector.broadcast %1120 : vector<16x1xf32> to vector<16x32xf32>
    %1129 = arith.subf %1112, %1128 : vector<16x32xf32>
    %cst_345 = arith.constant 9.99999997E-7 : f32
    %1130 = vector.broadcast %cst_345 : f32 to vector<16x1xf32>
    %1131 = arith.addf %1127, %1130 : vector<16x1xf32>
    %1132 = math.sqrt %1131 : vector<16x1xf32>
    %1133 = vector.broadcast %1132 : vector<16x1xf32> to vector<16x32xf32>
    %1134 = arith.divf %1129, %1133 : vector<16x32xf32>
    %1135 = vector.broadcast %1114 : vector<1x32xf32> to vector<16x32xf32>
    %1136 = arith.mulf %1134, %1135 : vector<16x32xf32>
    %1137 = vector.broadcast %1116 : vector<1x32xf32> to vector<16x32xf32>
    %1138 = arith.addf %1136, %1137 : vector<16x32xf32>
    %c0_346 = arith.constant 0 : index
    %c0_347 = arith.constant 0 : index
    %c0_348 = arith.constant 0 : index
    %1139 = vector.load %arg35[%c0_346, %c0_347, %c0_348] : memref<2x32x64xbf16, #tpu.memory_space<vmem>>, vector<1x32x64xbf16>
    %1140 = vector.shape_cast %1139 : vector<1x32x64xbf16> to vector<32x64xbf16>
    %c0_349 = arith.constant 0 : index
    %c0_350 = arith.constant 0 : index
    %c0_351 = arith.constant 0 : index
    %1141 = vector.load %arg36[%c0_349, %c0_350, %c0_351] : memref<2x1x64xf32, #tpu.memory_space<vmem>>, vector<1x1x64xf32>
    %1142 = vector.shape_cast %1141 : vector<1x1x64xf32> to vector<1x64xf32>
    %1143 = arith.truncf %1138 : vector<16x32xf32> to vector<16x32xbf16>
    %cst_352 = arith.constant dense<0.000000e+00> : vector<16x64xf32>
    %1144 = tpu.matmul %1143, %1140, %cst_352 {dimension_numbers = #tpu.dot_dimension_numbers<[1], [0], [0], [1], [0, 0, 1, 1], [], []>} : vector<16x32xbf16>, vector<32x64xbf16>, vector<16x64xf32> -> vector<16x64xf32>
    %1145 = vector.broadcast %1142 : vector<1x64xf32> to vector<16x64xf32>
    %1146 = arith.addf %1144, %1145 : vector<16x64xf32>
    %cst_353 = arith.constant 0.000000e+00 : f32
    %1147 = vector.broadcast %cst_353 : f32 to vector<16x64xf32>
    %1148 = arith.maximumf %1146, %1147 : vector<16x64xf32>
    %c0_354 = arith.constant 0 : index
    %c0_355 = arith.constant 0 : index
    %c0_356 = arith.constant 0 : index
    %1149 = vector.load %arg37[%c0_354, %c0_355, %c0_356] : memref<2x64x32xbf16, #tpu.memory_space<vmem>>, vector<1x64x32xbf16>
    %1150 = vector.shape_cast %1149 : vector<1x64x32xbf16> to vector<64x32xbf16>
    %c0_357 = arith.constant 0 : index
    %c0_358 = arith.constant 0 : index
    %c0_359 = arith.constant 0 : index
    %1151 = vector.load %arg38[%c0_357, %c0_358, %c0_359] : memref<2x1x32xf32, #tpu.memory_space<vmem>>, vector<1x1x32xf32>
    %1152 = vector.shape_cast %1151 : vector<1x1x32xf32> to vector<1x32xf32>
    %1153 = arith.truncf %1148 : vector<16x64xf32> to vector<16x64xbf16>
    %cst_360 = arith.constant dense<0.000000e+00> : vector<16x32xf32>
    %1154 = tpu.matmul %1153, %1150, %cst_360 {dimension_numbers = #tpu.dot_dimension_numbers<[1], [0], [0], [1], [0, 0, 1, 1], [], []>} : vector<16x64xbf16>, vector<64x32xbf16>, vector<16x32xf32> -> vector<16x32xf32>
    %1155 = vector.broadcast %1152 : vector<1x32xf32> to vector<16x32xf32>
    %1156 = arith.addf %1154, %1155 : vector<16x32xf32>
    %1157 = arith.addf %1112, %1156 : vector<16x32xf32>
    %c1_361 = arith.constant 1 : index
    %c0_362 = arith.constant 0 : index
    %c0_363 = arith.constant 0 : index
    %1158 = vector.load %arg19[%c1_361, %c0_362, %c0_363] : memref<2x1x32xf32, #tpu.memory_space<vmem>>, vector<1x1x32xf32>
    %1159 = vector.shape_cast %1158 : vector<1x1x32xf32> to vector<1x32xf32>
    %c1_364 = arith.constant 1 : index
    %c0_365 = arith.constant 0 : index
    %c0_366 = arith.constant 0 : index
    %1160 = vector.load %arg20[%c1_364, %c0_365, %c0_366] : memref<2x1x32xf32, #tpu.memory_space<vmem>>, vector<1x1x32xf32>
    %1161 = vector.shape_cast %1160 : vector<1x1x32xf32> to vector<1x32xf32>
    %cst_367 = arith.constant dense<0.000000e+00> : vector<16xf32>
    %1162 = vector.multi_reduction <add>, %1157, %cst_367 [1] : vector<16x32xf32> to vector<16xf32>
    %1163 = vector.shape_cast %1162 : vector<16xf32> to vector<16x1xf32>
    %cst_368 = arith.constant 3.200000e+01 : f32
    %1164 = vector.broadcast %cst_368 : f32 to vector<16x1xf32>
    %1165 = arith.divf %1163, %1164 : vector<16x1xf32>
    %1166 = vector.broadcast %1165 : vector<16x1xf32> to vector<16x32xf32>
    %1167 = arith.subf %1157, %1166 : vector<16x32xf32>
    %1168 = arith.mulf %1167, %1167 : vector<16x32xf32>
    %cst_369 = arith.constant dense<0.000000e+00> : vector<16xf32>
    %1169 = vector.multi_reduction <add>, %1168, %cst_369 [1] : vector<16x32xf32> to vector<16xf32>
    %1170 = vector.shape_cast %1169 : vector<16xf32> to vector<16x1xf32>
    %cst_370 = arith.constant 3.200000e+01 : f32
    %1171 = vector.broadcast %cst_370 : f32 to vector<16x1xf32>
    %1172 = arith.divf %1170, %1171 : vector<16x1xf32>
    %1173 = vector.broadcast %1165 : vector<16x1xf32> to vector<16x32xf32>
    %1174 = arith.subf %1157, %1173 : vector<16x32xf32>
    %cst_371 = arith.constant 9.99999997E-7 : f32
    %1175 = vector.broadcast %cst_371 : f32 to vector<16x1xf32>
    %1176 = arith.addf %1172, %1175 : vector<16x1xf32>
    %1177 = math.sqrt %1176 : vector<16x1xf32>
    %1178 = vector.broadcast %1177 : vector<16x1xf32> to vector<16x32xf32>
    %1179 = arith.divf %1174, %1178 : vector<16x32xf32>
    %1180 = vector.broadcast %1159 : vector<1x32xf32> to vector<16x32xf32>
    %1181 = arith.mulf %1179, %1180 : vector<16x32xf32>
    %1182 = vector.broadcast %1161 : vector<1x32xf32> to vector<16x32xf32>
    %1183 = arith.addf %1181, %1182 : vector<16x32xf32>
    %c1_372 = arith.constant 1 : index
    %c0_373 = arith.constant 0 : index
    %c0_374 = arith.constant 0 : index
    %1184 = vector.load %arg21[%c1_372, %c0_373, %c0_374] : memref<2x32x96xbf16, #tpu.memory_space<vmem>>, vector<1x32x96xbf16>
    %1185 = vector.shape_cast %1184 : vector<1x32x96xbf16> to vector<32x96xbf16>
    %c1_375 = arith.constant 1 : index
    %c0_376 = arith.constant 0 : index
    %c0_377 = arith.constant 0 : index
    %1186 = vector.load %arg22[%c1_375, %c0_376, %c0_377] : memref<2x1x96xf32, #tpu.memory_space<vmem>>, vector<1x1x96xf32>
    %1187 = vector.shape_cast %1186 : vector<1x1x96xf32> to vector<1x96xf32>
    %1188 = arith.truncf %1183 : vector<16x32xf32> to vector<16x32xbf16>
    %cst_378 = arith.constant dense<0.000000e+00> : vector<16x96xf32>
    %1189 = tpu.matmul %1188, %1185, %cst_378 {dimension_numbers = #tpu.dot_dimension_numbers<[1], [0], [0], [1], [0, 0, 1, 1], [], []>} : vector<16x32xbf16>, vector<32x96xbf16>, vector<16x96xf32> -> vector<16x96xf32>
    %1190 = vector.broadcast %1187 : vector<1x96xf32> to vector<16x96xf32>
    %1191 = arith.addf %1189, %1190 : vector<16x96xf32>
    %1192 = vector.extract_strided_slice %1191 {offsets = [0, 0], sizes = [16, 32], strides = [1, 1]} : vector<16x96xf32> to vector<16x32xf32>
    %1193 = vector.extract_strided_slice %1191 {offsets = [0, 32], sizes = [16, 32], strides = [1, 1]} : vector<16x96xf32> to vector<16x32xf32>
    %1194 = vector.extract_strided_slice %1191 {offsets = [0, 64], sizes = [16, 32], strides = [1, 1]} : vector<16x96xf32> to vector<16x32xf32>
    %1195 = vector.extract_strided_slice %1192 {offsets = [0, 0], sizes = [8, 32], strides = [1, 1]} : vector<16x32xf32> to vector<8x32xf32>
    %1196 = vector.extract_strided_slice %1193 {offsets = [0, 0], sizes = [8, 32], strides = [1, 1]} : vector<16x32xf32> to vector<8x32xf32>
    %1197 = vector.extract_strided_slice %1194 {offsets = [0, 0], sizes = [8, 32], strides = [1, 1]} : vector<16x32xf32> to vector<8x32xf32>
    %1198 = vector.extract_strided_slice %1195 {offsets = [0, 0], sizes = [8, 8], strides = [1, 1]} : vector<8x32xf32> to vector<8x8xf32>
    %1199 = arith.truncf %1198 : vector<8x8xf32> to vector<8x8xbf16>
    %1200 = vector.extract_strided_slice %1196 {offsets = [0, 0], sizes = [8, 8], strides = [1, 1]} : vector<8x32xf32> to vector<8x8xf32>
    %1201 = arith.truncf %1200 : vector<8x8xf32> to vector<8x8xbf16>
    "tpu.trace_start"() <{level = 10 : i32, message = "qd,kd->qk"}> : () -> ()
    %cst_379 = arith.constant dense<0.000000e+00> : vector<8x8xf32>
    %1202 = tpu.matmul %1199, %1201, %cst_379 {dimension_numbers = #tpu.dot_dimension_numbers<[1], [1], [0], [0], [0, 0, 1, 0], [], []>} : vector<8x8xbf16>, vector<8x8xbf16>, vector<8x8xf32> -> vector<8x8xf32>
    "tpu.trace_stop"() : () -> ()
    %cst_380 = arith.constant 0.353553385 : f32
    %1203 = vector.broadcast %cst_380 : f32 to vector<8x8xf32>
    %1204 = arith.mulf %1202, %1203 : vector<8x8xf32>
    %1205 = vector.extract_strided_slice %1 {offsets = [0, 0, 0], sizes = [1, 8, 8], strides = [1, 1, 1]} : vector<2x8x8xf32> to vector<1x8x8xf32>
    %1206 = vector.shape_cast %1205 : vector<1x8x8xf32> to vector<8x8xf32>
    %1207 = arith.addf %1204, %1206 : vector<8x8xf32>
    %cst_381 = arith.constant dense<0xFF800000> : vector<8xf32>
    %1208 = vector.multi_reduction <maximumf>, %1207, %cst_381 [1] : vector<8x8xf32> to vector<8xf32>
    %1209 = vector.shape_cast %1208 : vector<8xf32> to vector<8x1xf32>
    %1210 = vector.broadcast %1209 : vector<8x1xf32> to vector<8x8xf32>
    %1211 = arith.subf %1207, %1210 : vector<8x8xf32>
    %1212 = math.exp %1211 : vector<8x8xf32>
    %cst_382 = arith.constant dense<0.000000e+00> : vector<8xf32>
    %1213 = vector.multi_reduction <add>, %1212, %cst_382 [1] : vector<8x8xf32> to vector<8xf32>
    %1214 = vector.shape_cast %1213 : vector<8xf32> to vector<8x1xf32>
    %1215 = tpu.reciprocal %1214 {approx = true} : vector<8x1xf32> -> vector<8x1xf32>
    %1216 = vector.broadcast %1215 : vector<8x1xf32> to vector<8x8xf32>
    %1217 = arith.mulf %1212, %1216 : vector<8x8xf32>
    %1218 = arith.truncf %1217 : vector<8x8xf32> to vector<8x8xbf16>
    %1219 = vector.extract_strided_slice %1197 {offsets = [0, 0], sizes = [8, 8], strides = [1, 1]} : vector<8x32xf32> to vector<8x8xf32>
    %1220 = arith.truncf %1219 : vector<8x8xf32> to vector<8x8xbf16>
    %cst_383 = arith.constant dense<0.000000e+00> : vector<8x8xf32>
    %1221 = tpu.matmul %1218, %1220, %cst_383 {dimension_numbers = #tpu.dot_dimension_numbers<[1], [0], [0], [1], [0, 0, 1, 1], [], []>} : vector<8x8xbf16>, vector<8x8xbf16>, vector<8x8xf32> -> vector<8x8xf32>
    %1222 = vector.extract_strided_slice %1195 {offsets = [0, 8], sizes = [8, 8], strides = [1, 1]} : vector<8x32xf32> to vector<8x8xf32>
    %1223 = arith.truncf %1222 : vector<8x8xf32> to vector<8x8xbf16>
    %1224 = vector.extract_strided_slice %1196 {offsets = [0, 8], sizes = [8, 8], strides = [1, 1]} : vector<8x32xf32> to vector<8x8xf32>
    %1225 = arith.truncf %1224 : vector<8x8xf32> to vector<8x8xbf16>
    "tpu.trace_start"() <{level = 10 : i32, message = "qd,kd->qk"}> : () -> ()
    %cst_384 = arith.constant dense<0.000000e+00> : vector<8x8xf32>
    %1226 = tpu.matmul %1223, %1225, %cst_384 {dimension_numbers = #tpu.dot_dimension_numbers<[1], [1], [0], [0], [0, 0, 1, 0], [], []>} : vector<8x8xbf16>, vector<8x8xbf16>, vector<8x8xf32> -> vector<8x8xf32>
    "tpu.trace_stop"() : () -> ()
    %cst_385 = arith.constant 0.353553385 : f32
    %1227 = vector.broadcast %cst_385 : f32 to vector<8x8xf32>
    %1228 = arith.mulf %1226, %1227 : vector<8x8xf32>
    %1229 = vector.extract_strided_slice %1 {offsets = [0, 0, 0], sizes = [1, 8, 8], strides = [1, 1, 1]} : vector<2x8x8xf32> to vector<1x8x8xf32>
    %1230 = vector.shape_cast %1229 : vector<1x8x8xf32> to vector<8x8xf32>
    %1231 = arith.addf %1228, %1230 : vector<8x8xf32>
    %cst_386 = arith.constant dense<0xFF800000> : vector<8xf32>
    %1232 = vector.multi_reduction <maximumf>, %1231, %cst_386 [1] : vector<8x8xf32> to vector<8xf32>
    %1233 = vector.shape_cast %1232 : vector<8xf32> to vector<8x1xf32>
    %1234 = vector.broadcast %1233 : vector<8x1xf32> to vector<8x8xf32>
    %1235 = arith.subf %1231, %1234 : vector<8x8xf32>
    %1236 = math.exp %1235 : vector<8x8xf32>
    %cst_387 = arith.constant dense<0.000000e+00> : vector<8xf32>
    %1237 = vector.multi_reduction <add>, %1236, %cst_387 [1] : vector<8x8xf32> to vector<8xf32>
    %1238 = vector.shape_cast %1237 : vector<8xf32> to vector<8x1xf32>
    %1239 = tpu.reciprocal %1238 {approx = true} : vector<8x1xf32> -> vector<8x1xf32>
    %1240 = vector.broadcast %1239 : vector<8x1xf32> to vector<8x8xf32>
    %1241 = arith.mulf %1236, %1240 : vector<8x8xf32>
    %1242 = arith.truncf %1241 : vector<8x8xf32> to vector<8x8xbf16>
    %1243 = vector.extract_strided_slice %1197 {offsets = [0, 8], sizes = [8, 8], strides = [1, 1]} : vector<8x32xf32> to vector<8x8xf32>
    %1244 = arith.truncf %1243 : vector<8x8xf32> to vector<8x8xbf16>
    %cst_388 = arith.constant dense<0.000000e+00> : vector<8x8xf32>
    %1245 = tpu.matmul %1242, %1244, %cst_388 {dimension_numbers = #tpu.dot_dimension_numbers<[1], [0], [0], [1], [0, 0, 1, 1], [], []>} : vector<8x8xbf16>, vector<8x8xbf16>, vector<8x8xf32> -> vector<8x8xf32>
    %1246 = vector.extract_strided_slice %1195 {offsets = [0, 16], sizes = [8, 8], strides = [1, 1]} : vector<8x32xf32> to vector<8x8xf32>
    %1247 = arith.truncf %1246 : vector<8x8xf32> to vector<8x8xbf16>
    %1248 = vector.extract_strided_slice %1196 {offsets = [0, 16], sizes = [8, 8], strides = [1, 1]} : vector<8x32xf32> to vector<8x8xf32>
    %1249 = arith.truncf %1248 : vector<8x8xf32> to vector<8x8xbf16>
    "tpu.trace_start"() <{level = 10 : i32, message = "qd,kd->qk"}> : () -> ()
    %cst_389 = arith.constant dense<0.000000e+00> : vector<8x8xf32>
    %1250 = tpu.matmul %1247, %1249, %cst_389 {dimension_numbers = #tpu.dot_dimension_numbers<[1], [1], [0], [0], [0, 0, 1, 0], [], []>} : vector<8x8xbf16>, vector<8x8xbf16>, vector<8x8xf32> -> vector<8x8xf32>
    "tpu.trace_stop"() : () -> ()
    %cst_390 = arith.constant 0.353553385 : f32
    %1251 = vector.broadcast %cst_390 : f32 to vector<8x8xf32>
    %1252 = arith.mulf %1250, %1251 : vector<8x8xf32>
    %1253 = vector.extract_strided_slice %1 {offsets = [0, 0, 0], sizes = [1, 8, 8], strides = [1, 1, 1]} : vector<2x8x8xf32> to vector<1x8x8xf32>
    %1254 = vector.shape_cast %1253 : vector<1x8x8xf32> to vector<8x8xf32>
    %1255 = arith.addf %1252, %1254 : vector<8x8xf32>
    %cst_391 = arith.constant dense<0xFF800000> : vector<8xf32>
    %1256 = vector.multi_reduction <maximumf>, %1255, %cst_391 [1] : vector<8x8xf32> to vector<8xf32>
    %1257 = vector.shape_cast %1256 : vector<8xf32> to vector<8x1xf32>
    %1258 = vector.broadcast %1257 : vector<8x1xf32> to vector<8x8xf32>
    %1259 = arith.subf %1255, %1258 : vector<8x8xf32>
    %1260 = math.exp %1259 : vector<8x8xf32>
    %cst_392 = arith.constant dense<0.000000e+00> : vector<8xf32>
    %1261 = vector.multi_reduction <add>, %1260, %cst_392 [1] : vector<8x8xf32> to vector<8xf32>
    %1262 = vector.shape_cast %1261 : vector<8xf32> to vector<8x1xf32>
    %1263 = tpu.reciprocal %1262 {approx = true} : vector<8x1xf32> -> vector<8x1xf32>
    %1264 = vector.broadcast %1263 : vector<8x1xf32> to vector<8x8xf32>
    %1265 = arith.mulf %1260, %1264 : vector<8x8xf32>
    %1266 = arith.truncf %1265 : vector<8x8xf32> to vector<8x8xbf16>
    %1267 = vector.extract_strided_slice %1197 {offsets = [0, 16], sizes = [8, 8], strides = [1, 1]} : vector<8x32xf32> to vector<8x8xf32>
    %1268 = arith.truncf %1267 : vector<8x8xf32> to vector<8x8xbf16>
    %cst_393 = arith.constant dense<0.000000e+00> : vector<8x8xf32>
    %1269 = tpu.matmul %1266, %1268, %cst_393 {dimension_numbers = #tpu.dot_dimension_numbers<[1], [0], [0], [1], [0, 0, 1, 1], [], []>} : vector<8x8xbf16>, vector<8x8xbf16>, vector<8x8xf32> -> vector<8x8xf32>
    %1270 = vector.extract_strided_slice %1195 {offsets = [0, 24], sizes = [8, 8], strides = [1, 1]} : vector<8x32xf32> to vector<8x8xf32>
    %1271 = arith.truncf %1270 : vector<8x8xf32> to vector<8x8xbf16>
    %1272 = vector.extract_strided_slice %1196 {offsets = [0, 24], sizes = [8, 8], strides = [1, 1]} : vector<8x32xf32> to vector<8x8xf32>
    %1273 = arith.truncf %1272 : vector<8x8xf32> to vector<8x8xbf16>
    "tpu.trace_start"() <{level = 10 : i32, message = "qd,kd->qk"}> : () -> ()
    %cst_394 = arith.constant dense<0.000000e+00> : vector<8x8xf32>
    %1274 = tpu.matmul %1271, %1273, %cst_394 {dimension_numbers = #tpu.dot_dimension_numbers<[1], [1], [0], [0], [0, 0, 1, 0], [], []>} : vector<8x8xbf16>, vector<8x8xbf16>, vector<8x8xf32> -> vector<8x8xf32>
    "tpu.trace_stop"() : () -> ()
    %cst_395 = arith.constant 0.353553385 : f32
    %1275 = vector.broadcast %cst_395 : f32 to vector<8x8xf32>
    %1276 = arith.mulf %1274, %1275 : vector<8x8xf32>
    %1277 = vector.extract_strided_slice %1 {offsets = [0, 0, 0], sizes = [1, 8, 8], strides = [1, 1, 1]} : vector<2x8x8xf32> to vector<1x8x8xf32>
    %1278 = vector.shape_cast %1277 : vector<1x8x8xf32> to vector<8x8xf32>
    %1279 = arith.addf %1276, %1278 : vector<8x8xf32>
    %cst_396 = arith.constant dense<0xFF800000> : vector<8xf32>
    %1280 = vector.multi_reduction <maximumf>, %1279, %cst_396 [1] : vector<8x8xf32> to vector<8xf32>
    %1281 = vector.shape_cast %1280 : vector<8xf32> to vector<8x1xf32>
    %1282 = vector.broadcast %1281 : vector<8x1xf32> to vector<8x8xf32>
    %1283 = arith.subf %1279, %1282 : vector<8x8xf32>
    %1284 = math.exp %1283 : vector<8x8xf32>
    %cst_397 = arith.constant dense<0.000000e+00> : vector<8xf32>
    %1285 = vector.multi_reduction <add>, %1284, %cst_397 [1] : vector<8x8xf32> to vector<8xf32>
    %1286 = vector.shape_cast %1285 : vector<8xf32> to vector<8x1xf32>
    %1287 = tpu.reciprocal %1286 {approx = true} : vector<8x1xf32> -> vector<8x1xf32>
    %1288 = vector.broadcast %1287 : vector<8x1xf32> to vector<8x8xf32>
    %1289 = arith.mulf %1284, %1288 : vector<8x8xf32>
    %1290 = arith.truncf %1289 : vector<8x8xf32> to vector<8x8xbf16>
    %1291 = vector.extract_strided_slice %1197 {offsets = [0, 24], sizes = [8, 8], strides = [1, 1]} : vector<8x32xf32> to vector<8x8xf32>
    %1292 = arith.truncf %1291 : vector<8x8xf32> to vector<8x8xbf16>
    %cst_398 = arith.constant dense<0.000000e+00> : vector<8x8xf32>
    %1293 = tpu.matmul %1290, %1292, %cst_398 {dimension_numbers = #tpu.dot_dimension_numbers<[1], [0], [0], [1], [0, 0, 1, 1], [], []>} : vector<8x8xbf16>, vector<8x8xbf16>, vector<8x8xf32> -> vector<8x8xf32>
    %1294 = tpu.concatenate %1221, %1245, %1269, %1293 in 1 : vector<8x8xf32>, vector<8x8xf32>, vector<8x8xf32>, vector<8x8xf32> -> vector<8x32xf32>
    %1295 = vector.extract_strided_slice %1192 {offsets = [8, 0], sizes = [8, 32], strides = [1, 1]} : vector<16x32xf32> to vector<8x32xf32>
    %1296 = vector.extract_strided_slice %1193 {offsets = [8, 0], sizes = [8, 32], strides = [1, 1]} : vector<16x32xf32> to vector<8x32xf32>
    %1297 = vector.extract_strided_slice %1194 {offsets = [8, 0], sizes = [8, 32], strides = [1, 1]} : vector<16x32xf32> to vector<8x32xf32>
    %1298 = vector.extract_strided_slice %1295 {offsets = [0, 0], sizes = [8, 8], strides = [1, 1]} : vector<8x32xf32> to vector<8x8xf32>
    %1299 = arith.truncf %1298 : vector<8x8xf32> to vector<8x8xbf16>
    %1300 = vector.extract_strided_slice %1296 {offsets = [0, 0], sizes = [8, 8], strides = [1, 1]} : vector<8x32xf32> to vector<8x8xf32>
    %1301 = arith.truncf %1300 : vector<8x8xf32> to vector<8x8xbf16>
    "tpu.trace_start"() <{level = 10 : i32, message = "qd,kd->qk"}> : () -> ()
    %cst_399 = arith.constant dense<0.000000e+00> : vector<8x8xf32>
    %1302 = tpu.matmul %1299, %1301, %cst_399 {dimension_numbers = #tpu.dot_dimension_numbers<[1], [1], [0], [0], [0, 0, 1, 0], [], []>} : vector<8x8xbf16>, vector<8x8xbf16>, vector<8x8xf32> -> vector<8x8xf32>
    "tpu.trace_stop"() : () -> ()
    %cst_400 = arith.constant 0.353553385 : f32
    %1303 = vector.broadcast %cst_400 : f32 to vector<8x8xf32>
    %1304 = arith.mulf %1302, %1303 : vector<8x8xf32>
    %1305 = vector.extract_strided_slice %1 {offsets = [1, 0, 0], sizes = [1, 8, 8], strides = [1, 1, 1]} : vector<2x8x8xf32> to vector<1x8x8xf32>
    %1306 = vector.shape_cast %1305 : vector<1x8x8xf32> to vector<8x8xf32>
    %1307 = arith.addf %1304, %1306 : vector<8x8xf32>
    %cst_401 = arith.constant dense<0xFF800000> : vector<8xf32>
    %1308 = vector.multi_reduction <maximumf>, %1307, %cst_401 [1] : vector<8x8xf32> to vector<8xf32>
    %1309 = vector.shape_cast %1308 : vector<8xf32> to vector<8x1xf32>
    %1310 = vector.broadcast %1309 : vector<8x1xf32> to vector<8x8xf32>
    %1311 = arith.subf %1307, %1310 : vector<8x8xf32>
    %1312 = math.exp %1311 : vector<8x8xf32>
    %cst_402 = arith.constant dense<0.000000e+00> : vector<8xf32>
    %1313 = vector.multi_reduction <add>, %1312, %cst_402 [1] : vector<8x8xf32> to vector<8xf32>
    %1314 = vector.shape_cast %1313 : vector<8xf32> to vector<8x1xf32>
    %1315 = tpu.reciprocal %1314 {approx = true} : vector<8x1xf32> -> vector<8x1xf32>
    %1316 = vector.broadcast %1315 : vector<8x1xf32> to vector<8x8xf32>
    %1317 = arith.mulf %1312, %1316 : vector<8x8xf32>
    %1318 = arith.truncf %1317 : vector<8x8xf32> to vector<8x8xbf16>
    %1319 = vector.extract_strided_slice %1297 {offsets = [0, 0], sizes = [8, 8], strides = [1, 1]} : vector<8x32xf32> to vector<8x8xf32>
    %1320 = arith.truncf %1319 : vector<8x8xf32> to vector<8x8xbf16>
    %cst_403 = arith.constant dense<0.000000e+00> : vector<8x8xf32>
    %1321 = tpu.matmul %1318, %1320, %cst_403 {dimension_numbers = #tpu.dot_dimension_numbers<[1], [0], [0], [1], [0, 0, 1, 1], [], []>} : vector<8x8xbf16>, vector<8x8xbf16>, vector<8x8xf32> -> vector<8x8xf32>
    %1322 = vector.extract_strided_slice %1295 {offsets = [0, 8], sizes = [8, 8], strides = [1, 1]} : vector<8x32xf32> to vector<8x8xf32>
    %1323 = arith.truncf %1322 : vector<8x8xf32> to vector<8x8xbf16>
    %1324 = vector.extract_strided_slice %1296 {offsets = [0, 8], sizes = [8, 8], strides = [1, 1]} : vector<8x32xf32> to vector<8x8xf32>
    %1325 = arith.truncf %1324 : vector<8x8xf32> to vector<8x8xbf16>
    "tpu.trace_start"() <{level = 10 : i32, message = "qd,kd->qk"}> : () -> ()
    %cst_404 = arith.constant dense<0.000000e+00> : vector<8x8xf32>
    %1326 = tpu.matmul %1323, %1325, %cst_404 {dimension_numbers = #tpu.dot_dimension_numbers<[1], [1], [0], [0], [0, 0, 1, 0], [], []>} : vector<8x8xbf16>, vector<8x8xbf16>, vector<8x8xf32> -> vector<8x8xf32>
    "tpu.trace_stop"() : () -> ()
    %cst_405 = arith.constant 0.353553385 : f32
    %1327 = vector.broadcast %cst_405 : f32 to vector<8x8xf32>
    %1328 = arith.mulf %1326, %1327 : vector<8x8xf32>
    %1329 = vector.extract_strided_slice %1 {offsets = [1, 0, 0], sizes = [1, 8, 8], strides = [1, 1, 1]} : vector<2x8x8xf32> to vector<1x8x8xf32>
    %1330 = vector.shape_cast %1329 : vector<1x8x8xf32> to vector<8x8xf32>
    %1331 = arith.addf %1328, %1330 : vector<8x8xf32>
    %cst_406 = arith.constant dense<0xFF800000> : vector<8xf32>
    %1332 = vector.multi_reduction <maximumf>, %1331, %cst_406 [1] : vector<8x8xf32> to vector<8xf32>
    %1333 = vector.shape_cast %1332 : vector<8xf32> to vector<8x1xf32>
    %1334 = vector.broadcast %1333 : vector<8x1xf32> to vector<8x8xf32>
    %1335 = arith.subf %1331, %1334 : vector<8x8xf32>
    %1336 = math.exp %1335 : vector<8x8xf32>
    %cst_407 = arith.constant dense<0.000000e+00> : vector<8xf32>
    %1337 = vector.multi_reduction <add>, %1336, %cst_407 [1] : vector<8x8xf32> to vector<8xf32>
    %1338 = vector.shape_cast %1337 : vector<8xf32> to vector<8x1xf32>
    %1339 = tpu.reciprocal %1338 {approx = true} : vector<8x1xf32> -> vector<8x1xf32>
    %1340 = vector.broadcast %1339 : vector<8x1xf32> to vector<8x8xf32>
    %1341 = arith.mulf %1336, %1340 : vector<8x8xf32>
    %1342 = arith.truncf %1341 : vector<8x8xf32> to vector<8x8xbf16>
    %1343 = vector.extract_strided_slice %1297 {offsets = [0, 8], sizes = [8, 8], strides = [1, 1]} : vector<8x32xf32> to vector<8x8xf32>
    %1344 = arith.truncf %1343 : vector<8x8xf32> to vector<8x8xbf16>
    %cst_408 = arith.constant dense<0.000000e+00> : vector<8x8xf32>
    %1345 = tpu.matmul %1342, %1344, %cst_408 {dimension_numbers = #tpu.dot_dimension_numbers<[1], [0], [0], [1], [0, 0, 1, 1], [], []>} : vector<8x8xbf16>, vector<8x8xbf16>, vector<8x8xf32> -> vector<8x8xf32>
    %1346 = vector.extract_strided_slice %1295 {offsets = [0, 16], sizes = [8, 8], strides = [1, 1]} : vector<8x32xf32> to vector<8x8xf32>
    %1347 = arith.truncf %1346 : vector<8x8xf32> to vector<8x8xbf16>
    %1348 = vector.extract_strided_slice %1296 {offsets = [0, 16], sizes = [8, 8], strides = [1, 1]} : vector<8x32xf32> to vector<8x8xf32>
    %1349 = arith.truncf %1348 : vector<8x8xf32> to vector<8x8xbf16>
    "tpu.trace_start"() <{level = 10 : i32, message = "qd,kd->qk"}> : () -> ()
    %cst_409 = arith.constant dense<0.000000e+00> : vector<8x8xf32>
    %1350 = tpu.matmul %1347, %1349, %cst_409 {dimension_numbers = #tpu.dot_dimension_numbers<[1], [1], [0], [0], [0, 0, 1, 0], [], []>} : vector<8x8xbf16>, vector<8x8xbf16>, vector<8x8xf32> -> vector<8x8xf32>
    "tpu.trace_stop"() : () -> ()
    %cst_410 = arith.constant 0.353553385 : f32
    %1351 = vector.broadcast %cst_410 : f32 to vector<8x8xf32>
    %1352 = arith.mulf %1350, %1351 : vector<8x8xf32>
    %1353 = vector.extract_strided_slice %1 {offsets = [1, 0, 0], sizes = [1, 8, 8], strides = [1, 1, 1]} : vector<2x8x8xf32> to vector<1x8x8xf32>
    %1354 = vector.shape_cast %1353 : vector<1x8x8xf32> to vector<8x8xf32>
    %1355 = arith.addf %1352, %1354 : vector<8x8xf32>
    %cst_411 = arith.constant dense<0xFF800000> : vector<8xf32>
    %1356 = vector.multi_reduction <maximumf>, %1355, %cst_411 [1] : vector<8x8xf32> to vector<8xf32>
    %1357 = vector.shape_cast %1356 : vector<8xf32> to vector<8x1xf32>
    %1358 = vector.broadcast %1357 : vector<8x1xf32> to vector<8x8xf32>
    %1359 = arith.subf %1355, %1358 : vector<8x8xf32>
    %1360 = math.exp %1359 : vector<8x8xf32>
    %cst_412 = arith.constant dense<0.000000e+00> : vector<8xf32>
    %1361 = vector.multi_reduction <add>, %1360, %cst_412 [1] : vector<8x8xf32> to vector<8xf32>
    %1362 = vector.shape_cast %1361 : vector<8xf32> to vector<8x1xf32>
    %1363 = tpu.reciprocal %1362 {approx = true} : vector<8x1xf32> -> vector<8x1xf32>
    %1364 = vector.broadcast %1363 : vector<8x1xf32> to vector<8x8xf32>
    %1365 = arith.mulf %1360, %1364 : vector<8x8xf32>
    %1366 = arith.truncf %1365 : vector<8x8xf32> to vector<8x8xbf16>
    %1367 = vector.extract_strided_slice %1297 {offsets = [0, 16], sizes = [8, 8], strides = [1, 1]} : vector<8x32xf32> to vector<8x8xf32>
    %1368 = arith.truncf %1367 : vector<8x8xf32> to vector<8x8xbf16>
    %cst_413 = arith.constant dense<0.000000e+00> : vector<8x8xf32>
    %1369 = tpu.matmul %1366, %1368, %cst_413 {dimension_numbers = #tpu.dot_dimension_numbers<[1], [0], [0], [1], [0, 0, 1, 1], [], []>} : vector<8x8xbf16>, vector<8x8xbf16>, vector<8x8xf32> -> vector<8x8xf32>
    %1370 = vector.extract_strided_slice %1295 {offsets = [0, 24], sizes = [8, 8], strides = [1, 1]} : vector<8x32xf32> to vector<8x8xf32>
    %1371 = arith.truncf %1370 : vector<8x8xf32> to vector<8x8xbf16>
    %1372 = vector.extract_strided_slice %1296 {offsets = [0, 24], sizes = [8, 8], strides = [1, 1]} : vector<8x32xf32> to vector<8x8xf32>
    %1373 = arith.truncf %1372 : vector<8x8xf32> to vector<8x8xbf16>
    "tpu.trace_start"() <{level = 10 : i32, message = "qd,kd->qk"}> : () -> ()
    %cst_414 = arith.constant dense<0.000000e+00> : vector<8x8xf32>
    %1374 = tpu.matmul %1371, %1373, %cst_414 {dimension_numbers = #tpu.dot_dimension_numbers<[1], [1], [0], [0], [0, 0, 1, 0], [], []>} : vector<8x8xbf16>, vector<8x8xbf16>, vector<8x8xf32> -> vector<8x8xf32>
    "tpu.trace_stop"() : () -> ()
    %cst_415 = arith.constant 0.353553385 : f32
    %1375 = vector.broadcast %cst_415 : f32 to vector<8x8xf32>
    %1376 = arith.mulf %1374, %1375 : vector<8x8xf32>
    %1377 = vector.extract_strided_slice %1 {offsets = [1, 0, 0], sizes = [1, 8, 8], strides = [1, 1, 1]} : vector<2x8x8xf32> to vector<1x8x8xf32>
    %1378 = vector.shape_cast %1377 : vector<1x8x8xf32> to vector<8x8xf32>
    %1379 = arith.addf %1376, %1378 : vector<8x8xf32>
    %cst_416 = arith.constant dense<0xFF800000> : vector<8xf32>
    %1380 = vector.multi_reduction <maximumf>, %1379, %cst_416 [1] : vector<8x8xf32> to vector<8xf32>
    %1381 = vector.shape_cast %1380 : vector<8xf32> to vector<8x1xf32>
    %1382 = vector.broadcast %1381 : vector<8x1xf32> to vector<8x8xf32>
    %1383 = arith.subf %1379, %1382 : vector<8x8xf32>
    %1384 = math.exp %1383 : vector<8x8xf32>
    %cst_417 = arith.constant dense<0.000000e+00> : vector<8xf32>
    %1385 = vector.multi_reduction <add>, %1384, %cst_417 [1] : vector<8x8xf32> to vector<8xf32>
    %1386 = vector.shape_cast %1385 : vector<8xf32> to vector<8x1xf32>
    %1387 = tpu.reciprocal %1386 {approx = true} : vector<8x1xf32> -> vector<8x1xf32>
    %1388 = vector.broadcast %1387 : vector<8x1xf32> to vector<8x8xf32>
    %1389 = arith.mulf %1384, %1388 : vector<8x8xf32>
    %1390 = arith.truncf %1389 : vector<8x8xf32> to vector<8x8xbf16>
    %1391 = vector.extract_strided_slice %1297 {offsets = [0, 24], sizes = [8, 8], strides = [1, 1]} : vector<8x32xf32> to vector<8x8xf32>
    %1392 = arith.truncf %1391 : vector<8x8xf32> to vector<8x8xbf16>
    %cst_418 = arith.constant dense<0.000000e+00> : vector<8x8xf32>
    %1393 = tpu.matmul %1390, %1392, %cst_418 {dimension_numbers = #tpu.dot_dimension_numbers<[1], [0], [0], [1], [0, 0, 1, 1], [], []>} : vector<8x8xbf16>, vector<8x8xbf16>, vector<8x8xf32> -> vector<8x8xf32>
    %1394 = tpu.concatenate %1321, %1345, %1369, %1393 in 1 : vector<8x8xf32>, vector<8x8xf32>, vector<8x8xf32>, vector<8x8xf32> -> vector<8x32xf32>
    %1395 = tpu.concatenate %1294, %1394 in 0 : vector<8x32xf32>, vector<8x32xf32> -> vector<16x32xf32>
    %c1_419 = arith.constant 1 : index
    %c0_420 = arith.constant 0 : index
    %c0_421 = arith.constant 0 : index
    %1396 = vector.load %arg23[%c1_419, %c0_420, %c0_421] : memref<2x32x32xbf16, #tpu.memory_space<vmem>>, vector<1x32x32xbf16>
    %1397 = vector.shape_cast %1396 : vector<1x32x32xbf16> to vector<32x32xbf16>
    %c1_422 = arith.constant 1 : index
    %c0_423 = arith.constant 0 : index
    %c0_424 = arith.constant 0 : index
    %1398 = vector.load %arg24[%c1_422, %c0_423, %c0_424] : memref<2x1x32xf32, #tpu.memory_space<vmem>>, vector<1x1x32xf32>
    %1399 = vector.shape_cast %1398 : vector<1x1x32xf32> to vector<1x32xf32>
    %1400 = arith.truncf %1395 : vector<16x32xf32> to vector<16x32xbf16>
    %cst_425 = arith.constant dense<0.000000e+00> : vector<16x32xf32>
    %1401 = tpu.matmul %1400, %1397, %cst_425 {dimension_numbers = #tpu.dot_dimension_numbers<[1], [0], [0], [1], [0, 0, 1, 1], [], []>} : vector<16x32xbf16>, vector<32x32xbf16>, vector<16x32xf32> -> vector<16x32xf32>
    %1402 = vector.broadcast %1399 : vector<1x32xf32> to vector<16x32xf32>
    %1403 = arith.addf %1401, %1402 : vector<16x32xf32>
    %1404 = arith.addf %1157, %1403 : vector<16x32xf32>
    %c1_426 = arith.constant 1 : index
    %c0_427 = arith.constant 0 : index
    %c0_428 = arith.constant 0 : index
    %1405 = vector.load %arg25[%c1_426, %c0_427, %c0_428] : memref<2x1x32xf32, #tpu.memory_space<vmem>>, vector<1x1x32xf32>
    %1406 = vector.shape_cast %1405 : vector<1x1x32xf32> to vector<1x32xf32>
    %c1_429 = arith.constant 1 : index
    %c0_430 = arith.constant 0 : index
    %c0_431 = arith.constant 0 : index
    %1407 = vector.load %arg26[%c1_429, %c0_430, %c0_431] : memref<2x1x32xf32, #tpu.memory_space<vmem>>, vector<1x1x32xf32>
    %1408 = vector.shape_cast %1407 : vector<1x1x32xf32> to vector<1x32xf32>
    %cst_432 = arith.constant dense<0.000000e+00> : vector<16xf32>
    %1409 = vector.multi_reduction <add>, %1404, %cst_432 [1] : vector<16x32xf32> to vector<16xf32>
    %1410 = vector.shape_cast %1409 : vector<16xf32> to vector<16x1xf32>
    %cst_433 = arith.constant 3.200000e+01 : f32
    %1411 = vector.broadcast %cst_433 : f32 to vector<16x1xf32>
    %1412 = arith.divf %1410, %1411 : vector<16x1xf32>
    %1413 = vector.broadcast %1412 : vector<16x1xf32> to vector<16x32xf32>
    %1414 = arith.subf %1404, %1413 : vector<16x32xf32>
    %1415 = arith.mulf %1414, %1414 : vector<16x32xf32>
    %cst_434 = arith.constant dense<0.000000e+00> : vector<16xf32>
    %1416 = vector.multi_reduction <add>, %1415, %cst_434 [1] : vector<16x32xf32> to vector<16xf32>
    %1417 = vector.shape_cast %1416 : vector<16xf32> to vector<16x1xf32>
    %cst_435 = arith.constant 3.200000e+01 : f32
    %1418 = vector.broadcast %cst_435 : f32 to vector<16x1xf32>
    %1419 = arith.divf %1417, %1418 : vector<16x1xf32>
    %1420 = vector.broadcast %1412 : vector<16x1xf32> to vector<16x32xf32>
    %1421 = arith.subf %1404, %1420 : vector<16x32xf32>
    %cst_436 = arith.constant 9.99999997E-7 : f32
    %1422 = vector.broadcast %cst_436 : f32 to vector<16x1xf32>
    %1423 = arith.addf %1419, %1422 : vector<16x1xf32>
    %1424 = math.sqrt %1423 : vector<16x1xf32>
    %1425 = vector.broadcast %1424 : vector<16x1xf32> to vector<16x32xf32>
    %1426 = arith.divf %1421, %1425 : vector<16x32xf32>
    %1427 = vector.broadcast %1406 : vector<1x32xf32> to vector<16x32xf32>
    %1428 = arith.mulf %1426, %1427 : vector<16x32xf32>
    %1429 = vector.broadcast %1408 : vector<1x32xf32> to vector<16x32xf32>
    %1430 = arith.addf %1428, %1429 : vector<16x32xf32>
    %c1_437 = arith.constant 1 : index
    %c0_438 = arith.constant 0 : index
    %c0_439 = arith.constant 0 : index
    %1431 = vector.load %arg27[%c1_437, %c0_438, %c0_439] : memref<2x32x32xbf16, #tpu.memory_space<vmem>>, vector<1x32x32xbf16>
    %1432 = vector.shape_cast %1431 : vector<1x32x32xbf16> to vector<32x32xbf16>
    %c1_440 = arith.constant 1 : index
    %c0_441 = arith.constant 0 : index
    %c0_442 = arith.constant 0 : index
    %1433 = vector.load %arg28[%c1_440, %c0_441, %c0_442] : memref<2x1x32xf32, #tpu.memory_space<vmem>>, vector<1x1x32xf32>
    %1434 = vector.shape_cast %1433 : vector<1x1x32xf32> to vector<1x32xf32>
    %1435 = arith.truncf %1430 : vector<16x32xf32> to vector<16x32xbf16>
    %cst_443 = arith.constant dense<0.000000e+00> : vector<16x32xf32>
    %1436 = tpu.matmul %1435, %1432, %cst_443 {dimension_numbers = #tpu.dot_dimension_numbers<[1], [0], [0], [1], [0, 0, 1, 1], [], []>} : vector<16x32xbf16>, vector<32x32xbf16>, vector<16x32xf32> -> vector<16x32xf32>
    %1437 = vector.broadcast %1434 : vector<1x32xf32> to vector<16x32xf32>
    %1438 = arith.addf %1436, %1437 : vector<16x32xf32>
    %c1_444 = arith.constant 1 : index
    %c0_445 = arith.constant 0 : index
    %c0_446 = arith.constant 0 : index
    %1439 = vector.load %arg29[%c1_444, %c0_445, %c0_446] : memref<2x32x64xbf16, #tpu.memory_space<vmem>>, vector<1x32x64xbf16>
    %1440 = vector.shape_cast %1439 : vector<1x32x64xbf16> to vector<32x64xbf16>
    %c1_447 = arith.constant 1 : index
    %c0_448 = arith.constant 0 : index
    %c0_449 = arith.constant 0 : index
    %1441 = vector.load %arg30[%c1_447, %c0_448, %c0_449] : memref<2x1x64xf32, #tpu.memory_space<vmem>>, vector<1x1x64xf32>
    %1442 = vector.shape_cast %1441 : vector<1x1x64xf32> to vector<1x64xf32>
    %1443 = arith.truncf %610 : vector<16x32xf32> to vector<16x32xbf16>
    %cst_450 = arith.constant dense<0.000000e+00> : vector<16x64xf32>
    %1444 = tpu.matmul %1443, %1440, %cst_450 {dimension_numbers = #tpu.dot_dimension_numbers<[1], [0], [0], [1], [0, 0, 1, 1], [], []>} : vector<16x32xbf16>, vector<32x64xbf16>, vector<16x64xf32> -> vector<16x64xf32>
    %1445 = vector.broadcast %1442 : vector<1x64xf32> to vector<16x64xf32>
    %1446 = arith.addf %1444, %1445 : vector<16x64xf32>
    %1447 = vector.extract_strided_slice %1446 {offsets = [0, 0], sizes = [16, 32], strides = [1, 1]} : vector<16x64xf32> to vector<16x32xf32>
    %1448 = vector.extract_strided_slice %1446 {offsets = [0, 32], sizes = [16, 32], strides = [1, 1]} : vector<16x64xf32> to vector<16x32xf32>
    %1449 = vector.extract_strided_slice %1438 {offsets = [0, 0], sizes = [8, 32], strides = [1, 1]} : vector<16x32xf32> to vector<8x32xf32>
    %1450 = vector.extract_strided_slice %1447 {offsets = [0, 0], sizes = [8, 32], strides = [1, 1]} : vector<16x32xf32> to vector<8x32xf32>
    %1451 = vector.extract_strided_slice %1448 {offsets = [0, 0], sizes = [8, 32], strides = [1, 1]} : vector<16x32xf32> to vector<8x32xf32>
    %1452 = vector.extract_strided_slice %1449 {offsets = [0, 0], sizes = [8, 8], strides = [1, 1]} : vector<8x32xf32> to vector<8x8xf32>
    %1453 = arith.truncf %1452 : vector<8x8xf32> to vector<8x8xbf16>
    %1454 = vector.extract_strided_slice %1450 {offsets = [0, 0], sizes = [8, 8], strides = [1, 1]} : vector<8x32xf32> to vector<8x8xf32>
    %1455 = arith.truncf %1454 : vector<8x8xf32> to vector<8x8xbf16>
    "tpu.trace_start"() <{level = 10 : i32, message = "qd,kd->qk"}> : () -> ()
    %cst_451 = arith.constant dense<0.000000e+00> : vector<8x8xf32>
    %1456 = tpu.matmul %1453, %1455, %cst_451 {dimension_numbers = #tpu.dot_dimension_numbers<[1], [1], [0], [0], [0, 0, 1, 0], [], []>} : vector<8x8xbf16>, vector<8x8xbf16>, vector<8x8xf32> -> vector<8x8xf32>
    "tpu.trace_stop"() : () -> ()
    %cst_452 = arith.constant 0.353553385 : f32
    %1457 = vector.broadcast %cst_452 : f32 to vector<8x8xf32>
    %1458 = arith.mulf %1456, %1457 : vector<8x8xf32>
    %1459 = vector.extract_strided_slice %0 {offsets = [0, 0, 0], sizes = [1, 8, 8], strides = [1, 1, 1]} : vector<2x8x8xf32> to vector<1x8x8xf32>
    %1460 = vector.shape_cast %1459 : vector<1x8x8xf32> to vector<8x8xf32>
    %1461 = arith.addf %1458, %1460 : vector<8x8xf32>
    %cst_453 = arith.constant dense<0xFF800000> : vector<8xf32>
    %1462 = vector.multi_reduction <maximumf>, %1461, %cst_453 [1] : vector<8x8xf32> to vector<8xf32>
    %1463 = vector.shape_cast %1462 : vector<8xf32> to vector<8x1xf32>
    %1464 = vector.broadcast %1463 : vector<8x1xf32> to vector<8x8xf32>
    %1465 = arith.subf %1461, %1464 : vector<8x8xf32>
    %1466 = math.exp %1465 : vector<8x8xf32>
    %cst_454 = arith.constant dense<0.000000e+00> : vector<8xf32>
    %1467 = vector.multi_reduction <add>, %1466, %cst_454 [1] : vector<8x8xf32> to vector<8xf32>
    %1468 = vector.shape_cast %1467 : vector<8xf32> to vector<8x1xf32>
    %1469 = tpu.reciprocal %1468 {approx = true} : vector<8x1xf32> -> vector<8x1xf32>
    %1470 = vector.broadcast %1469 : vector<8x1xf32> to vector<8x8xf32>
    %1471 = arith.mulf %1466, %1470 : vector<8x8xf32>
    %1472 = arith.truncf %1471 : vector<8x8xf32> to vector<8x8xbf16>
    %1473 = vector.extract_strided_slice %1451 {offsets = [0, 0], sizes = [8, 8], strides = [1, 1]} : vector<8x32xf32> to vector<8x8xf32>
    %1474 = arith.truncf %1473 : vector<8x8xf32> to vector<8x8xbf16>
    %cst_455 = arith.constant dense<0.000000e+00> : vector<8x8xf32>
    %1475 = tpu.matmul %1472, %1474, %cst_455 {dimension_numbers = #tpu.dot_dimension_numbers<[1], [0], [0], [1], [0, 0, 1, 1], [], []>} : vector<8x8xbf16>, vector<8x8xbf16>, vector<8x8xf32> -> vector<8x8xf32>
    %1476 = vector.extract_strided_slice %1449 {offsets = [0, 8], sizes = [8, 8], strides = [1, 1]} : vector<8x32xf32> to vector<8x8xf32>
    %1477 = arith.truncf %1476 : vector<8x8xf32> to vector<8x8xbf16>
    %1478 = vector.extract_strided_slice %1450 {offsets = [0, 8], sizes = [8, 8], strides = [1, 1]} : vector<8x32xf32> to vector<8x8xf32>
    %1479 = arith.truncf %1478 : vector<8x8xf32> to vector<8x8xbf16>
    "tpu.trace_start"() <{level = 10 : i32, message = "qd,kd->qk"}> : () -> ()
    %cst_456 = arith.constant dense<0.000000e+00> : vector<8x8xf32>
    %1480 = tpu.matmul %1477, %1479, %cst_456 {dimension_numbers = #tpu.dot_dimension_numbers<[1], [1], [0], [0], [0, 0, 1, 0], [], []>} : vector<8x8xbf16>, vector<8x8xbf16>, vector<8x8xf32> -> vector<8x8xf32>
    "tpu.trace_stop"() : () -> ()
    %cst_457 = arith.constant 0.353553385 : f32
    %1481 = vector.broadcast %cst_457 : f32 to vector<8x8xf32>
    %1482 = arith.mulf %1480, %1481 : vector<8x8xf32>
    %1483 = vector.extract_strided_slice %0 {offsets = [0, 0, 0], sizes = [1, 8, 8], strides = [1, 1, 1]} : vector<2x8x8xf32> to vector<1x8x8xf32>
    %1484 = vector.shape_cast %1483 : vector<1x8x8xf32> to vector<8x8xf32>
    %1485 = arith.addf %1482, %1484 : vector<8x8xf32>
    %cst_458 = arith.constant dense<0xFF800000> : vector<8xf32>
    %1486 = vector.multi_reduction <maximumf>, %1485, %cst_458 [1] : vector<8x8xf32> to vector<8xf32>
    %1487 = vector.shape_cast %1486 : vector<8xf32> to vector<8x1xf32>
    %1488 = vector.broadcast %1487 : vector<8x1xf32> to vector<8x8xf32>
    %1489 = arith.subf %1485, %1488 : vector<8x8xf32>
    %1490 = math.exp %1489 : vector<8x8xf32>
    %cst_459 = arith.constant dense<0.000000e+00> : vector<8xf32>
    %1491 = vector.multi_reduction <add>, %1490, %cst_459 [1] : vector<8x8xf32> to vector<8xf32>
    %1492 = vector.shape_cast %1491 : vector<8xf32> to vector<8x1xf32>
    %1493 = tpu.reciprocal %1492 {approx = true} : vector<8x1xf32> -> vector<8x1xf32>
    %1494 = vector.broadcast %1493 : vector<8x1xf32> to vector<8x8xf32>
    %1495 = arith.mulf %1490, %1494 : vector<8x8xf32>
    %1496 = arith.truncf %1495 : vector<8x8xf32> to vector<8x8xbf16>
    %1497 = vector.extract_strided_slice %1451 {offsets = [0, 8], sizes = [8, 8], strides = [1, 1]} : vector<8x32xf32> to vector<8x8xf32>
    %1498 = arith.truncf %1497 : vector<8x8xf32> to vector<8x8xbf16>
    %cst_460 = arith.constant dense<0.000000e+00> : vector<8x8xf32>
    %1499 = tpu.matmul %1496, %1498, %cst_460 {dimension_numbers = #tpu.dot_dimension_numbers<[1], [0], [0], [1], [0, 0, 1, 1], [], []>} : vector<8x8xbf16>, vector<8x8xbf16>, vector<8x8xf32> -> vector<8x8xf32>
    %1500 = vector.extract_strided_slice %1449 {offsets = [0, 16], sizes = [8, 8], strides = [1, 1]} : vector<8x32xf32> to vector<8x8xf32>
    %1501 = arith.truncf %1500 : vector<8x8xf32> to vector<8x8xbf16>
    %1502 = vector.extract_strided_slice %1450 {offsets = [0, 16], sizes = [8, 8], strides = [1, 1]} : vector<8x32xf32> to vector<8x8xf32>
    %1503 = arith.truncf %1502 : vector<8x8xf32> to vector<8x8xbf16>
    "tpu.trace_start"() <{level = 10 : i32, message = "qd,kd->qk"}> : () -> ()
    %cst_461 = arith.constant dense<0.000000e+00> : vector<8x8xf32>
    %1504 = tpu.matmul %1501, %1503, %cst_461 {dimension_numbers = #tpu.dot_dimension_numbers<[1], [1], [0], [0], [0, 0, 1, 0], [], []>} : vector<8x8xbf16>, vector<8x8xbf16>, vector<8x8xf32> -> vector<8x8xf32>
    "tpu.trace_stop"() : () -> ()
    %cst_462 = arith.constant 0.353553385 : f32
    %1505 = vector.broadcast %cst_462 : f32 to vector<8x8xf32>
    %1506 = arith.mulf %1504, %1505 : vector<8x8xf32>
    %1507 = vector.extract_strided_slice %0 {offsets = [0, 0, 0], sizes = [1, 8, 8], strides = [1, 1, 1]} : vector<2x8x8xf32> to vector<1x8x8xf32>
    %1508 = vector.shape_cast %1507 : vector<1x8x8xf32> to vector<8x8xf32>
    %1509 = arith.addf %1506, %1508 : vector<8x8xf32>
    %cst_463 = arith.constant dense<0xFF800000> : vector<8xf32>
    %1510 = vector.multi_reduction <maximumf>, %1509, %cst_463 [1] : vector<8x8xf32> to vector<8xf32>
    %1511 = vector.shape_cast %1510 : vector<8xf32> to vector<8x1xf32>
    %1512 = vector.broadcast %1511 : vector<8x1xf32> to vector<8x8xf32>
    %1513 = arith.subf %1509, %1512 : vector<8x8xf32>
    %1514 = math.exp %1513 : vector<8x8xf32>
    %cst_464 = arith.constant dense<0.000000e+00> : vector<8xf32>
    %1515 = vector.multi_reduction <add>, %1514, %cst_464 [1] : vector<8x8xf32> to vector<8xf32>
    %1516 = vector.shape_cast %1515 : vector<8xf32> to vector<8x1xf32>
    %1517 = tpu.reciprocal %1516 {approx = true} : vector<8x1xf32> -> vector<8x1xf32>
    %1518 = vector.broadcast %1517 : vector<8x1xf32> to vector<8x8xf32>
    %1519 = arith.mulf %1514, %1518 : vector<8x8xf32>
    %1520 = arith.truncf %1519 : vector<8x8xf32> to vector<8x8xbf16>
    %1521 = vector.extract_strided_slice %1451 {offsets = [0, 16], sizes = [8, 8], strides = [1, 1]} : vector<8x32xf32> to vector<8x8xf32>
    %1522 = arith.truncf %1521 : vector<8x8xf32> to vector<8x8xbf16>
    %cst_465 = arith.constant dense<0.000000e+00> : vector<8x8xf32>
    %1523 = tpu.matmul %1520, %1522, %cst_465 {dimension_numbers = #tpu.dot_dimension_numbers<[1], [0], [0], [1], [0, 0, 1, 1], [], []>} : vector<8x8xbf16>, vector<8x8xbf16>, vector<8x8xf32> -> vector<8x8xf32>
    %1524 = vector.extract_strided_slice %1449 {offsets = [0, 24], sizes = [8, 8], strides = [1, 1]} : vector<8x32xf32> to vector<8x8xf32>
    %1525 = arith.truncf %1524 : vector<8x8xf32> to vector<8x8xbf16>
    %1526 = vector.extract_strided_slice %1450 {offsets = [0, 24], sizes = [8, 8], strides = [1, 1]} : vector<8x32xf32> to vector<8x8xf32>
    %1527 = arith.truncf %1526 : vector<8x8xf32> to vector<8x8xbf16>
    "tpu.trace_start"() <{level = 10 : i32, message = "qd,kd->qk"}> : () -> ()
    %cst_466 = arith.constant dense<0.000000e+00> : vector<8x8xf32>
    %1528 = tpu.matmul %1525, %1527, %cst_466 {dimension_numbers = #tpu.dot_dimension_numbers<[1], [1], [0], [0], [0, 0, 1, 0], [], []>} : vector<8x8xbf16>, vector<8x8xbf16>, vector<8x8xf32> -> vector<8x8xf32>
    "tpu.trace_stop"() : () -> ()
    %cst_467 = arith.constant 0.353553385 : f32
    %1529 = vector.broadcast %cst_467 : f32 to vector<8x8xf32>
    %1530 = arith.mulf %1528, %1529 : vector<8x8xf32>
    %1531 = vector.extract_strided_slice %0 {offsets = [0, 0, 0], sizes = [1, 8, 8], strides = [1, 1, 1]} : vector<2x8x8xf32> to vector<1x8x8xf32>
    %1532 = vector.shape_cast %1531 : vector<1x8x8xf32> to vector<8x8xf32>
    %1533 = arith.addf %1530, %1532 : vector<8x8xf32>
    %cst_468 = arith.constant dense<0xFF800000> : vector<8xf32>
    %1534 = vector.multi_reduction <maximumf>, %1533, %cst_468 [1] : vector<8x8xf32> to vector<8xf32>
    %1535 = vector.shape_cast %1534 : vector<8xf32> to vector<8x1xf32>
    %1536 = vector.broadcast %1535 : vector<8x1xf32> to vector<8x8xf32>
    %1537 = arith.subf %1533, %1536 : vector<8x8xf32>
    %1538 = math.exp %1537 : vector<8x8xf32>
    %cst_469 = arith.constant dense<0.000000e+00> : vector<8xf32>
    %1539 = vector.multi_reduction <add>, %1538, %cst_469 [1] : vector<8x8xf32> to vector<8xf32>
    %1540 = vector.shape_cast %1539 : vector<8xf32> to vector<8x1xf32>
    %1541 = tpu.reciprocal %1540 {approx = true} : vector<8x1xf32> -> vector<8x1xf32>
    %1542 = vector.broadcast %1541 : vector<8x1xf32> to vector<8x8xf32>
    %1543 = arith.mulf %1538, %1542 : vector<8x8xf32>
    %1544 = arith.truncf %1543 : vector<8x8xf32> to vector<8x8xbf16>
    %1545 = vector.extract_strided_slice %1451 {offsets = [0, 24], sizes = [8, 8], strides = [1, 1]} : vector<8x32xf32> to vector<8x8xf32>
    %1546 = arith.truncf %1545 : vector<8x8xf32> to vector<8x8xbf16>
    %cst_470 = arith.constant dense<0.000000e+00> : vector<8x8xf32>
    %1547 = tpu.matmul %1544, %1546, %cst_470 {dimension_numbers = #tpu.dot_dimension_numbers<[1], [0], [0], [1], [0, 0, 1, 1], [], []>} : vector<8x8xbf16>, vector<8x8xbf16>, vector<8x8xf32> -> vector<8x8xf32>
    %1548 = tpu.concatenate %1475, %1499, %1523, %1547 in 1 : vector<8x8xf32>, vector<8x8xf32>, vector<8x8xf32>, vector<8x8xf32> -> vector<8x32xf32>
    %1549 = vector.extract_strided_slice %1438 {offsets = [8, 0], sizes = [8, 32], strides = [1, 1]} : vector<16x32xf32> to vector<8x32xf32>
    %1550 = vector.extract_strided_slice %1447 {offsets = [8, 0], sizes = [8, 32], strides = [1, 1]} : vector<16x32xf32> to vector<8x32xf32>
    %1551 = vector.extract_strided_slice %1448 {offsets = [8, 0], sizes = [8, 32], strides = [1, 1]} : vector<16x32xf32> to vector<8x32xf32>
    %1552 = vector.extract_strided_slice %1549 {offsets = [0, 0], sizes = [8, 8], strides = [1, 1]} : vector<8x32xf32> to vector<8x8xf32>
    %1553 = arith.truncf %1552 : vector<8x8xf32> to vector<8x8xbf16>
    %1554 = vector.extract_strided_slice %1550 {offsets = [0, 0], sizes = [8, 8], strides = [1, 1]} : vector<8x32xf32> to vector<8x8xf32>
    %1555 = arith.truncf %1554 : vector<8x8xf32> to vector<8x8xbf16>
    "tpu.trace_start"() <{level = 10 : i32, message = "qd,kd->qk"}> : () -> ()
    %cst_471 = arith.constant dense<0.000000e+00> : vector<8x8xf32>
    %1556 = tpu.matmul %1553, %1555, %cst_471 {dimension_numbers = #tpu.dot_dimension_numbers<[1], [1], [0], [0], [0, 0, 1, 0], [], []>} : vector<8x8xbf16>, vector<8x8xbf16>, vector<8x8xf32> -> vector<8x8xf32>
    "tpu.trace_stop"() : () -> ()
    %cst_472 = arith.constant 0.353553385 : f32
    %1557 = vector.broadcast %cst_472 : f32 to vector<8x8xf32>
    %1558 = arith.mulf %1556, %1557 : vector<8x8xf32>
    %1559 = vector.extract_strided_slice %0 {offsets = [1, 0, 0], sizes = [1, 8, 8], strides = [1, 1, 1]} : vector<2x8x8xf32> to vector<1x8x8xf32>
    %1560 = vector.shape_cast %1559 : vector<1x8x8xf32> to vector<8x8xf32>
    %1561 = arith.addf %1558, %1560 : vector<8x8xf32>
    %cst_473 = arith.constant dense<0xFF800000> : vector<8xf32>
    %1562 = vector.multi_reduction <maximumf>, %1561, %cst_473 [1] : vector<8x8xf32> to vector<8xf32>
    %1563 = vector.shape_cast %1562 : vector<8xf32> to vector<8x1xf32>
    %1564 = vector.broadcast %1563 : vector<8x1xf32> to vector<8x8xf32>
    %1565 = arith.subf %1561, %1564 : vector<8x8xf32>
    %1566 = math.exp %1565 : vector<8x8xf32>
    %cst_474 = arith.constant dense<0.000000e+00> : vector<8xf32>
    %1567 = vector.multi_reduction <add>, %1566, %cst_474 [1] : vector<8x8xf32> to vector<8xf32>
    %1568 = vector.shape_cast %1567 : vector<8xf32> to vector<8x1xf32>
    %1569 = tpu.reciprocal %1568 {approx = true} : vector<8x1xf32> -> vector<8x1xf32>
    %1570 = vector.broadcast %1569 : vector<8x1xf32> to vector<8x8xf32>
    %1571 = arith.mulf %1566, %1570 : vector<8x8xf32>
    %1572 = arith.truncf %1571 : vector<8x8xf32> to vector<8x8xbf16>
    %1573 = vector.extract_strided_slice %1551 {offsets = [0, 0], sizes = [8, 8], strides = [1, 1]} : vector<8x32xf32> to vector<8x8xf32>
    %1574 = arith.truncf %1573 : vector<8x8xf32> to vector<8x8xbf16>
    %cst_475 = arith.constant dense<0.000000e+00> : vector<8x8xf32>
    %1575 = tpu.matmul %1572, %1574, %cst_475 {dimension_numbers = #tpu.dot_dimension_numbers<[1], [0], [0], [1], [0, 0, 1, 1], [], []>} : vector<8x8xbf16>, vector<8x8xbf16>, vector<8x8xf32> -> vector<8x8xf32>
    %1576 = vector.extract_strided_slice %1549 {offsets = [0, 8], sizes = [8, 8], strides = [1, 1]} : vector<8x32xf32> to vector<8x8xf32>
    %1577 = arith.truncf %1576 : vector<8x8xf32> to vector<8x8xbf16>
    %1578 = vector.extract_strided_slice %1550 {offsets = [0, 8], sizes = [8, 8], strides = [1, 1]} : vector<8x32xf32> to vector<8x8xf32>
    %1579 = arith.truncf %1578 : vector<8x8xf32> to vector<8x8xbf16>
    "tpu.trace_start"() <{level = 10 : i32, message = "qd,kd->qk"}> : () -> ()
    %cst_476 = arith.constant dense<0.000000e+00> : vector<8x8xf32>
    %1580 = tpu.matmul %1577, %1579, %cst_476 {dimension_numbers = #tpu.dot_dimension_numbers<[1], [1], [0], [0], [0, 0, 1, 0], [], []>} : vector<8x8xbf16>, vector<8x8xbf16>, vector<8x8xf32> -> vector<8x8xf32>
    "tpu.trace_stop"() : () -> ()
    %cst_477 = arith.constant 0.353553385 : f32
    %1581 = vector.broadcast %cst_477 : f32 to vector<8x8xf32>
    %1582 = arith.mulf %1580, %1581 : vector<8x8xf32>
    %1583 = vector.extract_strided_slice %0 {offsets = [1, 0, 0], sizes = [1, 8, 8], strides = [1, 1, 1]} : vector<2x8x8xf32> to vector<1x8x8xf32>
    %1584 = vector.shape_cast %1583 : vector<1x8x8xf32> to vector<8x8xf32>
    %1585 = arith.addf %1582, %1584 : vector<8x8xf32>
    %cst_478 = arith.constant dense<0xFF800000> : vector<8xf32>
    %1586 = vector.multi_reduction <maximumf>, %1585, %cst_478 [1] : vector<8x8xf32> to vector<8xf32>
    %1587 = vector.shape_cast %1586 : vector<8xf32> to vector<8x1xf32>
    %1588 = vector.broadcast %1587 : vector<8x1xf32> to vector<8x8xf32>
    %1589 = arith.subf %1585, %1588 : vector<8x8xf32>
    %1590 = math.exp %1589 : vector<8x8xf32>
    %cst_479 = arith.constant dense<0.000000e+00> : vector<8xf32>
    %1591 = vector.multi_reduction <add>, %1590, %cst_479 [1] : vector<8x8xf32> to vector<8xf32>
    %1592 = vector.shape_cast %1591 : vector<8xf32> to vector<8x1xf32>
    %1593 = tpu.reciprocal %1592 {approx = true} : vector<8x1xf32> -> vector<8x1xf32>
    %1594 = vector.broadcast %1593 : vector<8x1xf32> to vector<8x8xf32>
    %1595 = arith.mulf %1590, %1594 : vector<8x8xf32>
    %1596 = arith.truncf %1595 : vector<8x8xf32> to vector<8x8xbf16>
    %1597 = vector.extract_strided_slice %1551 {offsets = [0, 8], sizes = [8, 8], strides = [1, 1]} : vector<8x32xf32> to vector<8x8xf32>
    %1598 = arith.truncf %1597 : vector<8x8xf32> to vector<8x8xbf16>
    %cst_480 = arith.constant dense<0.000000e+00> : vector<8x8xf32>
    %1599 = tpu.matmul %1596, %1598, %cst_480 {dimension_numbers = #tpu.dot_dimension_numbers<[1], [0], [0], [1], [0, 0, 1, 1], [], []>} : vector<8x8xbf16>, vector<8x8xbf16>, vector<8x8xf32> -> vector<8x8xf32>
    %1600 = vector.extract_strided_slice %1549 {offsets = [0, 16], sizes = [8, 8], strides = [1, 1]} : vector<8x32xf32> to vector<8x8xf32>
    %1601 = arith.truncf %1600 : vector<8x8xf32> to vector<8x8xbf16>
    %1602 = vector.extract_strided_slice %1550 {offsets = [0, 16], sizes = [8, 8], strides = [1, 1]} : vector<8x32xf32> to vector<8x8xf32>
    %1603 = arith.truncf %1602 : vector<8x8xf32> to vector<8x8xbf16>
    "tpu.trace_start"() <{level = 10 : i32, message = "qd,kd->qk"}> : () -> ()
    %cst_481 = arith.constant dense<0.000000e+00> : vector<8x8xf32>
    %1604 = tpu.matmul %1601, %1603, %cst_481 {dimension_numbers = #tpu.dot_dimension_numbers<[1], [1], [0], [0], [0, 0, 1, 0], [], []>} : vector<8x8xbf16>, vector<8x8xbf16>, vector<8x8xf32> -> vector<8x8xf32>
    "tpu.trace_stop"() : () -> ()
    %cst_482 = arith.constant 0.353553385 : f32
    %1605 = vector.broadcast %cst_482 : f32 to vector<8x8xf32>
    %1606 = arith.mulf %1604, %1605 : vector<8x8xf32>
    %1607 = vector.extract_strided_slice %0 {offsets = [1, 0, 0], sizes = [1, 8, 8], strides = [1, 1, 1]} : vector<2x8x8xf32> to vector<1x8x8xf32>
    %1608 = vector.shape_cast %1607 : vector<1x8x8xf32> to vector<8x8xf32>
    %1609 = arith.addf %1606, %1608 : vector<8x8xf32>
    %cst_483 = arith.constant dense<0xFF800000> : vector<8xf32>
    %1610 = vector.multi_reduction <maximumf>, %1609, %cst_483 [1] : vector<8x8xf32> to vector<8xf32>
    %1611 = vector.shape_cast %1610 : vector<8xf32> to vector<8x1xf32>
    %1612 = vector.broadcast %1611 : vector<8x1xf32> to vector<8x8xf32>
    %1613 = arith.subf %1609, %1612 : vector<8x8xf32>
    %1614 = math.exp %1613 : vector<8x8xf32>
    %cst_484 = arith.constant dense<0.000000e+00> : vector<8xf32>
    %1615 = vector.multi_reduction <add>, %1614, %cst_484 [1] : vector<8x8xf32> to vector<8xf32>
    %1616 = vector.shape_cast %1615 : vector<8xf32> to vector<8x1xf32>
    %1617 = tpu.reciprocal %1616 {approx = true} : vector<8x1xf32> -> vector<8x1xf32>
    %1618 = vector.broadcast %1617 : vector<8x1xf32> to vector<8x8xf32>
    %1619 = arith.mulf %1614, %1618 : vector<8x8xf32>
    %1620 = arith.truncf %1619 : vector<8x8xf32> to vector<8x8xbf16>
    %1621 = vector.extract_strided_slice %1551 {offsets = [0, 16], sizes = [8, 8], strides = [1, 1]} : vector<8x32xf32> to vector<8x8xf32>
    %1622 = arith.truncf %1621 : vector<8x8xf32> to vector<8x8xbf16>
    %cst_485 = arith.constant dense<0.000000e+00> : vector<8x8xf32>
    %1623 = tpu.matmul %1620, %1622, %cst_485 {dimension_numbers = #tpu.dot_dimension_numbers<[1], [0], [0], [1], [0, 0, 1, 1], [], []>} : vector<8x8xbf16>, vector<8x8xbf16>, vector<8x8xf32> -> vector<8x8xf32>
    %1624 = vector.extract_strided_slice %1549 {offsets = [0, 24], sizes = [8, 8], strides = [1, 1]} : vector<8x32xf32> to vector<8x8xf32>
    %1625 = arith.truncf %1624 : vector<8x8xf32> to vector<8x8xbf16>
    %1626 = vector.extract_strided_slice %1550 {offsets = [0, 24], sizes = [8, 8], strides = [1, 1]} : vector<8x32xf32> to vector<8x8xf32>
    %1627 = arith.truncf %1626 : vector<8x8xf32> to vector<8x8xbf16>
    "tpu.trace_start"() <{level = 10 : i32, message = "qd,kd->qk"}> : () -> ()
    %cst_486 = arith.constant dense<0.000000e+00> : vector<8x8xf32>
    %1628 = tpu.matmul %1625, %1627, %cst_486 {dimension_numbers = #tpu.dot_dimension_numbers<[1], [1], [0], [0], [0, 0, 1, 0], [], []>} : vector<8x8xbf16>, vector<8x8xbf16>, vector<8x8xf32> -> vector<8x8xf32>
    "tpu.trace_stop"() : () -> ()
    %cst_487 = arith.constant 0.353553385 : f32
    %1629 = vector.broadcast %cst_487 : f32 to vector<8x8xf32>
    %1630 = arith.mulf %1628, %1629 : vector<8x8xf32>
    %1631 = vector.extract_strided_slice %0 {offsets = [1, 0, 0], sizes = [1, 8, 8], strides = [1, 1, 1]} : vector<2x8x8xf32> to vector<1x8x8xf32>
    %1632 = vector.shape_cast %1631 : vector<1x8x8xf32> to vector<8x8xf32>
    %1633 = arith.addf %1630, %1632 : vector<8x8xf32>
    %cst_488 = arith.constant dense<0xFF800000> : vector<8xf32>
    %1634 = vector.multi_reduction <maximumf>, %1633, %cst_488 [1] : vector<8x8xf32> to vector<8xf32>
    %1635 = vector.shape_cast %1634 : vector<8xf32> to vector<8x1xf32>
    %1636 = vector.broadcast %1635 : vector<8x1xf32> to vector<8x8xf32>
    %1637 = arith.subf %1633, %1636 : vector<8x8xf32>
    %1638 = math.exp %1637 : vector<8x8xf32>
    %cst_489 = arith.constant dense<0.000000e+00> : vector<8xf32>
    %1639 = vector.multi_reduction <add>, %1638, %cst_489 [1] : vector<8x8xf32> to vector<8xf32>
    %1640 = vector.shape_cast %1639 : vector<8xf32> to vector<8x1xf32>
    %1641 = tpu.reciprocal %1640 {approx = true} : vector<8x1xf32> -> vector<8x1xf32>
    %1642 = vector.broadcast %1641 : vector<8x1xf32> to vector<8x8xf32>
    %1643 = arith.mulf %1638, %1642 : vector<8x8xf32>
    %1644 = arith.truncf %1643 : vector<8x8xf32> to vector<8x8xbf16>
    %1645 = vector.extract_strided_slice %1551 {offsets = [0, 24], sizes = [8, 8], strides = [1, 1]} : vector<8x32xf32> to vector<8x8xf32>
    %1646 = arith.truncf %1645 : vector<8x8xf32> to vector<8x8xbf16>
    %cst_490 = arith.constant dense<0.000000e+00> : vector<8x8xf32>
    %1647 = tpu.matmul %1644, %1646, %cst_490 {dimension_numbers = #tpu.dot_dimension_numbers<[1], [0], [0], [1], [0, 0, 1, 1], [], []>} : vector<8x8xbf16>, vector<8x8xbf16>, vector<8x8xf32> -> vector<8x8xf32>
    %1648 = tpu.concatenate %1575, %1599, %1623, %1647 in 1 : vector<8x8xf32>, vector<8x8xf32>, vector<8x8xf32>, vector<8x8xf32> -> vector<8x32xf32>
    %1649 = tpu.concatenate %1548, %1648 in 0 : vector<8x32xf32>, vector<8x32xf32> -> vector<16x32xf32>
    %c1_491 = arith.constant 1 : index
    %c0_492 = arith.constant 0 : index
    %c0_493 = arith.constant 0 : index
    %1650 = vector.load %arg31[%c1_491, %c0_492, %c0_493] : memref<2x32x32xbf16, #tpu.memory_space<vmem>>, vector<1x32x32xbf16>
    %1651 = vector.shape_cast %1650 : vector<1x32x32xbf16> to vector<32x32xbf16>
    %c1_494 = arith.constant 1 : index
    %c0_495 = arith.constant 0 : index
    %c0_496 = arith.constant 0 : index
    %1652 = vector.load %arg32[%c1_494, %c0_495, %c0_496] : memref<2x1x32xf32, #tpu.memory_space<vmem>>, vector<1x1x32xf32>
    %1653 = vector.shape_cast %1652 : vector<1x1x32xf32> to vector<1x32xf32>
    %1654 = arith.truncf %1649 : vector<16x32xf32> to vector<16x32xbf16>
    %cst_497 = arith.constant dense<0.000000e+00> : vector<16x32xf32>
    %1655 = tpu.matmul %1654, %1651, %cst_497 {dimension_numbers = #tpu.dot_dimension_numbers<[1], [0], [0], [1], [0, 0, 1, 1], [], []>} : vector<16x32xbf16>, vector<32x32xbf16>, vector<16x32xf32> -> vector<16x32xf32>
    %1656 = vector.broadcast %1653 : vector<1x32xf32> to vector<16x32xf32>
    %1657 = arith.addf %1655, %1656 : vector<16x32xf32>
    %1658 = arith.addf %1404, %1657 : vector<16x32xf32>
    %c1_498 = arith.constant 1 : index
    %c0_499 = arith.constant 0 : index
    %c0_500 = arith.constant 0 : index
    %1659 = vector.load %arg33[%c1_498, %c0_499, %c0_500] : memref<2x1x32xf32, #tpu.memory_space<vmem>>, vector<1x1x32xf32>
    %1660 = vector.shape_cast %1659 : vector<1x1x32xf32> to vector<1x32xf32>
    %c1_501 = arith.constant 1 : index
    %c0_502 = arith.constant 0 : index
    %c0_503 = arith.constant 0 : index
    %1661 = vector.load %arg34[%c1_501, %c0_502, %c0_503] : memref<2x1x32xf32, #tpu.memory_space<vmem>>, vector<1x1x32xf32>
    %1662 = vector.shape_cast %1661 : vector<1x1x32xf32> to vector<1x32xf32>
    %cst_504 = arith.constant dense<0.000000e+00> : vector<16xf32>
    %1663 = vector.multi_reduction <add>, %1658, %cst_504 [1] : vector<16x32xf32> to vector<16xf32>
    %1664 = vector.shape_cast %1663 : vector<16xf32> to vector<16x1xf32>
    %cst_505 = arith.constant 3.200000e+01 : f32
    %1665 = vector.broadcast %cst_505 : f32 to vector<16x1xf32>
    %1666 = arith.divf %1664, %1665 : vector<16x1xf32>
    %1667 = vector.broadcast %1666 : vector<16x1xf32> to vector<16x32xf32>
    %1668 = arith.subf %1658, %1667 : vector<16x32xf32>
    %1669 = arith.mulf %1668, %1668 : vector<16x32xf32>
    %cst_506 = arith.constant dense<0.000000e+00> : vector<16xf32>
    %1670 = vector.multi_reduction <add>, %1669, %cst_506 [1] : vector<16x32xf32> to vector<16xf32>
    %1671 = vector.shape_cast %1670 : vector<16xf32> to vector<16x1xf32>
    %cst_507 = arith.constant 3.200000e+01 : f32
    %1672 = vector.broadcast %cst_507 : f32 to vector<16x1xf32>
    %1673 = arith.divf %1671, %1672 : vector<16x1xf32>
    %1674 = vector.broadcast %1666 : vector<16x1xf32> to vector<16x32xf32>
    %1675 = arith.subf %1658, %1674 : vector<16x32xf32>
    %cst_508 = arith.constant 9.99999997E-7 : f32
    %1676 = vector.broadcast %cst_508 : f32 to vector<16x1xf32>
    %1677 = arith.addf %1673, %1676 : vector<16x1xf32>
    %1678 = math.sqrt %1677 : vector<16x1xf32>
    %1679 = vector.broadcast %1678 : vector<16x1xf32> to vector<16x32xf32>
    %1680 = arith.divf %1675, %1679 : vector<16x32xf32>
    %1681 = vector.broadcast %1660 : vector<1x32xf32> to vector<16x32xf32>
    %1682 = arith.mulf %1680, %1681 : vector<16x32xf32>
    %1683 = vector.broadcast %1662 : vector<1x32xf32> to vector<16x32xf32>
    %1684 = arith.addf %1682, %1683 : vector<16x32xf32>
    %c1_509 = arith.constant 1 : index
    %c0_510 = arith.constant 0 : index
    %c0_511 = arith.constant 0 : index
    %1685 = vector.load %arg35[%c1_509, %c0_510, %c0_511] : memref<2x32x64xbf16, #tpu.memory_space<vmem>>, vector<1x32x64xbf16>
    %1686 = vector.shape_cast %1685 : vector<1x32x64xbf16> to vector<32x64xbf16>
    %c1_512 = arith.constant 1 : index
    %c0_513 = arith.constant 0 : index
    %c0_514 = arith.constant 0 : index
    %1687 = vector.load %arg36[%c1_512, %c0_513, %c0_514] : memref<2x1x64xf32, #tpu.memory_space<vmem>>, vector<1x1x64xf32>
    %1688 = vector.shape_cast %1687 : vector<1x1x64xf32> to vector<1x64xf32>
    %1689 = arith.truncf %1684 : vector<16x32xf32> to vector<16x32xbf16>
    %cst_515 = arith.constant dense<0.000000e+00> : vector<16x64xf32>
    %1690 = tpu.matmul %1689, %1686, %cst_515 {dimension_numbers = #tpu.dot_dimension_numbers<[1], [0], [0], [1], [0, 0, 1, 1], [], []>} : vector<16x32xbf16>, vector<32x64xbf16>, vector<16x64xf32> -> vector<16x64xf32>
    %1691 = vector.broadcast %1688 : vector<1x64xf32> to vector<16x64xf32>
    %1692 = arith.addf %1690, %1691 : vector<16x64xf32>
    %cst_516 = arith.constant 0.000000e+00 : f32
    %1693 = vector.broadcast %cst_516 : f32 to vector<16x64xf32>
    %1694 = arith.maximumf %1692, %1693 : vector<16x64xf32>
    %c1_517 = arith.constant 1 : index
    %c0_518 = arith.constant 0 : index
    %c0_519 = arith.constant 0 : index
    %1695 = vector.load %arg37[%c1_517, %c0_518, %c0_519] : memref<2x64x32xbf16, #tpu.memory_space<vmem>>, vector<1x64x32xbf16>
    %1696 = vector.shape_cast %1695 : vector<1x64x32xbf16> to vector<64x32xbf16>
    %c1_520 = arith.constant 1 : index
    %c0_521 = arith.constant 0 : index
    %c0_522 = arith.constant 0 : index
    %1697 = vector.load %arg38[%c1_520, %c0_521, %c0_522] : memref<2x1x32xf32, #tpu.memory_space<vmem>>, vector<1x1x32xf32>
    %1698 = vector.shape_cast %1697 : vector<1x1x32xf32> to vector<1x32xf32>
    %1699 = arith.truncf %1694 : vector<16x64xf32> to vector<16x64xbf16>
    %cst_523 = arith.constant dense<0.000000e+00> : vector<16x32xf32>
    %1700 = tpu.matmul %1699, %1696, %cst_523 {dimension_numbers = #tpu.dot_dimension_numbers<[1], [0], [0], [1], [0, 0, 1, 1], [], []>} : vector<16x64xbf16>, vector<64x32xbf16>, vector<16x32xf32> -> vector<16x32xf32>
    %1701 = vector.broadcast %1698 : vector<1x32xf32> to vector<16x32xf32>
    %1702 = arith.addf %1700, %1701 : vector<16x32xf32>
    %1703 = arith.addf %1658, %1702 : vector<16x32xf32>
    %c0_524 = arith.constant 0 : index
    %c0_525 = arith.constant 0 : index
    %1704 = vector.load %arg39[%c0_524, %c0_525] : memref<1x32xf32, #tpu.memory_space<vmem>>, vector<1x32xf32>
    %c0_526 = arith.constant 0 : index
    %c0_527 = arith.constant 0 : index
    %1705 = vector.load %arg40[%c0_526, %c0_527] : memref<1x32xf32, #tpu.memory_space<vmem>>, vector<1x32xf32>
    %cst_528 = arith.constant dense<0.000000e+00> : vector<16xf32>
    %1706 = vector.multi_reduction <add>, %1703, %cst_528 [1] : vector<16x32xf32> to vector<16xf32>
    %1707 = vector.shape_cast %1706 : vector<16xf32> to vector<16x1xf32>
    %cst_529 = arith.constant 3.200000e+01 : f32
    %1708 = vector.broadcast %cst_529 : f32 to vector<16x1xf32>
    %1709 = arith.divf %1707, %1708 : vector<16x1xf32>
    %1710 = vector.broadcast %1709 : vector<16x1xf32> to vector<16x32xf32>
    %1711 = arith.subf %1703, %1710 : vector<16x32xf32>
    %1712 = arith.mulf %1711, %1711 : vector<16x32xf32>
    %cst_530 = arith.constant dense<0.000000e+00> : vector<16xf32>
    %1713 = vector.multi_reduction <add>, %1712, %cst_530 [1] : vector<16x32xf32> to vector<16xf32>
    %1714 = vector.shape_cast %1713 : vector<16xf32> to vector<16x1xf32>
    %cst_531 = arith.constant 3.200000e+01 : f32
    %1715 = vector.broadcast %cst_531 : f32 to vector<16x1xf32>
    %1716 = arith.divf %1714, %1715 : vector<16x1xf32>
    %1717 = vector.broadcast %1709 : vector<16x1xf32> to vector<16x32xf32>
    %1718 = arith.subf %1703, %1717 : vector<16x32xf32>
    %cst_532 = arith.constant 9.99999997E-7 : f32
    %1719 = vector.broadcast %cst_532 : f32 to vector<16x1xf32>
    %1720 = arith.addf %1716, %1719 : vector<16x1xf32>
    %1721 = math.sqrt %1720 : vector<16x1xf32>
    %1722 = vector.broadcast %1721 : vector<16x1xf32> to vector<16x32xf32>
    %1723 = arith.divf %1718, %1722 : vector<16x32xf32>
    %1724 = vector.broadcast %1704 : vector<1x32xf32> to vector<16x32xf32>
    %1725 = arith.mulf %1723, %1724 : vector<16x32xf32>
    %1726 = vector.broadcast %1705 : vector<1x32xf32> to vector<16x32xf32>
    %1727 = arith.addf %1725, %1726 : vector<16x32xf32>
    %1728 = arith.truncf %1727 : vector<16x32xf32> to vector<16x32xbf16>
    %c0_533 = arith.constant 0 : index
    %c0_534 = arith.constant 0 : index
    %1729 = vector.load %arg41[%c0_533, %c0_534] : memref<32x128xbf16, #tpu.memory_space<vmem>>, vector<32x128xbf16>
    %cst_535 = arith.constant dense<0.000000e+00> : vector<16x128xf32>
    %1730 = tpu.matmul %1728, %1729, %cst_535 {dimension_numbers = #tpu.dot_dimension_numbers<[1], [0], [0], [1], [0, 0, 1, 1], [], []>} : vector<16x32xbf16>, vector<32x128xbf16>, vector<16x128xf32> -> vector<16x128xf32>
    %c0_536 = arith.constant 0 : index
    %c0_537 = arith.constant 0 : index
    %1731 = vector.load %arg42[%c0_536, %c0_537] : memref<1x128xf32, #tpu.memory_space<vmem>>, vector<1x128xf32>
    %1732 = vector.broadcast %1731 : vector<1x128xf32> to vector<16x128xf32>
    %1733 = arith.addf %1730, %1732 : vector<16x128xf32>
    %cst_538 = arith.constant dense<0xFF800000> : vector<16xf32>
    %1734 = vector.multi_reduction <maximumf>, %1733, %cst_538 [1] : vector<16x128xf32> to vector<16xf32>
    %1735 = vector.shape_cast %1734 : vector<16xf32> to vector<16x1xf32>
    %1736 = vector.broadcast %1735 : vector<16x1xf32> to vector<16x128xf32>
    %1737 = arith.subf %1733, %1736 : vector<16x128xf32>
    %1738 = math.exp %1737 : vector<16x128xf32>
    %cst_539 = arith.constant dense<0.000000e+00> : vector<16xf32>
    %1739 = vector.multi_reduction <add>, %1738, %cst_539 [1] : vector<16x128xf32> to vector<16xf32>
    %1740 = vector.shape_cast %1739 : vector<16xf32> to vector<16x1xf32>
    %1741 = math.log %1740 : vector<16x1xf32>
    %1742 = vector.broadcast %1741 : vector<16x1xf32> to vector<16x128xf32>
    %1743 = arith.subf %1737, %1742 : vector<16x128xf32>
    %c0_540 = arith.constant 0 : index
    %c0_541 = arith.constant 0 : index
    %1744 = vector.load %arg43[%c0_540, %c0_541] : memref<16x128xf32, #tpu.memory_space<vmem>>, vector<16x128xf32>
    tpu.vector_store %arg43[%c0_540, %c0_541], %1743 {strides = array<i32>} : memref<16x128xf32, #tpu.memory_space<vmem>>, vector<16x128xf32>,
    return
  }
  func.func @transform_0(%arg0: i32) -> (i32, i32) {
    %c0_i32 = arith.constant 0 : i32
    %c0_i32_0 = arith.constant 0 : i32
    %c0_i32_1 = arith.constant 0 : i32
    return %c0_i32, %c0_i32_0 : i32, i32
  }
  func.func @transform_1(%arg0: i32) -> (i32, i32) {
    %c0_i32 = arith.constant 0 : i32
    %c0_i32_0 = arith.constant 0 : i32
    %c0_i32_1 = arith.constant 0 : i32
    return %c0_i32, %c0_i32_0 : i32, i32
  }
  func.func @transform_2(%arg0: i32) -> (i32, i32, i32) {
    %c0_i32 = arith.constant 0 : i32
    %c0_i32_0 = arith.constant 0 : i32
    %c0_i32_1 = arith.constant 0 : i32
    %c0_i32_2 = arith.constant 0 : i32
    return %c0_i32, %c0_i32_0, %c0_i32_1 : i32, i32, i32
  }
  func.func @transform_3(%arg0: i32) -> (i32, i32, i32) {
    %c0_i32 = arith.constant 0 : i32
    %c0_i32_0 = arith.constant 0 : i32
    %c0_i32_1 = arith.constant 0 : i32
    %c0_i32_2 = arith.constant 0 : i32
    return %c0_i32, %c0_i32_0, %c0_i32_1 : i32, i32, i32
  }
  func.func @transform_4(%arg0: i32) -> (i32, i32, i32) {
    %c0_i32 = arith.constant 0 : i32
    %c0_i32_0 = arith.constant 0 : i32
    %c0_i32_1 = arith.constant 0 : i32
    %c0_i32_2 = arith.constant 0 : i32
    return %c0_i32, %c0_i32_0, %c0_i32_1 : i32, i32, i32
  }
  func.func @transform_5(%arg0: i32) -> (i32, i32, i32) {
    %c0_i32 = arith.constant 0 : i32
    %c0_i32_0 = arith.constant 0 : i32
    %c0_i32_1 = arith.constant 0 : i32
    %c0_i32_2 = arith.constant 0 : i32
    return %c0_i32, %c0_i32_0, %c0_i32_1 : i32, i32, i32
  }
  func.func @transform_6(%arg0: i32) -> (i32, i32, i32) {
    %c0_i32 = arith.constant 0 : i32
    %c0_i32_0 = arith.constant 0 : i32
    %c0_i32_1 = arith.constant 0 : i32
    %c0_i32_2 = arith.constant 0 : i32
    return %c0_i32, %c0_i32_0, %c0_i32_1 : i32, i32, i32
  }
  func.func @transform_7(%arg0: i32) -> (i32, i32, i32) {
    %c0_i32 = arith.constant 0 : i32
    %c0_i32_0 = arith.constant 0 : i32
    %c0_i32_1 = arith.constant 0 : i32
    %c0_i32_2 = arith.constant 0 : i32
    return %c0_i32, %c0_i32_0, %c0_i32_1 : i32, i32, i32
  }
  func.func @transform_8(%arg0: i32) -> (i32, i32, i32) {
    %c0_i32 = arith.constant 0 : i32
    %c0_i32_0 = arith.constant 0 : i32
    %c0_i32_1 = arith.constant 0 : i32
    %c0_i32_2 = arith.constant 0 : i32
    return %c0_i32, %c0_i32_0, %c0_i32_1 : i32, i32, i32
  }
  func.func @transform_9(%arg0: i32) -> (i32, i32, i32) {
    %c0_i32 = arith.constant 0 : i32
    %c0_i32_0 = arith.constant 0 : i32
    %c0_i32_1 = arith.constant 0 : i32
    %c0_i32_2 = arith.constant 0 : i32
    return %c0_i32, %c0_i32_0, %c0_i32_1 : i32, i32, i32
  }
  func.func @transform_10(%arg0: i32) -> (i32, i32, i32) {
    %c0_i32 = arith.constant 0 : i32
    %c0_i32_0 = arith.constant 0 : i32
    %c0_i32_1 = arith.constant 0 : i32
    %c0_i32_2 = arith.constant 0 : i32
    return %c0_i32, %c0_i32_0, %c0_i32_1 : i32, i32, i32
  }
  func.func @transform_11(%arg0: i32) -> (i32, i32, i32) {
    %c0_i32 = arith.constant 0 : i32
    %c0_i32_0 = arith.constant 0 : i32
    %c0_i32_1 = arith.constant 0 : i32
    %c0_i32_2 = arith.constant 0 : i32
    return %c0_i32, %c0_i32_0, %c0_i32_1 : i32, i32, i32
  }
  func.func @transform_12(%arg0: i32) -> (i32, i32, i32) {
    %c0_i32 = arith.constant 0 : i32
    %c0_i32_0 = arith.constant 0 : i32
    %c0_i32_1 = arith.constant 0 : i32
    %c0_i32_2 = arith.constant 0 : i32
    return %c0_i32, %c0_i32_0, %c0_i32_1 : i32, i32, i32
  }
  func.func @transform_13(%arg0: i32) -> (i32, i32, i32) {
    %c0_i32 = arith.constant 0 : i32
    %c0_i32_0 = arith.constant 0 : i32
    %c0_i32_1 = arith.constant 0 : i32
    %c0_i32_2 = arith.constant 0 : i32
    return %c0_i32, %c0_i32_0, %c0_i32_1 : i32, i32, i32
  }
  func.func @transform_14(%arg0: i32) -> (i32, i32, i32) {
    %c0_i32 = arith.constant 0 : i32
    %c0_i32_0 = arith.constant 0 : i32
    %c0_i32_1 = arith.constant 0 : i32
    %c0_i32_2 = arith.constant 0 : i32
    return %c0_i32, %c0_i32_0, %c0_i32_1 : i32, i32, i32
  }
  func.func @transform_15(%arg0: i32) -> (i32, i32, i32) {
    %c0_i32 = arith.constant 0 : i32
    %c0_i32_0 = arith.constant 0 : i32
    %c0_i32_1 = arith.constant 0 : i32
    %c0_i32_2 = arith.constant 0 : i32
    return %c0_i32, %c0_i32_0, %c0_i32_1 : i32, i32, i32
  }
  func.func @transform_16(%arg0: i32) -> (i32, i32) {
    %c0_i32 = arith.constant 0 : i32
    %c0_i32_0 = arith.constant 0 : i32
    %c0_i32_1 = arith.constant 0 : i32
    return %c0_i32, %c0_i32_0 : i32, i32
  }
  func.func @transform_17(%arg0: i32) -> (i32, i32) {
    %c0_i32 = arith.constant 0 : i32
    %c0_i32_0 = arith.constant 0 : i32
    %c0_i32_1 = arith.constant 0 : i32
    return %c0_i32, %c0_i32_0 : i32, i32
  }
  func.func @transform_18(%arg0: i32) -> (i32, i32, i32) {
    %c0_i32 = arith.constant 0 : i32
    %c0_i32_0 = arith.constant 0 : i32
    %c0_i32_1 = arith.constant 0 : i32
    %c0_i32_2 = arith.constant 0 : i32
    return %c0_i32, %c0_i32_0, %c0_i32_1 : i32, i32, i32
  }
  func.func @transform_19(%arg0: i32) -> (i32, i32, i32) {
    %c0_i32 = arith.constant 0 : i32
    %c0_i32_0 = arith.constant 0 : i32
    %c0_i32_1 = arith.constant 0 : i32
    %c0_i32_2 = arith.constant 0 : i32
    return %c0_i32, %c0_i32_0, %c0_i32_1 : i32, i32, i32
  }
  func.func @transform_20(%arg0: i32) -> (i32, i32, i32) {
    %c0_i32 = arith.constant 0 : i32
    %c0_i32_0 = arith.constant 0 : i32
    %c0_i32_1 = arith.constant 0 : i32
    %c0_i32_2 = arith.constant 0 : i32
    return %c0_i32, %c0_i32_0, %c0_i32_1 : i32, i32, i32
  }
  func.func @transform_21(%arg0: i32) -> (i32, i32, i32) {
    %c0_i32 = arith.constant 0 : i32
    %c0_i32_0 = arith.constant 0 : i32
    %c0_i32_1 = arith.constant 0 : i32
    %c0_i32_2 = arith.constant 0 : i32
    return %c0_i32, %c0_i32_0, %c0_i32_1 : i32, i32, i32
  }
  func.func @transform_22(%arg0: i32) -> (i32, i32, i32) {
    %c0_i32 = arith.constant 0 : i32
    %c0_i32_0 = arith.constant 0 : i32
    %c0_i32_1 = arith.constant 0 : i32
    %c0_i32_2 = arith.constant 0 : i32
    return %c0_i32, %c0_i32_0, %c0_i32_1 : i32, i32, i32
  }
  func.func @transform_23(%arg0: i32) -> (i32, i32, i32) {
    %c0_i32 = arith.constant 0 : i32
    %c0_i32_0 = arith.constant 0 : i32
    %c0_i32_1 = arith.constant 0 : i32
    %c0_i32_2 = arith.constant 0 : i32
    return %c0_i32, %c0_i32_0, %c0_i32_1 : i32, i32, i32
  }
  func.func @transform_24(%arg0: i32) -> (i32, i32, i32) {
    %c0_i32 = arith.constant 0 : i32
    %c0_i32_0 = arith.constant 0 : i32
    %c0_i32_1 = arith.constant 0 : i32
    %c0_i32_2 = arith.constant 0 : i32
    return %c0_i32, %c0_i32_0, %c0_i32_1 : i32, i32, i32
  }
  func.func @transform_25(%arg0: i32) -> (i32, i32, i32) {
    %c0_i32 = arith.constant 0 : i32
    %c0_i32_0 = arith.constant 0 : i32
    %c0_i32_1 = arith.constant 0 : i32
    %c0_i32_2 = arith.constant 0 : i32
    return %c0_i32, %c0_i32_0, %c0_i32_1 : i32, i32, i32
  }
  func.func @transform_26(%arg0: i32) -> (i32, i32, i32) {
    %c0_i32 = arith.constant 0 : i32
    %c0_i32_0 = arith.constant 0 : i32
    %c0_i32_1 = arith.constant 0 : i32
    %c0_i32_2 = arith.constant 0 : i32
    return %c0_i32, %c0_i32_0, %c0_i32_1 : i32, i32, i32
  }
  func.func @transform_27(%arg0: i32) -> (i32, i32, i32) {
    %c0_i32 = arith.constant 0 : i32
    %c0_i32_0 = arith.constant 0 : i32
    %c0_i32_1 = arith.constant 0 : i32
    %c0_i32_2 = arith.constant 0 : i32
    return %c0_i32, %c0_i32_0, %c0_i32_1 : i32, i32, i32
  }
  func.func @transform_28(%arg0: i32) -> (i32, i32, i32) {
    %c0_i32 = arith.constant 0 : i32
    %c0_i32_0 = arith.constant 0 : i32
    %c0_i32_1 = arith.constant 0 : i32
    %c0_i32_2 = arith.constant 0 : i32
    return %c0_i32, %c0_i32_0, %c0_i32_1 : i32, i32, i32
  }
  func.func @transform_29(%arg0: i32) -> (i32, i32, i32) {
    %c0_i32 = arith.constant 0 : i32
    %c0_i32_0 = arith.constant 0 : i32
    %c0_i32_1 = arith.constant 0 : i32
    %c0_i32_2 = arith.constant 0 : i32
    return %c0_i32, %c0_i32_0, %c0_i32_1 : i32, i32, i32
  }
  func.func @transform_30(%arg0: i32) -> (i32, i32, i32) {
    %c0_i32 = arith.constant 0 : i32
    %c0_i32_0 = arith.constant 0 : i32
    %c0_i32_1 = arith.constant 0 : i32
    %c0_i32_2 = arith.constant 0 : i32
    return %c0_i32, %c0_i32_0, %c0_i32_1 : i32, i32, i32
  }
  func.func @transform_31(%arg0: i32) -> (i32, i32, i32) {
    %c0_i32 = arith.constant 0 : i32
    %c0_i32_0 = arith.constant 0 : i32
    %c0_i32_1 = arith.constant 0 : i32
    %c0_i32_2 = arith.constant 0 : i32
    return %c0_i32, %c0_i32_0, %c0_i32_1 : i32, i32, i32
  }
  func.func @transform_32(%arg0: i32) -> (i32, i32, i32) {
    %c0_i32 = arith.constant 0 : i32
    %c0_i32_0 = arith.constant 0 : i32
    %c0_i32_1 = arith.constant 0 : i32
    %c0_i32_2 = arith.constant 0 : i32
    return %c0_i32, %c0_i32_0, %c0_i32_1 : i32, i32, i32
  }
  func.func @transform_33(%arg0: i32) -> (i32, i32, i32) {
    %c0_i32 = arith.constant 0 : i32
    %c0_i32_0 = arith.constant 0 : i32
    %c0_i32_1 = arith.constant 0 : i32
    %c0_i32_2 = arith.constant 0 : i32
    return %c0_i32, %c0_i32_0, %c0_i32_1 : i32, i32, i32
  }
  func.func @transform_34(%arg0: i32) -> (i32, i32, i32) {
    %c0_i32 = arith.constant 0 : i32
    %c0_i32_0 = arith.constant 0 : i32
    %c0_i32_1 = arith.constant 0 : i32
    %c0_i32_2 = arith.constant 0 : i32
    return %c0_i32, %c0_i32_0, %c0_i32_1 : i32, i32, i32
  }
  func.func @transform_35(%arg0: i32) -> (i32, i32, i32) {
    %c0_i32 = arith.constant 0 : i32
    %c0_i32_0 = arith.constant 0 : i32
    %c0_i32_1 = arith.constant 0 : i32
    %c0_i32_2 = arith.constant 0 : i32
    return %c0_i32, %c0_i32_0, %c0_i32_1 : i32, i32, i32
  }
  func.func @transform_36(%arg0: i32) -> (i32, i32, i32) {
    %c0_i32 = arith.constant 0 : i32
    %c0_i32_0 = arith.constant 0 : i32
    %c0_i32_1 = arith.constant 0 : i32
    %c0_i32_2 = arith.constant 0 : i32
    return %c0_i32, %c0_i32_0, %c0_i32_1 : i32, i32, i32
  }
  func.func @transform_37(%arg0: i32) -> (i32, i32, i32) {
    %c0_i32 = arith.constant 0 : i32
    %c0_i32_0 = arith.constant 0 : i32
    %c0_i32_1 = arith.constant 0 : i32
    %c0_i32_2 = arith.constant 0 : i32
    return %c0_i32, %c0_i32_0, %c0_i32_1 : i32, i32, i32
  }
  func.func @transform_38(%arg0: i32) -> (i32, i32) {
    %c0_i32 = arith.constant 0 : i32
    %c0_i32_0 = arith.constant 0 : i32
    %c0_i32_1 = arith.constant 0 : i32
    return %c0_i32, %c0_i32_0 : i32, i32
  }
  func.func @transform_39(%arg0: i32) -> (i32, i32) {
    %c0_i32 = arith.constant 0 : i32
    %c0_i32_0 = arith.constant 0 : i32
    %c0_i32_1 = arith.constant 0 : i32
    return %c0_i32, %c0_i32_0 : i32, i32
  }
  func.func @transform_40(%arg0: i32) -> (i32, i32) {
    %c0_i32 = arith.constant 0 : i32
    %c0_i32_0 = arith.constant 0 : i32
    %c0_i32_1 = arith.constant 0 : i32
    return %c0_i32, %c0_i32_0 : i32, i32
  }
  func.func @transform_41(%arg0: i32) -> (i32, i32) {
    %c0_i32 = arith.constant 0 : i32
    %c0_i32_0 = arith.constant 0 : i32
    %c0_i32_1 = arith.constant 0 : i32
    return %c0_i32, %c0_i32_0 : i32, i32
  }
  func.func @transform_42(%arg0: i32) -> (i32, i32) {
    %c0_i32 = arith.constant 0 : i32
    %c0_i32_0 = arith.constant 0 : i32
    %c0_i32_1 = arith.constant 0 : i32
    return %c0_i32, %c0_i32_0 : i32, i32
  }
}

</mosaic_0001>

<bundles_post_ra>
// kernel: transformer_forward.1
= control target key start
LH: loop header
LB: loop body
LE: loop exit
PB: predicated region body
PF: predicated region fallthrough
CT: control target
= control target key end

     0   :  { %s10080_s6 = smov 1   ;;  %s10081_s10 = smov 2   ;;  %s11938_s0 = inlined_call_operand.smem [shape: u32[43], index: -1, kind: input, shape index: {}] }
   0x1   :  { %s10147_s5 = sld [smem:[%s11938_s0]]   ;;  %s10082_s14 = smov 3  }
   0x2   :  { %s10152_s9 = sld [smem:[%s11938_s0 + %s10080_s6]]   ;;  %s10083_s18 = smov 4  }
   0x3   :  { %s10157_s13 = sld [smem:[%s11938_s0 + %s10081_s10]]   ;;  %s10084_s22 = smov 5  }
   0x4   :  { %s10162_s17 = sld [smem:[%s11938_s0 + %s10082_s14]]   ;;  %s10085_s26 = smov 6  }
   0x5   :  { %s10167_s21 = sld [smem:[%s11938_s0 + %s10083_s18]]   ;;  %s10086_s30 = smov 7  }
   0x6   :  { %s10172_s25 = sld [smem:[%s11938_s0 + %s10084_s22]]   ;;  %s10087_s4 = smov 8  }
   0x7   :  { %s10177_s29 = sld [smem:[%s11938_s0 + %s10085_s26]]   ;;  %s10088_s10 = smov 9  }
   0x8   :  { %11977 = sst [smem:[#allocation5_spill]] %s10152_s9  ;;  %s10089_s15 = smov 10  }
   0x9   :  { %s10182_s3 = sld [smem:[%s11938_s0 + %s10086_s30]]   ;;  %s10090_s20 = smov 11  }
   0xa   :  { %11978 = sst [smem:[#allocation6_spill]] %s10162_s17  ;;  %s10091_s26 = smov 12  }
   0xb   :  { %s10187_s8 = sld [smem:[%s11938_s0 + %s10087_s4]]   ;;  %s10092_s1 = smov 13  }
   0xc   :  { %s10192_s14 = sld [smem:[%s11938_s0 + %s10088_s10]]   ;;  %s10093_s7 = smov 14  }
   0xd   :  { %s10197_s19 = sld [smem:[%s11938_s0 + %s10089_s15]]   ;;  %s10094_s15 = smov 15  }
   0xe   :  { %s10202_s24 = sld [smem:[%s11938_s0 + %s10090_s20]]   ;;  %s10095_s22 = smov 16  }
   0xf   :  { %s10207_s30 = sld [smem:[%s11938_s0 + %s10091_s26]]   ;;  %s10096_s28 = smov 17  }
  0x10   :  { %s10212_s6 = sld [smem:[%s11938_s0 + %s10092_s1]]   ;;  %s10121_s10 = smov 42  }
  0x11   :  { %s10217_s12 = sld [smem:[%s11938_s0 + %s10093_s7]]   ;;  %s10097_s7 = smov 18  }
  0x12   :  { %s10222_s20 = sld [smem:[%s11938_s0 + %s10094_s15]]   ;;  %s10098_s15 = smov 19  }
  0x13   :  { %s10227_s27 = sld [smem:[%s11938_s0 + %s10095_s22]]   ;;  %s10099_s22 = smov 20  }
  0x14   :  { %s10232_s4 = sld [smem:[%s11938_s0 + %s10096_s28]]   ;;  %s10100_s28 = smov 21  }
  0x15   :  { %s10237_s17 = sld [smem:[%s11938_s0 + %s10097_s7]]   ;;  %s10101_s7 = smov 22  }
  0x16   :  { %s10242_s9 = sld [smem:[%s11938_s0 + %s10098_s15]]   ;;  %s10102_s15 = smov 23  }
  0x19   :  { %11979 = sst [smem:[#allocation7_spill]] %s10227_s27 }
  0x1a   :  { %11980 = sst [smem:[#allocation8_spill]] %s10232_s4 }
  0x1b   :  { %11981 = sst [smem:[#allocation9_spill]] %s10237_s17 }
  0x1c   :  { %11982 = sst [smem:[#allocation10_spill]] %s10242_s9 }
  0x1d   :  { %s10247_s27 = sld [smem:[%s11938_s0 + %s10099_s22]]   ;;  %s10103_s22 = smov 24  }
  0x1e   :  { %s10252_s4 = sld [smem:[%s11938_s0 + %s10100_s28]]   ;;  %s10104_s28 = smov 25  }
  0x1f   :  { %s10257_s17 = sld [smem:[%s11938_s0 + %s10101_s7]]   ;;  %s10105_s7 = smov 26  }
  0x20   :  { %s10262_s9 = sld [smem:[%s11938_s0 + %s10102_s15]]   ;;  %s10106_s15 = smov 27  }
  0x23   :  { %11983 = sst [smem:[#allocation11_spill]] %s10247_s27 }
  0x24   :  { %11984 = sst [smem:[#allocation12_spill]] %s10252_s4 }
  0x25   :  { %11985 = sst [smem:[#allocation13_spill]] %s10257_s17 }
  0x26   :  { %11986 = sst [smem:[#allocation14_spill]] %s10262_s9 }
  0x27   :  { %s10267_s27 = sld [smem:[%s11938_s0 + %s10103_s22]]   ;;  %s10107_s22 = smov 28  }
  0x28   :  { %s10272_s4 = sld [smem:[%s11938_s0 + %s10104_s28]]   ;;  %s10108_s28 = smov 29  }
  0x29   :  { %s10277_s17 = sld [smem:[%s11938_s0 + %s10105_s7]]   ;;  %s10109_s7 = smov 30  }
  0x2a   :  { %s10282_s9 = sld [smem:[%s11938_s0 + %s10106_s15]]   ;;  %s10110_s15 = smov 31  }
  0x2d   :  { %11987 = sst [smem:[#allocation15_spill]] %s10267_s27 }
  0x2e   :  { %11988 = sst [smem:[#allocation16_spill]] %s10272_s4 }
  0x2f   :  { %11989 = sst [smem:[#allocation17_spill]] %s10277_s17 }
  0x30   :  { %11990 = sst [smem:[#allocation18_spill]] %s10282_s9 }
  0x31   :  { %s10287_s27 = sld [smem:[%s11938_s0 + %s10107_s22]]   ;;  %s10111_s22 = smov 32  }
  0x32   :  { %s10292_s4 = sld [smem:[%s11938_s0 + %s10108_s28]]   ;;  %s10112_s28 = smov 33  }
  0x33   :  { %s10297_s17 = sld [smem:[%s11938_s0 + %s10109_s7]]   ;;  %s10113_s7 = smov 34  }
  0x34   :  { %s10302_s9 = sld [smem:[%s11938_s0 + %s10110_s15]]   ;;  %s10114_s15 = smov 35  }
  0x37   :  { %11991 = sst [smem:[#allocation19_spill]] %s10287_s27 }
  0x38   :  { %11992 = sst [smem:[#allocation20_spill]] %s10292_s4 }
  0x39   :  { %11993 = sst [smem:[#allocation21_spill]] %s10297_s17 }
  0x3a   :  { %11994 = sst [smem:[#allocation22_spill]] %s10302_s9 }
  0x3b   :  { %s10307_s27 = sld [smem:[%s11938_s0 + %s10111_s22]]   ;;  %s10115_s22 = smov 36  }
  0x3c   :  { %s10312_s4 = sld [smem:[%s11938_s0 + %s10112_s28]]   ;;  %s10116_s28 = smov 37  }
  0x3d   :  { %s10317_s17 = sld [smem:[%s11938_s0 + %s10113_s7]]   ;;  %s10117_s7 = smov 38  }
  0x3e   :  { %s10322_s9 = sld [smem:[%s11938_s0 + %s10114_s15]]   ;;  %s10118_s15 = smov 39  }
  0x41   :  { %11995 = sst [smem:[#allocation23_spill]] %s10307_s27 }
  0x42   :  { %11996 = sst [smem:[#allocation24_spill]] %s10312_s4 }
  0x43   :  { %11997 = sst [smem:[#allocation25_spill]] %s10317_s17 }
  0x44   :  { %11998 = sst [smem:[#allocation26_spill]] %s10322_s9 }
  0x45   :  { %s10327_s27 = sld [smem:[%s11938_s0 + %s10115_s22]]   ;;  %s10119_s22 = smov 40  }
  0x46   :  { %s10332_s4 = sld [smem:[%s11938_s0 + %s10116_s28]]   ;;  %s10120_s28 = smov 41  }
  0x47   :  { %s10337_s17 = sld [smem:[%s11938_s0 + %s10117_s7]]  }
  0x48   :  { %s10342_s9 = sld [smem:[%s11938_s0 + %s10118_s15]]  }
  0x4b   :  { %11999 = sst [smem:[#allocation27_spill]] %s10327_s27 }
  0x4c   :  { %12000 = sst [smem:[#allocation28_spill]] %s10332_s4 }
  0x4d   :  { %12001 = sst [smem:[#allocation29_spill]] %s10337_s17 }
  0x4e   :  { %s10347_s27 = sld [smem:[%s11938_s0 + %s10119_s22]]  }
  0x4f   :  { %s8205_s4 = sld [smem:[%s11938_s0 + %s10120_s28]]  }
  0x50   :  { %s10355_s17 = sld [smem:[%s11938_s0 + %s10121_s10]]  }
  0x51   :  { %90 = vsyncpa [#allocation3], 0  ;;  %s10122_s15 = smov [#allocation2]  }
  0x52   :  { %s179_s16 = sshll.u32 %s10122_s15, 4  ;;  %s180_s16 = int_to_ptr.vmem [resolvable:$true] %s179_s16 }
  0x55   :  { %s10056_s18 = scalar_lea.hbm %s8205_s4, 16 }
  0x56   :  { %p10057_p0 = scmp.ne.s32.totalorder %s8205_s4, %s10056_s18  ;;  %p10060_p1 = scmp.lt.u32.totalorder %s10056_s18, %s8205_s4 }
  0x58   :  { %p10062_p2 = pnand %p10060_p1, %p10057_p0 }
  0x5a   :  { %10065 = shalt.err (!%p10062_p2)
}
  0x5b   :  { %s10066_s22 = scalar_lea.vmem %s180_s16, 16  ;;  %s10070_s23 = scalar_lea.vmem %s180_s16, 32 }
  0x5c   :  { %p10067_p3 = scmp.ne.s32.totalorder %s180_s16, %s10066_s22  ;;  %p10071_p4 = scmp.lt.s32.totalorder %s180_s16, %s180_s16 }
  0x5d   :  { %p10072_p5 = scmp.lt.s32.totalorder %s10070_s23, %s10066_s22 }
  0x5f   :  { %p10073_p6 = por %p10072_p5, %p10071_p4 }
  0x61   :  { %p10074_p7 = pnand %p10073_p6, %p10067_p3 }
  0x63   :  { %10077 = shalt.err (!%p10074_p7)
}
  0x64   :  { %182 = dma.hbm_to_vmem [thread:$0]  %s8205_s4, 16, %s180_s16, [#allocation3]  }
  0x65   :  { %10078 = dma.done.wait [#allocation3], 16  }
  0x66   :  { %10079 = vsyncadd [#allocation3], 4294967280  ;;  %vm195_vm0 = vcmask 261120   ;;  %v191_v0 = vld [vmem:[%s10147_s5] sm:$0xff]  ;;  %v192_v1 = vld [vmem:[%s10147_s5 + $0x8] sm:$0xff]  ;;  %v10123_v15 = vmov 0.0  }
  0x67   :  { %v196_v2 = vsel %vm195_vm0, %v191_v0, 0.0  ;;  %v199_v3 = vsel %vm195_vm0, %v192_v1, 0.0  ;;  %v9694_v14 = vld [vmem:[%s10177_s29] sm:$0xff]   ;;  %8769 = vmatprep.subr.bf16.mxu0 %v10123_v15  ;;  %vm10124_vm1 = vmmov 0   ;;  %v9695_v16 = vld [vmem:[%s10177_s29 + $0x8] sm:$0xff]   ;;  %8777 = vmatprep.subr.bf16.mxu1 %v10123_v15  ;;  %s10125_s0 = smov 88  }
  0x68   :  { %197 = vadd.xlane.f32.xlu0 %v196_v2  ;;  %8773 = vmatprep.mubr.msk.bf16.mxu0 %vm10124_vm1, %v10123_v15  ;;  %v8207_v35 = vld [vmem:[%s10167_s21] ss:$0 sm:$0xff]  ;;  %s10126_s4 = smov 96   ;;  %s10127_s26 = smov 120   ;;  %vm325_vm6 = vcmask 64512   ;;  %vm391_vm7 = vcmask 1043456  }
  0x69   :  { %8770 = vmatpush3.bf16.msra.mxu0 %v9694_v14  ;;  %8779 = vmatprep.mubr.msk.bf16.mxu1 %vm10124_vm1, %v10123_v15  ;;  %v8208_v39 = vld [vmem:[%s10172_s25] ss:$0 sm:$0xff]  ;;  %s10128_s28 = smov 112   ;;  %s10129_s1 = smov 80   ;;  %vm784_vm8 = vcmask 130048   ;;  %vm786_vm9 = vcmask 195584  }
  0x6a   :  { %8771 = vmatprep.subr.bf16.mxu0 %v10123_v15  ;;  %v8209_v44 = vld [vmem:[%s10182_s3] ss:$0 sm:$0xff]  ;;  %s10130_s2 = smov 104   ;;  %s11975_s10 = smov 72   ;;  %vm1489_vm14 = vcmask 523264  }
  0x6b   :  { %s11973_s7 = smov 56   ;;  %s11971_s11 = smov 64  }
  0x6c   :  { %200 = vadd.xlane.f32.xlu0 %v199_v3  ;;  %s11969_s15 = smov 48   ;;  %s11961_s16 = smov 40  }
  0x6d   :  { %8772 = vmatpush3.bf16.msra.mxu0 %v9695_v16  ;;  %s11963_s18 = smov 8   ;;  %s11967_s22 = smov 16  }
  0x6e   :  { %8783 = vmatprep.subr.bf16.mxu0 %v10123_v15  ;;  %s11965_s23 = smov 24  }
  0xf5   :  { %v198_v4 = vpop.xlane.xlu0 %197 }
  0xf6   :  { %v203_v5 = vmul.f32 0.03125, %v198_v4 }
  0xf8   :  { %v205_v6 = vsub.f32 %v191_v0, %v203_v5 }
  0xf9   :  { %v201_v7 = vpop.xlane.xlu0 %200 }
  0xfa   :  { %v204_v8 = vmul.f32 0.03125, %v201_v7  ;;  %v207_v9 = vmul.f32 %v205_v6, %v205_v6 }
  0xfc   :  { %v206_v10 = vsub.f32 %v192_v1, %v204_v8  ;;  %v209_v11 = vsel %vm195_vm0, %v207_v9, 0.0 }
  0xfd   :  { %210 = vadd.xlane.f32.xlu1 %v209_v11 }
  0xfe   :  { %v208_v12 = vmul.f32 %v206_v10, %v206_v10 }
 0x100   :  { %v212_v13 = vsel %vm195_vm0, %v208_v12, 0.0  ;;  %v187_v12 = vld [vmem:[%s10157_s13] sm:$0xff] }
 0x101   :  { %213 = vadd.xlane.f32.xlu1 %v212_v13 }
 0x18a   :  { %v211_v17 = vpop.xlane.xlu1 %210 }
 0x18b   :  { %v215_v18 = vmul.f32 0.03125, %v211_v17 }
 0x18d   :  { %v217_v19 = vadd.f32 1e-06, %v215_v18 }
 0x18e   :  { %v214_v20 = vpop.xlane.xlu1 %213 }
 0x18f   :  { %9748 = vrsqrt.f32 %v217_v19  ;;  %v216_v21 = vmul.f32 0.03125, %v214_v20  ;;  %vm221_vm2 = vcmp.eq.f32.partialorder %v217_v19, inf  ;;  %v224_v25 = vand.u32 2147483648, %v217_v19 }
 0x190   :  { %vm223_vm3 = vcmp.eq.f32.partialorder %v217_v19, 0.0 }
 0x191   :  { %v218_v22 = vadd.f32 1e-06, %v216_v21 }
 0x193   :  { %9750 = vrsqrt.f32 %v218_v22  ;;  %vm228_vm4 = vcmp.eq.f32.partialorder %v218_v22, inf  ;;  %v231_v30 = vand.u32 2147483648, %v218_v22  ;;  %vm230_vm5 = vcmp.eq.f32.partialorder %v218_v22, 0.0 }
 0x199   :  { %v9749_v23 = vpop.eup %9748 }
 0x19a   :  { %v220_v24 = vmul.f32 %v9749_v23, %v217_v19 }
 0x19c   :  { %v222_v26 = vsel %vm221_vm2, %v217_v19, %v220_v24 }
 0x19d   :  { %v225_v27 = vsel %vm223_vm3, %v224_v25, %v222_v26  ;;  %v9751_v28 = vpop.eup %9750 }
 0x19e   :  { %9752 = vrcp.f32 %v225_v27  ;;  %v227_v29 = vmul.f32 %v9751_v28, %v218_v22 }
 0x1a0   :  { %v229_v31 = vsel %vm228_vm4, %v218_v22, %v227_v29 }
 0x1a1   :  { %v232_v32 = vsel %vm230_vm5, %v231_v30, %v229_v31 }
 0x1a2   :  { %9754 = vrcp.f32 %v232_v32 }
 0x1a8   :  { %v9753_v33 = vpop.eup %9752 }
 0x1a9   :  { %v234_v34 = vmul.f32 %v9753_v33, %v205_v6 }
 0x1ab   :  { %v243_v38 = vmul.f32 %v8207_v35, %v234_v34 }
 0x1ac   :  { %v9755_v36 = vpop.eup %9754 }
 0x1ad   :  { %v236_v37 = vmul.f32 %v9755_v36, %v206_v10  ;;  %v251_v41 = vadd.f32 %v8208_v39, %v243_v38 }
 0x1af   :  { %v244_v40 = vmul.f32 %v8207_v35, %v236_v37 }
 0x1b1   :  { %v252_v42 = vadd.f32 %v8208_v39, %v244_v40 }
 0x1b3   :  { %v258_v43 = vpack.c.bf16 %v252_v42, %v251_v41 }
 0x1b5   :  { %8774 = vmatmul.mubr.msk.bf16.vlgmr.msra.gmra.mrb[0].mxu0 %vm195_vm0, %v258_v43  ;;  %v188_v43 = vld [vmem:[%s10157_s13 + $0x8] sm:$0xff] }
 0x1b6   :  { %8785 = vmatprep.mubr.msk.bf16.mxu0 %vm10124_vm1, %v10123_v15 }
 0x288   :  { %v314_v45 = vpop.f32.mrb[0].mxu0 }
 0x289   :  { %v315_v46 = vadd.f32 %v8209_v44, %v314_v45  ;;  %v8775_v47 = vpop.f32.mrb[1].mxu0 }
 0x28a   :  { %v317_v48 = vpop.f32.mrb[2].mxu0 }
 0x28b   :  { %v10379_v49 = vpack.c.bf16 %v315_v46, %v315_v46  ;;  %v8776_v50 = vpop.f32.mrb[3].mxu0  ;;  %v318_v51 = vadd.f32 %v8209_v44, %v317_v48 }
 0x28d   :  { %437 = vrot.lane.b32.xlu1 %v10379_v49, %s10125_s0  ;;  %323 = vrot.lane.b32.xlu0 %v10379_v49, %s10126_s4  ;;  %v10393_v52 = vpack.c.bf16 %v318_v51, %v318_v51 }
 0x291   :  { %435 = vrot.lane.b32.xlu1 %v10379_v49, %s10127_s26  ;;  %547 = vrot.lane.b32.xlu0 %v10379_v49, %s10128_s28 }
 0x295   :  { %549 = vrot.lane.b32.xlu1 %v10379_v49, %s10129_s1  ;;  %659 = vrot.lane.b32.xlu0 %v10379_v49, %s10130_s2 }
 0x299   :  { %661 = vrot.lane.b32.xlu1 %v10379_v49, %s11975_s10  ;;  %902 = vrot.lane.b32.xlu0 %v10393_v52, %s10125_s0 }
 0x29d   :  { %1014 = vrot.lane.b32.xlu0 %v10393_v52, %s10129_s1  ;;  %790 = vrot.lane.b32.xlu1 %v10393_v52, %s10126_s4 }
 0x2a1   :  { %1126 = vrot.lane.b32.xlu0 %v10393_v52, %s11975_s10  ;;  %900 = vrot.lane.b32.xlu1 %v10393_v52, %s10127_s26 }
 0x2a5   :  { %1012 = vrot.lane.b32.xlu1 %v10393_v52, %s10128_s28 }
 0x2a9   :  { %1124 = vrot.lane.b32.xlu1 %v10393_v52, %s10130_s2 }
 0x2ad   :  { %499 = vrot.lane.b32.xlu1 %v10379_v49, %s11973_s7 }
 0x2ff   :  { %v324_v53 = vpop.permute.xlu0 %323  ;;  %v438_v55 = vpop.permute.xlu1 %437 }
 0x300   :  { %v330_v54 = vsel %vm325_vm6, %v324_v53, 0  ;;  %v443_v57 = vsel %vm325_vm6, %v438_v55, 0 }
 0x301   :  { %8778 = vmatpush3.bf16.xpose.msra.mxu1 %v330_v54 }
 0x302   :  { %8789 = vmatprep.subr.bf16.mxu1 %v10123_v15 }
 0x303   :  { %v436_v56 = vpop.permute.xlu1 %435  ;;  %v548_v61 = vpop.permute.xlu0 %547 }
 0x307   :  { %v550_v58 = vpop.permute.xlu1 %549  ;;  %v660_v0 = vpop.permute.xlu0 %659 }
 0x308   :  { %8780 = vmatmul.mubr.msk.bf16.vlgmr.msra.gmra.mrb[0].mxu1 %vm325_vm6, %v10379_v49  ;;  %v555_v59 = vsel %vm325_vm6, %v550_v58, 0 }
 0x309   :  { %8790 = vmatpush3.bf16.xpose.msra.mxu1 %v443_v57  ;;  %8791 = vmatprep.mubr.msk.bf16.mxu1 %vm10124_vm1, %v10123_v15 }
 0x30a   :  { %8801 = vmatprep.subr.bf16.mxu1 %v10123_v15 }
 0x30b   :  { %v662_v60 = vpop.permute.xlu1 %661  ;;  %v903_v2 = vpop.permute.xlu0 %902 }
 0x30c   :  { %v667_v62 = vsel %vm325_vm6, %v662_v60, 0  ;;  %v908_v3 = vsel %vm325_vm6, %v903_v2, 0 }
 0x30f   :  { %v791_v63 = vpop.permute.xlu1 %790  ;;  %v1015_v4 = vpop.permute.xlu0 %1014 }
 0x310   :  { %8792 = vmatmul.mubr.msk.bf16.vlgmr.msra.gmra.mrb[4].mxu1 %vm325_vm6, %v436_v56  ;;  %v796_v1 = vsel %vm325_vm6, %v791_v63, 0  ;;  %v1020_v6 = vsel %vm325_vm6, %v1015_v4, 0 }
 0x311   :  { %8802 = vmatpush3.bf16.xpose.msra.mxu1 %v555_v59  ;;  %8803 = vmatprep.mubr.msk.bf16.mxu1 %vm10124_vm1, %v10123_v15 }
 0x312   :  { %8813 = vmatprep.subr.bf16.mxu1 %v10123_v15 }
 0x313   :  { %v901_v5 = vpop.permute.xlu1 %900  ;;  %v1127_v7 = vpop.permute.xlu0 %1126 }
 0x314   :  { %v1132_v9 = vsel %vm325_vm6, %v1127_v7, 0 }
 0x317   :  { %v1013_v8 = vpop.permute.xlu1 %1012 }
 0x318   :  { %8804 = vmatmul.mubr.msk.bf16.vlgmr.msra.gmra.mrb[8].mxu1 %vm325_vm6, %v548_v61 }
 0x319   :  { %8814 = vmatpush3.bf16.xpose.msra.mxu1 %v667_v62  ;;  %8815 = vmatprep.mubr.msk.bf16.mxu1 %vm10124_vm1, %v10123_v15 }
 0x31a   :  { %8825 = vmatprep.subr.bf16.mxu1 %v10123_v15 }
 0x31b   :  { %v1125_v10 = vpop.permute.xlu1 %1124 }
 0x320   :  { %8816 = vmatmul.mubr.msk.bf16.vlgmr.msra.gmra.mrb[12].mxu1 %vm325_vm6, %v660_v0 }
 0x321   :  { %8826 = vmatpush3.bf16.xpose.msra.mxu1 %v796_v1  ;;  %8827 = vmatprep.mubr.msk.bf16.mxu1 %vm10124_vm1, %v10123_v15 }
 0x322   :  { %8837 = vmatprep.subr.bf16.mxu1 %v10123_v15 }
 0x328   :  { %8828 = vmatmul.mubr.msk.bf16.vlgmr.msra.gmra.mrb[16].mxu1 %vm325_vm6, %v10393_v52 }
 0x329   :  { %8838 = vmatpush3.bf16.xpose.msra.mxu1 %v908_v3  ;;  %8839 = vmatprep.mubr.msk.bf16.mxu1 %vm10124_vm1, %v10123_v15 }
 0x32a   :  { %8849 = vmatprep.subr.bf16.mxu1 %v10123_v15 }
 0x330   :  { %8840 = vmatmul.mubr.msk.bf16.vlgmr.msra.gmra.mrb[20].mxu1 %vm325_vm6, %v901_v5 }
 0x331   :  { %8850 = vmatpush3.bf16.xpose.msra.mxu1 %v1020_v6  ;;  %8851 = vmatprep.mubr.msk.bf16.mxu1 %vm10124_vm1, %v10123_v15 }
 0x332   :  { %8861 = vmatprep.subr.bf16.mxu1 %v10123_v15 }
 0x338   :  { %8852 = vmatmul.mubr.msk.bf16.vlgmr.msra.gmra.mrb[24].mxu1 %vm325_vm6, %v1013_v8 }
 0x339   :  { %8862 = vmatpush3.bf16.xpose.msra.mxu1 %v1132_v9  ;;  %8863 = vmatprep.mubr.msk.bf16.mxu1 %vm10124_vm1, %v10123_v15 }
 0x33a   :  { %8873 = vmatprep.subr.bf16.mxu1 %v10123_v15 }
 0x340   :  { %8864 = vmatmul.mubr.msk.bf16.vlgmr.msra.gmra.mrb[28].mxu1 %vm325_vm6, %v1125_v10 }
 0x341   :  { %8877 = vmatprep.mubr.msk.bf16.mxu1 %vm10124_vm1, %v10123_v15 }
 0x3db   :  { %v366_v11 = vpop.f32.mrb[0].mxu1 }
 0x3dc   :  { %v372_v13 = vmul.f32 0.35355338, %v366_v11  ;;  %v8781_v14 = vpop.f32.mrb[1].mxu1  ;;  %v10482_v11 = vpop.permute.xlu1 %499 }
 0x3dd   :  { %v369_v16 = vpop.f32.mrb[2].mxu1 }
 0x3de   :  { %v8782_v17 = vpop.f32.mrb[3].mxu1  ;;  %v10456_v18 = vadd.f32 %v372_v13, %v187_v12 }
 0x3e0   :  { %v374_v19 = vsel %vm325_vm6, %v10456_v18, -inf }
 0x3e1   :  { %375 = vmax.xlane.f32.xlu0 %v374_v19 }
 0x3e3   :  { %v479_v20 = vpop.f32.mrb[4].mxu1 }
 0x3e4   :  { %v485_v21 = vmul.f32 0.35355338, %v479_v20  ;;  %v8793_v22 = vpop.f32.mrb[5].mxu1 }
 0x3e5   :  { %v482_v23 = vpop.f32.mrb[6].mxu1 }
 0x3e6   :  { %v8794_v24 = vpop.f32.mrb[7].mxu1  ;;  %v10460_v25 = vadd.f32 %v485_v21, %v187_v12 }
 0x3e8   :  { %v487_v26 = vsel %vm325_vm6, %v10460_v25, -inf }
 0x3e9   :  { %488 = vmax.xlane.f32.xlu1 %v487_v26 }
 0x3eb   :  { %v591_v27 = vpop.f32.mrb[8].mxu1 }
 0x3ec   :  { %v8805_v28 = vpop.f32.mrb[9].mxu1  ;;  %v597_v50 = vmul.f32 0.35355338, %v591_v27 }
 0x3ed   :  { %v594_v29 = vpop.f32.mrb[10].mxu1 }
 0x3ee   :  { %v8806_v30 = vpop.f32.mrb[11].mxu1  ;;  %v598_v55 = vadd.f32 %v597_v50, %v187_v12 }
 0x3f0   :  { %v599_v61 = vsel %vm325_vm6, %v598_v55, -inf }
 0x3f3   :  { %v703_v31 = vpop.f32.mrb[12].mxu1 }
 0x3f4   :  { %v8817_v32 = vpop.f32.mrb[13].mxu1  ;;  %v709_v54 = vmul.f32 0.35355338, %v703_v31 }
 0x3f5   :  { %v706_v33 = vpop.f32.mrb[14].mxu1 }
 0x3f6   :  { %v8818_v34 = vpop.f32.mrb[15].mxu1  ;;  %v710_v62 = vadd.f32 %v709_v54, %v187_v12 }
 0x3f7   :  { %386 = vrot.lane.b32.xlu0 %v10379_v49, %s11971_s11 }
 0x3f8   :  { %v711_v3 = vsel %vm325_vm6, %v710_v62, -inf }
 0x3fb   :  { %v832_v35 = vpop.f32.mrb[16].mxu1 }
 0x3fc   :  { %v8829_v36 = vpop.f32.mrb[17].mxu1  ;;  %v838_v59 = vmul.f32 0.35355338, %v832_v35 }
 0x3fd   :  { %v835_v37 = vpop.f32.mrb[18].mxu1 }
 0x3fe   :  { %v8830_v38 = vpop.f32.mrb[19].mxu1  ;;  %v839_v4 = vadd.f32 %v838_v59, %v188_v43  ;;  %v505_v59 = vsel %vm391_vm7, %v10482_v11, 0 }
 0x400   :  { %v840_v5 = vsel %vm325_vm6, %v839_v4, -inf }
 0x403   :  { %v944_v39 = vpop.f32.mrb[20].mxu1 }
 0x404   :  { %v950_v40 = vmul.f32 0.35355338, %v944_v39  ;;  %v8841_v41 = vpop.f32.mrb[21].mxu1 }
 0x405   :  { %v947_v42 = vpop.f32.mrb[22].mxu1 }
 0x406   :  { %v8842_v44 = vpop.f32.mrb[23].mxu1  ;;  %v10467_v45 = vadd.f32 %v950_v40, %v188_v43 }
 0x408   :  { %v952_v46 = vsel %vm325_vm6, %v10467_v45, -inf }
 0x409   :  { %953 = vmax.xlane.f32.xlu1 %v952_v46 }
 0x40b   :  { %v1056_v47 = vpop.f32.mrb[24].mxu1 }
 0x40c   :  { %v8853_v48 = vpop.f32.mrb[25].mxu1  ;;  %v1062_v2 = vmul.f32 0.35355338, %v1056_v47 }
 0x40d   :  { %v1059_v51 = vpop.f32.mrb[26].mxu1 }
 0x40e   :  { %v8854_v53 = vpop.f32.mrb[27].mxu1  ;;  %v1063_v6 = vadd.f32 %v1062_v2, %v188_v43 }
 0x410   :  { %v1064_v7 = vsel %vm325_vm6, %v1063_v6, -inf }
 0x413   :  { %v1168_v56 = vpop.f32.mrb[28].mxu1 }
 0x414   :  { %v1174_v57 = vmul.f32 0.35355338, %v1168_v56  ;;  %v8865_v58 = vpop.f32.mrb[29].mxu1 }
 0x415   :  { %v1171_v60 = vpop.f32.mrb[30].mxu1 }
 0x416   :  { %v8866_v63 = vpop.f32.mrb[31].mxu1  ;;  %600 = vmax.xlane.f32.xlu0 %v599_v61  ;;  %v10472_v0 = vadd.f32 %v1174_v57, %v188_v43 }
 0x418   :  { %v1176_v1 = vsel %vm325_vm6, %v10472_v0, -inf }
 0x419   :  { %1177 = vmax.xlane.f32.xlu1 %v1176_v1 }
 0x41a   :  { %712 = vmax.xlane.f32.xlu0 %v711_v3 }
 0x41e   :  { %841 = vmax.xlane.f32.xlu0 %v840_v5 }
 0x422   :  { %1065 = vmax.xlane.f32.xlu0 %v1064_v7 }
 0x438   :  { %611 = vrot.lane.b32.xlu0 %v10379_v49, %s11969_s15 }
 0x46e   :  { %v376_v8 = vpop.xlane.xlu0 %375 }
 0x46f   :  { %v377_v9 = vsub.f32 %v10456_v18, %v376_v8 }
 0x471   :  { %v378_v10 = vmul.f32 1.442695, %v377_v9 }
 0x472   :  { %v387_v12 = vpop.permute.xlu0 %386 }
 0x473   :  { %9756 = vpow2.f32 %v378_v10  ;;  %v393_v13 = vsel %vm391_vm7, %v387_v12, 0 }
 0x474   :  { %8784 = vmatpush3.bf16.msra.mxu0 %v393_v13 }
 0x475   :  { %8795 = vmatprep.subr.bf16.mxu0 %v10123_v15 }
 0x476   :  { %v489_v14 = vpop.xlane.xlu1 %488 }
 0x477   :  { %v490_v16 = vsub.f32 %v10460_v25, %v489_v14 }
 0x479   :  { %v491_v17 = vmul.f32 1.442695, %v490_v16 }
 0x47b   :  { %9758 = vpow2.f32 %v491_v17 }
 0x47d   :  { %v9757_v19 = vpop.eup %9756 }
 0x47e   :  { %v380_v20 = vsel %vm325_vm6, %v9757_v19, 0.0 }
 0x47f   :  { %381 = vadd.xlane.f32.xlu0 %v380_v20 }
 0x485   :  { %v10488_v18 = vpop.eup %9758 }
 0x486   :  { %v493_v21 = vsel %vm325_vm6, %v10488_v18, 0.0 }
 0x487   :  { %494 = vadd.xlane.f32.xlu1 %v493_v21 }
 0x496   :  { %v954_v28 = vpop.xlane.xlu1 %953 }
 0x497   :  { %v955_v31 = vsub.f32 %v10467_v45, %v954_v28 }
 0x498   :  { %852 = vrot.lane.b32.xlu1 %v10393_v52, %s11971_s11 }
 0x499   :  { %v956_v34 = vmul.f32 1.442695, %v955_v31 }
 0x4a3   :  { %v601_v22 = vpop.xlane.xlu0 %600 }
 0x4a4   :  { %v602_v23 = vsub.f32 %v598_v55, %v601_v22 }
 0x4a6   :  { %v603_v24 = vmul.f32 1.442695, %v602_v23  ;;  %v1178_v45 = vpop.xlane.xlu1 %1177 }
 0x4a7   :  { %v713_v26 = vpop.xlane.xlu0 %712  ;;  %v1179_v46 = vsub.f32 %v10472_v0, %v1178_v45 }
 0x4a8   :  { %9760 = vpow2.f32 %v603_v24  ;;  %v714_v25 = vsub.f32 %v710_v62, %v713_v26 }
 0x4a9   :  { %v1180_v48 = vmul.f32 1.442695, %v1179_v46 }
 0x4aa   :  { %v715_v27 = vmul.f32 1.442695, %v714_v25 }
 0x4ab   :  { %v842_v29 = vpop.xlane.xlu0 %841 }
 0x4ac   :  { %v843_v30 = vsub.f32 %v839_v4, %v842_v29  ;;  %9762 = vpow2.f32 %v715_v27 }
 0x4ae   :  { %v844_v32 = vmul.f32 1.442695, %v843_v30 }
 0x4af   :  { %v1066_v42 = vpop.xlane.xlu0 %1065 }
 0x4b0   :  { %9764 = vpow2.f32 %v844_v32  ;;  %v1067_v43 = vsub.f32 %v1063_v6, %v1066_v42 }
 0x4b1   :  { %9766 = vpow2.f32 %v956_v34 }
 0x4b2   :  { %v9761_v33 = vpop.eup %9760  ;;  %v1068_v44 = vmul.f32 1.442695, %v1067_v43 }
 0x4b3   :  { %v605_v35 = vsel %vm325_vm6, %v9761_v33, 0.0  ;;  %v612_v53 = vpop.permute.xlu0 %611 }
 0x4b4   :  { %606 = vadd.xlane.f32.xlu0 %v605_v35  ;;  %9768 = vpow2.f32 %v1068_v44  ;;  %v617_v62 = vsel %vm391_vm7, %v612_v53, 0 }
 0x4b5   :  { %9770 = vpow2.f32 %v1180_v48 }
 0x4b6   :  { %v10496_v36 = vpop.eup %9762 }
 0x4b7   :  { %v717_v37 = vsel %vm325_vm6, %v10496_v36, 0.0 }
 0x4ba   :  { %v10500_v38 = vpop.eup %9764 }
 0x4bb   :  { %v846_v39 = vsel %vm325_vm6, %v10500_v38, 0.0  ;;  %v10504_v40 = vpop.eup %9766 }
 0x4bc   :  { %718 = vadd.xlane.f32.xlu1 %v717_v37  ;;  %v958_v41 = vsel %vm325_vm6, %v10504_v40, 0.0 }
 0x4be   :  { %v10513_v47 = vpop.eup %9768 }
 0x4bf   :  { %v1070_v50 = vsel %vm325_vm6, %v10513_v47, 0.0  ;;  %v10517_v51 = vpop.eup %9770 }
 0x4c0   :  { %847 = vadd.xlane.f32.xlu1 %v846_v39 }
 0x4c4   :  { %959 = vadd.xlane.f32.xlu1 %v958_v41 }
 0x4ca   :  { %723 = vrot.lane.b32.xlu0 %v10379_v49, %s11961_s16  ;;  %v1182_v49 = vsel %vm325_vm6, %v10517_v51, 0.0 }
 0x4d5   :  { %964 = vrot.lane.b32.xlu1 %v10393_v52, %s11973_s7 }
 0x4e9   :  { %1071 = vadd.xlane.f32.xlu0 %v1070_v50 }
 0x4f9   :  { %1183 = vadd.xlane.f32.xlu1 %v1182_v49 }
 0x4ff   :  { %1076 = vrot.lane.b32.xlu0 %v10393_v52, %s11969_s15 }
 0x50a   :  { %1188 = vrot.lane.b32.xlu1 %v10393_v52, %s11961_s16 }
 0x50c   :  { %v382_v54 = vpop.xlane.xlu0 %381 }
 0x50d   :  { %9772 = vrcp.f32 %v382_v54 }
 0x514   :  { %v495_v55 = vpop.xlane.xlu1 %494 }
 0x515   :  { %9774 = vrcp.f32 %v495_v55 }
 0x517   :  { %v9773_v56 = vpop.eup %9772 }
 0x518   :  { %v384_v57 = vmul.f32 %v9773_v56, %v9757_v19  ;;  %v853_v0 = vpop.permute.xlu1 %852 }
 0x519   :  { %v858_v13 = vsel %vm391_vm7, %v853_v0, 0 }
 0x51a   :  { %v385_v58 = vpack.c.bf16 %v384_v57, %v384_v57 }
 0x51c   :  { %8786 = vmatmul.mubr.msk.bf16.vlgmr.msra.gmra.mrb[4].mxu0 %vm325_vm6, %v385_v58 }
 0x51d   :  { %8796 = vmatpush3.bf16.msra.mxu0 %v505_v59  ;;  %8797 = vmatprep.mubr.msk.bf16.mxu0 %vm10124_vm1, %v10123_v15 }
 0x51e   :  { %8807 = vmatprep.subr.bf16.mxu0 %v10123_v15 }
 0x51f   :  { %v9775_v60 = vpop.eup %9774 }
 0x520   :  { %v497_v52 = vmul.f32 %v9775_v60, %v10488_v18  ;;  %v9696_v60 = vld [vmem:[%s10187_s8] sm:$0xff]  }
 0x521   :  { %8874 = vmatpush3.bf16.msra.mxu1 %v9696_v60 }
 0x522   :  { %v498_v61 = vpack.c.bf16 %v497_v52, %v497_v52  ;;  %8875 = vmatprep.subr.bf16.mxu1 %v10123_v15 }
 0x524   :  { %8798 = vmatmul.mubr.msk.bf16.vlgmr.msra.gmra.mrb[8].mxu0 %vm325_vm6, %v498_v61 }
 0x525   :  { %8808 = vmatpush3.bf16.msra.mxu0 %v617_v62  ;;  %8809 = vmatprep.mubr.msk.bf16.mxu0 %vm10124_vm1, %v10123_v15 }
 0x526   :  { %8819 = vmatprep.subr.bf16.mxu0 %v10123_v15 }
 0x541   :  { %v607_v63 = vpop.xlane.xlu0 %606 }
 0x542   :  { %9776 = vrcp.f32 %v607_v63 }
 0x545   :  { %v724_v5 = vpop.permute.xlu0 %723 }
 0x546   :  { %v729_v7 = vsel %vm391_vm7, %v724_v5, 0 }
 0x549   :  { %v719_v1 = vpop.xlane.xlu1 %718 }
 0x54a   :  { %9778 = vrcp.f32 %v719_v1  ;;  %v9697_v1 = vld [vmem:[%s10187_s8 + $0x8] sm:$0xff]  }
 0x54b   :  { %8876 = vmatpush3.bf16.msra.mxu1 %v9697_v1 }
 0x54c   :  { %v9777_v2 = vpop.eup %9776  ;;  %8889 = vmatprep.subr.bf16.mxu1 %v10123_v15 }
 0x54d   :  { %v848_v3 = vpop.xlane.xlu1 %847  ;;  %v609_v4 = vmul.f32 %v9777_v2, %v9761_v33 }
 0x54e   :  { %9780 = vrcp.f32 %v848_v3 }
 0x54f   :  { %v610_v6 = vpack.c.bf16 %v609_v4, %v609_v4 }
 0x551   :  { %8810 = vmatmul.mubr.msk.bf16.vlgmr.msra.gmra.mrb[12].mxu0 %vm325_vm6, %v610_v6  ;;  %v960_v8 = vpop.xlane.xlu1 %959 }
 0x552   :  { %8820 = vmatpush3.bf16.msra.mxu0 %v729_v7  ;;  %8821 = vmatprep.mubr.msk.bf16.mxu0 %vm10124_vm1, %v10123_v15  ;;  %9782 = vrcp.f32 %v960_v8 }
 0x553   :  { %8831 = vmatprep.subr.bf16.mxu0 %v10123_v15 }
 0x554   :  { %v9779_v9 = vpop.eup %9778 }
 0x555   :  { %v721_v10 = vmul.f32 %v9779_v9, %v10496_v36  ;;  %v965_v16 = vpop.permute.xlu1 %964 }
 0x556   :  { %v970_v20 = vsel %vm391_vm7, %v965_v16, 0 }
 0x557   :  { %v722_v11 = vpack.c.bf16 %v721_v10, %v721_v10 }
 0x558   :  { %v9781_v12 = vpop.eup %9780 }
 0x559   :  { %8822 = vmatmul.mubr.msk.bf16.vlgmr.msra.gmra.mrb[16].mxu0 %vm325_vm6, %v722_v11  ;;  %v850_v14 = vmul.f32 %v9781_v12, %v10500_v38 }
 0x55a   :  { %8832 = vmatpush3.bf16.msra.mxu0 %v858_v13  ;;  %8833 = vmatprep.mubr.msk.bf16.mxu0 %vm10124_vm1, %v10123_v15 }
 0x55b   :  { %8843 = vmatprep.subr.bf16.mxu0 %v10123_v15  ;;  %v851_v17 = vpack.c.bf16 %v850_v14, %v850_v14 }
 0x55c   :  { %v9783_v19 = vpop.eup %9782 }
 0x55d   :  { %v962_v18 = vmul.f32 %v9783_v19, %v10504_v40 }
 0x55f   :  { %v963_v21 = vpack.c.bf16 %v962_v18, %v962_v18 }
 0x561   :  { %8834 = vmatmul.mubr.msk.bf16.vlgmr.msra.gmra.mrb[20].mxu0 %vm325_vm6, %v851_v17 }
 0x562   :  { %8844 = vmatpush3.bf16.msra.mxu0 %v970_v20  ;;  %8845 = vmatprep.mubr.msk.bf16.mxu0 %vm10124_vm1, %v10123_v15 }
 0x563   :  { %8855 = vmatprep.subr.bf16.mxu0 %v10123_v15 }
 0x569   :  { %8846 = vmatmul.mubr.msk.bf16.vlgmr.msra.gmra.mrb[24].mxu0 %vm325_vm6, %v963_v21 }
 0x56a   :  { %8857 = vmatprep.mubr.msk.bf16.mxu0 %vm10124_vm1, %v10123_v15 }
 0x576   :  { %v1072_v22 = vpop.xlane.xlu0 %1071 }
 0x577   :  { %9784 = vrcp.f32 %v1072_v22 }
 0x57a   :  { %v1077_v23 = vpop.permute.xlu0 %1076 }
 0x57b   :  { %v1082_v24 = vsel %vm391_vm7, %v1077_v23, 0 }
 0x57c   :  { %8856 = vmatpush3.bf16.msra.mxu0 %v1082_v24  ;;  %v8229_v24 = vld [vmem:[%s10192_s14] ss:$0 sm:$0xff] }
 0x57d   :  { %8867 = vmatprep.subr.bf16.mxu0 %v10123_v15 }
 0x581   :  { %v9785_v26 = vpop.eup %9784 }
 0x582   :  { %v1074_v25 = vmul.f32 %v9785_v26, %v10513_v47 }
 0x584   :  { %v1075_v27 = vpack.c.bf16 %v1074_v25, %v1074_v25 }
 0x586   :  { %v1184_v28 = vpop.xlane.xlu1 %1183  ;;  %8858 = vmatmul.mubr.msk.bf16.vlgmr.msra.gmra.mrb[28].mxu0 %vm325_vm6, %v1075_v27 }
 0x587   :  { %9786 = vrcp.f32 %v1184_v28  ;;  %8869 = vmatprep.mubr.msk.bf16.mxu0 %vm10124_vm1, %v10123_v15 }
 0x58a   :  { %v1189_v29 = vpop.permute.xlu1 %1188 }
 0x58b   :  { %v1194_v30 = vsel %vm391_vm7, %v1189_v29, 0  ;;  %v10044_v29 = vld [vmem:[%s10147_s5] sm:$0xff] }
 0x58c   :  { %8868 = vmatpush3.bf16.msra.mxu0 %v1194_v30 }
 0x58d   :  { %8881 = vmatprep.subr.bf16.mxu0 %v10123_v15 }
 0x591   :  { %v9787_v31 = vpop.eup %9786 }
 0x592   :  { %v1186_v32 = vmul.f32 %v9787_v31, %v10517_v51 }
 0x594   :  { %v1187_v33 = vpack.c.bf16 %v1186_v32, %v1186_v32 }
 0x596   :  { %8870 = vmatmul.mubr.msk.bf16.vlgmr.msra.gmra.mrb[32].mxu0 %vm325_vm6, %v1187_v33  ;;  %v10045_v33 = vld [vmem:[%s10147_s5 + $0x8] sm:$0xff]  ;;  %s12002_s5 = sld [smem:[#allocation5_spill]] }
 0x597   :  { %8885 = vmatprep.mubr.msk.bf16.mxu0 %vm10124_vm1, %v10123_v15 }
 0x5ef   :  { %v429_v34 = vpop.f32.mrb[4].mxu0 }
 0x5f0   :  { %v8787_v35 = vpop.f32.mrb[5].mxu0 }
 0x5f1   :  { %v432_v36 = vpop.f32.mrb[6].mxu0 }
 0x5f2   :  { %v8788_v37 = vpop.f32.mrb[7].mxu0 }
 0x5f7   :  { %v541_v38 = vpop.f32.mrb[8].mxu0 }
 0x5f8   :  { %v8799_v39 = vpop.f32.mrb[9].mxu0 }
 0x5f9   :  { %v544_v40 = vpop.f32.mrb[10].mxu0 }
 0x5fa   :  { %v8800_v41 = vpop.f32.mrb[11].mxu0 }
 0x624   :  { %v653_v42 = vpop.f32.mrb[12].mxu0 }
 0x625   :  { %v8811_v43 = vpop.f32.mrb[13].mxu0 }
 0x626   :  { %v656_v44 = vpop.f32.mrb[14].mxu0 }
 0x627   :  { %v8812_v45 = vpop.f32.mrb[15].mxu0 }
 0x62c   :  { %v765_v46 = vpop.f32.mrb[16].mxu0 }
 0x62d   :  { %v8823_v47 = vpop.f32.mrb[17].mxu0 }
 0x62e   :  { %v768_v48 = vpop.f32.mrb[18].mxu0  ;;  %v9698_v47 = vld [vmem:[%s10207_s30] sm:$0xff]  }
 0x62f   :  { %v8824_v50 = vpop.f32.mrb[19].mxu0  ;;  %8882 = vmatpush3.bf16.msra.mxu0 %v9698_v47  ;;  %v9699_v48 = vld [vmem:[%s10207_s30 + $0x8] sm:$0xff]  }
 0x630   :  { %8883 = vmatprep.subr.bf16.mxu0 %v10123_v15  ;;  %v9700_v50 = vld [vmem:[%s10217_s12] sm:$0xff]  }
 0x633   :  { %8884 = vmatpush3.bf16.msra.mxu0 %v9699_v48  ;;  %v9704_v48 = vld [vmem:[%s10177_s29 + $0x10] sm:$0xff]  }
 0x634   :  { %v894_v51 = vpop.f32.mrb[20].mxu0  ;;  %8901 = vmatprep.subr.bf16.mxu0 %v10123_v15 }
 0x635   :  { %v8835_v49 = vpop.f32.mrb[21].mxu0 }
 0x636   :  { %v897_v53 = vpop.f32.mrb[22].mxu0 }
 0x637   :  { %v8836_v54 = vpop.f32.mrb[23].mxu0 }
 0x63c   :  { %v1006_v55 = vpop.f32.mrb[24].mxu0 }
 0x63d   :  { %v9604_v56 = vpack.i.bf16 %v1006_v55, %v541_v38  ;;  %v8847_v57 = vpop.f32.mrb[25].mxu0 }
 0x63e   :  { %v1009_v58 = vpop.f32.mrb[26].mxu0 }
 0x63f   :  { %9605 = vrot.lane.b32.xlu0 %v9604_v56, %s11963_s18  ;;  %v8848_v59 = vpop.f32.mrb[27].mxu0 }
 0x659   :  { %v1118_v52 = vpop.f32.mrb[28].mxu0 }
 0x65a   :  { %v9609_v61 = vpack.i.bf16 %v1118_v52, %v653_v42  ;;  %v8859_v62 = vpop.f32.mrb[29].mxu0 }
 0x65b   :  { %v1121_v63 = vpop.f32.mrb[30].mxu0 }
 0x65c   :  { %9610 = vrot.lane.b32.xlu1 %v9609_v61, %s11967_s22  ;;  %v8860_v0 = vpop.f32.mrb[31].mxu0 }
 0x669   :  { %v1230_v2 = vpop.f32.mrb[32].mxu0 }
 0x66a   :  { %v9614_v3 = vpack.i.bf16 %v1230_v2, %v765_v46  ;;  %v8871_v4 = vpop.f32.mrb[33].mxu0 }
 0x66b   :  { %v1233_v5 = vpop.f32.mrb[34].mxu0 }
 0x66c   :  { %9615 = vrot.lane.b32.xlu0 %v9614_v3, %s11965_s23  ;;  %v8872_v6 = vpop.f32.mrb[35].mxu0  ;;  %v8233_v5 = vld [vmem:[%s10197_s19] ss:$0 sm:$0xff] }
 0x6b1   :  { %v9606_v7 = vpop.permute.xlu0 %9605 }
 0x6b2   :  { %v9608_v9 = vunpack.i.h.bf16 %v9606_v7  ;;  %v9607_v10 = vunpack.i.l.bf16 %v9606_v7 }
 0x6b4   :  { %v1248_v14 = vsel %vm325_vm6, %v894_v51, %v9608_v9  ;;  %v783_v16 = vsel %vm325_vm6, %v429_v34, %v9607_v10  ;;  %v9701_v51 = vld [vmem:[%s10217_s12 + $0x8] sm:$0xff]   ;;  %v8234_v9 = vld [vmem:[%s10202_s24] ss:$0 sm:$0xff] }
 0x6ce   :  { %v9611_v8 = vpop.permute.xlu1 %9610 }
 0x6cf   :  { %v9613_v11 = vunpack.i.h.bf16 %v9611_v8  ;;  %v9612_v12 = vunpack.i.l.bf16 %v9611_v8 }
 0x6d1   :  { %v785_v20 = vsel %vm784_vm8, %v783_v16, %v9612_v12  ;;  %v1249_v18 = vsel %vm784_vm8, %v1248_v14, %v9613_v11  ;;  %v9702_v14 = vld [vmem:[%s10217_s12 + $0x10] sm:$0xff]   ;;  %v9703_v16 = vld [vmem:[%s10217_s12 + $0x18] sm:$0xff]  }
 0x6de   :  { %v9616_v13 = vpop.permute.xlu0 %9615 }
 0x6df   :  { %v9618_v17 = vunpack.i.h.bf16 %v9616_v13  ;;  %v9617_v19 = vunpack.i.l.bf16 %v9616_v13 }
 0x6e1   :  { %v787_v21 = vsel %vm786_vm9, %v785_v20, %v9617_v19  ;;  %v1250_v22 = vsel %vm786_vm9, %v1249_v18, %v9618_v17  ;;  %v8235_v17 = vld [vmem:[%s10212_s6] ss:$0 sm:$0xff] }
 0x6e2   :  { %v1256_v23 = vpack.c.bf16 %v1250_v22, %v787_v21 }
 0x6e4   :  { %8878 = vmatmul.mubr.msk.bf16.vlgmr.msra.gmra.mrb[32].mxu1 %vm195_vm0, %v1256_v23 }
 0x6e5   :  { %8897 = vmatprep.mubr.msk.bf16.mxu1 %vm10124_vm1, %v10123_v15  ;;  %8890 = vmatpush3.bf16.msra.mxu1 %v9700_v50  ;;  %v9705_v50 = vld [vmem:[%s10177_s29 + $0x18] sm:$0xff]   ;;  %s12005_s29 = sld [smem:[#allocation10_spill]] }
 0x6e6   :  { %8891 = vmatprep.subr.bf16.mxu1 %v10123_v15 }
 0x6e9   :  { %8892 = vmatpush3.bf16.msra.mxu1 %v9701_v51 }
 0x6ea   :  { %8893 = vmatprep.subr.bf16.mxu1 %v10123_v15 }
 0x6ed   :  { %8894 = vmatpush3.bf16.msra.mxu1 %v9702_v14 }
 0x6ee   :  { %8895 = vmatprep.subr.bf16.mxu1 %v10123_v15 }
 0x6f1   :  { %8896 = vmatpush3.bf16.msra.mxu1 %v9703_v16 }
 0x6f2   :  { %8915 = vmatprep.subr.bf16.mxu1 %v10123_v15 }
 0x7b7   :  { %v1312_v26 = vpop.f32.mrb[32].mxu1 }
 0x7b8   :  { %v1313_v25 = vadd.f32 %v8229_v24, %v1312_v26  ;;  %v8879_v27 = vpop.f32.mrb[33].mxu1 }
 0x7b9   :  { %v1315_v28 = vpop.f32.mrb[34].mxu1  ;;  %v8239_v27 = vld [vmem:[%s10222_s20] ss:$0 sm:$0xff] }
 0x7ba   :  { %v10588_v30 = vadd.f32 %v10044_v29, %v1313_v25  ;;  %v1316_v31 = vadd.f32 %v8229_v24, %v1315_v28  ;;  %v8880_v32 = vpop.f32.mrb[35].mxu1 }
 0x7bc   :  { %v10591_v34 = vadd.f32 %v10045_v33, %v1316_v31  ;;  %v1323_v35 = vsel %vm195_vm0, %v10588_v30, 0.0 }
 0x7bd   :  { %1324 = vadd.xlane.f32.xlu1 %v1323_v35 }
 0x7be   :  { %v1326_v36 = vsel %vm195_vm0, %v10591_v34, 0.0 }
 0x7bf   :  { %1327 = vadd.xlane.f32.xlu0 %v1326_v36 }
 0x84a   :  { %v1325_v37 = vpop.xlane.xlu1 %1324 }
 0x84b   :  { %v1329_v38 = vmul.f32 0.03125, %v1325_v37 }
 0x84c   :  { %v1328_v39 = vpop.xlane.xlu0 %1327 }
 0x84d   :  { %v1331_v40 = vsub.f32 %v10588_v30, %v1329_v38  ;;  %v1330_v41 = vmul.f32 0.03125, %v1328_v39 }
 0x84f   :  { %v1332_v42 = vsub.f32 %v10591_v34, %v1330_v41  ;;  %v1333_v43 = vmul.f32 %v1331_v40, %v1331_v40 }
 0x851   :  { %v1335_v44 = vsel %vm195_vm0, %v1333_v43, 0.0  ;;  %v1334_v45 = vmul.f32 %v1332_v42, %v1332_v42 }
 0x852   :  { %1336 = vadd.xlane.f32.xlu0 %v1335_v44 }
 0x853   :  { %v1338_v46 = vsel %vm195_vm0, %v1334_v45, 0.0 }
 0x856   :  { %1339 = vadd.xlane.f32.xlu0 %v1338_v46 }
 0x8df   :  { %v1337_v49 = vpop.xlane.xlu0 %1336 }
 0x8e0   :  { %v1341_v53 = vmul.f32 0.03125, %v1337_v49 }
 0x8e2   :  { %v1343_v54 = vadd.f32 1e-06, %v1341_v53 }
 0x8e3   :  { %v1340_v55 = vpop.xlane.xlu0 %1339 }
 0x8e4   :  { %9788 = vrsqrt.f32 %v1343_v54  ;;  %v1342_v56 = vmul.f32 0.03125, %v1340_v55  ;;  %vm1347_vm10 = vcmp.eq.f32.partialorder %v1343_v54, inf  ;;  %v1350_v60 = vand.u32 2147483648, %v1343_v54 }
 0x8e5   :  { %vm1349_vm11 = vcmp.eq.f32.partialorder %v1343_v54, 0.0 }
 0x8e6   :  { %v1344_v57 = vadd.f32 1e-06, %v1342_v56 }
 0x8e8   :  { %9790 = vrsqrt.f32 %v1344_v57  ;;  %vm1354_vm12 = vcmp.eq.f32.partialorder %v1344_v57, inf  ;;  %v1357_v0 = vand.u32 2147483648, %v1344_v57  ;;  %vm1356_vm13 = vcmp.eq.f32.partialorder %v1344_v57, 0.0 }
 0x8ee   :  { %v9789_v58 = vpop.eup %9788 }
 0x8ef   :  { %v1346_v59 = vmul.f32 %v9789_v58, %v1343_v54 }
 0x8f1   :  { %v1348_v52 = vsel %vm1347_vm10, %v1343_v54, %v1346_v59 }
 0x8f2   :  { %v1351_v61 = vsel %vm1349_vm11, %v1350_v60, %v1348_v52  ;;  %v9791_v62 = vpop.eup %9790 }
 0x8f3   :  { %9792 = vrcp.f32 %v1351_v61  ;;  %v1353_v63 = vmul.f32 %v9791_v62, %v1344_v57 }
 0x8f5   :  { %v1355_v1 = vsel %vm1354_vm12, %v1344_v57, %v1353_v63 }
 0x8f6   :  { %v1358_v2 = vsel %vm1356_vm13, %v1357_v0, %v1355_v1 }
 0x8f7   :  { %9794 = vrcp.f32 %v1358_v2 }
 0x8fd   :  { %v9793_v3 = vpop.eup %9792 }
 0x8fe   :  { %v1360_v4 = vmul.f32 %v9793_v3, %v1331_v40  ;;  %v8247_v3 = vld [vmem:[%s10167_s21 + $0x1] ss:$0 sm:$0xff]  ;;  %s12003_s21 = sld [smem:[#allocation11_spill]] }
 0x900   :  { %v1369_v8 = vmul.f32 %v8233_v5, %v1360_v4 }
 0x901   :  { %v9795_v6 = vpop.eup %9794 }
 0x902   :  { %v1362_v7 = vmul.f32 %v9795_v6, %v1332_v42  ;;  %v1377_v11 = vadd.f32 %v8234_v9, %v1369_v8  ;;  %v8248_v8 = vld [vmem:[%s10172_s25 + $0x1] ss:$0 sm:$0xff]  ;;  %s12004_s25 = sld [smem:[#allocation9_spill]] }
 0x904   :  { %v1370_v10 = vmul.f32 %v8233_v5, %v1362_v7 }
 0x906   :  { %v1378_v12 = vadd.f32 %v8234_v9, %v1370_v10 }
 0x908   :  { %v1384_v13 = vpack.c.bf16 %v1378_v12, %v1377_v11 }
 0x90a   :  { %8886 = vmatmul.mubr.msk.bf16.vlgmr.msra.gmra.mrb[36].mxu0 %vm195_vm0, %v1384_v13  ;;  %v8254_v13 = vld [vmem:[%s10182_s3 + $0x1] ss:$0 sm:$0xff]  ;;  %s12006_s3 = sld [smem:[#allocation12_spill]] }
 0x90b   :  { %8905 = vmatprep.mubr.msk.bf16.mxu0 %vm10124_vm1, %v10123_v15  ;;  %8902 = vmatpush3.bf16.msra.mxu0 %v9704_v48 }
 0x90c   :  { %8903 = vmatprep.subr.bf16.mxu0 %v10123_v15 }
 0x90f   :  { %8904 = vmatpush3.bf16.msra.mxu0 %v9705_v50 }
 0x910   :  { %8909 = vmatprep.subr.bf16.mxu0 %v10123_v15 }
 0x9dd   :  { %v1440_v19 = vpop.f32.mrb[36].mxu0 }
 0x9de   :  { %v1441_v20 = vadd.f32 %v8235_v17, %v1440_v19  ;;  %v8887_v18 = vpop.f32.mrb[37].mxu0 }
 0x9df   :  { %v1443_v21 = vpop.f32.mrb[38].mxu0 }
 0x9e0   :  { %v1444_v22 = vadd.f32 %v8235_v17, %v1443_v21  ;;  %v8888_v23 = vpop.f32.mrb[39].mxu0  ;;  %v1447_v24 = vmax.f32 %v1441_v20, 0.0 }
 0x9e2   :  { %v1448_v26 = vmax.f32 %v1444_v22, 0.0 }
 0x9e4   :  { %v1458_v25 = vpack.c.bf16 %v1448_v26, %v1447_v24 }
 0x9e6   :  { %8898 = vmatmul.mubr.msk.bf16.vlgmr.msra.gmra.mrb[36].mxu1 %vm1489_vm14, %v1458_v25 }
 0x9e7   :  { %8917 = vmatprep.mubr.msk.bf16.mxu1 %vm10124_vm1, %v10123_v15 }
 0xab9   :  { %v1527_v28 = vpop.f32.mrb[36].mxu1 }
 0xaba   :  { %v1528_v29 = vadd.f32 %v8239_v27, %v1527_v28  ;;  %v8899_v31 = vpop.f32.mrb[37].mxu1 }
 0xabb   :  { %v1530_v32 = vpop.f32.mrb[38].mxu1 }
 0xabc   :  { %v10624_v33 = vadd.f32 %v1528_v29, %v10588_v30  ;;  %v1531_v35 = vadd.f32 %v8239_v27, %v1530_v32  ;;  %v8900_v36 = vpop.f32.mrb[39].mxu1 }
 0xabe   :  { %v10627_v37 = vadd.f32 %v1531_v35, %v10591_v34  ;;  %v1540_v38 = vsel %vm195_vm0, %v10624_v33, 0.0 }
 0xabf   :  { %1541 = vadd.xlane.f32.xlu1 %v1540_v38 }
 0xac0   :  { %v1543_v39 = vsel %vm195_vm0, %v10627_v37, 0.0 }
 0xac1   :  { %1544 = vadd.xlane.f32.xlu0 %v1543_v39 }
 0xb4c   :  { %v1542_v40 = vpop.xlane.xlu1 %1541 }
 0xb4d   :  { %v1546_v41 = vmul.f32 0.03125, %v1542_v40 }
 0xb4e   :  { %v1545_v42 = vpop.xlane.xlu0 %1544 }
 0xb4f   :  { %v1548_v30 = vsub.f32 %v10624_v33, %v1546_v41  ;;  %v1547_v43 = vmul.f32 0.03125, %v1545_v42 }
 0xb51   :  { %v1549_v44 = vsub.f32 %v10627_v37, %v1547_v43  ;;  %v1550_v34 = vmul.f32 %v1548_v30, %v1548_v30 }
 0xb53   :  { %v1552_v45 = vsel %vm195_vm0, %v1550_v34, 0.0  ;;  %v1551_v46 = vmul.f32 %v1549_v44, %v1549_v44 }
 0xb54   :  { %1553 = vadd.xlane.f32.xlu1 %v1552_v45 }
 0xb55   :  { %v1555_v47 = vsel %vm195_vm0, %v1551_v46, 0.0 }
 0xb56   :  { %1556 = vadd.xlane.f32.xlu0 %v1555_v47 }
 0xbe1   :  { %v1554_v51 = vpop.xlane.xlu1 %1553 }
 0xbe2   :  { %v1558_v49 = vmul.f32 0.03125, %v1554_v51 }
 0xbe3   :  { %v1557_v53 = vpop.xlane.xlu0 %1556 }
 0xbe4   :  { %v1560_v54 = vadd.f32 1e-06, %v1558_v49  ;;  %v1559_v55 = vmul.f32 0.03125, %v1557_v53  ;;  %v10046_v53 = vld [vmem:[%s10157_s13] sm:$0xff] }
 0xbe6   :  { %9796 = vrsqrt.f32 %v1560_v54  ;;  %v1561_v56 = vadd.f32 1e-06, %v1559_v55  ;;  %vm1564_vm15 = vcmp.eq.f32.partialorder %v1560_v54, inf  ;;  %v1567_v59 = vand.u32 2147483648, %v1560_v54 }
 0xbe7   :  { %vm1566_vm2 = vcmp.eq.f32.partialorder %v1560_v54, 0.0 }
 0xbe8   :  { %9798 = vrsqrt.f32 %v1561_v56  ;;  %vm1571_vm3 = vcmp.eq.f32.partialorder %v1561_v56, inf  ;;  %v1574_v63 = vand.u32 2147483648, %v1561_v56  ;;  %vm1573_vm4 = vcmp.eq.f32.partialorder %v1561_v56, 0.0 }
 0xbf0   :  { %v9797_v57 = vpop.eup %9796 }
 0xbf1   :  { %v1563_v58 = vmul.f32 %v9797_v57, %v1560_v54 }
 0xbf2   :  { %v9799_v60 = vpop.eup %9798 }
 0xbf3   :  { %v1565_v52 = vsel %vm1564_vm15, %v1560_v54, %v1563_v58  ;;  %v1570_v62 = vmul.f32 %v9799_v60, %v1561_v56 }
 0xbf4   :  { %v1568_v61 = vsel %vm1566_vm2, %v1567_v59, %v1565_v52 }
 0xbf5   :  { %9800 = vrcp.f32 %v1568_v61  ;;  %v1572_v0 = vsel %vm1571_vm3, %v1561_v56, %v1570_v62 }
 0xbf6   :  { %v1575_v1 = vsel %vm1573_vm4, %v1574_v63, %v1572_v0 }
 0xbf7   :  { %9802 = vrcp.f32 %v1575_v1 }
 0xbff   :  { %v9801_v2 = vpop.eup %9800 }
 0xc00   :  { %v1577_v4 = vmul.f32 %v9801_v2, %v1548_v30 }
 0xc01   :  { %v9803_v5 = vpop.eup %9802 }
 0xc02   :  { %v1579_v6 = vmul.f32 %v9803_v5, %v1549_v44  ;;  %v1586_v7 = vmul.f32 %v8247_v3, %v1577_v4 }
 0xc04   :  { %v1587_v9 = vmul.f32 %v8247_v3, %v1579_v6  ;;  %v1594_v10 = vadd.f32 %v8248_v8, %v1586_v7 }
 0xc06   :  { %v1595_v11 = vadd.f32 %v8248_v8, %v1587_v9 }
 0xc08   :  { %v1603_v12 = vpack.c.bf16 %v1595_v11, %v1594_v10 }
 0xc0a   :  { %8906 = vmatmul.mubr.msk.bf16.vlgmr.msra.gmra.mrb[40].mxu0 %vm195_vm0, %v1603_v12 }
 0xc0b   :  { %8911 = vmatprep.mubr.msk.bf16.mxu0 %vm10124_vm1, %v10123_v15 }
 0xcdd   :  { %v1659_v14 = vpop.f32.mrb[40].mxu0 }
 0xcde   :  { %v1660_v16 = vadd.f32 %v8254_v13, %v1659_v14  ;;  %v8907_v17 = vpop.f32.mrb[41].mxu0 }
 0xcdf   :  { %v1662_v19 = vpop.f32.mrb[42].mxu0 }
 0xce0   :  { %v10647_v20 = vpack.c.bf16 %v1660_v16, %v1660_v16  ;;  %v8908_v18 = vpop.f32.mrb[43].mxu0  ;;  %v1663_v21 = vadd.f32 %v8254_v13, %v1662_v19  ;;  %v10047_v19 = vld [vmem:[%s10157_s13 + $0x8] sm:$0xff] }
 0xce2   :  { %1780 = vrot.lane.b32.xlu0 %v10647_v20, %s10125_s0  ;;  %1668 = vrot.lane.b32.xlu1 %v10647_v20, %s10126_s4  ;;  %v10657_v22 = vpack.c.bf16 %v1663_v21, %v1663_v21 }
 0xce6   :  { %2004 = vrot.lane.b32.xlu0 %v10647_v20, %s11975_s10  ;;  %1778 = vrot.lane.b32.xlu1 %v10647_v20, %s10127_s26 }
 0xcea   :  { %1892 = vrot.lane.b32.xlu1 %v10647_v20, %s10129_s1  ;;  %2131 = vrot.lane.b32.xlu0 %v10657_v22, %s10126_s4 }
 0xcee   :  { %1890 = vrot.lane.b32.xlu1 %v10647_v20, %s10128_s28  ;;  %2241 = vrot.lane.b32.xlu0 %v10657_v22, %s10127_s26 }
 0xcf2   :  { %2002 = vrot.lane.b32.xlu1 %v10647_v20, %s10130_s2  ;;  %2353 = vrot.lane.b32.xlu0 %v10657_v22, %s10128_s28 }
 0xcf6   :  { %2243 = vrot.lane.b32.xlu1 %v10657_v22, %s10125_s0  ;;  %2465 = vrot.lane.b32.xlu0 %v10657_v22, %s10130_s2 }
 0xcfa   :  { %2355 = vrot.lane.b32.xlu1 %v10657_v22, %s10129_s1 }
 0xcfe   :  { %2467 = vrot.lane.b32.xlu1 %v10657_v22, %s11975_s10 }
 0xd54   :  { %v1669_v23 = vpop.permute.xlu1 %1668  ;;  %v1781_v26 = vpop.permute.xlu0 %1780 }
 0xd55   :  { %v1674_v24 = vsel %vm325_vm6, %v1669_v23, 0  ;;  %v1786_v27 = vsel %vm325_vm6, %v1781_v26, 0 }
 0xd56   :  { %8910 = vmatpush3.bf16.xpose.msra.mxu0 %v1674_v24 }
 0xd57   :  { %8921 = vmatprep.subr.bf16.mxu0 %v10123_v15 }
 0xd58   :  { %v1779_v25 = vpop.permute.xlu1 %1778  ;;  %v2005_v31 = vpop.permute.xlu0 %2004 }
 0xd59   :  { %v2010_v35 = vsel %vm325_vm6, %v2005_v31, 0 }
 0xd5c   :  { %v1893_v28 = vpop.permute.xlu1 %1892  ;;  %v2132_v36 = vpop.permute.xlu0 %2131 }
 0xd5d   :  { %8912 = vmatmul.mubr.msk.bf16.vlgmr.msra.gmra.mrb[44].mxu0 %vm325_vm6, %v10647_v20  ;;  %v1898_v29 = vsel %vm325_vm6, %v1893_v28, 0  ;;  %v2137_v39 = vsel %vm325_vm6, %v2132_v36, 0 }
 0xd5e   :  { %8922 = vmatpush3.bf16.xpose.msra.mxu0 %v1786_v27  ;;  %8923 = vmatprep.mubr.msk.bf16.mxu0 %vm10124_vm1, %v10123_v15 }
 0xd5f   :  { %8933 = vmatprep.subr.bf16.mxu0 %v10123_v15 }
 0xd60   :  { %v1891_v32 = vpop.permute.xlu1 %1890  ;;  %v2242_v30 = vpop.permute.xlu0 %2241 }
 0xd64   :  { %v2003_v38 = vpop.permute.xlu1 %2002  ;;  %v2354_v34 = vpop.permute.xlu0 %2353 }
 0xd65   :  { %8924 = vmatmul.mubr.msk.bf16.vlgmr.msra.gmra.mrb[48].mxu0 %vm325_vm6, %v1779_v25 }
 0xd66   :  { %8934 = vmatpush3.bf16.xpose.msra.mxu0 %v1898_v29  ;;  %8935 = vmatprep.mubr.msk.bf16.mxu0 %vm10124_vm1, %v10123_v15 }
 0xd67   :  { %8945 = vmatprep.subr.bf16.mxu0 %v10123_v15 }
 0xd68   :  { %v2244_v40 = vpop.permute.xlu1 %2243  ;;  %v2466_v46 = vpop.permute.xlu0 %2465 }
 0xd69   :  { %v2249_v41 = vsel %vm325_vm6, %v2244_v40, 0 }
 0xd6c   :  { %v2356_v42 = vpop.permute.xlu1 %2355 }
 0xd6d   :  { %8936 = vmatmul.mubr.msk.bf16.vlgmr.msra.gmra.mrb[52].mxu0 %vm325_vm6, %v1891_v32  ;;  %v2361_v43 = vsel %vm325_vm6, %v2356_v42, 0 }
 0xd6e   :  { %8946 = vmatpush3.bf16.xpose.msra.mxu0 %v2010_v35  ;;  %8947 = vmatprep.mubr.msk.bf16.mxu0 %vm10124_vm1, %v10123_v15 }
 0xd6f   :  { %8957 = vmatprep.subr.bf16.mxu0 %v10123_v15 }
 0xd70   :  { %v2468_v44 = vpop.permute.xlu1 %2467 }
 0xd71   :  { %v2473_v45 = vsel %vm325_vm6, %v2468_v44, 0 }
 0xd75   :  { %8948 = vmatmul.mubr.msk.bf16.vlgmr.msra.gmra.mrb[56].mxu0 %vm325_vm6, %v2003_v38 }
 0xd76   :  { %8958 = vmatpush3.bf16.xpose.msra.mxu0 %v2137_v39  ;;  %8959 = vmatprep.mubr.msk.bf16.mxu0 %vm10124_vm1, %v10123_v15 }
 0xd77   :  { %8969 = vmatprep.subr.bf16.mxu0 %v10123_v15 }
 0xd7d   :  { %8960 = vmatmul.mubr.msk.bf16.vlgmr.msra.gmra.mrb[60].mxu0 %vm325_vm6, %v10657_v22 }
 0xd7e   :  { %8970 = vmatpush3.bf16.xpose.msra.mxu0 %v2249_v41  ;;  %8971 = vmatprep.mubr.msk.bf16.mxu0 %vm10124_vm1, %v10123_v15 }
 0xd7f   :  { %8981 = vmatprep.subr.bf16.mxu0 %v10123_v15 }
 0xd85   :  { %8972 = vmatmul.mubr.msk.bf16.vlgmr.msra.gmra.mrb[64].mxu0 %vm325_vm6, %v2242_v30 }
 0xd86   :  { %8982 = vmatpush3.bf16.xpose.msra.mxu0 %v2361_v43  ;;  %8983 = vmatprep.mubr.msk.bf16.mxu0 %vm10124_vm1, %v10123_v15 }
 0xd87   :  { %8993 = vmatprep.subr.bf16.mxu0 %v10123_v15 }
 0xd8d   :  { %8984 = vmatmul.mubr.msk.bf16.vlgmr.msra.gmra.mrb[68].mxu0 %vm325_vm6, %v2354_v34 }
 0xd8e   :  { %8994 = vmatpush3.bf16.xpose.msra.mxu0 %v2473_v45  ;;  %8995 = vmatprep.mubr.msk.bf16.mxu0 %vm10124_vm1, %v10123_v15 }
 0xd8f   :  { %9005 = vmatprep.subr.bf16.mxu0 %v10123_v15 }
 0xd95   :  { %8996 = vmatmul.mubr.msk.bf16.vlgmr.msra.gmra.mrb[72].mxu0 %vm325_vm6, %v2466_v46 }
 0xd96   :  { %9009 = vmatprep.mubr.msk.bf16.mxu0 %vm10124_vm1, %v10123_v15 }
 0xe30   :  { %v1710_v47 = vpop.f32.mrb[44].mxu0 }
 0xe31   :  { %v1716_v48 = vmul.f32 0.35355338, %v1710_v47  ;;  %v8913_v50 = vpop.f32.mrb[45].mxu0 }
 0xe32   :  { %v1713_v51 = vpop.f32.mrb[46].mxu0 }
 0xe33   :  { %v8914_v49 = vpop.f32.mrb[47].mxu0  ;;  %v10722_v54 = vadd.f32 %v10046_v53, %v1716_v48 }
 0xe35   :  { %v1718_v55 = vsel %vm325_vm6, %v10722_v54, -inf }
 0xe36   :  { %1719 = vmax.xlane.f32.xlu1 %v1718_v55 }
 0xe38   :  { %v1822_v56 = vpop.f32.mrb[48].mxu0 }
 0xe39   :  { %v1828_v57 = vmul.f32 0.35355338, %v1822_v56  ;;  %v8925_v58 = vpop.f32.mrb[49].mxu0 }
 0xe3a   :  { %v1825_v59 = vpop.f32.mrb[50].mxu0 }
 0xe3b   :  { %v8926_v60 = vpop.f32.mrb[51].mxu0  ;;  %v1829_v52 = vadd.f32 %v10046_v53, %v1828_v57 }
 0xe3d   :  { %v1830_v61 = vsel %vm325_vm6, %v1829_v52, -inf }
 0xe3e   :  { %1831 = vmax.xlane.f32.xlu0 %v1830_v61 }
 0xe40   :  { %v1934_v62 = vpop.f32.mrb[52].mxu0 }
 0xe41   :  { %v1940_v63 = vmul.f32 0.35355338, %v1934_v62  ;;  %v8937_v0 = vpop.f32.mrb[53].mxu0 }
 0xe42   :  { %v1937_v1 = vpop.f32.mrb[54].mxu0 }
 0xe43   :  { %v8938_v2 = vpop.f32.mrb[55].mxu0  ;;  %v1941_v3 = vadd.f32 %v10046_v53, %v1940_v63 }
 0xe45   :  { %v1942_v4 = vsel %vm325_vm6, %v1941_v3, -inf }
 0xe46   :  { %1943 = vmax.xlane.f32.xlu0 %v1942_v4 }
 0xe48   :  { %v2046_v5 = vpop.f32.mrb[56].mxu0 }
 0xe49   :  { %v2052_v6 = vmul.f32 0.35355338, %v2046_v5  ;;  %v8949_v7 = vpop.f32.mrb[57].mxu0 }
 0xe4a   :  { %v2049_v8 = vpop.f32.mrb[58].mxu0 }
 0xe4b   :  { %v8950_v9 = vpop.f32.mrb[59].mxu0  ;;  %v10728_v10 = vadd.f32 %v10046_v53, %v2052_v6 }
 0xe4d   :  { %v2054_v11 = vsel %vm325_vm6, %v10728_v10, -inf }
 0xe4e   :  { %2055 = vmax.xlane.f32.xlu0 %v2054_v11 }
 0xe50   :  { %v2173_v12 = vpop.f32.mrb[60].mxu0 }
 0xe51   :  { %v2179_v13 = vmul.f32 0.35355338, %v2173_v12  ;;  %v8961_v14 = vpop.f32.mrb[61].mxu0 }
 0xe52   :  { %v2176_v16 = vpop.f32.mrb[62].mxu0 }
 0xe53   :  { %v8962_v17 = vpop.f32.mrb[63].mxu0  ;;  %v10733_v18 = vadd.f32 %v10047_v19, %v2179_v13 }
 0xe55   :  { %v2181_v21 = vsel %vm325_vm6, %v10733_v18, -inf }
 0xe56   :  { %2182 = vmax.xlane.f32.xlu1 %v2181_v21 }
 0xe58   :  { %v2285_v23 = vpop.f32.mrb[64].mxu0 }
 0xe59   :  { %v2291_v24 = vmul.f32 0.35355338, %v2285_v23  ;;  %v8973_v26 = vpop.f32.mrb[65].mxu0 }
 0xe5a   :  { %v2288_v25 = vpop.f32.mrb[66].mxu0 }
 0xe5b   :  { %v8974_v27 = vpop.f32.mrb[67].mxu0  ;;  %v2292_v28 = vadd.f32 %v10047_v19, %v2291_v24 }
 0xe5d   :  { %v2293_v29 = vsel %vm325_vm6, %v2292_v28, -inf }
 0xe5e   :  { %2294 = vmax.xlane.f32.xlu0 %v2293_v29 }
 0xe60   :  { %v2397_v31 = vpop.f32.mrb[68].mxu0 }
 0xe61   :  { %v2403_v32 = vmul.f32 0.35355338, %v2397_v31  ;;  %v8985_v35 = vpop.f32.mrb[69].mxu0 }
 0xe62   :  { %v2400_v36 = vpop.f32.mrb[70].mxu0 }
 0xe63   :  { %v8986_v38 = vpop.f32.mrb[71].mxu0  ;;  %v2404_v39 = vadd.f32 %v10047_v19, %v2403_v32 }
 0xe65   :  { %v2405_v40 = vsel %vm325_vm6, %v2404_v39, -inf }
 0xe66   :  { %2406 = vmax.xlane.f32.xlu1 %v2405_v40 }
 0xe68   :  { %v2509_v41 = vpop.f32.mrb[72].mxu0 }
 0xe69   :  { %v8997_v42 = vpop.f32.mrb[73].mxu0  ;;  %v2515_v44 = vmul.f32 0.35355338, %v2509_v41 }
 0xe6a   :  { %v2512_v30 = vpop.f32.mrb[74].mxu0 }
 0xe6b   :  { %v8998_v43 = vpop.f32.mrb[75].mxu0  ;;  %v2516_v34 = vadd.f32 %v10047_v19, %v2515_v44 }
 0xe6d   :  { %v2517_v45 = vsel %vm325_vm6, %v2516_v34, -inf }
 0xe74   :  { %1842 = vrot.lane.b32.xlu0 %v10647_v20, %s11973_s7 }
 0xe77   :  { %1730 = vrot.lane.b32.xlu1 %v10647_v20, %s11971_s11 }
 0xe93   :  { %2518 = vmax.xlane.f32.xlu0 %v2517_v45 }
 0xec3   :  { %v1720_v46 = vpop.xlane.xlu1 %1719 }
 0xec4   :  { %v1721_v47 = vsub.f32 %v10722_v54, %v1720_v46 }
 0xec6   :  { %v1722_v48 = vmul.f32 1.442695, %v1721_v47 }
 0xec8   :  { %9804 = vpow2.f32 %v1722_v48 }
 0xecb   :  { %v1832_v50 = vpop.xlane.xlu0 %1831 }
 0xecc   :  { %v1833_v51 = vsub.f32 %v1829_v52, %v1832_v50 }
 0xece   :  { %v1834_v49 = vmul.f32 1.442695, %v1833_v51 }
 0xed0   :  { %9806 = vpow2.f32 %v1834_v49 }
 0xed2   :  { %v10745_v53 = vpop.eup %9804 }
 0xed3   :  { %v1944_v55 = vpop.xlane.xlu0 %1943  ;;  %v1724_v56 = vsel %vm325_vm6, %v10745_v53, 0.0 }
 0xed4   :  { %v1945_v57 = vsub.f32 %v1941_v3, %v1944_v55  ;;  %1725 = vadd.xlane.f32.xlu1 %v1724_v56 }
 0xed6   :  { %v1946_v58 = vmul.f32 1.442695, %v1945_v57 }
 0xed8   :  { %9808 = vpow2.f32 %v1946_v58 }
 0xeda   :  { %v10749_v59 = vpop.eup %9806 }
 0xedb   :  { %v1836_v54 = vsel %vm325_vm6, %v10749_v59, 0.0  ;;  %v2056_v0 = vpop.xlane.xlu0 %2055 }
 0xedc   :  { %1837 = vadd.xlane.f32.xlu0 %v1836_v54  ;;  %v2057_v2 = vsub.f32 %v10728_v10, %v2056_v0 }
 0xede   :  { %v2058_v3 = vmul.f32 1.442695, %v2057_v2 }
 0xee0   :  { %9810 = vpow2.f32 %v2058_v3 }
 0xee2   :  { %v10753_v60 = vpop.eup %9808 }
 0xee3   :  { %v1948_v52 = vsel %vm325_vm6, %v10753_v60, 0.0  ;;  %v2183_v61 = vpop.xlane.xlu1 %2182 }
 0xee4   :  { %1949 = vadd.xlane.f32.xlu1 %v1948_v52  ;;  %v2184_v4 = vsub.f32 %v10733_v18, %v2183_v61 }
 0xee6   :  { %v2185_v7 = vmul.f32 1.442695, %v2184_v4 }
 0xee8   :  { %9812 = vpow2.f32 %v2185_v7 }
 0xeea   :  { %v9811_v11 = vpop.eup %9810 }
 0xeeb   :  { %v2295_v5 = vpop.xlane.xlu0 %2294  ;;  %v2060_v12 = vsel %vm325_vm6, %v9811_v11, 0.0 }
 0xeec   :  { %v2296_v6 = vsub.f32 %v2292_v28, %v2295_v5 }
 0xeee   :  { %v2297_v9 = vmul.f32 1.442695, %v2296_v6 }
 0xeef   :  { %v1843_v18 = vpop.permute.xlu0 %1842 }
 0xef0   :  { %9814 = vpow2.f32 %v2297_v9  ;;  %v1848_v35 = vsel %vm391_vm7, %v1843_v18, 0 }
 0xef2   :  { %1954 = vrot.lane.b32.xlu0 %v10647_v20, %s11969_s15  ;;  %v10766_v13 = vpop.eup %9812 }
 0xef3   :  { %v2407_v62 = vpop.xlane.xlu1 %2406  ;;  %v2187_v14 = vsel %vm325_vm6, %v10766_v13, 0.0 }
 0xef4   :  { %v2408_v8 = vsub.f32 %v2404_v39, %v2407_v62 }
 0xef5   :  { %2066 = vrot.lane.b32.xlu1 %v10647_v20, %s11961_s16 }
 0xef6   :  { %v2409_v20 = vmul.f32 1.442695, %v2408_v8 }
 0xef7   :  { %v1731_v63 = vpop.permute.xlu1 %1730 }
 0xef8   :  { %v1736_v1 = vsel %vm391_vm7, %v1731_v63, 0  ;;  %9816 = vpow2.f32 %v2409_v20 }
 0xef9   :  { %8916 = vmatpush3.bf16.msra.mxu1 %v1736_v1 }
 0xefa   :  { %8927 = vmatprep.subr.bf16.mxu1 %v10123_v15  ;;  %v10768_v10 = vpop.eup %9814 }
 0xefb   :  { %v2299_v17 = vsel %vm325_vm6, %v10768_v10, 0.0 }
 0xf02   :  { %v10772_v16 = vpop.eup %9816 }
 0xf03   :  { %v2411_v19 = vsel %vm325_vm6, %v10772_v16, 0.0 }
 0xf11   :  { %2061 = vadd.xlane.f32.xlu0 %v2060_v12 }
 0xf15   :  { %2188 = vadd.xlane.f32.xlu0 %v2187_v14 }
 0xf19   :  { %2300 = vadd.xlane.f32.xlu1 %v2299_v17  ;;  %2412 = vadd.xlane.f32.xlu0 %v2411_v19 }
 0xf20   :  { %v2519_v21 = vpop.xlane.xlu0 %2518 }
 0xf21   :  { %v2520_v23 = vsub.f32 %v2516_v34, %v2519_v21 }
 0xf23   :  { %v2521_v24 = vmul.f32 1.442695, %v2520_v23 }
 0xf25   :  { %9818 = vpow2.f32 %v2521_v24 }
 0xf2a   :  { %2305 = vrot.lane.b32.xlu1 %v10657_v22, %s11973_s7 }
 0xf2e   :  { %2417 = vrot.lane.b32.xlu1 %v10657_v22, %s11969_s15 }
 0xf2f   :  { %v10782_v26 = vpop.eup %9818 }
 0xf30   :  { %v2523_v25 = vsel %vm325_vm6, %v10782_v26, 0.0 }
 0xf31   :  { %2524 = vadd.xlane.f32.xlu0 %v2523_v25 }
 0xf32   :  { %2529 = vrot.lane.b32.xlu1 %v10657_v22, %s11961_s16 }
 0xf47   :  { %2193 = vrot.lane.b32.xlu0 %v10657_v22, %s11971_s11 }
 0xf61   :  { %v1726_v27 = vpop.xlane.xlu1 %1725 }
 0xf62   :  { %9820 = vrcp.f32 %v1726_v27 }
 0xf69   :  { %v1838_v28 = vpop.xlane.xlu0 %1837 }
 0xf6a   :  { %9822 = vrcp.f32 %v1838_v28 }
 0xf6c   :  { %v9821_v29 = vpop.eup %9820 }
 0xf6d   :  { %v1728_v31 = vmul.f32 %v9821_v29, %v10745_v53  ;;  %v1955_v39 = vpop.permute.xlu0 %1954 }
 0xf6e   :  { %v1960_v41 = vsel %vm391_vm7, %v1955_v39, 0 }
 0xf6f   :  { %v1729_v32 = vpack.c.bf16 %v1728_v31, %v1728_v31 }
 0xf71   :  { %8918 = vmatmul.mubr.msk.bf16.vlgmr.msra.gmra.mrb[40].mxu1 %vm325_vm6, %v1729_v32  ;;  %v1950_v36 = vpop.xlane.xlu1 %1949 }
 0xf72   :  { %8928 = vmatpush3.bf16.msra.mxu1 %v1848_v35  ;;  %9824 = vrcp.f32 %v1950_v36  ;;  %8929 = vmatprep.mubr.msk.bf16.mxu1 %vm10124_vm1, %v10123_v15  ;;  %v9706_v35 = vld [vmem:[%s10187_s8 + $0x10] sm:$0xff]  }
 0xf73   :  { %8939 = vmatprep.subr.bf16.mxu1 %v10123_v15  ;;  %9006 = vmatpush3.bf16.msra.mxu0 %v9706_v35 }
 0xf74   :  { %v9823_v22 = vpop.eup %9822  ;;  %9007 = vmatprep.subr.bf16.mxu0 %v10123_v15 }
 0xf75   :  { %v1840_v38 = vmul.f32 %v9823_v22, %v10749_v59  ;;  %v2067_v43 = vpop.permute.xlu1 %2066 }
 0xf76   :  { %v2072_v34 = vsel %vm391_vm7, %v2067_v43, 0 }
 0xf77   :  { %v1841_v40 = vpack.c.bf16 %v1840_v38, %v1840_v38 }
 0xf79   :  { %8930 = vmatmul.mubr.msk.bf16.vlgmr.msra.gmra.mrb[44].mxu1 %vm325_vm6, %v1841_v40  ;;  %v9707_v40 = vld [vmem:[%s10187_s8 + $0x18] sm:$0xff]   ;;  %s12007_s8 = sld [smem:[#allocation6_spill]] }
 0xf7a   :  { %8940 = vmatpush3.bf16.msra.mxu1 %v1960_v41  ;;  %8941 = vmatprep.mubr.msk.bf16.mxu1 %vm10124_vm1, %v10123_v15 }
 0xf7b   :  { %8951 = vmatprep.subr.bf16.mxu1 %v10123_v15  ;;  %9008 = vmatpush3.bf16.msra.mxu0 %v9707_v40  ;;  %v9709_v40 = vld [vmem:[%s10207_s30 + $0x18] sm:$0xff]  }
 0xf7c   :  { %v9825_v42 = vpop.eup %9824  ;;  %9021 = vmatprep.subr.bf16.mxu0 %v10123_v15 }
 0xf7d   :  { %v1952_v30 = vmul.f32 %v9825_v42, %v10753_v60 }
 0xf7f   :  { %v1953_v44 = vpack.c.bf16 %v1952_v30, %v1952_v30 }
 0xf81   :  { %8942 = vmatmul.mubr.msk.bf16.vlgmr.msra.gmra.mrb[48].mxu1 %vm325_vm6, %v1953_v44 }
 0xf82   :  { %8952 = vmatpush3.bf16.msra.mxu1 %v2072_v34  ;;  %8953 = vmatprep.mubr.msk.bf16.mxu1 %vm10124_vm1, %v10123_v15 }
 0xf83   :  { %8963 = vmatprep.subr.bf16.mxu1 %v10123_v15 }
 0xf9e   :  { %v2062_v45 = vpop.xlane.xlu0 %2061 }
 0xf9f   :  { %9826 = vrcp.f32 %v2062_v45 }
 0xfa2   :  { %v2189_v50 = vpop.xlane.xlu0 %2188 }
 0xfa3   :  { %9828 = vrcp.f32 %v2189_v50 }
 0xfa6   :  { %v2301_v51 = vpop.xlane.xlu1 %2300  ;;  %v2413_v49 = vpop.xlane.xlu0 %2412 }
 0xfa7   :  { %9830 = vrcp.f32 %v2301_v51 }
 0xfa8   :  { %9832 = vrcp.f32 %v2413_v49 }
 0xfa9   :  { %v9827_v46 = vpop.eup %9826 }
 0xfaa   :  { %v2064_v47 = vmul.f32 %v9827_v46, %v9811_v11  ;;  %v2306_v59 = vpop.permute.xlu1 %2305 }
 0xfab   :  { %v2311_v52 = vsel %vm391_vm7, %v2306_v59, 0 }
 0xfac   :  { %v2065_v48 = vpack.c.bf16 %v2064_v47, %v2064_v47 }
 0xfad   :  { %v9829_v53 = vpop.eup %9828 }
 0xfae   :  { %8954 = vmatmul.mubr.msk.bf16.vlgmr.msra.gmra.mrb[52].mxu1 %vm325_vm6, %v2065_v48  ;;  %v2191_v56 = vmul.f32 %v9829_v53, %v10766_v13  ;;  %v2418_v62 = vpop.permute.xlu1 %2417 }
 0xfaf   :  { %8965 = vmatprep.mubr.msk.bf16.mxu1 %vm10124_vm1, %v10123_v15  ;;  %v2423_v1 = vsel %vm391_vm7, %v2418_v62, 0 }
 0xfb0   :  { %v2192_v54 = vpack.c.bf16 %v2191_v56, %v2191_v56 }
 0xfb1   :  { %v9831_v60 = vpop.eup %9830 }
 0xfb2   :  { %v2303_v61 = vmul.f32 %v9831_v60, %v10768_v10  ;;  %v9833_v0 = vpop.eup %9832  ;;  %v2530_v3 = vpop.permute.xlu1 %2529 }
 0xfb3   :  { %v2415_v2 = vmul.f32 %v9833_v0, %v10772_v16  ;;  %v2535_v6 = vsel %vm391_vm7, %v2530_v3, 0 }
 0xfb4   :  { %v2304_v63 = vpack.c.bf16 %v2303_v61, %v2303_v61 }
 0xfb5   :  { %v2416_v4 = vpack.c.bf16 %v2415_v2, %v2415_v2 }
 0xfbe   :  { %v2525_v55 = vpop.xlane.xlu0 %2524 }
 0xfbf   :  { %9834 = vrcp.f32 %v2525_v55 }
 0xfc2   :  { %v2194_v57 = vpop.permute.xlu0 %2193 }
 0xfc3   :  { %v2199_v58 = vsel %vm391_vm7, %v2194_v57, 0 }
 0xfc4   :  { %8964 = vmatpush3.bf16.msra.mxu1 %v2199_v58 }
 0xfc5   :  { %8975 = vmatprep.subr.bf16.mxu1 %v10123_v15 }
 0xfc7   :  { %8966 = vmatmul.mubr.msk.bf16.vlgmr.msra.gmra.mrb[56].mxu1 %vm325_vm6, %v2192_v54 }
 0xfc8   :  { %8976 = vmatpush3.bf16.msra.mxu1 %v2311_v52  ;;  %8977 = vmatprep.mubr.msk.bf16.mxu1 %vm10124_vm1, %v10123_v15 }
 0xfc9   :  { %8987 = vmatprep.subr.bf16.mxu1 %v10123_v15  ;;  %v9835_v5 = vpop.eup %9834 }
 0xfca   :  { %v2527_v7 = vmul.f32 %v9835_v5, %v10782_v26 }
 0xfcc   :  { %v2528_v8 = vpack.c.bf16 %v2527_v7, %v2527_v7 }
 0xfcf   :  { %8978 = vmatmul.mubr.msk.bf16.vlgmr.msra.gmra.mrb[60].mxu1 %vm325_vm6, %v2304_v63 }
 0xfd0   :  { %8988 = vmatpush3.bf16.msra.mxu1 %v2423_v1  ;;  %8989 = vmatprep.mubr.msk.bf16.mxu1 %vm10124_vm1, %v10123_v15  ;;  %v8279_v1 = vld [vmem:[%s10192_s14 + $0x1] ss:$0 sm:$0xff]  ;;  %s12008_s14 = sld [smem:[#allocation13_spill]] }
 0xfd1   :  { %8999 = vmatprep.subr.bf16.mxu1 %v10123_v15 }
 0xfd7   :  { %8990 = vmatmul.mubr.msk.bf16.vlgmr.msra.gmra.mrb[64].mxu1 %vm325_vm6, %v2416_v4 }
 0xfd8   :  { %9000 = vmatpush3.bf16.msra.mxu1 %v2535_v6  ;;  %9001 = vmatprep.mubr.msk.bf16.mxu1 %vm10124_vm1, %v10123_v15 }
 0xfd9   :  { %9013 = vmatprep.subr.bf16.mxu1 %v10123_v15 }
 0xfdf   :  { %9002 = vmatmul.mubr.msk.bf16.vlgmr.msra.gmra.mrb[68].mxu1 %vm325_vm6, %v2528_v8 }
 0xfe0   :  { %9017 = vmatprep.mubr.msk.bf16.mxu1 %vm10124_vm1, %v10123_v15 }
0x1044   :  { %v1772_v9 = vpop.f32.mrb[40].mxu1 }
0x1045   :  { %v8919_v20 = vpop.f32.mrb[41].mxu1 }
0x1046   :  { %v1775_v11 = vpop.f32.mrb[42].mxu1 }
0x1047   :  { %v8920_v12 = vpop.f32.mrb[43].mxu1 }
0x104c   :  { %v1884_v13 = vpop.f32.mrb[44].mxu1 }
0x104d   :  { %v8931_v10 = vpop.f32.mrb[45].mxu1 }
0x104e   :  { %v1887_v14 = vpop.f32.mrb[46].mxu1  ;;  %v2943_v10 = vld [vmem:[%s12002_s5 + $0x8] sm:$0xff] }
0x104f   :  { %v8932_v16 = vpop.f32.mrb[47].mxu1 }
0x1054   :  { %v1996_v17 = vpop.f32.mrb[48].mxu1 }
0x1055   :  { %v8943_v19 = vpop.f32.mrb[49].mxu1 }
0x1056   :  { %v1999_v18 = vpop.f32.mrb[50].mxu1 }
0x1057   :  { %v8944_v21 = vpop.f32.mrb[51].mxu1 }
0x1081   :  { %v2108_v23 = vpop.f32.mrb[52].mxu1 }
0x1082   :  { %v8955_v24 = vpop.f32.mrb[53].mxu1 }
0x1083   :  { %v2111_v26 = vpop.f32.mrb[54].mxu1 }
0x1084   :  { %v8956_v25 = vpop.f32.mrb[55].mxu1 }
0x109a   :  { %v2235_v27 = vpop.f32.mrb[56].mxu1 }
0x109b   :  { %v8967_v28 = vpop.f32.mrb[57].mxu1 }
0x109c   :  { %v2238_v29 = vpop.f32.mrb[58].mxu1 }
0x109d   :  { %v8968_v31 = vpop.f32.mrb[59].mxu1 }
0x10a2   :  { %v2347_v32 = vpop.f32.mrb[60].mxu1 }
0x10a3   :  { %v9619_v36 = vpack.i.bf16 %v2347_v32, %v1884_v13  ;;  %v8979_v22 = vpop.f32.mrb[61].mxu1 }
0x10a4   :  { %v2350_v38 = vpop.f32.mrb[62].mxu1 }
0x10a5   :  { %9620 = vrot.lane.b32.xlu1 %v9619_v36, %s11963_s18  ;;  %v8980_v39 = vpop.f32.mrb[63].mxu1 }
0x10a6   :  { %v9708_v39 = vld [vmem:[%s10207_s30 + $0x10] sm:$0xff]   ;;  %s12011_s30 = sld [smem:[#allocation7_spill]] }
0x10a7   :  { %9014 = vmatpush3.bf16.msra.mxu1 %v9708_v39  ;;  %v9715_v39 = vld [vmem:[%s10217_s12 + $0x38] sm:$0xff]  }
0x10a8   :  { %9015 = vmatprep.subr.bf16.mxu1 %v10123_v15 }
0x10aa   :  { %v2459_v41 = vpop.f32.mrb[64].mxu1 }
0x10ab   :  { %v9624_v42 = vpack.i.bf16 %v2459_v41, %v1996_v17  ;;  %v8991_v30 = vpop.f32.mrb[65].mxu1  ;;  %9016 = vmatpush3.bf16.msra.mxu1 %v9709_v40  ;;  %v9712_v41 = vld [vmem:[%s10217_s12 + $0x20] sm:$0xff]  }
0x10ac   :  { %v2462_v43 = vpop.f32.mrb[66].mxu1  ;;  %9033 = vmatprep.subr.bf16.mxu1 %v10123_v15  ;;  %v8292_v40 = vld [vmem:[%s10212_s6 + $0x1] ss:$0 sm:$0xff]  ;;  %s12012_s6 = sld [smem:[#allocation8_spill]] }
0x10ad   :  { %9625 = vrot.lane.b32.xlu1 %v9624_v42, %s11967_s22  ;;  %v8992_v44 = vpop.f32.mrb[67].mxu1  ;;  %v9713_v42 = vld [vmem:[%s10217_s12 + $0x28] sm:$0xff]  }
0x10b2   :  { %v2571_v34 = vpop.f32.mrb[68].mxu1 }
0x10b3   :  { %v9629_v45 = vpack.i.bf16 %v2571_v34, %v2108_v23  ;;  %v9003_v46 = vpop.f32.mrb[69].mxu1 }
0x10b4   :  { %v2574_v47 = vpop.f32.mrb[70].mxu1 }
0x10b5   :  { %9630 = vrot.lane.b32.xlu1 %v9629_v45, %s11965_s23  ;;  %v9004_v48 = vpop.f32.mrb[71].mxu1 }
0x1117   :  { %v9621_v50 = vpop.permute.xlu1 %9620 }
0x1118   :  { %v9623_v49 = vunpack.i.h.bf16 %v9621_v50  ;;  %v9622_v53 = vunpack.i.l.bf16 %v9621_v50 }
0x111a   :  { %v2589_v58 = vsel %vm325_vm6, %v2235_v27, %v9623_v49  ;;  %v2126_v59 = vsel %vm325_vm6, %v1772_v9, %v9622_v53  ;;  %v2942_v9 = vld [vmem:[%s12002_s5] sm:$0xff] }
0x111b   :  { %v2946_v13 = vsel %vm195_vm0, %v2942_v9, 0.0 }
0x111f   :  { %v9626_v51 = vpop.permute.xlu1 %9625 }
0x1120   :  { %v9628_v55 = vunpack.i.h.bf16 %v9626_v51  ;;  %v9627_v56 = vunpack.i.l.bf16 %v9626_v51 }
0x1122   :  { %v2590_v52 = vsel %vm784_vm8, %v2589_v58, %v9628_v55  ;;  %v2127_v61 = vsel %vm784_vm8, %v2126_v59, %v9627_v56 }
0x1127   :  { %v9631_v57 = vpop.permute.xlu1 %9630 }
0x1128   :  { %v9633_v54 = vunpack.i.h.bf16 %v9631_v57  ;;  %v9632_v60 = vunpack.i.l.bf16 %v9631_v57 }
0x112a   :  { %v2591_v62 = vsel %vm786_vm9, %v2590_v52, %v9633_v54  ;;  %v2128_v63 = vsel %vm786_vm9, %v2127_v61, %v9632_v60 }
0x112b   :  { %v2599_v0 = vpack.c.bf16 %v2591_v62, %v2128_v63 }
0x112d   :  { %9010 = vmatmul.mubr.msk.bf16.vlgmr.msra.gmra.mrb[76].mxu0 %vm195_vm0, %v2599_v0 }
0x112e   :  { %9029 = vmatprep.mubr.msk.bf16.mxu0 %vm10124_vm1, %v10123_v15  ;;  %9022 = vmatpush3.bf16.msra.mxu0 %v9712_v41 }
0x112f   :  { %9023 = vmatprep.subr.bf16.mxu0 %v10123_v15 }
0x1132   :  { %9024 = vmatpush3.bf16.msra.mxu0 %v9713_v42 }
0x1133   :  { %9025 = vmatprep.subr.bf16.mxu0 %v10123_v15 }
0x1200   :  { %v2655_v2 = vpop.f32.mrb[76].mxu0 }
0x1201   :  { %v2656_v3 = vadd.f32 %v8279_v1, %v2655_v2  ;;  %v9011_v4 = vpop.f32.mrb[77].mxu0 }
0x1202   :  { %v2658_v5 = vpop.f32.mrb[78].mxu0 }
0x1203   :  { %v10853_v6 = vadd.f32 %v2656_v3, %v10624_v33  ;;  %v2659_v7 = vadd.f32 %v8279_v1, %v2658_v5  ;;  %v9012_v8 = vpop.f32.mrb[79].mxu0  ;;  %v2949_v33 = vsel %vm195_vm0, %v2943_v10, 0.0 }
0x1205   :  { %v10857_v20 = vadd.f32 %v2659_v7, %v10627_v37  ;;  %v2668_v11 = vsel %vm195_vm0, %v10853_v6, 0.0 }
0x1206   :  { %2669 = vadd.xlane.f32.xlu0 %v2668_v11 }
0x1207   :  { %v2671_v12 = vsel %vm195_vm0, %v10857_v20, 0.0 }
0x1208   :  { %2672 = vadd.xlane.f32.xlu1 %v2671_v12  ;;  %v8285_v12 = vld [vmem:[%s10197_s19 + $0x1] ss:$0 sm:$0xff]  ;;  %s12009_s19 = sld [smem:[#allocation14_spill]] }
0x120a   :  { %2947 = vadd.xlane.f32.xlu0 %v2946_v13 }
0x120e   :  { %2950 = vadd.xlane.f32.xlu0 %v2949_v33 }
0x1293   :  { %v2670_v14 = vpop.xlane.xlu0 %2669 }
0x1294   :  { %v2674_v16 = vmul.f32 0.03125, %v2670_v14 }
0x1295   :  { %v2673_v17 = vpop.xlane.xlu1 %2672 }
0x1296   :  { %v10867_v37 = vsub.f32 %v10853_v6, %v2674_v16  ;;  %v2675_v19 = vmul.f32 0.03125, %v2673_v17  ;;  %v8286_v16 = vld [vmem:[%s10202_s24 + $0x1] ss:$0 sm:$0xff]  ;;  %s12010_s24 = sld [smem:[#allocation19_spill]] }
0x1297   :  { %v2948_v18 = vpop.xlane.xlu0 %2947 }
0x1298   :  { %v10870_v21 = vsub.f32 %v10857_v20, %v2675_v19  ;;  %v2952_v23 = vmul.f32 0.03125, %v2948_v18  ;;  %v2678_v24 = vmul.f32 %v10867_v37, %v10867_v37 }
0x129a   :  { %v10874_v26 = vsub.f32 %v2942_v9, %v2952_v23  ;;  %v2680_v25 = vsel %vm195_vm0, %v2678_v24, 0.0  ;;  %v2679_v27 = vmul.f32 %v10870_v21, %v10870_v21 }
0x129b   :  { %2681 = vadd.xlane.f32.xlu0 %v2680_v25  ;;  %v2951_v28 = vpop.xlane.xlu0 %2950 }
0x129c   :  { %v2953_v29 = vmul.f32 0.03125, %v2951_v28  ;;  %v2683_v31 = vsel %vm195_vm0, %v2679_v27, 0.0  ;;  %v2956_v32 = vmul.f32 %v10874_v26, %v10874_v26  ;;  %v9710_v27 = vld [vmem:[%s12003_s21] sm:$0xff]  }
0x129d   :  { %2684 = vadd.xlane.f32.xlu1 %v2683_v31  ;;  %v8313_v28 = vld [vmem:[%s12004_s25] ss:$0 sm:$0xff] }
0x129e   :  { %v10882_v35 = vsub.f32 %v2943_v10, %v2953_v29  ;;  %v2958_v36 = vsel %vm195_vm0, %v2956_v32, 0.0  ;;  %v9711_v32 = vld [vmem:[%s12003_s21 + $0x8] sm:$0xff]  }
0x129f   :  { %2959 = vadd.xlane.f32.xlu0 %v2958_v36  ;;  %v8314_v36 = vld [vmem:[%s12005_s29] ss:$0 sm:$0xff] }
0x12a0   :  { %v2957_v22 = vmul.f32 %v10882_v35, %v10882_v35 }
0x12a2   :  { %v2961_v38 = vsel %vm195_vm0, %v2957_v22, 0.0 }
0x12a3   :  { %2962 = vadd.xlane.f32.xlu1 %v2961_v38 }
0x1328   :  { %v2682_v30 = vpop.xlane.xlu0 %2681 }
0x1329   :  { %v2686_v43 = vmul.f32 0.03125, %v2682_v30 }
0x132a   :  { %v2685_v44 = vpop.xlane.xlu1 %2684 }
0x132b   :  { %v2688_v34 = vadd.f32 1e-06, %v2686_v43  ;;  %v2687_v45 = vmul.f32 0.03125, %v2685_v44 }
0x132c   :  { %v2960_v46 = vpop.xlane.xlu0 %2959 }
0x132d   :  { %9836 = vrsqrt.f32 %v2688_v34  ;;  %v2689_v47 = vadd.f32 1e-06, %v2687_v45  ;;  %v2964_v48 = vmul.f32 0.03125, %v2960_v46  ;;  %vm2692_vm5 = vcmp.eq.f32.partialorder %v2688_v34, inf }
0x132e   :  { %v2695_v57 = vand.u32 2147483648, %v2688_v34  ;;  %vm2694_vm10 = vcmp.eq.f32.partialorder %v2688_v34, 0.0 }
0x132f   :  { %9838 = vrsqrt.f32 %v2689_v47  ;;  %v2966_v51 = vadd.f32 1e-06, %v2964_v48  ;;  %vm2699_vm11 = vcmp.eq.f32.partialorder %v2689_v47, inf  ;;  %v2702_v52 = vand.u32 2147483648, %v2689_v47 }
0x1330   :  { %v2963_v50 = vpop.xlane.xlu1 %2962  ;;  %vm2701_vm12 = vcmp.eq.f32.partialorder %v2689_v47, 0.0 }
0x1331   :  { %v2965_v49 = vmul.f32 0.03125, %v2963_v50  ;;  %9840 = vrsqrt.f32 %v2966_v51  ;;  %vm2970_vm13 = vcmp.eq.f32.partialorder %v2966_v51, inf  ;;  %v2973_v1 = vand.u32 2147483648, %v2966_v51 }
0x1332   :  { %vm2972_vm15 = vcmp.eq.f32.partialorder %v2966_v51, 0.0 }
0x1333   :  { %v2967_v53 = vadd.f32 1e-06, %v2965_v49 }
0x1335   :  { %9842 = vrsqrt.f32 %v2967_v53  ;;  %vm2977_vm2 = vcmp.eq.f32.partialorder %v2967_v53, inf  ;;  %v2980_v7 = vand.u32 2147483648, %v2967_v53  ;;  %vm2979_vm3 = vcmp.eq.f32.partialorder %v2967_v53, 0.0 }
0x1337   :  { %v9837_v55 = vpop.eup %9836 }
0x1338   :  { %v2691_v56 = vmul.f32 %v9837_v55, %v2688_v34 }
0x1339   :  { %v9839_v58 = vpop.eup %9838 }
0x133a   :  { %v2693_v59 = vsel %vm2692_vm5, %v2688_v34, %v2691_v56  ;;  %v2698_v60 = vmul.f32 %v9839_v58, %v2689_v47 }
0x133b   :  { %v2696_v54 = vsel %vm2694_vm10, %v2695_v57, %v2693_v59  ;;  %v9841_v61 = vpop.eup %9840 }
0x133c   :  { %9844 = vrcp.f32 %v2696_v54  ;;  %v2700_v62 = vsel %vm2699_vm11, %v2689_v47, %v2698_v60  ;;  %v2969_v0 = vmul.f32 %v9841_v61, %v2966_v51  ;;  %v8315_v47 = vld [vmem:[%s12006_s3] ss:$0 sm:$0xff] }
0x133d   :  { %v2703_v63 = vsel %vm2701_vm12, %v2702_v52, %v2700_v62 }
0x133e   :  { %9846 = vrcp.f32 %v2703_v63  ;;  %v2971_v3 = vsel %vm2970_vm13, %v2966_v51, %v2969_v0 }
0x133f   :  { %v9843_v2 = vpop.eup %9842  ;;  %v2974_v4 = vsel %vm2972_vm15, %v2973_v1, %v2971_v3 }
0x1340   :  { %v2976_v5 = vmul.f32 %v9843_v2, %v2967_v53  ;;  %9848 = vrcp.f32 %v2974_v4 }
0x1342   :  { %v2978_v8 = vsel %vm2977_vm2, %v2967_v53, %v2976_v5 }
0x1343   :  { %v2981_v9 = vsel %vm2979_vm3, %v2980_v7, %v2978_v8 }
0x1344   :  { %9850 = vrcp.f32 %v2981_v9 }
0x1346   :  { %v9845_v11 = vpop.eup %9844 }
0x1347   :  { %v2705_v13 = vmul.f32 %v9845_v11, %v10867_v37 }
0x1348   :  { %v9847_v10 = vpop.eup %9846 }
0x1349   :  { %v2707_v33 = vmul.f32 %v9847_v10, %v10870_v21  ;;  %v2714_v14 = vmul.f32 %v8285_v12, %v2705_v13 }
0x134a   :  { %v9849_v17 = vpop.eup %9848 }
0x134b   :  { %v2715_v19 = vmul.f32 %v8285_v12, %v2707_v33  ;;  %v2722_v18 = vadd.f32 %v8286_v16, %v2714_v14  ;;  %v2983_v24 = vmul.f32 %v9849_v17, %v10874_v26 }
0x134d   :  { %v2723_v23 = vadd.f32 %v8286_v16, %v2715_v19  ;;  %v2992_v37 = vmul.f32 %v8313_v28, %v2983_v24 }
0x134e   :  { %v9851_v25 = vpop.eup %9850 }
0x134f   :  { %v2731_v29 = vpack.c.bf16 %v2723_v23, %v2722_v18  ;;  %v2985_v31 = vmul.f32 %v9851_v25, %v10882_v35  ;;  %v3000_v22 = vadd.f32 %v8314_v36, %v2992_v37  ;;  %v9714_v35 = vld [vmem:[%s10217_s12 + $0x30] sm:$0xff]   ;;  %v189_v23 = vld [vmem:[%s12007_s8] sm:$0xff]  ;;  %s12013_s12 = sld [smem:[#allocation17_spill]] }
0x1350   :  { %9026 = vmatpush3.bf16.msra.mxu0 %v9714_v35 }
0x1351   :  { %9018 = vmatmul.mubr.msk.bf16.vlgmr.msra.gmra.mrb[72].mxu1 %vm195_vm0, %v2731_v29  ;;  %v2993_v21 = vmul.f32 %v8313_v28, %v2985_v31  ;;  %9027 = vmatprep.subr.bf16.mxu0 %v10123_v15 }
0x1352   :  { %9034 = vmatpush3.bf16.msra.mxu1 %v9710_v27  ;;  %9037 = vmatprep.mubr.msk.bf16.mxu1 %vm10124_vm1, %v10123_v15 }
0x1353   :  { %9035 = vmatprep.subr.bf16.mxu1 %v10123_v15  ;;  %v3001_v26 = vadd.f32 %v8314_v36, %v2993_v21 }
0x1354   :  { %9028 = vmatpush3.bf16.msra.mxu0 %v9715_v39 }
0x1355   :  { %v3007_v38 = vpack.c.bf16 %v3001_v26, %v3000_v22  ;;  %9047 = vmatprep.subr.bf16.mxu0 %v10123_v15 }
0x1356   :  { %9036 = vmatpush3.bf16.msra.mxu1 %v9711_v32 }
0x1357   :  { %9041 = vmatprep.subr.bf16.mxu1 %v10123_v15 }
0x1359   :  { %9038 = vmatmul.mubr.msk.bf16.vlgmr.msra.gmra.mrb[76].mxu1 %vm195_vm0, %v3007_v38 }
0x135a   :  { %9043 = vmatprep.mubr.msk.bf16.mxu1 %vm10124_vm1, %v10123_v15 }
0x1424   :  { %v2787_v41 = vpop.f32.mrb[72].mxu1 }
0x1425   :  { %v2788_v42 = vadd.f32 %v8292_v40, %v2787_v41  ;;  %v9019_v30 = vpop.f32.mrb[73].mxu1 }
0x1426   :  { %v2790_v43 = vpop.f32.mrb[74].mxu1 }
0x1427   :  { %v2791_v44 = vadd.f32 %v8292_v40, %v2790_v43  ;;  %v9020_v34 = vpop.f32.mrb[75].mxu1  ;;  %v2794_v45 = vmax.f32 %v2788_v42, 0.0 }
0x1429   :  { %v2795_v46 = vmax.f32 %v2791_v44, 0.0 }
0x142b   :  { %v2807_v48 = vpack.c.bf16 %v2795_v46, %v2794_v45 }
0x142c   :  { %v3063_v50 = vpop.f32.mrb[76].mxu1 }
0x142d   :  { %v3064_v51 = vadd.f32 %v8315_v47, %v3063_v50  ;;  %9030 = vmatmul.mubr.msk.bf16.vlgmr.msra.gmra.mrb[80].mxu0 %vm1489_vm14, %v2807_v48  ;;  %v9039_v49 = vpop.f32.mrb[77].mxu1 }
0x142e   :  { %v3066_v53 = vpop.f32.mrb[78].mxu1  ;;  %9049 = vmatprep.mubr.msk.bf16.mxu0 %vm10124_vm1, %v10123_v15 }
0x142f   :  { %v10923_v55 = vpack.c.bf16 %v3064_v51, %v3064_v51  ;;  %v9040_v56 = vpop.f32.mrb[79].mxu1  ;;  %v3067_v57 = vadd.f32 %v8315_v47, %v3066_v53  ;;  %v190_v53 = vld [vmem:[%s12007_s8 + $0x8] sm:$0xff] }
0x1431   :  { %3184 = vrot.lane.b32.xlu1 %v10923_v55, %s10125_s0  ;;  %3072 = vrot.lane.b32.xlu0 %v10923_v55, %s10126_s4  ;;  %v10937_v58 = vpack.c.bf16 %v3067_v57, %v3067_v57 }
0x1435   :  { %3182 = vrot.lane.b32.xlu1 %v10923_v55, %s10127_s26  ;;  %3294 = vrot.lane.b32.xlu0 %v10923_v55, %s10128_s28 }
0x1439   :  { %3296 = vrot.lane.b32.xlu1 %v10923_v55, %s10129_s1  ;;  %3406 = vrot.lane.b32.xlu0 %v10923_v55, %s10130_s2 }
0x143d   :  { %3408 = vrot.lane.b32.xlu1 %v10923_v55, %s11975_s10  ;;  %3647 = vrot.lane.b32.xlu0 %v10937_v58, %s10125_s0 }
0x1441   :  { %3759 = vrot.lane.b32.xlu0 %v10937_v58, %s10129_s1  ;;  %3535 = vrot.lane.b32.xlu1 %v10937_v58, %s10126_s4 }
0x1445   :  { %3871 = vrot.lane.b32.xlu0 %v10937_v58, %s11975_s10  ;;  %3645 = vrot.lane.b32.xlu1 %v10937_v58, %s10127_s26 }
0x1449   :  { %3757 = vrot.lane.b32.xlu1 %v10937_v58, %s10128_s28 }
0x144d   :  { %3869 = vrot.lane.b32.xlu1 %v10937_v58, %s10130_s2 }
0x1451   :  { %3246 = vrot.lane.b32.xlu1 %v10923_v55, %s11973_s7 }
0x14a3   :  { %v3073_v59 = vpop.permute.xlu0 %3072  ;;  %v3185_v60 = vpop.permute.xlu1 %3184 }
0x14a4   :  { %v3078_v54 = vsel %vm325_vm6, %v3073_v59, 0  ;;  %v3190_v61 = vsel %vm325_vm6, %v3185_v60, 0 }
0x14a5   :  { %9042 = vmatpush3.bf16.xpose.msra.mxu1 %v3078_v54 }
0x14a6   :  { %9053 = vmatprep.subr.bf16.mxu1 %v10123_v15 }
0x14a7   :  { %v3183_v52 = vpop.permute.xlu1 %3182  ;;  %v3295_v1 = vpop.permute.xlu0 %3294 }
0x14ab   :  { %v3297_v62 = vpop.permute.xlu1 %3296  ;;  %v3407_v4 = vpop.permute.xlu0 %3406 }
0x14ac   :  { %9044 = vmatmul.mubr.msk.bf16.vlgmr.msra.gmra.mrb[80].mxu1 %vm325_vm6, %v10923_v55  ;;  %v3302_v63 = vsel %vm325_vm6, %v3297_v62, 0 }
0x14ad   :  { %9054 = vmatpush3.bf16.xpose.msra.mxu1 %v3190_v61  ;;  %9055 = vmatprep.mubr.msk.bf16.mxu1 %vm10124_vm1, %v10123_v15 }
0x14ae   :  { %9065 = vmatprep.subr.bf16.mxu1 %v10123_v15 }
0x14af   :  { %v3409_v0 = vpop.permute.xlu1 %3408  ;;  %v3648_v7 = vpop.permute.xlu0 %3647 }
0x14b0   :  { %v3414_v2 = vsel %vm325_vm6, %v3409_v0, 0  ;;  %v3653_v8 = vsel %vm325_vm6, %v3648_v7, 0 }
0x14b3   :  { %v3536_v3 = vpop.permute.xlu1 %3535  ;;  %v3760_v9 = vpop.permute.xlu0 %3759 }
0x14b4   :  { %9056 = vmatmul.mubr.msk.bf16.vlgmr.msra.gmra.mrb[84].mxu1 %vm325_vm6, %v3183_v52  ;;  %v3541_v5 = vsel %vm325_vm6, %v3536_v3, 0  ;;  %v3765_v12 = vsel %vm325_vm6, %v3760_v9, 0 }
0x14b5   :  { %9066 = vmatpush3.bf16.xpose.msra.mxu1 %v3302_v63  ;;  %9067 = vmatprep.mubr.msk.bf16.mxu1 %vm10124_vm1, %v10123_v15 }
0x14b6   :  { %9077 = vmatprep.subr.bf16.mxu1 %v10123_v15 }
0x14b7   :  { %v3646_v11 = vpop.permute.xlu1 %3645  ;;  %v3872_v13 = vpop.permute.xlu0 %3871 }
0x14b8   :  { %v3877_v33 = vsel %vm325_vm6, %v3872_v13, 0 }
0x14bb   :  { %v3758_v10 = vpop.permute.xlu1 %3757 }
0x14bc   :  { %9068 = vmatmul.mubr.msk.bf16.vlgmr.msra.gmra.mrb[88].mxu1 %vm325_vm6, %v3295_v1 }
0x14bd   :  { %9078 = vmatpush3.bf16.xpose.msra.mxu1 %v3414_v2  ;;  %9079 = vmatprep.mubr.msk.bf16.mxu1 %vm10124_vm1, %v10123_v15 }
0x14be   :  { %9089 = vmatprep.subr.bf16.mxu1 %v10123_v15 }
0x14bf   :  { %v3870_v14 = vpop.permute.xlu1 %3869 }
0x14c4   :  { %9080 = vmatmul.mubr.msk.bf16.vlgmr.msra.gmra.mrb[92].mxu1 %vm325_vm6, %v3407_v4 }
0x14c5   :  { %9090 = vmatpush3.bf16.xpose.msra.mxu1 %v3541_v5  ;;  %9091 = vmatprep.mubr.msk.bf16.mxu1 %vm10124_vm1, %v10123_v15 }
0x14c6   :  { %9101 = vmatprep.subr.bf16.mxu1 %v10123_v15 }
0x14cc   :  { %9092 = vmatmul.mubr.msk.bf16.vlgmr.msra.gmra.mrb[96].mxu1 %vm325_vm6, %v10937_v58 }
0x14cd   :  { %9102 = vmatpush3.bf16.xpose.msra.mxu1 %v3653_v8  ;;  %9103 = vmatprep.mubr.msk.bf16.mxu1 %vm10124_vm1, %v10123_v15 }
0x14ce   :  { %9113 = vmatprep.subr.bf16.mxu1 %v10123_v15 }
0x14d4   :  { %9104 = vmatmul.mubr.msk.bf16.vlgmr.msra.gmra.mrb[100].mxu1 %vm325_vm6, %v3646_v11 }
0x14d5   :  { %9114 = vmatpush3.bf16.xpose.msra.mxu1 %v3765_v12  ;;  %9115 = vmatprep.mubr.msk.bf16.mxu1 %vm10124_vm1, %v10123_v15 }
0x14d6   :  { %9125 = vmatprep.subr.bf16.mxu1 %v10123_v15 }
0x14dc   :  { %9116 = vmatmul.mubr.msk.bf16.vlgmr.msra.gmra.mrb[104].mxu1 %vm325_vm6, %v3758_v10 }
0x14dd   :  { %9126 = vmatpush3.bf16.xpose.msra.mxu1 %v3877_v33  ;;  %9127 = vmatprep.mubr.msk.bf16.mxu1 %vm10124_vm1, %v10123_v15 }
0x14de   :  { %9137 = vmatprep.subr.bf16.mxu1 %v10123_v15 }
0x14e4   :  { %9128 = vmatmul.mubr.msk.bf16.vlgmr.msra.gmra.mrb[108].mxu1 %vm325_vm6, %v3870_v14 }
0x14e5   :  { %9141 = vmatprep.mubr.msk.bf16.mxu1 %vm10124_vm1, %v10123_v15 }
0x1500   :  { %v10999_v16 = vpop.f32.mrb[80].mxu0 }
0x1501   :  { %v9031_v17 = vpop.f32.mrb[81].mxu0 }
0x1502   :  { %v11001_v19 = vpop.f32.mrb[82].mxu0 }
0x1503   :  { %v9032_v18 = vpop.f32.mrb[83].mxu0 }
0x157f   :  { %v3114_v24 = vpop.f32.mrb[80].mxu1 }
0x1580   :  { %v3120_v25 = vmul.f32 0.35355338, %v3114_v24  ;;  %v9045_v27 = vpop.f32.mrb[81].mxu1 }
0x1581   :  { %v3117_v28 = vpop.f32.mrb[82].mxu1 }
0x1582   :  { %v11004_v29 = vadd.f32 %v3120_v25, %v189_v23  ;;  %v9046_v31 = vpop.f32.mrb[83].mxu1  ;;  %v11030_v28 = vpop.permute.xlu1 %3246 }
0x1584   :  { %v3122_v37 = vsel %vm325_vm6, %v11004_v29, -inf }
0x1585   :  { %3123 = vmax.xlane.f32.xlu0 %v3122_v37 }
0x1587   :  { %v3226_v21 = vpop.f32.mrb[84].mxu1 }
0x1588   :  { %v3232_v32 = vmul.f32 0.35355338, %v3226_v21  ;;  %v9057_v36 = vpop.f32.mrb[85].mxu1 }
0x1589   :  { %v3229_v26 = vpop.f32.mrb[86].mxu1 }
0x158a   :  { %v11008_v22 = vadd.f32 %v3232_v32, %v189_v23  ;;  %v9058_v38 = vpop.f32.mrb[87].mxu1 }
0x158c   :  { %v3234_v35 = vsel %vm325_vm6, %v11008_v22, -inf }
0x158d   :  { %3235 = vmax.xlane.f32.xlu1 %v3234_v35 }
0x158f   :  { %v3338_v39 = vpop.f32.mrb[88].mxu1 }
0x1590   :  { %v9069_v40 = vpop.f32.mrb[89].mxu1  ;;  %v3344_v61 = vmul.f32 0.35355338, %v3338_v39 }
0x1591   :  { %v3341_v41 = vpop.f32.mrb[90].mxu1 }
0x1592   :  { %v9070_v42 = vpop.f32.mrb[91].mxu1  ;;  %v3345_v0 = vadd.f32 %v3344_v61, %v189_v23 }
0x1594   :  { %v3346_v9 = vsel %vm325_vm6, %v3345_v0, -inf }
0x1597   :  { %v3450_v30 = vpop.f32.mrb[92].mxu1 }
0x1598   :  { %v9081_v43 = vpop.f32.mrb[93].mxu1  ;;  %v3456_v1 = vmul.f32 0.35355338, %v3450_v30 }
0x1599   :  { %v3453_v44 = vpop.f32.mrb[94].mxu1 }
0x159a   :  { %v9082_v34 = vpop.f32.mrb[95].mxu1  ;;  %v3457_v5 = vadd.f32 %v3456_v1, %v189_v23 }
0x159b   :  { %3134 = vrot.lane.b32.xlu0 %v10923_v55, %s11971_s11 }
0x159c   :  { %v3458_v14 = vsel %vm325_vm6, %v3457_v5, -inf }
0x159f   :  { %v3577_v45 = vpop.f32.mrb[96].mxu1 }
0x15a0   :  { %v9093_v46 = vpop.f32.mrb[97].mxu1  ;;  %v3583_v7 = vmul.f32 0.35355338, %v3577_v45 }
0x15a1   :  { %v3580_v47 = vpop.f32.mrb[98].mxu1 }
0x15a2   :  { %v9094_v48 = vpop.f32.mrb[99].mxu1  ;;  %v3584_v10 = vadd.f32 %v3583_v7, %v190_v53 }
0x15a4   :  { %v3585_v18 = vsel %vm325_vm6, %v3584_v10, -inf }
0x15a7   :  { %v3689_v50 = vpop.f32.mrb[100].mxu1 }
0x15a8   :  { %v3695_v51 = vmul.f32 0.35355338, %v3689_v50  ;;  %v9105_v49 = vpop.f32.mrb[101].mxu1 }
0x15a9   :  { %v3692_v56 = vpop.f32.mrb[102].mxu1 }
0x15aa   :  { %v11015_v57 = vadd.f32 %v3695_v51, %v190_v53  ;;  %v9106_v59 = vpop.f32.mrb[103].mxu1 }
0x15ac   :  { %v3697_v54 = vsel %vm325_vm6, %v11015_v57, -inf }
0x15ad   :  { %3698 = vmax.xlane.f32.xlu1 %v3697_v54 }
0x15af   :  { %v3801_v60 = vpop.f32.mrb[104].mxu1 }
0x15b0   :  { %v9117_v52 = vpop.f32.mrb[105].mxu1  ;;  %v3807_v33 = vmul.f32 0.35355338, %v3801_v60 }
0x15b1   :  { %v3804_v62 = vpop.f32.mrb[106].mxu1 }
0x15b2   :  { %v9118_v63 = vpop.f32.mrb[107].mxu1  ;;  %v3808_v17 = vadd.f32 %v3807_v33, %v190_v53 }
0x15b4   :  { %v3809_v23 = vsel %vm325_vm6, %v3808_v17, -inf }
0x15b7   :  { %v3913_v2 = vpop.f32.mrb[108].mxu1 }
0x15b8   :  { %v3919_v3 = vmul.f32 0.35355338, %v3913_v2  ;;  %v9129_v4 = vpop.f32.mrb[109].mxu1 }
0x15b9   :  { %v3916_v8 = vpop.f32.mrb[110].mxu1 }
0x15ba   :  { %v11020_v11 = vadd.f32 %v3919_v3, %v190_v53  ;;  %3347 = vmax.xlane.f32.xlu0 %v3346_v9  ;;  %v9130_v12 = vpop.f32.mrb[111].mxu1 }
0x15bc   :  { %v3921_v13 = vsel %vm325_vm6, %v11020_v11, -inf }
0x15bd   :  { %3922 = vmax.xlane.f32.xlu1 %v3921_v13 }
0x15be   :  { %3459 = vmax.xlane.f32.xlu0 %v3458_v14 }
0x15c2   :  { %3586 = vmax.xlane.f32.xlu0 %v3585_v18 }
0x15c6   :  { %3810 = vmax.xlane.f32.xlu0 %v3809_v23 }
0x15dc   :  { %3358 = vrot.lane.b32.xlu0 %v10923_v55, %s11969_s15 }
0x1612   :  { %v3124_v24 = vpop.xlane.xlu0 %3123 }
0x1613   :  { %v3125_v25 = vsub.f32 %v11004_v29, %v3124_v24 }
0x1615   :  { %v3126_v27 = vmul.f32 1.442695, %v3125_v25 }
0x1616   :  { %v3135_v31 = vpop.permute.xlu0 %3134 }
0x1617   :  { %9852 = vpow2.f32 %v3126_v27  ;;  %v3140_v37 = vsel %vm391_vm7, %v3135_v31, 0 }
0x1618   :  { %9048 = vmatpush3.bf16.msra.mxu0 %v3140_v37 }
0x1619   :  { %9059 = vmatprep.subr.bf16.mxu0 %v10123_v15 }
0x161a   :  { %v3236_v21 = vpop.xlane.xlu1 %3235 }
0x161b   :  { %v3237_v32 = vsub.f32 %v11008_v22, %v3236_v21 }
0x161d   :  { %v3238_v36 = vmul.f32 1.442695, %v3237_v32 }
0x161f   :  { %9854 = vpow2.f32 %v3238_v36 }
0x1621   :  { %v9853_v26 = vpop.eup %9852 }
0x1622   :  { %v3128_v38 = vsel %vm325_vm6, %v9853_v26, 0.0 }
0x1623   :  { %3129 = vadd.xlane.f32.xlu0 %v3128_v38 }
0x1629   :  { %v11036_v29 = vpop.eup %9854 }
0x162a   :  { %v3240_v35 = vsel %vm325_vm6, %v11036_v29, 0.0 }
0x162b   :  { %3241 = vadd.xlane.f32.xlu1 %v3240_v35 }
0x163a   :  { %v3699_v43 = vpop.xlane.xlu1 %3698 }
0x163b   :  { %v3700_v45 = vsub.f32 %v11015_v57, %v3699_v43 }
0x163c   :  { %3597 = vrot.lane.b32.xlu1 %v10937_v58, %s11971_s11  ;;  %s12023_s11 = sld [smem:[#allocation24_spill]] }
0x163d   :  { %v3701_v48 = vmul.f32 1.442695, %v3700_v45 }
0x1647   :  { %v3348_v39 = vpop.xlane.xlu0 %3347 }
0x1648   :  { %v3349_v40 = vsub.f32 %v3345_v0, %v3348_v39 }
0x164a   :  { %v3350_v41 = vmul.f32 1.442695, %v3349_v40  ;;  %v3923_v61 = vpop.xlane.xlu1 %3922 }
0x164b   :  { %v3460_v42 = vpop.xlane.xlu0 %3459  ;;  %v3924_v62 = vsub.f32 %v11020_v11, %v3923_v61  ;;  %v3252_v11 = vsel %vm391_vm7, %v11030_v28, 0 }
0x164c   :  { %9856 = vpow2.f32 %v3350_v41  ;;  %v3461_v22 = vsub.f32 %v3457_v5, %v3460_v42 }
0x164d   :  { %v3925_v0 = vmul.f32 1.442695, %v3924_v62 }
0x164e   :  { %v3462_v30 = vmul.f32 1.442695, %v3461_v22 }
0x164f   :  { %v3587_v44 = vpop.xlane.xlu0 %3586 }
0x1650   :  { %v3588_v34 = vsub.f32 %v3584_v10, %v3587_v44  ;;  %9858 = vpow2.f32 %v3462_v30 }
0x1652   :  { %v3589_v46 = vmul.f32 1.442695, %v3588_v34 }
0x1653   :  { %v3811_v54 = vpop.xlane.xlu0 %3810 }
0x1654   :  { %9860 = vpow2.f32 %v3589_v46  ;;  %v3812_v60 = vsub.f32 %v3808_v17, %v3811_v54 }
0x1655   :  { %9862 = vpow2.f32 %v3701_v48 }
0x1656   :  { %v9857_v47 = vpop.eup %9856  ;;  %v3813_v52 = vmul.f32 1.442695, %v3812_v60 }
0x1657   :  { %v3352_v50 = vsel %vm325_vm6, %v9857_v47, 0.0  ;;  %v3359_v3 = vpop.permute.xlu0 %3358 }
0x1658   :  { %3353 = vadd.xlane.f32.xlu0 %v3352_v50  ;;  %9864 = vpow2.f32 %v3813_v52  ;;  %v3364_v10 = vsel %vm391_vm7, %v3359_v3, 0 }
0x1659   :  { %9866 = vpow2.f32 %v3925_v0 }
0x165a   :  { %v11044_v51 = vpop.eup %9858 }
0x165b   :  { %v3464_v49 = vsel %vm325_vm6, %v11044_v51, 0.0 }
0x165e   :  { %v11048_v53 = vpop.eup %9860 }
0x165f   :  { %v3591_v56 = vsel %vm325_vm6, %v11048_v53, 0.0  ;;  %v11052_v57 = vpop.eup %9862 }
0x1660   :  { %3465 = vadd.xlane.f32.xlu1 %v3464_v49  ;;  %v3703_v59 = vsel %vm325_vm6, %v11052_v57, 0.0 }
0x1662   :  { %v11061_v63 = vpop.eup %9864 }
0x1663   :  { %v3815_v1 = vsel %vm325_vm6, %v11061_v63, 0.0  ;;  %v11065_v2 = vpop.eup %9866 }
0x1664   :  { %3592 = vadd.xlane.f32.xlu1 %v3591_v56 }
0x1668   :  { %3704 = vadd.xlane.f32.xlu1 %v3703_v59 }
0x166e   :  { %3470 = vrot.lane.b32.xlu0 %v10923_v55, %s11961_s16  ;;  %v3927_v55 = vsel %vm325_vm6, %v11065_v2, 0.0 }
0x1679   :  { %3709 = vrot.lane.b32.xlu1 %v10937_v58, %s11973_s7  ;;  %s12024_s7 = sld [smem:[#allocation26_spill]] }
0x168d   :  { %3816 = vadd.xlane.f32.xlu0 %v3815_v1 }
0x169d   :  { %3928 = vadd.xlane.f32.xlu1 %v3927_v55 }
0x16a3   :  { %3821 = vrot.lane.b32.xlu0 %v10937_v58, %s11969_s15  ;;  %s12022_s15 = sld [smem:[#allocation23_spill]] }
0x16ae   :  { %3933 = vrot.lane.b32.xlu1 %v10937_v58, %s11961_s16  ;;  %s12018_s16 = sld [smem:[#allocation21_spill]] }
0x16b0   :  { %v3130_v4 = vpop.xlane.xlu0 %3129 }
0x16b1   :  { %9868 = vrcp.f32 %v3130_v4 }
0x16b8   :  { %v3242_v5 = vpop.xlane.xlu1 %3241 }
0x16b9   :  { %9870 = vrcp.f32 %v3242_v5 }
0x16bb   :  { %v9869_v7 = vpop.eup %9868 }
0x16bc   :  { %v3132_v8 = vmul.f32 %v9869_v7, %v9853_v26  ;;  %v3598_v14 = vpop.permute.xlu1 %3597 }
0x16bd   :  { %v3603_v26 = vsel %vm391_vm7, %v3598_v14, 0 }
0x16be   :  { %v3133_v9 = vpack.c.bf16 %v3132_v8, %v3132_v8 }
0x16c0   :  { %9050 = vmatmul.mubr.msk.bf16.vlgmr.msra.gmra.mrb[84].mxu0 %vm325_vm6, %v3133_v9 }
0x16c1   :  { %9060 = vmatpush3.bf16.msra.mxu0 %v3252_v11  ;;  %9061 = vmatprep.mubr.msk.bf16.mxu0 %vm10124_vm1, %v10123_v15 }
0x16c2   :  { %9071 = vmatprep.subr.bf16.mxu0 %v10123_v15 }
0x16c3   :  { %v9871_v12 = vpop.eup %9870 }
0x16c4   :  { %v3244_v58 = vmul.f32 %v9871_v12, %v11036_v29 }
0x16c6   :  { %v3245_v13 = vpack.c.bf16 %v3244_v58, %v3244_v58 }
0x16c8   :  { %9062 = vmatmul.mubr.msk.bf16.vlgmr.msra.gmra.mrb[88].mxu0 %vm325_vm6, %v3245_v13 }
0x16c9   :  { %9072 = vmatpush3.bf16.msra.mxu0 %v3364_v10  ;;  %9073 = vmatprep.mubr.msk.bf16.mxu0 %vm10124_vm1, %v10123_v15 }
0x16ca   :  { %9083 = vmatprep.subr.bf16.mxu0 %v10123_v15 }
0x16e5   :  { %v3354_v33 = vpop.xlane.xlu0 %3353 }
0x16e6   :  { %9872 = vrcp.f32 %v3354_v33  ;;  %v9716_v33 = vld [vmem:[%s12008_s14] sm:$0xff]  }
0x16e7   :  { %9138 = vmatpush3.bf16.msra.mxu1 %v9716_v33 }
0x16e8   :  { %9139 = vmatprep.subr.bf16.mxu1 %v10123_v15 }
0x16e9   :  { %v3471_v25 = vpop.permute.xlu0 %3470 }
0x16ea   :  { %v3476_v28 = vsel %vm391_vm7, %v3471_v25, 0  ;;  %v9717_v25 = vld [vmem:[%s12008_s14 + $0x8] sm:$0xff]  }
0x16eb   :  { %9140 = vmatpush3.bf16.msra.mxu1 %v9717_v25 }
0x16ec   :  { %9153 = vmatprep.subr.bf16.mxu1 %v10123_v15 }
0x16ed   :  { %v3466_v17 = vpop.xlane.xlu1 %3465 }
0x16ee   :  { %9874 = vrcp.f32 %v3466_v17 }
0x16f0   :  { %v9873_v18 = vpop.eup %9872 }
0x16f1   :  { %v3593_v23 = vpop.xlane.xlu1 %3592  ;;  %v3356_v24 = vmul.f32 %v9873_v18, %v9857_v47 }
0x16f2   :  { %9876 = vrcp.f32 %v3593_v23 }
0x16f3   :  { %v3357_v27 = vpack.c.bf16 %v3356_v24, %v3356_v24 }
0x16f5   :  { %9074 = vmatmul.mubr.msk.bf16.vlgmr.msra.gmra.mrb[92].mxu0 %vm325_vm6, %v3357_v27  ;;  %v3705_v31 = vpop.xlane.xlu1 %3704 }
0x16f6   :  { %9084 = vmatpush3.bf16.msra.mxu0 %v3476_v28  ;;  %9085 = vmatprep.mubr.msk.bf16.mxu0 %vm10124_vm1, %v10123_v15  ;;  %9878 = vrcp.f32 %v3705_v31 }
0x16f7   :  { %9095 = vmatprep.subr.bf16.mxu0 %v10123_v15 }
0x16f8   :  { %v9875_v37 = vpop.eup %9874 }
0x16f9   :  { %v3468_v21 = vmul.f32 %v9875_v37, %v11044_v51  ;;  %v3710_v29 = vpop.permute.xlu1 %3709 }
0x16fa   :  { %v3715_v40 = vsel %vm391_vm7, %v3710_v29, 0 }
0x16fb   :  { %v3469_v32 = vpack.c.bf16 %v3468_v21, %v3468_v21 }
0x16fc   :  { %v9877_v36 = vpop.eup %9876 }
0x16fd   :  { %9086 = vmatmul.mubr.msk.bf16.vlgmr.msra.gmra.mrb[96].mxu0 %vm325_vm6, %v3469_v32  ;;  %v3595_v38 = vmul.f32 %v9877_v36, %v11048_v53  ;;  %v8305_v32 = vld [vmem:[%s10222_s20 + $0x1] ss:$0 sm:$0xff]  ;;  %s12014_s20 = sld [smem:[#allocation15_spill]] }
0x16fe   :  { %9096 = vmatpush3.bf16.msra.mxu0 %v3603_v26  ;;  %9097 = vmatprep.mubr.msk.bf16.mxu0 %vm10124_vm1, %v10123_v15  ;;  %v2876_v36 = vadd.f32 %v8305_v32, %v10999_v16  ;;  %v2879_v29 = vadd.f32 %v8305_v32, %v11001_v19 }
0x16ff   :  { %9107 = vmatprep.subr.bf16.mxu0 %v10123_v15  ;;  %v3596_v35 = vpack.c.bf16 %v3595_v38, %v3595_v38 }
0x1700   :  { %v9879_v39 = vpop.eup %9878  ;;  %v2882_v26 = vadd.f32 %v2876_v36, %v10853_v6 }
0x1701   :  { %v3707_v41 = vmul.f32 %v9879_v39, %v11052_v57 }
0x1702   :  { %v2886_v38 = vsel %vm195_vm0, %v2882_v26, 0.0 }
0x1703   :  { %v3708_v42 = vpack.c.bf16 %v3707_v41, %v3707_v41 }
0x1705   :  { %9098 = vmatmul.mubr.msk.bf16.vlgmr.msra.gmra.mrb[100].mxu0 %vm325_vm6, %v3596_v35  ;;  %v2883_v35 = vadd.f32 %v2879_v29, %v10857_v20 }
0x1706   :  { %9108 = vmatpush3.bf16.msra.mxu0 %v3715_v40  ;;  %9109 = vmatprep.mubr.msk.bf16.mxu0 %vm10124_vm1, %v10123_v15 }
0x1707   :  { %9119 = vmatprep.subr.bf16.mxu0 %v10123_v15  ;;  %v2889_v39 = vsel %vm195_vm0, %v2883_v35, 0.0 }
0x170d   :  { %9110 = vmatmul.mubr.msk.bf16.vlgmr.msra.gmra.mrb[104].mxu0 %vm325_vm6, %v3708_v42 }
0x170e   :  { %9121 = vmatprep.mubr.msk.bf16.mxu0 %vm10124_vm1, %v10123_v15 }
0x171a   :  { %v3817_v22 = vpop.xlane.xlu0 %3816 }
0x171b   :  { %9880 = vrcp.f32 %v3817_v22 }
0x171e   :  { %v3822_v30 = vpop.permute.xlu0 %3821 }
0x171f   :  { %v3827_v43 = vsel %vm391_vm7, %v3822_v30, 0 }
0x1720   :  { %9120 = vmatpush3.bf16.msra.mxu0 %v3827_v43 }
0x1721   :  { %9131 = vmatprep.subr.bf16.mxu0 %v10123_v15 }
0x1725   :  { %v9881_v44 = vpop.eup %9880 }
0x1726   :  { %v3819_v34 = vmul.f32 %v9881_v44, %v11061_v63 }
0x1728   :  { %v3820_v45 = vpack.c.bf16 %v3819_v34, %v3819_v34 }
0x172a   :  { %9122 = vmatmul.mubr.msk.bf16.vlgmr.msra.gmra.mrb[108].mxu0 %vm325_vm6, %v3820_v45  ;;  %v3929_v46 = vpop.xlane.xlu1 %3928 }
0x172b   :  { %9882 = vrcp.f32 %v3929_v46  ;;  %9133 = vmatprep.mubr.msk.bf16.mxu0 %vm10124_vm1, %v10123_v15 }
0x172e   :  { %v3934_v47 = vpop.permute.xlu1 %3933 }
0x172f   :  { %v3939_v48 = vsel %vm391_vm7, %v3934_v47, 0 }
0x1730   :  { %9132 = vmatpush3.bf16.msra.mxu0 %v3939_v48 }
0x1731   :  { %9145 = vmatprep.subr.bf16.mxu0 %v10123_v15 }
0x1735   :  { %v9883_v50 = vpop.eup %9882 }
0x1736   :  { %v3931_v51 = vmul.f32 %v9883_v50, %v11065_v2 }
0x1738   :  { %v3932_v49 = vpack.c.bf16 %v3931_v51, %v3931_v51 }
0x173a   :  { %9134 = vmatmul.mubr.msk.bf16.vlgmr.msra.gmra.mrb[112].mxu0 %vm325_vm6, %v3932_v49 }
0x173b   :  { %9149 = vmatprep.mubr.msk.bf16.mxu0 %vm10124_vm1, %v10123_v15 }
0x1793   :  { %v3176_v53 = vpop.f32.mrb[84].mxu0 }
0x1794   :  { %v9051_v56 = vpop.f32.mrb[85].mxu0 }
0x1795   :  { %v3179_v57 = vpop.f32.mrb[86].mxu0 }
0x1796   :  { %v9052_v59 = vpop.f32.mrb[87].mxu0 }
0x1797   :  { %v8335_v59 = vld [vmem:[%s12009_s19] ss:$0 sm:$0xff] }
0x179b   :  { %v3288_v54 = vpop.f32.mrb[88].mxu0 }
0x179c   :  { %v9063_v60 = vpop.f32.mrb[89].mxu0 }
0x179d   :  { %v3291_v52 = vpop.f32.mrb[90].mxu0 }
0x179e   :  { %v9064_v61 = vpop.f32.mrb[91].mxu0 }
0x17c8   :  { %v3400_v62 = vpop.f32.mrb[92].mxu0 }
0x17c9   :  { %v9075_v63 = vpop.f32.mrb[93].mxu0 }
0x17ca   :  { %v3403_v0 = vpop.f32.mrb[94].mxu0  ;;  %v10048_v63 = vld [vmem:[%s12002_s5] sm:$0xff] }
0x17cb   :  { %v9076_v1 = vpop.f32.mrb[95].mxu0 }
0x17d0   :  { %v3512_v2 = vpop.f32.mrb[96].mxu0 }
0x17d1   :  { %v9087_v55 = vpop.f32.mrb[97].mxu0 }
0x17d2   :  { %v3515_v3 = vpop.f32.mrb[98].mxu0 }
0x17d3   :  { %v9088_v4 = vpop.f32.mrb[99].mxu0  ;;  %v10049_v3 = vld [vmem:[%s12002_s5 + $0x8] sm:$0xff]  ;;  %s12015_s5 = sld [smem:[#allocation16_spill]] }
0x17d8   :  { %v3639_v5 = vpop.f32.mrb[100].mxu0 }
0x17d9   :  { %v9099_v7 = vpop.f32.mrb[101].mxu0 }
0x17da   :  { %v3642_v8 = vpop.f32.mrb[102].mxu0 }
0x17db   :  { %v9100_v9 = vpop.f32.mrb[103].mxu0 }
0x17e0   :  { %v3751_v11 = vpop.f32.mrb[104].mxu0 }
0x17e1   :  { %v9634_v12 = vpack.i.bf16 %v3751_v11, %v3288_v54  ;;  %v9111_v58 = vpop.f32.mrb[105].mxu0  ;;  %v9718_v11 = vld [vmem:[%s12010_s24] sm:$0xff]  }
0x17e2   :  { %v3754_v13 = vpop.f32.mrb[106].mxu0 }
0x17e3   :  { %9635 = vrot.lane.b32.xlu0 %v9634_v12, %s11963_s18  ;;  %v9112_v10 = vpop.f32.mrb[107].mxu0  ;;  %v9719_v12 = vld [vmem:[%s12010_s24 + $0x8] sm:$0xff]  }
0x17fd   :  { %v3863_v14 = vpop.f32.mrb[108].mxu0 }
0x17fe   :  { %v9639_v17 = vpack.i.bf16 %v3863_v14, %v3400_v62  ;;  %v9123_v18 = vpop.f32.mrb[109].mxu0 }
0x17ff   :  { %v3866_v23 = vpop.f32.mrb[110].mxu0 }
0x1800   :  { %9640 = vrot.lane.b32.xlu1 %v9639_v17, %s11967_s22  ;;  %v9124_v24 = vpop.f32.mrb[111].mxu0 }
0x180d   :  { %v3975_v27 = vpop.f32.mrb[112].mxu0 }
0x180e   :  { %v9644_v28 = vpack.i.bf16 %v3975_v27, %v3512_v2  ;;  %v9135_v31 = vpop.f32.mrb[113].mxu0 }
0x180f   :  { %v3978_v37 = vpop.f32.mrb[114].mxu0 }
0x1810   :  { %9645 = vrot.lane.b32.xlu0 %v9644_v28, %s11965_s23  ;;  %v9136_v21 = vpop.f32.mrb[115].mxu0 }
0x1824   :  { %2887 = vadd.xlane.f32.xlu1 %v2886_v38 }
0x182f   :  { %2890 = vadd.xlane.f32.xlu0 %v2889_v39 }
0x1855   :  { %v9636_v40 = vpop.permute.xlu0 %9635 }
0x1856   :  { %v9638_v42 = vunpack.i.h.bf16 %v9636_v40  ;;  %v9637_v22 = vunpack.i.l.bf16 %v9636_v40 }
0x1858   :  { %v3993_v16 = vsel %vm325_vm6, %v3639_v5, %v9638_v42  ;;  %v3530_v6 = vsel %vm325_vm6, %v3176_v53, %v9637_v22 }
0x1872   :  { %v9641_v41 = vpop.permute.xlu1 %9640 }
0x1873   :  { %v9643_v30 = vunpack.i.h.bf16 %v9641_v41  ;;  %v9642_v43 = vunpack.i.l.bf16 %v9641_v41 }
0x1875   :  { %v3994_v19 = vsel %vm784_vm8, %v3993_v16, %v9643_v30  ;;  %v3531_v20 = vsel %vm784_vm8, %v3530_v6, %v9642_v43 }
0x1882   :  { %v9646_v44 = vpop.permute.xlu0 %9645 }
0x1883   :  { %v9648_v34 = vunpack.i.h.bf16 %v9646_v44  ;;  %v9647_v45 = vunpack.i.l.bf16 %v9646_v44  ;;  %v8311_v44 = vld [vmem:[%s12011_s30] ss:$0 sm:$0xff]  ;;  %s12016_s30 = sld [smem:[#allocation20_spill]] }
0x1885   :  { %v3532_v46 = vsel %vm786_vm9, %v3531_v20, %v9647_v45  ;;  %v3995_v47 = vsel %vm786_vm9, %v3994_v19, %v9648_v34  ;;  %v8312_v45 = vld [vmem:[%s12012_s6] ss:$0 sm:$0xff]  ;;  %s12017_s6 = sld [smem:[#allocation18_spill]] }
0x1886   :  { %v4001_v48 = vpack.c.bf16 %v3995_v47, %v3532_v46 }
0x1888   :  { %9142 = vmatmul.mubr.msk.bf16.vlgmr.msra.gmra.mrb[112].mxu1 %vm195_vm0, %v4001_v48  ;;  %v9720_v48 = vld [vmem:[%s12013_s12] sm:$0xff]  }
0x1889   :  { %9157 = vmatprep.mubr.msk.bf16.mxu1 %vm10124_vm1, %v10123_v15  ;;  %9154 = vmatpush3.bf16.msra.mxu1 %v9718_v11 }
0x188a   :  { %9155 = vmatprep.subr.bf16.mxu1 %v10123_v15  ;;  %9146 = vmatpush3.bf16.msra.mxu0 %v9720_v48 }
0x188b   :  { %9147 = vmatprep.subr.bf16.mxu0 %v10123_v15 }
0x188d   :  { %9156 = vmatpush3.bf16.msra.mxu1 %v9719_v12 }
0x188e   :  { %9167 = vmatprep.subr.bf16.mxu1 %v10123_v15 }
0x18b1   :  { %v2888_v50 = vpop.xlane.xlu1 %2887 }
0x18b2   :  { %v2892_v51 = vmul.f32 0.03125, %v2888_v50  ;;  %v9721_v50 = vld [vmem:[%s12013_s12 + $0x8] sm:$0xff]  }
0x18b3   :  { %9148 = vmatpush3.bf16.msra.mxu0 %v9721_v50 }
0x18b4   :  { %v11141_v49 = vsub.f32 %v2882_v26, %v2892_v51  ;;  %9161 = vmatprep.subr.bf16.mxu0 %v10123_v15 }
0x18b6   :  { %v2896_v53 = vmul.f32 %v11141_v49, %v11141_v49 }
0x18b8   :  { %v2898_v56 = vsel %vm195_vm0, %v2896_v53, 0.0 }
0x18b9   :  { %2899 = vadd.xlane.f32.xlu1 %v2898_v56 }
0x18bc   :  { %v2891_v57 = vpop.xlane.xlu0 %2890 }
0x18bd   :  { %v2893_v60 = vmul.f32 0.03125, %v2891_v57 }
0x18bf   :  { %v2895_v55 = vsub.f32 %v2883_v35, %v2893_v60 }
0x18c1   :  { %v2897_v8 = vmul.f32 %v2895_v55, %v2895_v55 }
0x18c3   :  { %v2901_v9 = vsel %vm195_vm0, %v2897_v8, 0.0  ;;  %v8339_v8 = vld [vmem:[%s12014_s20] ss:$0 sm:$0xff] }
0x1946   :  { %v2900_v58 = vpop.xlane.xlu1 %2899 }
0x1947   :  { %v2904_v13 = vmul.f32 0.03125, %v2900_v58  ;;  %v8340_v58 = vld [vmem:[%s12015_s5] ss:$0 sm:$0xff] }
0x1949   :  { %v2906_v10 = vadd.f32 1e-06, %v2904_v13 }
0x194b   :  { %9884 = vrsqrt.f32 %v2906_v10  ;;  %vm2910_vm4 = vcmp.eq.f32.partialorder %v2906_v10, inf  ;;  %v2913_v29 = vand.u32 2147483648, %v2906_v10  ;;  %vm2912_vm5 = vcmp.eq.f32.partialorder %v2906_v10, 0.0 }
0x1955   :  { %v9885_v31 = vpop.eup %9884 }
0x1956   :  { %v2909_v26 = vmul.f32 %v9885_v31, %v2906_v10 }
0x1958   :  { %v2911_v38 = vsel %vm2910_vm4, %v2906_v10, %v2909_v26 }
0x1959   :  { %v2914_v35 = vsel %vm2912_vm5, %v2913_v29, %v2911_v38 }
0x195b   :  { %v4057_v54 = vpop.f32.mrb[112].mxu1 }
0x195c   :  { %v4058_v52 = vadd.f32 %v8335_v59, %v4057_v54  ;;  %v9143_v61 = vpop.f32.mrb[113].mxu1 }
0x195d   :  { %v4060_v62 = vpop.f32.mrb[114].mxu1 }
0x195e   :  { %v11148_v0 = vadd.f32 %v10048_v63, %v4058_v52  ;;  %v4061_v1 = vadd.f32 %v8335_v59, %v4060_v62  ;;  %v9144_v2 = vpop.f32.mrb[115].mxu1 }
0x1960   :  { %v11151_v4 = vadd.f32 %v10049_v3, %v4061_v1  ;;  %v4068_v5 = vsel %vm195_vm0, %v11148_v0, 0.0 }
0x1961   :  { %4069 = vadd.xlane.f32.xlu0 %v4068_v5 }
0x1962   :  { %v4071_v7 = vsel %vm195_vm0, %v11151_v4, 0.0 }
0x1965   :  { %4072 = vadd.xlane.f32.xlu0 %v4071_v7 }
0x1969   :  { %2902 = vadd.xlane.f32.xlu0 %v2901_v9 }
0x19ee   :  { %v4070_v33 = vpop.xlane.xlu0 %4069 }
0x19ef   :  { %v4074_v14 = vmul.f32 0.03125, %v4070_v33 }
0x19f1   :  { %v11163_v17 = vsub.f32 %v11148_v0, %v4074_v14 }
0x19f2   :  { %v4073_v18 = vpop.xlane.xlu0 %4072 }
0x19f3   :  { %v4075_v23 = vmul.f32 0.03125, %v4073_v18  ;;  %v4078_v24 = vmul.f32 %v11163_v17, %v11163_v17  ;;  %v8345_v18 = vld [vmem:[%s12016_s30] ss:$0 sm:$0xff] }
0x19f5   :  { %v11168_v25 = vsub.f32 %v11151_v4, %v4075_v23  ;;  %v4080_v27 = vsel %vm195_vm0, %v4078_v24, 0.0 }
0x19f6   :  { %4081 = vadd.xlane.f32.xlu1 %v4080_v27  ;;  %v2903_v28 = vpop.xlane.xlu0 %2902 }
0x19f7   :  { %v2905_v37 = vmul.f32 0.03125, %v2903_v28  ;;  %v4079_v21 = vmul.f32 %v11168_v25, %v11168_v25 }
0x19f9   :  { %v2907_v32 = vadd.f32 1e-06, %v2905_v37  ;;  %v4083_v36 = vsel %vm195_vm0, %v4079_v21, 0.0  ;;  %v8341_v21 = vld [vmem:[%s12017_s6] ss:$0 sm:$0xff] }
0x19fa   :  { %4084 = vadd.xlane.f32.xlu0 %v4083_v36 }
0x19fb   :  { %9886 = vrsqrt.f32 %v2907_v32  ;;  %vm2917_vm10 = vcmp.eq.f32.partialorder %v2907_v32, inf  ;;  %v2920_v41 = vand.u32 2147483648, %v2907_v32  ;;  %vm2919_vm11 = vcmp.eq.f32.partialorder %v2907_v32, 0.0 }
0x19fc   :  { %9888 = vrcp.f32 %v2914_v35 }
0x1a05   :  { %v9887_v39 = vpop.eup %9886 }
0x1a06   :  { %v2916_v40 = vmul.f32 %v9887_v39, %v2907_v32  ;;  %v9889_v30 = vpop.eup %9888 }
0x1a07   :  { %v2923_v43 = vmul.f32 %v9889_v30, %v11141_v49 }
0x1a08   :  { %v2918_v42 = vsel %vm2917_vm10, %v2907_v32, %v2916_v40 }
0x1a09   :  { %v2921_v22 = vsel %vm2919_vm11, %v2920_v41, %v2918_v42  ;;  %v2932_v34 = vmul.f32 %v8311_v44, %v2923_v43 }
0x1a0a   :  { %9890 = vrcp.f32 %v2921_v22 }
0x1a0b   :  { %v2940_v20 = vadd.f32 %v8312_v45, %v2932_v34 }
0x1a14   :  { %v9891_v16 = vpop.eup %9890 }
0x1a15   :  { %v2925_v6 = vmul.f32 %v9891_v16, %v2895_v55 }
0x1a17   :  { %v2933_v19 = vmul.f32 %v8311_v44, %v2925_v6 }
0x1a19   :  { %v2941_v46 = vadd.f32 %v8312_v45, %v2933_v19 }
0x1a1b   :  { %v11177_v47 = vpack.c.bf16 %v2941_v46, %v2940_v20 }
0x1a1d   :  { %9158 = vmatmul.mubr.msk.bf16.vlgmr.msra.gmra.mrb[116].mxu1 %vm195_vm0, %v11177_v47 }
0x1a1e   :  { %9169 = vmatprep.mubr.msk.bf16.mxu1 %vm10124_vm1, %v10123_v15 }
0x1a83   :  { %v4082_v51 = vpop.xlane.xlu1 %4081 }
0x1a84   :  { %v4086_v49 = vmul.f32 0.03125, %v4082_v51 }
0x1a86   :  { %v4088_v53 = vadd.f32 1e-06, %v4086_v49 }
0x1a87   :  { %v4085_v56 = vpop.xlane.xlu0 %4084 }
0x1a88   :  { %9892 = vrsqrt.f32 %v4088_v53  ;;  %v4087_v57 = vmul.f32 0.03125, %v4085_v56  ;;  %vm4092_vm12 = vcmp.eq.f32.partialorder %v4088_v53, inf  ;;  %v4095_v52 = vand.u32 2147483648, %v4088_v53 }
0x1a89   :  { %vm4094_vm13 = vcmp.eq.f32.partialorder %v4088_v53, 0.0 }
0x1a8a   :  { %v4089_v59 = vadd.f32 1e-06, %v4087_v57 }
0x1a8c   :  { %9894 = vrsqrt.f32 %v4089_v59  ;;  %vm4099_vm15 = vcmp.eq.f32.partialorder %v4089_v59, inf  ;;  %v4102_v2 = vand.u32 2147483648, %v4089_v59  ;;  %vm4101_vm2 = vcmp.eq.f32.partialorder %v4089_v59, 0.0 }
0x1a92   :  { %v9893_v54 = vpop.eup %9892 }
0x1a93   :  { %v4091_v60 = vmul.f32 %v9893_v54, %v4088_v53 }
0x1a95   :  { %v4093_v61 = vsel %vm4092_vm12, %v4088_v53, %v4091_v60 }
0x1a96   :  { %v4096_v62 = vsel %vm4094_vm13, %v4095_v52, %v4093_v61  ;;  %v9895_v63 = vpop.eup %9894  ;;  %v10050_v61 = vld [vmem:[%s10157_s13] sm:$0xff] }
0x1a97   :  { %9896 = vrcp.f32 %v4096_v62  ;;  %v4098_v1 = vmul.f32 %v9895_v63, %v4089_v59 }
0x1a99   :  { %v4100_v55 = vsel %vm4099_vm15, %v4089_v59, %v4098_v1 }
0x1a9a   :  { %v4103_v3 = vsel %vm4101_vm2, %v4102_v2, %v4100_v55 }
0x1a9b   :  { %9898 = vrcp.f32 %v4103_v3 }
0x1aa1   :  { %v9897_v5 = vpop.eup %9896 }
0x1aa2   :  { %v4105_v7 = vmul.f32 %v9897_v5, %v11163_v17 }
0x1aa4   :  { %v4114_v12 = vmul.f32 %v8339_v8, %v4105_v7 }
0x1aa5   :  { %v9899_v9 = vpop.eup %9898 }
0x1aa6   :  { %v4107_v11 = vmul.f32 %v9899_v9, %v11168_v25  ;;  %v4122_v10 = vadd.f32 %v8340_v58, %v4114_v12 }
0x1aa8   :  { %v4115_v13 = vmul.f32 %v8339_v8, %v4107_v11 }
0x1aaa   :  { %v4123_v33 = vadd.f32 %v8340_v58, %v4115_v13 }
0x1aac   :  { %v4129_v14 = vpack.c.bf16 %v4123_v33, %v4122_v10 }
0x1aae   :  { %9150 = vmatmul.mubr.msk.bf16.vlgmr.msra.gmra.mrb[116].mxu0 %vm195_vm0, %v4129_v14 }
0x1aaf   :  { %9163 = vmatprep.mubr.msk.bf16.mxu0 %vm10124_vm1, %v10123_v15 }
0x1af0   :  { %v4253_v23 = vpop.f32.mrb[116].mxu1 }
0x1af1   :  { %v4254_v24 = vadd.f32 %v8345_v18, %v4253_v23  ;;  %v9159_v17 = vpop.f32.mrb[117].mxu1 }
0x1af2   :  { %v4256_v27 = vpop.f32.mrb[118].mxu1 }
0x1af3   :  { %v11195_v28 = vpack.c.bf16 %v4254_v24, %v4254_v24  ;;  %v4257_v25 = vadd.f32 %v8345_v18, %v4256_v27  ;;  %v9160_v31 = vpop.f32.mrb[119].mxu1 }
0x1af5   :  { %4374 = vrot.lane.b32.xlu1 %v11195_v28, %s10127_s26  ;;  %v4266_v37 = vsel %vm325_vm6, %v11195_v28, 0  ;;  %v11215_v42 = vpack.c.bf16 %v4257_v25, %v4257_v25 }
0x1af6   :  { %9162 = vmatpush3.bf16.xpose.msra.mxu0 %v4266_v37 }
0x1af7   :  { %9173 = vmatprep.subr.bf16.mxu0 %v10123_v15  ;;  %v4729_v19 = vsel %vm325_vm6, %v11215_v42, 0 }
0x1af9   :  { %4486 = vrot.lane.b32.xlu1 %v11195_v28, %s10128_s28 }
0x1b67   :  { %v4375_v29 = vpop.permute.xlu1 %4374 }
0x1b68   :  { %v4380_v40 = vsel %vm325_vm6, %v4375_v29, 0 }
0x1b6b   :  { %v4487_v30 = vpop.permute.xlu1 %4486 }
0x1b6c   :  { %v4492_v16 = vsel %vm325_vm6, %v4487_v30, 0 }
0x1b81   :  { %v4185_v32 = vpop.f32.mrb[116].mxu0 }
0x1b82   :  { %v4186_v36 = vadd.f32 %v8341_v21, %v4185_v32  ;;  %v9151_v26 = vpop.f32.mrb[117].mxu0 }
0x1b83   :  { %v4188_v38 = vpop.f32.mrb[118].mxu0  ;;  %v10051_v26 = vld [vmem:[%s10157_s13 + $0x8] sm:$0xff] }
0x1b84   :  { %v4260_v35 = vpack.c.bf16 %v4186_v36, %v4186_v36  ;;  %v9152_v39 = vpop.f32.mrb[119].mxu0  ;;  %v4189_v41 = vadd.f32 %v8341_v21, %v4188_v38 }
0x1b86   :  { %4372 = vrot.lane.b32.xlu0 %v4260_v35, %s10127_s26  ;;  %4484 = vrot.lane.b32.xlu1 %v4260_v35, %s10128_s28  ;;  %v4723_v22 = vpack.c.bf16 %v4189_v41, %v4189_v41 }
0x1b87   :  { %9164 = vmatmul.mubr.msk.bf16.vlgmr.msra.gmra.mrb[120].mxu0 %vm325_vm6, %v4260_v35 }
0x1b88   :  { %9174 = vmatpush3.bf16.xpose.msra.mxu0 %v4380_v40  ;;  %9175 = vmatprep.mubr.msk.bf16.mxu0 %vm10124_vm1, %v10123_v15 }
0x1b89   :  { %9185 = vmatprep.subr.bf16.mxu0 %v10123_v15 }
0x1b8a   :  { %4596 = vrot.lane.b32.xlu0 %v4260_v35, %s10130_s2  ;;  %4598 = vrot.lane.b32.xlu1 %v11195_v28, %s10130_s2 }
0x1b8e   :  { %4835 = vrot.lane.b32.xlu0 %v4723_v22, %s10127_s26  ;;  %4837 = vrot.lane.b32.xlu1 %v11215_v42, %s10127_s26 }
0x1b92   :  { %4947 = vrot.lane.b32.xlu0 %v4723_v22, %s10128_s28  ;;  %4949 = vrot.lane.b32.xlu1 %v11215_v42, %s10128_s28 }
0x1b96   :  { %5059 = vrot.lane.b32.xlu0 %v4723_v22, %s10130_s2  ;;  %5061 = vrot.lane.b32.xlu1 %v11215_v42, %s10130_s2 }
0x1bf8   :  { %v4373_v43 = vpop.permute.xlu0 %4372  ;;  %v4485_v44 = vpop.permute.xlu1 %4484 }
0x1bf9   :  { %9176 = vmatmul.mubr.msk.bf16.vlgmr.msra.gmra.mrb[124].mxu0 %vm325_vm6, %v4373_v43 }
0x1bfa   :  { %9186 = vmatpush3.bf16.xpose.msra.mxu0 %v4492_v16  ;;  %9187 = vmatprep.mubr.msk.bf16.mxu0 %vm10124_vm1, %v10123_v15 }
0x1bfb   :  { %9197 = vmatprep.subr.bf16.mxu0 %v10123_v15 }
0x1bfc   :  { %v4599_v6 = vpop.permute.xlu1 %4598  ;;  %v4597_v45 = vpop.permute.xlu0 %4596 }
0x1bfd   :  { %v4604_v34 = vsel %vm325_vm6, %v4599_v6, 0 }
0x1c00   :  { %v4838_v20 = vpop.permute.xlu1 %4837  ;;  %v4836_v50 = vpop.permute.xlu0 %4835 }
0x1c01   :  { %9188 = vmatmul.mubr.msk.bf16.vlgmr.msra.gmra.mrb[128].mxu0 %vm325_vm6, %v4485_v44  ;;  %v4843_v46 = vsel %vm325_vm6, %v4838_v20, 0 }
0x1c02   :  { %9198 = vmatpush3.bf16.xpose.msra.mxu0 %v4604_v34  ;;  %9199 = vmatprep.mubr.msk.bf16.mxu0 %vm10124_vm1, %v10123_v15 }
0x1c03   :  { %9209 = vmatprep.subr.bf16.mxu0 %v10123_v15 }
0x1c04   :  { %v4950_v48 = vpop.permute.xlu1 %4949  ;;  %v4948_v53 = vpop.permute.xlu0 %4947 }
0x1c05   :  { %v4955_v51 = vsel %vm325_vm6, %v4950_v48, 0 }
0x1c08   :  { %v5062_v49 = vpop.permute.xlu1 %5061  ;;  %v5060_v57 = vpop.permute.xlu0 %5059 }
0x1c09   :  { %9200 = vmatmul.mubr.msk.bf16.vlgmr.msra.gmra.mrb[132].mxu0 %vm325_vm6, %v4597_v45  ;;  %v5067_v56 = vsel %vm325_vm6, %v5062_v49, 0 }
0x1c0a   :  { %9210 = vmatpush3.bf16.xpose.msra.mxu0 %v4729_v19  ;;  %9211 = vmatprep.mubr.msk.bf16.mxu0 %vm10124_vm1, %v10123_v15 }
0x1c0b   :  { %9221 = vmatprep.subr.bf16.mxu0 %v10123_v15 }
0x1c11   :  { %9212 = vmatmul.mubr.msk.bf16.vlgmr.msra.gmra.mrb[136].mxu0 %vm325_vm6, %v4723_v22 }
0x1c12   :  { %9222 = vmatpush3.bf16.xpose.msra.mxu0 %v4843_v46  ;;  %9223 = vmatprep.mubr.msk.bf16.mxu0 %vm10124_vm1, %v10123_v15 }
0x1c13   :  { %9233 = vmatprep.subr.bf16.mxu0 %v10123_v15 }
0x1c19   :  { %9224 = vmatmul.mubr.msk.bf16.vlgmr.msra.gmra.mrb[140].mxu0 %vm325_vm6, %v4836_v50 }
0x1c1a   :  { %9234 = vmatpush3.bf16.xpose.msra.mxu0 %v4955_v51  ;;  %9235 = vmatprep.mubr.msk.bf16.mxu0 %vm10124_vm1, %v10123_v15 }
0x1c1b   :  { %9245 = vmatprep.subr.bf16.mxu0 %v10123_v15 }
0x1c21   :  { %9236 = vmatmul.mubr.msk.bf16.vlgmr.msra.gmra.mrb[144].mxu0 %vm325_vm6, %v4948_v53 }
0x1c22   :  { %9246 = vmatpush3.bf16.xpose.msra.mxu0 %v5067_v56  ;;  %9247 = vmatprep.mubr.msk.bf16.mxu0 %vm10124_vm1, %v10123_v15 }
0x1c23   :  { %9257 = vmatprep.subr.bf16.mxu0 %v10123_v15 }
0x1c29   :  { %9248 = vmatmul.mubr.msk.bf16.vlgmr.msra.gmra.mrb[148].mxu0 %vm325_vm6, %v5060_v57 }
0x1c2a   :  { %9261 = vmatprep.mubr.msk.bf16.mxu0 %vm10124_vm1, %v10123_v15 }
0x1c5a   :  { %v4302_v59 = vpop.f32.mrb[120].mxu0 }
0x1c5b   :  { %v4308_v54 = vmul.f32 0.35355338, %v4302_v59  ;;  %v9165_v60 = vpop.f32.mrb[121].mxu0 }
0x1c5c   :  { %v4305_v52 = vpop.f32.mrb[122].mxu0 }
0x1c5d   :  { %v4309_v62 = vadd.f32 %v10050_v61, %v4308_v54  ;;  %v9166_v63 = vpop.f32.mrb[123].mxu0 }
0x1c5f   :  { %v4310_v1 = vsel %vm325_vm6, %v4309_v62, -inf }
0x1c60   :  { %4311 = vmax.xlane.f32.xlu1 %v4310_v1 }
0x1ccc   :  { %v4416_v2 = vpop.f32.mrb[124].mxu0 }
0x1ccd   :  { %v4422_v55 = vmul.f32 0.35355338, %v4416_v2  ;;  %v9177_v3 = vpop.f32.mrb[125].mxu0 }
0x1cce   :  { %v4419_v5 = vpop.f32.mrb[126].mxu0 }
0x1ccf   :  { %v11262_v7 = vadd.f32 %v10050_v61, %v4422_v55  ;;  %v9178_v8 = vpop.f32.mrb[127].mxu0 }
0x1cd1   :  { %v4424_v9 = vsel %vm325_vm6, %v11262_v7, -inf }
0x1cd2   :  { %4425 = vmax.xlane.f32.xlu0 %v4424_v9 }
0x1cd4   :  { %v4528_v11 = vpop.f32.mrb[128].mxu0 }
0x1cd5   :  { %v4534_v12 = vmul.f32 0.35355338, %v4528_v11  ;;  %v9189_v58 = vpop.f32.mrb[129].mxu0 }
0x1cd6   :  { %v4531_v13 = vpop.f32.mrb[130].mxu0 }
0x1cd7   :  { %v4535_v10 = vadd.f32 %v10050_v61, %v4534_v12  ;;  %v9190_v33 = vpop.f32.mrb[131].mxu0 }
0x1cd9   :  { %v4536_v14 = vsel %vm325_vm6, %v4535_v10, -inf }
0x1cda   :  { %4537 = vmax.xlane.f32.xlu0 %v4536_v14 }
0x1cdc   :  { %v4640_v18 = vpop.f32.mrb[132].mxu0 }
0x1cdd   :  { %v4646_v23 = vmul.f32 0.35355338, %v4640_v18  ;;  %v9201_v24 = vpop.f32.mrb[133].mxu0 }
0x1cde   :  { %v4643_v17 = vpop.f32.mrb[134].mxu0 }
0x1cdf   :  { %v11267_v27 = vadd.f32 %v10050_v61, %v4646_v23  ;;  %v9202_v25 = vpop.f32.mrb[135].mxu0 }
0x1ce1   :  { %v4648_v31 = vsel %vm325_vm6, %v11267_v27, -inf }
0x1ce2   :  { %4649 = vmax.xlane.f32.xlu0 %v4648_v31 }
0x1ce4   :  { %v4765_v37 = vpop.f32.mrb[136].mxu0 }
0x1ce5   :  { %v4771_v21 = vmul.f32 0.35355338, %v4765_v37  ;;  %v9213_v32 = vpop.f32.mrb[137].mxu0 }
0x1ce6   :  { %v4768_v36 = vpop.f32.mrb[138].mxu0 }
0x1ce7   :  { %v11272_v38 = vadd.f32 %v10051_v26, %v4771_v21  ;;  %v9214_v29 = vpop.f32.mrb[139].mxu0 }
0x1ce9   :  { %v4773_v35 = vsel %vm325_vm6, %v11272_v38, -inf }
0x1cea   :  { %4774 = vmax.xlane.f32.xlu1 %v4773_v35 }
0x1cec   :  { %v4879_v39 = vpop.f32.mrb[140].mxu0 }
0x1ced   :  { %v4885_v40 = vmul.f32 0.35355338, %v4879_v39  ;;  %v9225_v41 = vpop.f32.mrb[141].mxu0  ;;  %v4312_v53 = vpop.xlane.xlu1 %4311 }
0x1cee   :  { %v4882_v22 = vpop.f32.mrb[142].mxu0  ;;  %v4313_v56 = vsub.f32 %v4309_v62, %v4312_v53 }
0x1cef   :  { %v4886_v30 = vadd.f32 %v10051_v26, %v4885_v40  ;;  %v9226_v43 = vpop.f32.mrb[143].mxu0 }
0x1cf0   :  { %v4314_v57 = vmul.f32 1.442695, %v4313_v56 }
0x1cf1   :  { %v4887_v44 = vsel %vm325_vm6, %v4886_v30, -inf }
0x1cf2   :  { %4888 = vmax.xlane.f32.xlu0 %v4887_v44  ;;  %9900 = vpow2.f32 %v4314_v57 }
0x1cf4   :  { %v4991_v16 = vpop.f32.mrb[144].mxu0 }
0x1cf5   :  { %v4997_v6 = vmul.f32 0.35355338, %v4991_v16  ;;  %v9237_v34 = vpop.f32.mrb[145].mxu0 }
0x1cf6   :  { %v4994_v45 = vpop.f32.mrb[146].mxu0 }
0x1cf7   :  { %v4998_v19 = vadd.f32 %v10051_v26, %v4997_v6  ;;  %v9238_v20 = vpop.f32.mrb[147].mxu0 }
0x1cf9   :  { %v4999_v46 = vsel %vm325_vm6, %v4998_v19, -inf }
0x1cfa   :  { %5000 = vmax.xlane.f32.xlu1 %v4999_v46 }
0x1cfc   :  { %v5103_v48 = vpop.f32.mrb[148].mxu0  ;;  %v11283_v52 = vpop.eup %9900 }
0x1cfd   :  { %v9249_v50 = vpop.f32.mrb[149].mxu0  ;;  %v5109_v59 = vmul.f32 0.35355338, %v5103_v48  ;;  %v4316_v61 = vsel %vm325_vm6, %v11283_v52, 0.0 }
0x1cfe   :  { %v5106_v51 = vpop.f32.mrb[150].mxu0 }
0x1cff   :  { %v9250_v49 = vpop.f32.mrb[151].mxu0  ;;  %v5110_v54 = vadd.f32 %v10051_v26, %v5109_v59 }
0x1d01   :  { %v5111_v60 = vsel %vm325_vm6, %v5110_v54, -inf }
0x1d08   :  { %4436 = vrot.lane.b32.xlu0 %v11195_v28, %s10125_s0 }
0x1d0b   :  { %4323 = vrot.lane.b32.xlu1 %v11195_v28, %s10126_s4 }
0x1d27   :  { %5112 = vmax.xlane.f32.xlu0 %v5111_v60 }
0x1d2f   :  { %4317 = vadd.xlane.f32.xlu1 %v4316_v61 }
0x1d5f   :  { %v4426_v63 = vpop.xlane.xlu0 %4425 }
0x1d60   :  { %v4427_v1 = vsub.f32 %v11262_v7, %v4426_v63 }
0x1d62   :  { %v4428_v2 = vmul.f32 1.442695, %v4427_v1 }
0x1d64   :  { %9902 = vpow2.f32 %v4428_v2 }
0x1d67   :  { %v4538_v55 = vpop.xlane.xlu0 %4537 }
0x1d68   :  { %v4539_v62 = vsub.f32 %v4535_v10, %v4538_v55 }
0x1d6a   :  { %v4540_v3 = vmul.f32 1.442695, %v4539_v62 }
0x1d6c   :  { %9904 = vpow2.f32 %v4540_v3 }
0x1d6e   :  { %v11288_v5 = vpop.eup %9902 }
0x1d6f   :  { %v4430_v8 = vsel %vm325_vm6, %v11288_v5, 0.0  ;;  %v4650_v13 = vpop.xlane.xlu0 %4649 }
0x1d70   :  { %4431 = vadd.xlane.f32.xlu0 %v4430_v8  ;;  %v4651_v33 = vsub.f32 %v11267_v27, %v4650_v13 }
0x1d72   :  { %v4652_v14 = vmul.f32 1.442695, %v4651_v33 }
0x1d74   :  { %9906 = vpow2.f32 %v4652_v14 }
0x1d76   :  { %v11292_v9 = vpop.eup %9904 }
0x1d77   :  { %v4542_v11 = vsel %vm325_vm6, %v11292_v9, 0.0  ;;  %v4775_v12 = vpop.xlane.xlu1 %4774 }
0x1d78   :  { %4543 = vadd.xlane.f32.xlu1 %v4542_v11  ;;  %v4776_v18 = vsub.f32 %v11272_v38, %v4775_v12 }
0x1d7a   :  { %v4777_v17 = vmul.f32 1.442695, %v4776_v18 }
0x1d7c   :  { %9908 = vpow2.f32 %v4777_v17 }
0x1d7e   :  { %v9907_v37 = vpop.eup %9906 }
0x1d7f   :  { %v4889_v23 = vpop.xlane.xlu0 %4888  ;;  %v4654_v21 = vsel %vm325_vm6, %v9907_v37, 0.0 }
0x1d80   :  { %v4890_v24 = vsub.f32 %v4886_v30, %v4889_v23 }
0x1d82   :  { %v4891_v31 = vmul.f32 1.442695, %v4890_v24 }
0x1d83   :  { %v4437_v35 = vpop.permute.xlu0 %4436 }
0x1d84   :  { %9910 = vpow2.f32 %v4891_v31  ;;  %v4442_v34 = vsel %vm391_vm7, %v4437_v35, 0 }
0x1d86   :  { %4548 = vrot.lane.b32.xlu0 %v11195_v28, %s10129_s1  ;;  %v11305_v32 = vpop.eup %9908 }
0x1d87   :  { %v5001_v7 = vpop.xlane.xlu1 %5000  ;;  %v4779_v36 = vsel %vm325_vm6, %v11305_v32, 0.0 }
0x1d88   :  { %v5002_v25 = vsub.f32 %v4998_v19, %v5001_v7 }
0x1d89   :  { %4660 = vrot.lane.b32.xlu1 %v11195_v28, %s11975_s10 }
0x1d8a   :  { %v5003_v28 = vmul.f32 1.442695, %v5002_v25 }
0x1d8b   :  { %v4324_v58 = vpop.permute.xlu1 %4323 }
0x1d8c   :  { %v4329_v10 = vsel %vm391_vm7, %v4324_v58, 0  ;;  %9912 = vpow2.f32 %v5003_v28 }
0x1d8d   :  { %9168 = vmatpush3.bf16.msra.mxu1 %v4329_v10 }
0x1d8e   :  { %9179 = vmatprep.subr.bf16.mxu1 %v10123_v15  ;;  %v11307_v27 = vpop.eup %9910 }
0x1d8f   :  { %v4893_v38 = vsel %vm325_vm6, %v11307_v27, 0.0 }
0x1d96   :  { %v11311_v26 = vpop.eup %9912 }
0x1d97   :  { %v5005_v29 = vsel %vm325_vm6, %v11311_v26, 0.0 }
0x1da5   :  { %4655 = vadd.xlane.f32.xlu0 %v4654_v21 }
0x1da9   :  { %4780 = vadd.xlane.f32.xlu0 %v4779_v36 }
0x1dad   :  { %4894 = vadd.xlane.f32.xlu1 %v4893_v38  ;;  %5006 = vadd.xlane.f32.xlu0 %v5005_v29 }
0x1db4   :  { %v5113_v39 = vpop.xlane.xlu0 %5112 }
0x1db5   :  { %v5114_v40 = vsub.f32 %v5110_v54, %v5113_v39 }
0x1db7   :  { %v5115_v41 = vmul.f32 1.442695, %v5114_v40 }
0x1db9   :  { %9914 = vpow2.f32 %v5115_v41 }
0x1dbc   :  { %v4318_v22 = vpop.xlane.xlu1 %4317 }
0x1dbd   :  { %9916 = vrcp.f32 %v4318_v22 }
0x1dbe   :  { %4899 = vrot.lane.b32.xlu1 %v11215_v42, %s10125_s0 }
0x1dc2   :  { %5011 = vrot.lane.b32.xlu1 %v11215_v42, %s10129_s1 }
0x1dc3   :  { %v11321_v30 = vpop.eup %9914 }
0x1dc4   :  { %v5117_v43 = vsel %vm325_vm6, %v11321_v30, 0.0 }
0x1dc5   :  { %5118 = vadd.xlane.f32.xlu0 %v5117_v43 }
0x1dc6   :  { %5123 = vrot.lane.b32.xlu1 %v11215_v42, %s11975_s10  ;;  %s12025_s10 = sld [smem:[#allocation28_spill]] }
0x1dc7   :  { %v9917_v44 = vpop.eup %9916 }
0x1dc8   :  { %v4320_v16 = vmul.f32 %v9917_v44, %v11283_v52 }
0x1dca   :  { %v4321_v6 = vpack.c.bf16 %v4320_v16, %v4320_v16 }
0x1dcc   :  { %9170 = vmatmul.mubr.msk.bf16.vlgmr.msra.gmra.mrb[120].mxu1 %vm325_vm6, %v4321_v6 }
0x1dcd   :  { %9180 = vmatpush3.bf16.msra.mxu1 %v4442_v34  ;;  %9181 = vmatprep.mubr.msk.bf16.mxu1 %vm10124_vm1, %v10123_v15 }
0x1dce   :  { %9191 = vmatprep.subr.bf16.mxu1 %v10123_v15 }
0x1ddb   :  { %4786 = vrot.lane.b32.xlu0 %v11215_v42, %s10126_s4 }
0x1dfd   :  { %v4432_v45 = vpop.xlane.xlu0 %4431 }
0x1dfe   :  { %9918 = vrcp.f32 %v4432_v45 }
0x1e01   :  { %v4549_v48 = vpop.permute.xlu0 %4548 }
0x1e02   :  { %v4554_v51 = vsel %vm391_vm7, %v4549_v48, 0 }
0x1e05   :  { %v4544_v19 = vpop.xlane.xlu1 %4543 }
0x1e06   :  { %9920 = vrcp.f32 %v4544_v19  ;;  %v9722_v19 = vld [vmem:[%s12018_s16] sm:$0xff]  }
0x1e07   :  { %9258 = vmatpush3.bf16.msra.mxu0 %v9722_v19 }
0x1e08   :  { %v9919_v20 = vpop.eup %9918  ;;  %9259 = vmatprep.subr.bf16.mxu0 %v10123_v15 }
0x1e09   :  { %v4434_v46 = vmul.f32 %v9919_v20, %v11288_v5  ;;  %v4661_v53 = vpop.permute.xlu1 %4660 }
0x1e0a   :  { %v4666_v57 = vsel %vm391_vm7, %v4661_v53, 0 }
0x1e0b   :  { %v4435_v50 = vpack.c.bf16 %v4434_v46, %v4434_v46 }
0x1e0d   :  { %9182 = vmatmul.mubr.msk.bf16.vlgmr.msra.gmra.mrb[124].mxu1 %vm325_vm6, %v4435_v50 }
0x1e0e   :  { %9192 = vmatpush3.bf16.msra.mxu1 %v4554_v51  ;;  %9193 = vmatprep.mubr.msk.bf16.mxu1 %vm10124_vm1, %v10123_v15 }
0x1e0f   :  { %9203 = vmatprep.subr.bf16.mxu1 %v10123_v15 }
0x1e10   :  { %v9921_v42 = vpop.eup %9920 }
0x1e11   :  { %v4546_v49 = vmul.f32 %v9921_v42, %v11292_v9  ;;  %v9723_v42 = vld [vmem:[%s12018_s16 + $0x8] sm:$0xff]  }
0x1e12   :  { %9260 = vmatpush3.bf16.msra.mxu0 %v9723_v42 }
0x1e13   :  { %v4547_v56 = vpack.c.bf16 %v4546_v49, %v4546_v49  ;;  %9273 = vmatprep.subr.bf16.mxu0 %v10123_v15 }
0x1e15   :  { %9194 = vmatmul.mubr.msk.bf16.vlgmr.msra.gmra.mrb[128].mxu1 %vm325_vm6, %v4547_v56 }
0x1e16   :  { %9204 = vmatpush3.bf16.msra.mxu1 %v4666_v57  ;;  %9205 = vmatprep.mubr.msk.bf16.mxu1 %vm10124_vm1, %v10123_v15 }
0x1e17   :  { %9215 = vmatprep.subr.bf16.mxu1 %v10123_v15 }
0x1e32   :  { %v4656_v59 = vpop.xlane.xlu0 %4655 }
0x1e33   :  { %9922 = vrcp.f32 %v4656_v59 }
0x1e36   :  { %v4781_v61 = vpop.xlane.xlu0 %4780 }
0x1e37   :  { %9924 = vrcp.f32 %v4781_v61 }
0x1e3a   :  { %v4895_v63 = vpop.xlane.xlu1 %4894  ;;  %v5007_v1 = vpop.xlane.xlu0 %5006 }
0x1e3b   :  { %9926 = vrcp.f32 %v4895_v63 }
0x1e3c   :  { %9928 = vrcp.f32 %v5007_v1 }
0x1e3d   :  { %v9923_v54 = vpop.eup %9922 }
0x1e3e   :  { %v4658_v60 = vmul.f32 %v9923_v54, %v9907_v37  ;;  %v4900_v8 = vpop.permute.xlu1 %4899 }
0x1e3f   :  { %v4905_v12 = vsel %vm391_vm7, %v4900_v8, 0 }
0x1e40   :  { %v4659_v52 = vpack.c.bf16 %v4658_v60, %v4658_v60 }
0x1e41   :  { %v9925_v2 = vpop.eup %9924 }
0x1e42   :  { %9206 = vmatmul.mubr.msk.bf16.vlgmr.msra.gmra.mrb[132].mxu1 %vm325_vm6, %v4659_v52  ;;  %v4783_v62 = vmul.f32 %v9925_v2, %v11305_v32  ;;  %v5012_v58 = vpop.permute.xlu1 %5011 }
0x1e43   :  { %9217 = vmatprep.mubr.msk.bf16.mxu1 %vm10124_vm1, %v10123_v15  ;;  %v5017_v33 = vsel %vm391_vm7, %v5012_v58, 0 }
0x1e44   :  { %v4784_v9 = vpack.c.bf16 %v4783_v62, %v4783_v62 }
0x1e45   :  { %v9927_v11 = vpop.eup %9926 }
0x1e46   :  { %v4897_v7 = vmul.f32 %v9927_v11, %v11307_v27  ;;  %v9929_v10 = vpop.eup %9928  ;;  %v5124_v18 = vpop.permute.xlu1 %5123 }
0x1e47   :  { %v5009_v14 = vmul.f32 %v9929_v10, %v11311_v26  ;;  %v5129_v17 = vsel %vm391_vm7, %v5124_v18, 0 }
0x1e48   :  { %v4898_v13 = vpack.c.bf16 %v4897_v7, %v4897_v7 }
0x1e49   :  { %v5010_v23 = vpack.c.bf16 %v5009_v14, %v5009_v14 }
0x1e52   :  { %v5119_v55 = vpop.xlane.xlu0 %5118 }
0x1e53   :  { %9930 = vrcp.f32 %v5119_v55 }
0x1e56   :  { %v4787_v3 = vpop.permute.xlu0 %4786 }
0x1e57   :  { %v4792_v5 = vsel %vm391_vm7, %v4787_v3, 0 }
0x1e58   :  { %9216 = vmatpush3.bf16.msra.mxu1 %v4792_v5 }
0x1e59   :  { %9227 = vmatprep.subr.bf16.mxu1 %v10123_v15 }
0x1e5b   :  { %9218 = vmatmul.mubr.msk.bf16.vlgmr.msra.gmra.mrb[136].mxu1 %vm325_vm6, %v4784_v9 }
0x1e5c   :  { %9228 = vmatpush3.bf16.msra.mxu1 %v4905_v12  ;;  %9229 = vmatprep.mubr.msk.bf16.mxu1 %vm10124_vm1, %v10123_v15 }
0x1e5d   :  { %9239 = vmatprep.subr.bf16.mxu1 %v10123_v15  ;;  %v9931_v24 = vpop.eup %9930 }
0x1e5e   :  { %v5121_v25 = vmul.f32 %v9931_v24, %v11321_v30 }
0x1e60   :  { %v5122_v31 = vpack.c.bf16 %v5121_v25, %v5121_v25 }
0x1e63   :  { %9230 = vmatmul.mubr.msk.bf16.vlgmr.msra.gmra.mrb[140].mxu1 %vm325_vm6, %v4898_v13 }
0x1e64   :  { %9240 = vmatpush3.bf16.msra.mxu1 %v5017_v33  ;;  %9241 = vmatprep.mubr.msk.bf16.mxu1 %vm10124_vm1, %v10123_v15 }
0x1e65   :  { %9251 = vmatprep.subr.bf16.mxu1 %v10123_v15 }
0x1e6b   :  { %9242 = vmatmul.mubr.msk.bf16.vlgmr.msra.gmra.mrb[144].mxu1 %vm325_vm6, %v5010_v23 }
0x1e6c   :  { %9252 = vmatpush3.bf16.msra.mxu1 %v5129_v17  ;;  %9253 = vmatprep.mubr.msk.bf16.mxu1 %vm10124_vm1, %v10123_v15 }
0x1e6d   :  { %9265 = vmatprep.subr.bf16.mxu1 %v10123_v15 }
0x1e73   :  { %9254 = vmatmul.mubr.msk.bf16.vlgmr.msra.gmra.mrb[148].mxu1 %vm325_vm6, %v5122_v31 }
0x1e74   :  { %9269 = vmatprep.mubr.msk.bf16.mxu1 %vm10124_vm1, %v10123_v15 }
0x1e9f   :  { %v4365_v28 = vpop.f32.mrb[120].mxu1 }
0x1ea0   :  { %v9171_v37 = vpop.f32.mrb[121].mxu1 }
0x1ea1   :  { %v4368_v21 = vpop.f32.mrb[122].mxu1 }
0x1ea2   :  { %v9172_v32 = vpop.f32.mrb[123].mxu1 }
0x1ee0   :  { %v4478_v27 = vpop.f32.mrb[124].mxu1 }
0x1ee1   :  { %v9183_v36 = vpop.f32.mrb[125].mxu1 }
0x1ee2   :  { %v4481_v26 = vpop.f32.mrb[126].mxu1 }
0x1ee3   :  { %v9184_v38 = vpop.f32.mrb[127].mxu1 }
0x1ee8   :  { %v4590_v29 = vpop.f32.mrb[128].mxu1 }
0x1ee9   :  { %v9195_v35 = vpop.f32.mrb[129].mxu1 }
0x1eea   :  { %v4593_v39 = vpop.f32.mrb[130].mxu1 }
0x1eeb   :  { %v9196_v40 = vpop.f32.mrb[131].mxu1 }
0x1f15   :  { %v4702_v41 = vpop.f32.mrb[132].mxu1 }
0x1f16   :  { %v9207_v22 = vpop.f32.mrb[133].mxu1 }
0x1f17   :  { %v4705_v30 = vpop.f32.mrb[134].mxu1 }
0x1f18   :  { %v9208_v43 = vpop.f32.mrb[135].mxu1 }
0x1f2e   :  { %v4828_v44 = vpop.f32.mrb[136].mxu1 }
0x1f2f   :  { %v9219_v16 = vpop.f32.mrb[137].mxu1 }
0x1f30   :  { %v4831_v6 = vpop.f32.mrb[138].mxu1 }
0x1f31   :  { %v9220_v34 = vpop.f32.mrb[139].mxu1 }
0x1f36   :  { %v4941_v45 = vpop.f32.mrb[140].mxu1 }
0x1f37   :  { %v9649_v20 = vpack.i.bf16 %v4941_v45, %v4478_v27  ;;  %v9231_v46 = vpop.f32.mrb[141].mxu1 }
0x1f38   :  { %v4944_v48 = vpop.f32.mrb[142].mxu1 }
0x1f39   :  { %9650 = vrot.lane.b32.xlu1 %v9649_v20, %s11963_s18  ;;  %v9232_v50 = vpop.f32.mrb[143].mxu1  ;;  %s12019_s18 = sld [smem:[#allocation22_spill]] }
0x1f3e   :  { %v5053_v51 = vpop.f32.mrb[144].mxu1 }
0x1f3f   :  { %v9654_v49 = vpack.i.bf16 %v5053_v51, %v4590_v29  ;;  %v9243_v53 = vpop.f32.mrb[145].mxu1  ;;  %v8365_v14 = vld [vmem:[%s12019_s18] ss:$0 sm:$0xff] }
0x1f40   :  { %v5056_v56 = vpop.f32.mrb[146].mxu1 }
0x1f41   :  { %9655 = vrot.lane.b32.xlu1 %v9654_v49, %s11967_s22  ;;  %v9244_v57 = vpop.f32.mrb[147].mxu1  ;;  %s12021_s22 = sld [smem:[#allocation27_spill]] }
0x1f46   :  { %v5165_v59 = vpop.f32.mrb[148].mxu1 }
0x1f47   :  { %v9659_v54 = vpack.i.bf16 %v5165_v59, %v4702_v41  ;;  %v9255_v60 = vpop.f32.mrb[149].mxu1  ;;  %v9726_v30 = vld [vmem:[%s12021_s22] sm:$0xff]   ;;  %v9727_v43 = vld [vmem:[%s12021_s22 + $0x8] sm:$0xff]  }
0x1f48   :  { %v5168_v52 = vpop.f32.mrb[150].mxu1  ;;  %v8369_v60 = vld [vmem:[%s12022_s15] ss:$0 sm:$0xff] }
0x1f49   :  { %9660 = vrot.lane.b32.xlu1 %v9659_v54, %s11965_s23  ;;  %v9256_v61 = vpop.f32.mrb[151].mxu1  ;;  %s12020_s23 = sld [smem:[#allocation25_spill]] }
0x1f4f   :  { %v9724_v41 = vld [vmem:[%s12020_s23] sm:$0xff]   ;;  %v9725_v22 = vld [vmem:[%s12020_s23 + $0x8] sm:$0xff]  }
0x1f50   :  { %9266 = vmatpush3.bf16.msra.mxu1 %v9724_v41 }
0x1f51   :  { %9267 = vmatprep.subr.bf16.mxu1 %v10123_v15 }
0x1f54   :  { %9268 = vmatpush3.bf16.msra.mxu1 %v9725_v22 }
0x1f55   :  { %9285 = vmatprep.subr.bf16.mxu1 %v10123_v15 }
0x1fab   :  { %v9651_v63 = vpop.permute.xlu1 %9650 }
0x1fac   :  { %v9653_v2 = vunpack.i.h.bf16 %v9651_v63  ;;  %v9652_v55 = vunpack.i.l.bf16 %v9651_v63 }
0x1fae   :  { %v5183_v8 = vsel %vm325_vm6, %v4828_v44, %v9653_v2  ;;  %v4720_v9 = vsel %vm325_vm6, %v4365_v28, %v9652_v55 }
0x1fb3   :  { %v9656_v1 = vpop.permute.xlu1 %9655 }
0x1fb4   :  { %v9658_v62 = vunpack.i.h.bf16 %v9656_v1  ;;  %v9657_v3 = vunpack.i.l.bf16 %v9656_v1  ;;  %v8370_v1 = vld [vmem:[%s12023_s11] ss:$0 sm:$0xff] }
0x1fb6   :  { %v5184_v7 = vsel %vm784_vm8, %v5183_v8, %v9658_v62  ;;  %v4721_v58 = vsel %vm784_vm8, %v4720_v9, %v9657_v3  ;;  %v9729_v8 = vld [vmem:[%s12021_s22 + $0x18] sm:$0xff]   ;;  %v8371_v9 = vld [vmem:[%s12024_s7] ss:$0 sm:$0xff] }
0x1fbb   :  { %v9661_v5 = vpop.permute.xlu1 %9660 }
0x1fbc   :  { %v9663_v11 = vunpack.i.h.bf16 %v9661_v5  ;;  %v9662_v12 = vunpack.i.l.bf16 %v9661_v5  ;;  %v9728_v5 = vld [vmem:[%s12021_s22 + $0x10] sm:$0xff]  }
0x1fbe   :  { %v5185_v13 = vsel %vm786_vm9, %v5184_v7, %v9663_v11  ;;  %v4722_v10 = vsel %vm786_vm9, %v4721_v58, %v9662_v12 }
0x1fbf   :  { %v5191_v33 = vpack.c.bf16 %v5185_v13, %v4722_v10 }
0x1fc1   :  { %9262 = vmatmul.mubr.msk.bf16.vlgmr.msra.gmra.mrb[152].mxu0 %vm195_vm0, %v5191_v33 }
0x1fc2   :  { %9281 = vmatprep.mubr.msk.bf16.mxu0 %vm10124_vm1, %v10123_v15  ;;  %9274 = vmatpush3.bf16.msra.mxu0 %v9726_v30  ;;  %v9730_v30 = vld [vmem:[%s12003_s21 + $0x10] sm:$0xff]  }
0x1fc3   :  { %9275 = vmatprep.subr.bf16.mxu0 %v10123_v15 }
0x1fc6   :  { %9276 = vmatpush3.bf16.msra.mxu0 %v9727_v43  ;;  %v9731_v43 = vld [vmem:[%s12003_s21 + $0x18] sm:$0xff]   ;;  %s12026_s21 = smov 72  }
0x1fc7   :  { %9277 = vmatprep.subr.bf16.mxu0 %v10123_v15 }
0x1fca   :  { %9278 = vmatpush3.bf16.msra.mxu0 %v9728_v5  ;;  %v8390_v5 = vld [vmem:[%s12006_s3 + $0x1] ss:$0 sm:$0xff]  ;;  %s12029_s3 = smov 48  }
0x1fcb   :  { %9279 = vmatprep.subr.bf16.mxu0 %v10123_v15 }
0x1fce   :  { %9280 = vmatpush3.bf16.msra.mxu0 %v9729_v8 }
0x1fcf   :  { %9299 = vmatprep.subr.bf16.mxu0 %v10123_v15 }
0x2094   :  { %v5247_v18 = vpop.f32.mrb[152].mxu0 }
0x2095   :  { %v5248_v23 = vadd.f32 %v8365_v14, %v5247_v18  ;;  %v9263_v24 = vpop.f32.mrb[153].mxu0 }
0x2096   :  { %v5250_v17 = vpop.f32.mrb[154].mxu0 }
0x2097   :  { %v11392_v25 = vadd.f32 %v5248_v23, %v11148_v0  ;;  %v5251_v31 = vadd.f32 %v8365_v14, %v5250_v17  ;;  %v9264_v28 = vpop.f32.mrb[155].mxu0  ;;  %v8375_v23 = vld [vmem:[%s12025_s10] ss:$0 sm:$0xff] }
0x2099   :  { %v11395_v37 = vadd.f32 %v5251_v31, %v11151_v4  ;;  %v5258_v21 = vsel %vm195_vm0, %v11392_v25, 0.0 }
0x209a   :  { %5259 = vadd.xlane.f32.xlu0 %v5258_v21 }
0x209b   :  { %v5261_v32 = vsel %vm195_vm0, %v11395_v37, 0.0 }
0x209c   :  { %5262 = vadd.xlane.f32.xlu1 %v5261_v32 }
0x2127   :  { %v5260_v27 = vpop.xlane.xlu0 %5259 }
0x2128   :  { %v5264_v36 = vmul.f32 0.03125, %v5260_v27 }
0x2129   :  { %v5263_v26 = vpop.xlane.xlu1 %5262 }
0x212a   :  { %v5266_v0 = vsub.f32 %v11392_v25, %v5264_v36  ;;  %v5265_v38 = vmul.f32 0.03125, %v5263_v26 }
0x212c   :  { %v5267_v4 = vsub.f32 %v11395_v37, %v5265_v38  ;;  %v5268_v29 = vmul.f32 %v5266_v0, %v5266_v0 }
0x212e   :  { %v5270_v35 = vsel %vm195_vm0, %v5268_v29, 0.0  ;;  %v5269_v39 = vmul.f32 %v5267_v4, %v5267_v4 }
0x212f   :  { %5271 = vadd.xlane.f32.xlu0 %v5270_v35 }
0x2130   :  { %v5273_v40 = vsel %vm195_vm0, %v5269_v39, 0.0 }
0x2133   :  { %5274 = vadd.xlane.f32.xlu0 %v5273_v40 }
0x21bc   :  { %v5272_v44 = vpop.xlane.xlu0 %5271 }
0x21bd   :  { %v5276_v16 = vmul.f32 0.03125, %v5272_v44 }
0x21bf   :  { %v5278_v6 = vadd.f32 1e-06, %v5276_v16 }
0x21c0   :  { %v5275_v34 = vpop.xlane.xlu0 %5274 }
0x21c1   :  { %9932 = vrsqrt.f32 %v5278_v6  ;;  %v5277_v45 = vmul.f32 0.03125, %v5275_v34  ;;  %vm5282_vm3 = vcmp.eq.f32.partialorder %v5278_v6, inf  ;;  %v5285_v48 = vand.u32 2147483648, %v5278_v6 }
0x21c2   :  { %vm5284_vm4 = vcmp.eq.f32.partialorder %v5278_v6, 0.0 }
0x21c3   :  { %v5279_v19 = vadd.f32 1e-06, %v5277_v45 }
0x21c5   :  { %9934 = vrsqrt.f32 %v5279_v19  ;;  %vm5289_vm5 = vcmp.eq.f32.partialorder %v5279_v19, inf  ;;  %v5292_v53 = vand.u32 2147483648, %v5279_v19  ;;  %vm5291_vm10 = vcmp.eq.f32.partialorder %v5279_v19, 0.0 }
0x21cb   :  { %v9933_v20 = vpop.eup %9932 }
0x21cc   :  { %v5281_v46 = vmul.f32 %v9933_v20, %v5278_v6 }
0x21ce   :  { %v5283_v50 = vsel %vm5282_vm3, %v5278_v6, %v5281_v46 }
0x21cf   :  { %v5286_v51 = vsel %vm5284_vm4, %v5285_v48, %v5283_v50  ;;  %v9935_v42 = vpop.eup %9934 }
0x21d0   :  { %9936 = vrcp.f32 %v5286_v51  ;;  %v5288_v49 = vmul.f32 %v9935_v42, %v5279_v19 }
0x21d2   :  { %v5290_v56 = vsel %vm5289_vm5, %v5279_v19, %v5288_v49 }
0x21d3   :  { %v5293_v57 = vsel %vm5291_vm10, %v5292_v53, %v5290_v56 }
0x21d4   :  { %9938 = vrcp.f32 %v5293_v57 }
0x21da   :  { %v9937_v59 = vpop.eup %9936 }
0x21db   :  { %v5295_v54 = vmul.f32 %v9937_v59, %v5266_v0 }
0x21dd   :  { %v5304_v63 = vmul.f32 %v8369_v60, %v5295_v54  ;;  %v8383_v54 = vld [vmem:[%s12004_s25 + $0x1] ss:$0 sm:$0xff]  ;;  %s12027_s25 = smov 56  }
0x21de   :  { %v9939_v52 = vpop.eup %9938 }
0x21df   :  { %v5297_v61 = vmul.f32 %v9939_v52, %v5267_v4  ;;  %v5312_v55 = vadd.f32 %v8370_v1, %v5304_v63 }
0x21e1   :  { %v5305_v2 = vmul.f32 %v8369_v60, %v5297_v61 }
0x21e3   :  { %v5313_v62 = vadd.f32 %v8370_v1, %v5305_v2  ;;  %v8384_v1 = vld [vmem:[%s12005_s29 + $0x1] ss:$0 sm:$0xff]  ;;  %s12028_s29 = smov 64  }
0x21e5   :  { %v5319_v3 = vpack.c.bf16 %v5313_v62, %v5312_v55 }
0x21e7   :  { %9270 = vmatmul.mubr.msk.bf16.vlgmr.msra.gmra.mrb[152].mxu1 %vm195_vm0, %v5319_v3 }
0x21e8   :  { %9289 = vmatprep.mubr.msk.bf16.mxu1 %vm10124_vm1, %v10123_v15  ;;  %9286 = vmatpush3.bf16.msra.mxu1 %v9730_v30 }
0x21e9   :  { %9287 = vmatprep.subr.bf16.mxu1 %v10123_v15 }
0x21ec   :  { %9288 = vmatpush3.bf16.msra.mxu1 %v9731_v43 }
0x21ed   :  { %9293 = vmatprep.subr.bf16.mxu1 %v10123_v15 }
0x22ba   :  { %v5375_v11 = vpop.f32.mrb[152].mxu1 }
0x22bb   :  { %v5376_v12 = vadd.f32 %v8371_v9, %v5375_v11  ;;  %v9271_v7 = vpop.f32.mrb[153].mxu1 }
0x22bc   :  { %v5378_v58 = vpop.f32.mrb[154].mxu1 }
0x22bd   :  { %v5379_v13 = vadd.f32 %v8371_v9, %v5378_v58  ;;  %v9272_v10 = vpop.f32.mrb[155].mxu1  ;;  %v5382_v33 = vmax.f32 %v5376_v12, 0.0 }
0x22bf   :  { %v5383_v14 = vmax.f32 %v5379_v13, 0.0 }
0x22c1   :  { %v5393_v18 = vpack.c.bf16 %v5383_v14, %v5382_v33 }
0x22c3   :  { %9282 = vmatmul.mubr.msk.bf16.vlgmr.msra.gmra.mrb[156].mxu0 %vm1489_vm14, %v5393_v18 }
0x22c4   :  { %9301 = vmatprep.mubr.msk.bf16.mxu0 %vm10124_vm1, %v10123_v15 }
0x2396   :  { %v5461_v24 = vpop.f32.mrb[156].mxu0 }
0x2397   :  { %v5462_v17 = vadd.f32 %v8375_v23, %v5461_v24  ;;  %v9283_v31 = vpop.f32.mrb[157].mxu0 }
0x2398   :  { %v5464_v28 = vpop.f32.mrb[158].mxu0 }
0x2399   :  { %v11428_v21 = vadd.f32 %v5462_v17, %v11392_v25  ;;  %v5465_v32 = vadd.f32 %v8375_v23, %v5464_v28  ;;  %v9284_v27 = vpop.f32.mrb[159].mxu0 }
0x239b   :  { %v11431_v36 = vadd.f32 %v5465_v32, %v11395_v37  ;;  %v5474_v26 = vsel %vm195_vm0, %v11428_v21, 0.0 }
0x239c   :  { %5475 = vadd.xlane.f32.xlu0 %v5474_v26 }
0x239d   :  { %v5477_v0 = vsel %vm195_vm0, %v11431_v36, 0.0 }
0x239e   :  { %5478 = vadd.xlane.f32.xlu1 %v5477_v0 }
0x2429   :  { %v5476_v38 = vpop.xlane.xlu0 %5475 }
0x242a   :  { %v5480_v4 = vmul.f32 0.03125, %v5476_v38 }
0x242b   :  { %v5479_v29 = vpop.xlane.xlu1 %5478 }
0x242c   :  { %v5482_v25 = vsub.f32 %v11428_v21, %v5480_v4  ;;  %v5481_v35 = vmul.f32 0.03125, %v5479_v29 }
0x242e   :  { %v5483_v39 = vsub.f32 %v11431_v36, %v5481_v35  ;;  %v5484_v37 = vmul.f32 %v5482_v25, %v5482_v25 }
0x2430   :  { %v5486_v40 = vsel %vm195_vm0, %v5484_v37, 0.0  ;;  %v5485_v41 = vmul.f32 %v5483_v39, %v5483_v39 }
0x2431   :  { %5487 = vadd.xlane.f32.xlu0 %v5486_v40 }
0x2432   :  { %v5489_v22 = vsel %vm195_vm0, %v5485_v41, 0.0 }
0x2433   :  { %5490 = vadd.xlane.f32.xlu1 %v5489_v22 }
0x24be   :  { %v5488_v44 = vpop.xlane.xlu0 %5487 }
0x24bf   :  { %v5492_v16 = vmul.f32 0.03125, %v5488_v44 }
0x24c0   :  { %v5491_v6 = vpop.xlane.xlu1 %5490 }
0x24c1   :  { %v5494_v34 = vadd.f32 1e-06, %v5492_v16  ;;  %v5493_v45 = vmul.f32 0.03125, %v5491_v6  ;;  %v10052_v6 = vld [vmem:[%s12007_s8] sm:$0xff] }
0x24c3   :  { %9940 = vrsqrt.f32 %v5494_v34  ;;  %v5495_v19 = vadd.f32 1e-06, %v5493_v45  ;;  %vm5498_vm11 = vcmp.eq.f32.partialorder %v5494_v34, inf  ;;  %v5501_v48 = vand.u32 2147483648, %v5494_v34 }
0x24c4   :  { %vm5500_vm12 = vcmp.eq.f32.partialorder %v5494_v34, 0.0 }
0x24c5   :  { %9942 = vrsqrt.f32 %v5495_v19  ;;  %vm5505_vm13 = vcmp.eq.f32.partialorder %v5495_v19, inf  ;;  %v5508_v53 = vand.u32 2147483648, %v5495_v19  ;;  %vm5507_vm15 = vcmp.eq.f32.partialorder %v5495_v19, 0.0 }
0x24cd   :  { %v9941_v20 = vpop.eup %9940 }
0x24ce   :  { %v5497_v46 = vmul.f32 %v9941_v20, %v5494_v34 }
0x24cf   :  { %v9943_v50 = vpop.eup %9942 }
0x24d0   :  { %v5499_v51 = vsel %vm5498_vm11, %v5494_v34, %v5497_v46  ;;  %v5504_v49 = vmul.f32 %v9943_v50, %v5495_v19 }
0x24d1   :  { %v5502_v42 = vsel %vm5500_vm12, %v5501_v48, %v5499_v51 }
0x24d2   :  { %9944 = vrcp.f32 %v5502_v42  ;;  %v5506_v56 = vsel %vm5505_vm13, %v5495_v19, %v5504_v49 }
0x24d3   :  { %v5509_v57 = vsel %vm5507_vm15, %v5508_v53, %v5506_v56 }
0x24d4   :  { %9946 = vrcp.f32 %v5509_v57 }
0x24dc   :  { %v9945_v59 = vpop.eup %9944 }
0x24dd   :  { %v5511_v60 = vmul.f32 %v9945_v59, %v5482_v25 }
0x24de   :  { %v9947_v52 = vpop.eup %9946 }
0x24df   :  { %v5513_v61 = vmul.f32 %v9947_v52, %v5483_v39  ;;  %v5520_v63 = vmul.f32 %v8383_v54, %v5511_v60 }
0x24e1   :  { %v5521_v2 = vmul.f32 %v8383_v54, %v5513_v61  ;;  %v5528_v55 = vadd.f32 %v8384_v1, %v5520_v63 }
0x24e3   :  { %v5529_v62 = vadd.f32 %v8384_v1, %v5521_v2 }
0x24e5   :  { %v5537_v3 = vpack.c.bf16 %v5529_v62, %v5528_v55 }
0x24e7   :  { %9290 = vmatmul.mubr.msk.bf16.vlgmr.msra.gmra.mrb[156].mxu1 %vm195_vm0, %v5537_v3 }
0x24e8   :  { %9295 = vmatprep.mubr.msk.bf16.mxu1 %vm10124_vm1, %v10123_v15 }
0x25ba   :  { %v5593_v8 = vpop.f32.mrb[156].mxu1 }
0x25bb   :  { %v5594_v9 = vadd.f32 %v8390_v5, %v5593_v8  ;;  %v9291_v11 = vpop.f32.mrb[157].mxu1 }
0x25bc   :  { %v5596_v12 = vpop.f32.mrb[158].mxu1 }
0x25bd   :  { %v11451_v7 = vpack.c.bf16 %v5594_v9, %v5594_v9  ;;  %v9292_v58 = vpop.f32.mrb[159].mxu1  ;;  %v5597_v13 = vadd.f32 %v8390_v5, %v5596_v12  ;;  %v10053_v9 = vld [vmem:[%s12007_s8 + $0x8] sm:$0xff]  ;;  %s12030_s8 = smov 40  }
0x25bf   :  { %5714 = vrot.lane.b32.xlu1 %v11451_v7, %s10125_s0  ;;  %5602 = vrot.lane.b32.xlu0 %v11451_v7, %s10126_s4  ;;  %v11465_v10 = vpack.c.bf16 %v5597_v13, %v5597_v13 }
0x25c3   :  { %5712 = vrot.lane.b32.xlu1 %v11451_v7, %s10127_s26  ;;  %5824 = vrot.lane.b32.xlu0 %v11451_v7, %s10128_s28 }
0x25c7   :  { %5826 = vrot.lane.b32.xlu1 %v11451_v7, %s10129_s1  ;;  %5936 = vrot.lane.b32.xlu0 %v11451_v7, %s10130_s2 }
0x25cb   :  { %5938 = vrot.lane.b32.xlu1 %v11451_v7, %s12026_s21  ;;  %6177 = vrot.lane.b32.xlu0 %v11465_v10, %s10125_s0 }
0x25cf   :  { %6289 = vrot.lane.b32.xlu0 %v11465_v10, %s10129_s1  ;;  %6065 = vrot.lane.b32.xlu1 %v11465_v10, %s10126_s4 }
0x25d3   :  { %6401 = vrot.lane.b32.xlu0 %v11465_v10, %s12026_s21  ;;  %6175 = vrot.lane.b32.xlu1 %v11465_v10, %s10127_s26 }
0x25d7   :  { %6287 = vrot.lane.b32.xlu1 %v11465_v10, %s10128_s28 }
0x25db   :  { %6399 = vrot.lane.b32.xlu1 %v11465_v10, %s10130_s2 }
0x25df   :  { %5776 = vrot.lane.b32.xlu1 %v11451_v7, %s12027_s25 }
0x2631   :  { %v5603_v33 = vpop.permute.xlu0 %5602  ;;  %v5715_v18 = vpop.permute.xlu1 %5714 }
0x2632   :  { %v5608_v14 = vsel %vm325_vm6, %v5603_v33, 0  ;;  %v5720_v24 = vsel %vm325_vm6, %v5715_v18, 0 }
0x2633   :  { %9294 = vmatpush3.bf16.xpose.msra.mxu1 %v5608_v14 }
0x2634   :  { %9305 = vmatprep.subr.bf16.mxu1 %v10123_v15 }
0x2635   :  { %v5713_v23 = vpop.permute.xlu1 %5712  ;;  %v5825_v32 = vpop.permute.xlu0 %5824 }
0x2639   :  { %v5827_v17 = vpop.permute.xlu1 %5826  ;;  %v5937_v0 = vpop.permute.xlu0 %5936 }
0x263a   :  { %9296 = vmatmul.mubr.msk.bf16.vlgmr.msra.gmra.mrb[160].mxu1 %vm325_vm6, %v11451_v7  ;;  %v5832_v31 = vsel %vm325_vm6, %v5827_v17, 0 }
0x263b   :  { %9306 = vmatpush3.bf16.xpose.msra.mxu1 %v5720_v24  ;;  %9307 = vmatprep.mubr.msk.bf16.mxu1 %vm10124_vm1, %v10123_v15 }
0x263c   :  { %9317 = vmatprep.subr.bf16.mxu1 %v10123_v15 }
0x263d   :  { %v5939_v28 = vpop.permute.xlu1 %5938  ;;  %v6178_v4 = vpop.permute.xlu0 %6177 }
0x263e   :  { %v5944_v27 = vsel %vm325_vm6, %v5939_v28, 0  ;;  %v6183_v29 = vsel %vm325_vm6, %v6178_v4, 0 }
0x2641   :  { %v6066_v26 = vpop.permute.xlu1 %6065  ;;  %v6290_v25 = vpop.permute.xlu0 %6289 }
0x2642   :  { %9308 = vmatmul.mubr.msk.bf16.vlgmr.msra.gmra.mrb[164].mxu1 %vm325_vm6, %v5713_v23  ;;  %v6071_v38 = vsel %vm325_vm6, %v6066_v26, 0  ;;  %v6295_v39 = vsel %vm325_vm6, %v6290_v25, 0 }
0x2643   :  { %9318 = vmatpush3.bf16.xpose.msra.mxu1 %v5832_v31  ;;  %9319 = vmatprep.mubr.msk.bf16.mxu1 %vm10124_vm1, %v10123_v15 }
0x2644   :  { %9329 = vmatprep.subr.bf16.mxu1 %v10123_v15 }
0x2645   :  { %v6176_v35 = vpop.permute.xlu1 %6175  ;;  %v6402_v37 = vpop.permute.xlu0 %6401 }
0x2646   :  { %v6407_v41 = vsel %vm325_vm6, %v6402_v37, 0 }
0x2649   :  { %v6288_v40 = vpop.permute.xlu1 %6287 }
0x264a   :  { %9320 = vmatmul.mubr.msk.bf16.vlgmr.msra.gmra.mrb[168].mxu1 %vm325_vm6, %v5825_v32 }
0x264b   :  { %9330 = vmatpush3.bf16.xpose.msra.mxu1 %v5944_v27  ;;  %9331 = vmatprep.mubr.msk.bf16.mxu1 %vm10124_vm1, %v10123_v15 }
0x264c   :  { %9341 = vmatprep.subr.bf16.mxu1 %v10123_v15 }
0x264d   :  { %v6400_v22 = vpop.permute.xlu1 %6399 }
0x2652   :  { %9332 = vmatmul.mubr.msk.bf16.vlgmr.msra.gmra.mrb[172].mxu1 %vm325_vm6, %v5937_v0 }
0x2653   :  { %9342 = vmatpush3.bf16.xpose.msra.mxu1 %v6071_v38  ;;  %9343 = vmatprep.mubr.msk.bf16.mxu1 %vm10124_vm1, %v10123_v15 }
0x2654   :  { %9353 = vmatprep.subr.bf16.mxu1 %v10123_v15 }
0x265a   :  { %9344 = vmatmul.mubr.msk.bf16.vlgmr.msra.gmra.mrb[176].mxu1 %vm325_vm6, %v11465_v10 }
0x265b   :  { %9354 = vmatpush3.bf16.xpose.msra.mxu1 %v6183_v29  ;;  %9355 = vmatprep.mubr.msk.bf16.mxu1 %vm10124_vm1, %v10123_v15 }
0x265c   :  { %9365 = vmatprep.subr.bf16.mxu1 %v10123_v15 }
0x2662   :  { %9356 = vmatmul.mubr.msk.bf16.vlgmr.msra.gmra.mrb[180].mxu1 %vm325_vm6, %v6176_v35 }
0x2663   :  { %9366 = vmatpush3.bf16.xpose.msra.mxu1 %v6295_v39  ;;  %9367 = vmatprep.mubr.msk.bf16.mxu1 %vm10124_vm1, %v10123_v15 }
0x2664   :  { %9377 = vmatprep.subr.bf16.mxu1 %v10123_v15 }
0x266a   :  { %9368 = vmatmul.mubr.msk.bf16.vlgmr.msra.gmra.mrb[184].mxu1 %vm325_vm6, %v6288_v40 }
0x266b   :  { %9378 = vmatpush3.bf16.xpose.msra.mxu1 %v6407_v41  ;;  %9379 = vmatprep.mubr.msk.bf16.mxu1 %vm10124_vm1, %v10123_v15 }
0x266c   :  { %9389 = vmatprep.subr.bf16.mxu1 %v10123_v15 }
0x2672   :  { %9380 = vmatmul.mubr.msk.bf16.vlgmr.msra.gmra.mrb[188].mxu1 %vm325_vm6, %v6400_v22 }
0x2673   :  { %9393 = vmatprep.mubr.msk.bf16.mxu1 %vm10124_vm1, %v10123_v15 }
0x270d   :  { %v5644_v30 = vpop.f32.mrb[160].mxu1 }
0x270e   :  { %v5650_v43 = vmul.f32 0.35355338, %v5644_v30  ;;  %v9297_v44 = vpop.f32.mrb[161].mxu1 }
0x270f   :  { %v5647_v16 = vpop.f32.mrb[162].mxu1 }
0x2710   :  { %v11528_v34 = vadd.f32 %v10052_v6, %v5650_v43  ;;  %v9298_v45 = vpop.f32.mrb[163].mxu1  ;;  %v11554_v16 = vpop.permute.xlu1 %5776 }
0x2712   :  { %v5652_v19 = vsel %vm325_vm6, %v11528_v34, -inf }
0x2713   :  { %5653 = vmax.xlane.f32.xlu0 %v5652_v19 }
0x2715   :  { %v5756_v20 = vpop.f32.mrb[164].mxu1 }
0x2716   :  { %v5762_v46 = vmul.f32 0.35355338, %v5756_v20  ;;  %v9309_v48 = vpop.f32.mrb[165].mxu1 }
0x2717   :  { %v5759_v50 = vpop.f32.mrb[166].mxu1 }
0x2718   :  { %v11532_v51 = vadd.f32 %v10052_v6, %v5762_v46  ;;  %v9310_v42 = vpop.f32.mrb[167].mxu1 }
0x271a   :  { %v5764_v49 = vsel %vm325_vm6, %v11532_v51, -inf }
0x271b   :  { %5765 = vmax.xlane.f32.xlu1 %v5764_v49 }
0x271d   :  { %v5868_v53 = vpop.f32.mrb[168].mxu1 }
0x271e   :  { %v9321_v56 = vpop.f32.mrb[169].mxu1  ;;  %v5874_v14 = vmul.f32 0.35355338, %v5868_v53 }
0x271f   :  { %v5871_v57 = vpop.f32.mrb[170].mxu1 }
0x2720   :  { %v9322_v59 = vpop.f32.mrb[171].mxu1  ;;  %v5875_v24 = vadd.f32 %v10052_v6, %v5874_v14 }
0x2722   :  { %v5876_v38 = vsel %vm325_vm6, %v5875_v24, -inf }
0x2725   :  { %v5980_v54 = vpop.f32.mrb[172].mxu1 }
0x2726   :  { %v9333_v60 = vpop.f32.mrb[173].mxu1  ;;  %v5986_v17 = vmul.f32 0.35355338, %v5980_v54 }
0x2727   :  { %v5983_v52 = vpop.f32.mrb[174].mxu1 }
0x2728   :  { %v9334_v61 = vpop.f32.mrb[175].mxu1  ;;  %v5987_v27 = vadd.f32 %v10052_v6, %v5986_v17 }
0x2729   :  { %5664 = vrot.lane.b32.xlu0 %v11451_v7, %s12028_s29 }
0x272a   :  { %v5988_v37 = vsel %vm325_vm6, %v5987_v27, -inf }
0x272d   :  { %v6107_v63 = vpop.f32.mrb[176].mxu1 }
0x272e   :  { %v9345_v1 = vpop.f32.mrb[177].mxu1  ;;  %v6113_v26 = vmul.f32 0.35355338, %v6107_v63 }
0x272f   :  { %v6110_v2 = vpop.f32.mrb[178].mxu1 }
0x2730   :  { %v9346_v55 = vpop.f32.mrb[179].mxu1  ;;  %v6114_v35 = vadd.f32 %v10053_v9, %v6113_v26 }
0x2732   :  { %v6115_v41 = vsel %vm325_vm6, %v6114_v35, -inf }
0x2735   :  { %v6219_v62 = vpop.f32.mrb[180].mxu1 }
0x2736   :  { %v6225_v3 = vmul.f32 0.35355338, %v6219_v62  ;;  %v9357_v5 = vpop.f32.mrb[181].mxu1 }
0x2737   :  { %v6222_v8 = vpop.f32.mrb[182].mxu1 }
0x2738   :  { %v11539_v11 = vadd.f32 %v10053_v9, %v6225_v3  ;;  %v9358_v12 = vpop.f32.mrb[183].mxu1 }
0x273a   :  { %v6227_v58 = vsel %vm325_vm6, %v11539_v11, -inf }
0x273b   :  { %6228 = vmax.xlane.f32.xlu1 %v6227_v58 }
0x273d   :  { %v6331_v13 = vpop.f32.mrb[184].mxu1 }
0x273e   :  { %v9369_v33 = vpop.f32.mrb[185].mxu1  ;;  %v6337_v39 = vmul.f32 0.35355338, %v6331_v13 }
0x273f   :  { %v6334_v18 = vpop.f32.mrb[186].mxu1 }
0x2740   :  { %v9370_v23 = vpop.f32.mrb[187].mxu1  ;;  %v6338_v40 = vadd.f32 %v10053_v9, %v6337_v39 }
0x2742   :  { %v6339_v22 = vsel %vm325_vm6, %v6338_v40, -inf }
0x2745   :  { %v6443_v31 = vpop.f32.mrb[188].mxu1 }
0x2746   :  { %v6449_v28 = vmul.f32 0.35355338, %v6443_v31  ;;  %v9381_v32 = vpop.f32.mrb[189].mxu1 }
0x2747   :  { %v6446_v0 = vpop.f32.mrb[190].mxu1 }
0x2748   :  { %v11544_v4 = vadd.f32 %v10053_v9, %v6449_v28  ;;  %5877 = vmax.xlane.f32.xlu0 %v5876_v38  ;;  %v9382_v29 = vpop.f32.mrb[191].mxu1  ;;  %v5782_v38 = vsel %vm391_vm7, %v11554_v16, 0 }
0x274a   :  { %v6451_v25 = vsel %vm325_vm6, %v11544_v4, -inf }
0x274b   :  { %6452 = vmax.xlane.f32.xlu1 %v6451_v25 }
0x274c   :  { %5989 = vmax.xlane.f32.xlu0 %v5988_v37 }
0x2750   :  { %6116 = vmax.xlane.f32.xlu0 %v6115_v41 }
0x2754   :  { %6340 = vmax.xlane.f32.xlu0 %v6339_v22 }
0x276a   :  { %5888 = vrot.lane.b32.xlu0 %v11451_v7, %s12029_s3 }
0x27a0   :  { %v5654_v30 = vpop.xlane.xlu0 %5653 }
0x27a1   :  { %v5655_v43 = vsub.f32 %v11528_v34, %v5654_v30 }
0x27a3   :  { %v5656_v44 = vmul.f32 1.442695, %v5655_v43 }
0x27a4   :  { %v5665_v6 = vpop.permute.xlu0 %5664 }
0x27a5   :  { %9948 = vpow2.f32 %v5656_v44  ;;  %v5670_v45 = vsel %vm391_vm7, %v5665_v6, 0 }
0x27a6   :  { %9300 = vmatpush3.bf16.msra.mxu0 %v5670_v45 }
0x27a7   :  { %9311 = vmatprep.subr.bf16.mxu0 %v10123_v15 }
0x27a8   :  { %v5766_v19 = vpop.xlane.xlu1 %5765 }
0x27a9   :  { %v5767_v20 = vsub.f32 %v11532_v51, %v5766_v19 }
0x27ab   :  { %v5768_v46 = vmul.f32 1.442695, %v5767_v20 }
0x27ad   :  { %9950 = vpow2.f32 %v5768_v46 }
0x27af   :  { %v9949_v48 = vpop.eup %9948 }
0x27b0   :  { %v5658_v50 = vsel %vm325_vm6, %v9949_v48, 0.0 }
0x27b1   :  { %5659 = vadd.xlane.f32.xlu0 %v5658_v50 }
0x27b7   :  { %v11560_v34 = vpop.eup %9950 }
0x27b8   :  { %v5770_v42 = vsel %vm325_vm6, %v11560_v34, 0.0 }
0x27b9   :  { %5771 = vadd.xlane.f32.xlu1 %v5770_v42 }
0x27c8   :  { %v6229_v54 = vpop.xlane.xlu1 %6228 }
0x27c9   :  { %v6230_v61 = vsub.f32 %v11539_v11, %v6229_v54 }
0x27ca   :  { %6127 = vrot.lane.b32.xlu1 %v11465_v10, %s12028_s29  ;;  %s12032_s29 = smov 16  }
0x27cb   :  { %v6231_v2 = vmul.f32 1.442695, %v6230_v61 }
0x27d5   :  { %v5878_v49 = vpop.xlane.xlu0 %5877 }
0x27d6   :  { %v5879_v53 = vsub.f32 %v5875_v24, %v5878_v49 }
0x27d8   :  { %v5880_v56 = vmul.f32 1.442695, %v5879_v53  ;;  %v6453_v33 = vpop.xlane.xlu1 %6452 }
0x27d9   :  { %v5990_v57 = vpop.xlane.xlu0 %5989  ;;  %v6454_v14 = vsub.f32 %v11544_v4, %v6453_v33 }
0x27da   :  { %9952 = vpow2.f32 %v5880_v56  ;;  %v5991_v51 = vsub.f32 %v5987_v27, %v5990_v57 }
0x27db   :  { %v6455_v23 = vmul.f32 1.442695, %v6454_v14 }
0x27dc   :  { %v5992_v59 = vmul.f32 1.442695, %v5991_v51 }
0x27dd   :  { %v6117_v60 = vpop.xlane.xlu0 %6116 }
0x27de   :  { %v6118_v52 = vsub.f32 %v6114_v35, %v6117_v60  ;;  %9954 = vpow2.f32 %v5992_v59 }
0x27e0   :  { %v6119_v63 = vmul.f32 1.442695, %v6118_v52 }
0x27e1   :  { %v6341_v12 = vpop.xlane.xlu0 %6340 }
0x27e2   :  { %9956 = vpow2.f32 %v6119_v63  ;;  %v6342_v58 = vsub.f32 %v6338_v40, %v6341_v12 }
0x27e3   :  { %9958 = vpow2.f32 %v6231_v2 }
0x27e4   :  { %v9953_v1 = vpop.eup %9952  ;;  %v6343_v13 = vmul.f32 1.442695, %v6342_v58 }
0x27e5   :  { %v5882_v55 = vsel %vm325_vm6, %v9953_v1, 0.0  ;;  %v5889_v31 = vpop.permute.xlu0 %5888 }
0x27e6   :  { %5883 = vadd.xlane.f32.xlu0 %v5882_v55  ;;  %9960 = vpow2.f32 %v6343_v13  ;;  %v5894_v25 = vsel %vm391_vm7, %v5889_v31, 0 }
0x27e7   :  { %9962 = vpow2.f32 %v6455_v23 }
0x27e8   :  { %v11568_v62 = vpop.eup %9954 }
0x27e9   :  { %v5994_v3 = vsel %vm325_vm6, %v11568_v62, 0.0 }
0x27ec   :  { %v11572_v5 = vpop.eup %9956 }
0x27ed   :  { %v6121_v8 = vsel %vm325_vm6, %v11572_v5, 0.0  ;;  %v11576_v9 = vpop.eup %9958 }
0x27ee   :  { %5995 = vadd.xlane.f32.xlu1 %v5994_v3  ;;  %v6233_v11 = vsel %vm325_vm6, %v11576_v9, 0.0 }
0x27f0   :  { %v11585_v18 = vpop.eup %9960 }
0x27f1   :  { %v6345_v24 = vsel %vm325_vm6, %v11585_v18, 0.0  ;;  %v11589_v17 = vpop.eup %9962 }
0x27f2   :  { %6122 = vadd.xlane.f32.xlu1 %v6121_v8 }
0x27f6   :  { %6234 = vadd.xlane.f32.xlu1 %v6233_v11 }
0x27fc   :  { %6000 = vrot.lane.b32.xlu0 %v11451_v7, %s12030_s8  ;;  %v6457_v7 = vsel %vm325_vm6, %v11589_v17, 0.0 }
0x2807   :  { %6239 = vrot.lane.b32.xlu1 %v11465_v10, %s12027_s25  ;;  %s12031_s25 = smov 8  }
0x281b   :  { %6346 = vadd.xlane.f32.xlu0 %v6345_v24 }
0x282b   :  { %6458 = vadd.xlane.f32.xlu1 %v6457_v7 }
0x2831   :  { %6351 = vrot.lane.b32.xlu0 %v11465_v10, %s12029_s3  ;;  %s12033_s3 = smov 24  }
0x283c   :  { %6463 = vrot.lane.b32.xlu1 %v11465_v10, %s12030_s8 }
0x283e   :  { %v5660_v28 = vpop.xlane.xlu0 %5659 }
0x283f   :  { %9964 = vrcp.f32 %v5660_v28 }
0x2846   :  { %v5772_v32 = vpop.xlane.xlu1 %5771 }
0x2847   :  { %9966 = vrcp.f32 %v5772_v32 }
0x2849   :  { %v9965_v27 = vpop.eup %9964 }
0x284a   :  { %v5662_v26 = vmul.f32 %v9965_v27, %v9949_v48  ;;  %v6128_v39 = vpop.permute.xlu1 %6127 }
0x284b   :  { %v6133_v46 = vsel %vm391_vm7, %v6128_v39, 0 }
0x284c   :  { %v5663_v0 = vpack.c.bf16 %v5662_v26, %v5662_v26 }
0x284e   :  { %9302 = vmatmul.mubr.msk.bf16.vlgmr.msra.gmra.mrb[160].mxu0 %vm325_vm6, %v5663_v0 }
0x284f   :  { %9312 = vmatpush3.bf16.msra.mxu0 %v5782_v38  ;;  %9313 = vmatprep.mubr.msk.bf16.mxu0 %vm10124_vm1, %v10123_v15 }
0x2850   :  { %9323 = vmatprep.subr.bf16.mxu0 %v10123_v15 }
0x2851   :  { %v9967_v4 = vpop.eup %9966 }
0x2852   :  { %v5774_v10 = vmul.f32 %v9967_v4, %v11560_v34 }
0x2854   :  { %v5775_v29 = vpack.c.bf16 %v5774_v10, %v5774_v10 }
0x2856   :  { %9314 = vmatmul.mubr.msk.bf16.vlgmr.msra.gmra.mrb[164].mxu0 %vm325_vm6, %v5775_v29 }
0x2857   :  { %9324 = vmatpush3.bf16.msra.mxu0 %v5894_v25  ;;  %9325 = vmatprep.mubr.msk.bf16.mxu0 %vm10124_vm1, %v10123_v15  ;;  %v9732_v25 = vld [vmem:[%s12008_s14 + $0x10] sm:$0xff]  }
0x2858   :  { %9335 = vmatprep.subr.bf16.mxu0 %v10123_v15  ;;  %9390 = vmatpush3.bf16.msra.mxu1 %v9732_v25 }
0x2859   :  { %9391 = vmatprep.subr.bf16.mxu1 %v10123_v15 }
0x2873   :  { %v5884_v35 = vpop.xlane.xlu0 %5883 }
0x2874   :  { %9968 = vrcp.f32 %v5884_v35 }
0x2877   :  { %v6001_v30 = vpop.permute.xlu0 %6000 }
0x2878   :  { %v6006_v44 = vsel %vm391_vm7, %v6001_v30, 0 }
0x287b   :  { %v5996_v37 = vpop.xlane.xlu1 %5995 }
0x287c   :  { %9970 = vrcp.f32 %v5996_v37 }
0x287e   :  { %v9969_v40 = vpop.eup %9968 }
0x287f   :  { %v5886_v41 = vmul.f32 %v9969_v40, %v9953_v1  ;;  %v6123_v22 = vpop.xlane.xlu1 %6122 }
0x2880   :  { %9972 = vrcp.f32 %v6123_v22  ;;  %v9733_v22 = vld [vmem:[%s12008_s14 + $0x18] sm:$0xff]  }
0x2881   :  { %v5887_v43 = vpack.c.bf16 %v5886_v41, %v5886_v41  ;;  %9392 = vmatpush3.bf16.msra.mxu1 %v9733_v22 }
0x2882   :  { %9405 = vmatprep.subr.bf16.mxu1 %v10123_v15 }
0x2883   :  { %9326 = vmatmul.mubr.msk.bf16.vlgmr.msra.gmra.mrb[168].mxu0 %vm325_vm6, %v5887_v43  ;;  %v6235_v16 = vpop.xlane.xlu1 %6234 }
0x2884   :  { %9336 = vmatpush3.bf16.msra.mxu0 %v6006_v44  ;;  %9337 = vmatprep.mubr.msk.bf16.mxu0 %vm10124_vm1, %v10123_v15  ;;  %9974 = vrcp.f32 %v6235_v16 }
0x2885   :  { %9347 = vmatprep.subr.bf16.mxu0 %v10123_v15 }
0x2886   :  { %v9971_v6 = vpop.eup %9970 }
0x2887   :  { %v5998_v45 = vmul.f32 %v9971_v6, %v11568_v62  ;;  %v6240_v50 = vpop.permute.xlu1 %6239 }
0x2888   :  { %v6245_v49 = vsel %vm391_vm7, %v6240_v50, 0 }
0x2889   :  { %v5999_v19 = vpack.c.bf16 %v5998_v45, %v5998_v45 }
0x288a   :  { %v9973_v20 = vpop.eup %9972 }
0x288b   :  { %9338 = vmatmul.mubr.msk.bf16.vlgmr.msra.gmra.mrb[172].mxu0 %vm325_vm6, %v5999_v19  ;;  %v6125_v48 = vmul.f32 %v9973_v20, %v11572_v5 }
0x288c   :  { %9348 = vmatpush3.bf16.msra.mxu0 %v6133_v46  ;;  %9349 = vmatprep.mubr.msk.bf16.mxu0 %vm10124_vm1, %v10123_v15 }
0x288d   :  { %9359 = vmatprep.subr.bf16.mxu0 %v10123_v15  ;;  %v6126_v34 = vpack.c.bf16 %v6125_v48, %v6125_v48 }
0x288e   :  { %v9975_v42 = vpop.eup %9974 }
0x288f   :  { %v6237_v53 = vmul.f32 %v9975_v42, %v11576_v9 }
0x2891   :  { %v6238_v56 = vpack.c.bf16 %v6237_v53, %v6237_v53 }
0x2893   :  { %9350 = vmatmul.mubr.msk.bf16.vlgmr.msra.gmra.mrb[176].mxu0 %vm325_vm6, %v6126_v34 }
0x2894   :  { %9360 = vmatpush3.bf16.msra.mxu0 %v6245_v49  ;;  %9361 = vmatprep.mubr.msk.bf16.mxu0 %vm10124_vm1, %v10123_v15 }
0x2895   :  { %9371 = vmatprep.subr.bf16.mxu0 %v10123_v15 }
0x289b   :  { %9362 = vmatmul.mubr.msk.bf16.vlgmr.msra.gmra.mrb[180].mxu0 %vm325_vm6, %v6238_v56 }
0x289c   :  { %9373 = vmatprep.mubr.msk.bf16.mxu0 %vm10124_vm1, %v10123_v15 }
0x28a8   :  { %v6347_v57 = vpop.xlane.xlu0 %6346 }
0x28a9   :  { %9976 = vrcp.f32 %v6347_v57 }
0x28ac   :  { %v6352_v51 = vpop.permute.xlu0 %6351 }
0x28ad   :  { %v6357_v59 = vsel %vm391_vm7, %v6352_v51, 0 }
0x28ae   :  { %9372 = vmatpush3.bf16.msra.mxu0 %v6357_v59 }
0x28af   :  { %9383 = vmatprep.subr.bf16.mxu0 %v10123_v15 }
0x28b3   :  { %v9977_v54 = vpop.eup %9976 }
0x28b4   :  { %v6349_v60 = vmul.f32 %v9977_v54, %v11585_v18 }
0x28b6   :  { %v6350_v52 = vpack.c.bf16 %v6349_v60, %v6349_v60  ;;  %v9734_v60 = vld [vmem:[%s12010_s24 + $0x10] sm:$0xff]  }
0x28b8   :  { %9374 = vmatmul.mubr.msk.bf16.vlgmr.msra.gmra.mrb[184].mxu0 %vm325_vm6, %v6350_v52  ;;  %v6459_v61 = vpop.xlane.xlu1 %6458 }
0x28b9   :  { %9978 = vrcp.f32 %v6459_v61  ;;  %9385 = vmatprep.mubr.msk.bf16.mxu0 %vm10124_vm1, %v10123_v15  ;;  %v9735_v61 = vld [vmem:[%s12010_s24 + $0x18] sm:$0xff]  }
0x28bc   :  { %v6464_v63 = vpop.permute.xlu1 %6463 }
0x28bd   :  { %v6469_v1 = vsel %vm391_vm7, %v6464_v63, 0  ;;  %v8415_v63 = vld [vmem:[%s12009_s19 + $0x1] ss:$0 sm:$0xff] }
0x28be   :  { %9384 = vmatpush3.bf16.msra.mxu0 %v6469_v1 }
0x28bf   :  { %9397 = vmatprep.subr.bf16.mxu0 %v10123_v15 }
0x28c3   :  { %v9979_v2 = vpop.eup %9978 }
0x28c4   :  { %v6461_v55 = vmul.f32 %v9979_v2, %v11589_v17 }
0x28c6   :  { %v6462_v62 = vpack.c.bf16 %v6461_v55, %v6461_v55 }
0x28c8   :  { %9386 = vmatmul.mubr.msk.bf16.vlgmr.msra.gmra.mrb[188].mxu0 %vm325_vm6, %v6462_v62 }
0x28c9   :  { %9401 = vmatprep.mubr.msk.bf16.mxu0 %vm10124_vm1, %v10123_v15 }
0x2921   :  { %v5706_v3 = vpop.f32.mrb[160].mxu0 }
0x2922   :  { %v9303_v5 = vpop.f32.mrb[161].mxu0 }
0x2923   :  { %v5709_v8 = vpop.f32.mrb[162].mxu0 }
0x2924   :  { %v9304_v9 = vpop.f32.mrb[163].mxu0 }
0x2929   :  { %v5818_v11 = vpop.f32.mrb[164].mxu0 }
0x292a   :  { %v9315_v12 = vpop.f32.mrb[165].mxu0 }
0x292b   :  { %v5821_v58 = vpop.f32.mrb[166].mxu0 }
0x292c   :  { %v9316_v13 = vpop.f32.mrb[167].mxu0 }
0x292d   :  { %v8437_v13 = vld [vmem:[%s12016_s30 + $0x1] ss:$0 sm:$0xff] }
0x2956   :  { %v5930_v33 = vpop.f32.mrb[168].mxu0 }
0x2957   :  { %v9327_v14 = vpop.f32.mrb[169].mxu0 }
0x2958   :  { %v5933_v18 = vpop.f32.mrb[170].mxu0 }
0x2959   :  { %v9328_v23 = vpop.f32.mrb[171].mxu0 }
0x295e   :  { %v6042_v24 = vpop.f32.mrb[172].mxu0 }
0x295f   :  { %v9339_v17 = vpop.f32.mrb[173].mxu0 }
0x2960   :  { %v6045_v7 = vpop.f32.mrb[174].mxu0 }
0x2961   :  { %v9340_v31 = vpop.f32.mrb[175].mxu0 }
0x2966   :  { %v6169_v28 = vpop.f32.mrb[176].mxu0 }
0x2967   :  { %v9351_v32 = vpop.f32.mrb[177].mxu0 }
0x2968   :  { %v6172_v27 = vpop.f32.mrb[178].mxu0 }
0x2969   :  { %v9352_v26 = vpop.f32.mrb[179].mxu0 }
0x296e   :  { %v6281_v0 = vpop.f32.mrb[180].mxu0 }
0x296f   :  { %v9664_v38 = vpack.i.bf16 %v6281_v0, %v5818_v11  ;;  %v9363_v4 = vpop.f32.mrb[181].mxu0 }
0x2970   :  { %v6284_v10 = vpop.f32.mrb[182].mxu0  ;;  %v9737_v4 = vld [vmem:[%s12013_s12 + $0x18] sm:$0xff]  }
0x2971   :  { %9665 = vrot.lane.b32.xlu0 %v9664_v38, %s12031_s25  ;;  %v9364_v29 = vpop.f32.mrb[183].mxu0  ;;  %v9736_v38 = vld [vmem:[%s12013_s12 + $0x10] sm:$0xff]  }
0x2972   :  { %9398 = vmatpush3.bf16.msra.mxu0 %v9736_v38 }
0x2973   :  { %9399 = vmatprep.subr.bf16.mxu0 %v10123_v15 }
0x2976   :  { %9400 = vmatpush3.bf16.msra.mxu0 %v9737_v4 }
0x2977   :  { %9413 = vmatprep.subr.bf16.mxu0 %v10123_v15 }
0x298b   :  { %v6393_v35 = vpop.f32.mrb[184].mxu0 }
0x298c   :  { %v9669_v39 = vpack.i.bf16 %v6393_v35, %v5930_v33  ;;  %v9375_v37 = vpop.f32.mrb[185].mxu0 }
0x298d   :  { %v6396_v40 = vpop.f32.mrb[186].mxu0 }
0x298e   :  { %9670 = vrot.lane.b32.xlu1 %v9669_v39, %s12032_s29  ;;  %v9376_v41 = vpop.f32.mrb[187].mxu0 }
0x299b   :  { %v6505_v30 = vpop.f32.mrb[188].mxu0 }
0x299c   :  { %v9674_v43 = vpack.i.bf16 %v6505_v30, %v6042_v24  ;;  %v9387_v44 = vpop.f32.mrb[189].mxu0 }
0x299d   :  { %v6508_v16 = vpop.f32.mrb[190].mxu0 }
0x299e   :  { %9675 = vrot.lane.b32.xlu0 %v9674_v43, %s12033_s3  ;;  %v9388_v6 = vpop.f32.mrb[191].mxu0 }
0x29e3   :  { %v9666_v45 = vpop.permute.xlu0 %9665 }
0x29e4   :  { %v9668_v20 = vunpack.i.h.bf16 %v9666_v45  ;;  %v9667_v46 = vunpack.i.l.bf16 %v9666_v45 }
0x29e6   :  { %v6523_v42 = vsel %vm325_vm6, %v6169_v28, %v9668_v20  ;;  %v6060_v49 = vsel %vm325_vm6, %v5706_v3, %v9667_v46 }
0x2a00   :  { %v9671_v19 = vpop.permute.xlu1 %9670 }
0x2a01   :  { %v9673_v48 = vunpack.i.h.bf16 %v9671_v19  ;;  %v9672_v50 = vunpack.i.l.bf16 %v9671_v19 }
0x2a03   :  { %v6524_v57 = vsel %vm784_vm8, %v6523_v42, %v9673_v48  ;;  %v6061_v51 = vsel %vm784_vm8, %v6060_v49, %v9672_v50  ;;  %v8421_v48 = vld [vmem:[%s12014_s20 + $0x1] ss:$0 sm:$0xff] }
0x2a04   :  { %v8422_v49 = vld [vmem:[%s12015_s5 + $0x1] ss:$0 sm:$0xff] }
0x2a10   :  { %v9676_v34 = vpop.permute.xlu0 %9675 }
0x2a11   :  { %v9678_v53 = vunpack.i.h.bf16 %v9676_v34  ;;  %v9677_v56 = vunpack.i.l.bf16 %v9676_v34 }
0x2a13   :  { %v6062_v59 = vsel %vm786_vm9, %v6061_v51, %v9677_v56  ;;  %v6525_v54 = vsel %vm786_vm9, %v6524_v57, %v9678_v53 }
0x2a14   :  { %v6533_v52 = vpack.c.bf16 %v6525_v54, %v6062_v59  ;;  %v8428_v54 = vld [vmem:[%s12017_s6 + $0x1] ss:$0 sm:$0xff] }
0x2a16   :  { %9394 = vmatmul.mubr.msk.bf16.vlgmr.msra.gmra.mrb[192].mxu1 %vm195_vm0, %v6533_v52 }
0x2a17   :  { %9406 = vmatpush3.bf16.msra.mxu1 %v9734_v60  ;;  %9409 = vmatprep.mubr.msk.bf16.mxu1 %vm10124_vm1, %v10123_v15 }
0x2a18   :  { %9407 = vmatprep.subr.bf16.mxu1 %v10123_v15 }
0x2a1b   :  { %9408 = vmatpush3.bf16.msra.mxu1 %v9735_v61 }
0x2a1c   :  { %9419 = vmatprep.subr.bf16.mxu1 %v10123_v15 }
0x2a1e   :  { %9410 = vmatmul.mubr.msk.bf16.vlgmr.msra.gmra.mrb[196].mxu1 %vm195_vm0, %v11177_v47 }
0x2a1f   :  { %9421 = vmatprep.mubr.msk.bf16.mxu1 %vm10124_vm1, %v10123_v15 }
0x2ae9   :  { %v6589_v1 = vpop.f32.mrb[192].mxu1 }
0x2aea   :  { %v6590_v2 = vadd.f32 %v8415_v63, %v6589_v1  ;;  %v9395_v55 = vpop.f32.mrb[193].mxu1 }
0x2aeb   :  { %v6592_v62 = vpop.f32.mrb[194].mxu1 }
0x2aec   :  { %v11668_v3 = vadd.f32 %v6590_v2, %v11428_v21  ;;  %v6593_v5 = vadd.f32 %v8415_v63, %v6592_v62  ;;  %v9396_v8 = vpop.f32.mrb[195].mxu1 }
0x2aee   :  { %v11671_v9 = vadd.f32 %v6593_v5, %v11431_v36  ;;  %v6602_v47 = vsel %vm195_vm0, %v11668_v3, 0.0 }
0x2aef   :  { %6603 = vadd.xlane.f32.xlu1 %v6602_v47 }
0x2af0   :  { %v6605_v11 = vsel %vm195_vm0, %v11671_v9, 0.0 }
0x2af1   :  { %6606 = vadd.xlane.f32.xlu0 %v6605_v11  ;;  %v6787_v12 = vpop.f32.mrb[196].mxu1 }
0x2af2   :  { %v9411_v58 = vpop.f32.mrb[197].mxu1  ;;  %v6788_v18 = vadd.f32 %v8437_v13, %v6787_v12 }
0x2af3   :  { %v6790_v33 = vpop.f32.mrb[198].mxu1 }
0x2af4   :  { %v11678_v14 = vadd.f32 %v8437_v13, %v6790_v33  ;;  %v9412_v21 = vpop.f32.mrb[199].mxu1  ;;  %v11680_v23 = vpack.c.bf16 %v6788_v18, %v6788_v18 }
0x2af6   :  { %v6800_v59 = vsel %vm325_vm6, %v11680_v23, 0  ;;  %v11715_v8 = vpack.c.bf16 %v11678_v14, %v11678_v14 }
0x2af8   :  { %v7263_v18 = vsel %vm325_vm6, %v11715_v8, 0 }
0x2b00   :  { %6908 = vrot.lane.b32.xlu1 %v11680_v23, %s10127_s26 }
0x2b04   :  { %7020 = vrot.lane.b32.xlu1 %v11680_v23, %s10128_s28 }
0x2b7c   :  { %v6604_v36 = vpop.xlane.xlu1 %6603 }
0x2b7d   :  { %v6608_v24 = vmul.f32 0.03125, %v6604_v36 }
0x2b7e   :  { %v6607_v17 = vpop.xlane.xlu0 %6606 }
0x2b7f   :  { %v6610_v7 = vsub.f32 %v11668_v3, %v6608_v24  ;;  %v6609_v31 = vmul.f32 0.03125, %v6607_v17 }
0x2b80   :  { %v6909_v1 = vpop.permute.xlu1 %6908 }
0x2b81   :  { %v6611_v28 = vsub.f32 %v11671_v9, %v6609_v31  ;;  %v6612_v32 = vmul.f32 %v6610_v7, %v6610_v7  ;;  %v6914_v62 = vsel %vm325_vm6, %v6909_v1, 0 }
0x2b83   :  { %v6614_v27 = vsel %vm195_vm0, %v6612_v32, 0.0  ;;  %v6613_v26 = vmul.f32 %v6611_v28, %v6611_v28 }
0x2b84   :  { %6615 = vadd.xlane.f32.xlu0 %v6614_v27  ;;  %v7021_v11 = vpop.permute.xlu1 %7020 }
0x2b85   :  { %v6617_v0 = vsel %vm195_vm0, %v6613_v26, 0.0  ;;  %v7026_v13 = vsel %vm325_vm6, %v7021_v11, 0 }
0x2b88   :  { %6618 = vadd.xlane.f32.xlu0 %v6617_v0 }
0x2c11   :  { %v6616_v10 = vpop.xlane.xlu0 %6615 }
0x2c12   :  { %v6620_v29 = vmul.f32 0.03125, %v6616_v10 }
0x2c14   :  { %v6622_v25 = vadd.f32 1e-06, %v6620_v29  ;;  %v10054_v29 = vld [vmem:[%s10157_s13] sm:$0xff] }
0x2c15   :  { %v6619_v35 = vpop.xlane.xlu0 %6618 }
0x2c16   :  { %9980 = vrsqrt.f32 %v6622_v25  ;;  %v6621_v39 = vmul.f32 0.03125, %v6619_v35  ;;  %vm6626_vm2 = vcmp.eq.f32.partialorder %v6622_v25, inf  ;;  %v6629_v22 = vand.u32 2147483648, %v6622_v25 }
0x2c17   :  { %vm6628_vm3 = vcmp.eq.f32.partialorder %v6622_v25, 0.0 }
0x2c18   :  { %v6623_v37 = vadd.f32 1e-06, %v6621_v39 }
0x2c1a   :  { %9982 = vrsqrt.f32 %v6623_v37  ;;  %vm6633_vm4 = vcmp.eq.f32.partialorder %v6623_v37, inf  ;;  %v6636_v6 = vand.u32 2147483648, %v6623_v37  ;;  %vm6635_vm5 = vcmp.eq.f32.partialorder %v6623_v37, 0.0 }
0x2c20   :  { %v9981_v40 = vpop.eup %9980 }
0x2c21   :  { %v6625_v41 = vmul.f32 %v9981_v40, %v6622_v25 }
0x2c23   :  { %v6627_v30 = vsel %vm6626_vm2, %v6622_v25, %v6625_v41 }
0x2c24   :  { %v6630_v43 = vsel %vm6628_vm3, %v6629_v22, %v6627_v30  ;;  %v9983_v44 = vpop.eup %9982 }
0x2c25   :  { %9984 = vrcp.f32 %v6630_v43  ;;  %v6632_v16 = vmul.f32 %v9983_v44, %v6623_v37 }
0x2c27   :  { %v6634_v45 = vsel %vm6633_vm4, %v6623_v37, %v6632_v16 }
0x2c28   :  { %v6637_v19 = vsel %vm6635_vm5, %v6636_v6, %v6634_v45 }
0x2c29   :  { %9986 = vrcp.f32 %v6637_v19 }
0x2c2f   :  { %v9985_v20 = vpop.eup %9984 }
0x2c30   :  { %v6639_v46 = vmul.f32 %v9985_v20, %v6610_v7 }
0x2c32   :  { %v6648_v42 = vmul.f32 %v8421_v48, %v6639_v46 }
0x2c33   :  { %v9987_v50 = vpop.eup %9986 }
0x2c34   :  { %v6641_v34 = vmul.f32 %v9987_v50, %v6611_v28  ;;  %v6656_v56 = vadd.f32 %v8422_v49, %v6648_v42 }
0x2c36   :  { %v6649_v53 = vmul.f32 %v8421_v48, %v6641_v34 }
0x2c38   :  { %v6657_v57 = vadd.f32 %v8422_v49, %v6649_v53 }
0x2c3a   :  { %v6665_v51 = vpack.c.bf16 %v6657_v57, %v6656_v56 }
0x2c3c   :  { %9402 = vmatmul.mubr.msk.bf16.vlgmr.msra.gmra.mrb[192].mxu0 %vm195_vm0, %v6665_v51 }
0x2c3d   :  { %9414 = vmatpush3.bf16.xpose.msra.mxu0 %v6800_v59  ;;  %9415 = vmatprep.mubr.msk.bf16.mxu0 %vm10124_vm1, %v10123_v15 }
0x2c3e   :  { %9425 = vmatprep.subr.bf16.mxu0 %v10123_v15 }
0x2d0f   :  { %v6721_v60 = vpop.f32.mrb[192].mxu0 }
0x2d10   :  { %v6722_v52 = vadd.f32 %v8428_v54, %v6721_v60  ;;  %v9403_v61 = vpop.f32.mrb[193].mxu0 }
0x2d11   :  { %v6724_v63 = vpop.f32.mrb[194].mxu0 }
0x2d12   :  { %v6794_v2 = vpack.c.bf16 %v6722_v52, %v6722_v52  ;;  %v9404_v55 = vpop.f32.mrb[195].mxu0  ;;  %v6725_v5 = vadd.f32 %v8428_v54, %v6724_v63  ;;  %v10055_v52 = vld [vmem:[%s10157_s13 + $0x8] sm:$0xff]  ;;  %s12034_s13 = sld [smem:[#allocation29_spill]] }
0x2d14   :  { %6906 = vrot.lane.b32.xlu0 %v6794_v2, %s10127_s26  ;;  %7018 = vrot.lane.b32.xlu1 %v6794_v2, %s10128_s28  ;;  %v7257_v47 = vpack.c.bf16 %v6725_v5, %v6725_v5 }
0x2d15   :  { %9416 = vmatmul.mubr.msk.bf16.vlgmr.msra.gmra.mrb[196].mxu0 %vm325_vm6, %v6794_v2 }
0x2d16   :  { %9426 = vmatpush3.bf16.xpose.msra.mxu0 %v6914_v62  ;;  %9427 = vmatprep.mubr.msk.bf16.mxu0 %vm10124_vm1, %v10123_v15 }
0x2d17   :  { %9437 = vmatprep.subr.bf16.mxu0 %v10123_v15 }
0x2d18   :  { %7130 = vrot.lane.b32.xlu0 %v6794_v2, %s10130_s2  ;;  %7132 = vrot.lane.b32.xlu1 %v11680_v23, %s10130_s2 }
0x2d1c   :  { %7369 = vrot.lane.b32.xlu0 %v7257_v47, %s10127_s26  ;;  %7371 = vrot.lane.b32.xlu1 %v11715_v8, %s10127_s26 }
0x2d20   :  { %7481 = vrot.lane.b32.xlu0 %v7257_v47, %s10128_s28  ;;  %7483 = vrot.lane.b32.xlu1 %v11715_v8, %s10128_s28 }
0x2d24   :  { %7593 = vrot.lane.b32.xlu0 %v7257_v47, %s10130_s2  ;;  %7595 = vrot.lane.b32.xlu1 %v11715_v8, %s10130_s2 }
0x2d86   :  { %v6907_v12 = vpop.permute.xlu0 %6906  ;;  %v7019_v58 = vpop.permute.xlu1 %7018 }
0x2d87   :  { %9428 = vmatmul.mubr.msk.bf16.vlgmr.msra.gmra.mrb[200].mxu0 %vm325_vm6, %v6907_v12 }
0x2d88   :  { %9438 = vmatpush3.bf16.xpose.msra.mxu0 %v7026_v13  ;;  %9439 = vmatprep.mubr.msk.bf16.mxu0 %vm10124_vm1, %v10123_v15 }
0x2d89   :  { %9449 = vmatprep.subr.bf16.mxu0 %v10123_v15 }
0x2d8a   :  { %v7133_v33 = vpop.permute.xlu1 %7132  ;;  %v7131_v21 = vpop.permute.xlu0 %7130 }
0x2d8b   :  { %v7138_v14 = vsel %vm325_vm6, %v7133_v33, 0 }
0x2d8e   :  { %v7372_v36 = vpop.permute.xlu1 %7371  ;;  %v7370_v7 = vpop.permute.xlu0 %7369 }
0x2d8f   :  { %9440 = vmatmul.mubr.msk.bf16.vlgmr.msra.gmra.mrb[204].mxu0 %vm325_vm6, %v7019_v58  ;;  %v7377_v24 = vsel %vm325_vm6, %v7372_v36, 0 }
0x2d90   :  { %9450 = vmatpush3.bf16.xpose.msra.mxu0 %v7138_v14  ;;  %9451 = vmatprep.mubr.msk.bf16.mxu0 %vm10124_vm1, %v10123_v15 }
0x2d91   :  { %9461 = vmatprep.subr.bf16.mxu0 %v10123_v15 }
0x2d92   :  { %v7484_v17 = vpop.permute.xlu1 %7483  ;;  %v7482_v32 = vpop.permute.xlu0 %7481 }
0x2d93   :  { %v7489_v31 = vsel %vm325_vm6, %v7484_v17, 0 }
0x2d96   :  { %v7596_v28 = vpop.permute.xlu1 %7595  ;;  %v7594_v26 = vpop.permute.xlu0 %7593 }
0x2d97   :  { %9452 = vmatmul.mubr.msk.bf16.vlgmr.msra.gmra.mrb[208].mxu0 %vm325_vm6, %v7131_v21  ;;  %v7601_v27 = vsel %vm325_vm6, %v7596_v28, 0 }
0x2d98   :  { %9462 = vmatpush3.bf16.xpose.msra.mxu0 %v7263_v18  ;;  %9463 = vmatprep.mubr.msk.bf16.mxu0 %vm10124_vm1, %v10123_v15 }
0x2d99   :  { %9473 = vmatprep.subr.bf16.mxu0 %v10123_v15 }
0x2d9f   :  { %9464 = vmatmul.mubr.msk.bf16.vlgmr.msra.gmra.mrb[212].mxu0 %vm325_vm6, %v7257_v47 }
0x2da0   :  { %9474 = vmatpush3.bf16.xpose.msra.mxu0 %v7377_v24  ;;  %9475 = vmatprep.mubr.msk.bf16.mxu0 %vm10124_vm1, %v10123_v15 }
0x2da1   :  { %9485 = vmatprep.subr.bf16.mxu0 %v10123_v15 }
0x2da7   :  { %9476 = vmatmul.mubr.msk.bf16.vlgmr.msra.gmra.mrb[216].mxu0 %vm325_vm6, %v7370_v7 }
0x2da8   :  { %9486 = vmatpush3.bf16.xpose.msra.mxu0 %v7489_v31  ;;  %9487 = vmatprep.mubr.msk.bf16.mxu0 %vm10124_vm1, %v10123_v15 }
0x2da9   :  { %9497 = vmatprep.subr.bf16.mxu0 %v10123_v15 }
0x2daf   :  { %9488 = vmatmul.mubr.msk.bf16.vlgmr.msra.gmra.mrb[220].mxu0 %vm325_vm6, %v7482_v32 }
0x2db0   :  { %9498 = vmatpush3.bf16.xpose.msra.mxu0 %v7601_v27  ;;  %9499 = vmatprep.mubr.msk.bf16.mxu0 %vm10124_vm1, %v10123_v15 }
0x2db1   :  { %9509 = vmatprep.subr.bf16.mxu0 %v10123_v15 }
0x2db7   :  { %9500 = vmatmul.mubr.msk.bf16.vlgmr.msra.gmra.mrb[224].mxu0 %vm325_vm6, %v7594_v26 }
0x2db8   :  { %9513 = vmatprep.mubr.msk.bf16.mxu0 %vm10124_vm1, %v10123_v15 }
0x2de8   :  { %v6836_v0 = vpop.f32.mrb[196].mxu0 }
0x2de9   :  { %v6842_v38 = vmul.f32 0.35355338, %v6836_v0  ;;  %v9417_v4 = vpop.f32.mrb[197].mxu0 }
0x2dea   :  { %v6839_v10 = vpop.f32.mrb[198].mxu0 }
0x2deb   :  { %v6843_v25 = vadd.f32 %v10054_v29, %v6842_v38  ;;  %v9418_v35 = vpop.f32.mrb[199].mxu0 }
0x2ded   :  { %v6844_v39 = vsel %vm325_vm6, %v6843_v25, -inf }
0x2dee   :  { %6845 = vmax.xlane.f32.xlu1 %v6844_v39 }
0x2e5a   :  { %v6950_v37 = vpop.f32.mrb[200].mxu0 }
0x2e5b   :  { %v6956_v40 = vmul.f32 0.35355338, %v6950_v37  ;;  %v9429_v41 = vpop.f32.mrb[201].mxu0 }
0x2e5c   :  { %v6953_v22 = vpop.f32.mrb[202].mxu0 }
0x2e5d   :  { %v11762_v30 = vadd.f32 %v10054_v29, %v6956_v40  ;;  %v9430_v43 = vpop.f32.mrb[203].mxu0 }
0x2e5f   :  { %v6958_v44 = vsel %vm325_vm6, %v11762_v30, -inf }
0x2e60   :  { %6959 = vmax.xlane.f32.xlu0 %v6958_v44 }
0x2e62   :  { %v7062_v16 = vpop.f32.mrb[204].mxu0 }
0x2e63   :  { %v7068_v6 = vmul.f32 0.35355338, %v7062_v16  ;;  %v9441_v45 = vpop.f32.mrb[205].mxu0 }
0x2e64   :  { %v7065_v19 = vpop.f32.mrb[206].mxu0 }
0x2e65   :  { %v7069_v20 = vadd.f32 %v10054_v29, %v7068_v6  ;;  %v9442_v46 = vpop.f32.mrb[207].mxu0 }
0x2e67   :  { %v7070_v48 = vsel %vm325_vm6, %v7069_v20, -inf }
0x2e68   :  { %7071 = vmax.xlane.f32.xlu0 %v7070_v48 }
0x2e6a   :  { %v7174_v50 = vpop.f32.mrb[208].mxu0 }
0x2e6b   :  { %v7180_v34 = vmul.f32 0.35355338, %v7174_v50  ;;  %v9453_v42 = vpop.f32.mrb[209].mxu0 }
0x2e6c   :  { %v7177_v49 = vpop.f32.mrb[210].mxu0 }
0x2e6d   :  { %v11767_v53 = vadd.f32 %v10054_v29, %v7180_v34  ;;  %v9454_v56 = vpop.f32.mrb[211].mxu0 }
0x2e6f   :  { %v7182_v57 = vsel %vm325_vm6, %v11767_v53, -inf }
0x2e70   :  { %7183 = vmax.xlane.f32.xlu0 %v7182_v57 }
0x2e72   :  { %v7299_v51 = vpop.f32.mrb[212].mxu0 }
0x2e73   :  { %v7305_v59 = vmul.f32 0.35355338, %v7299_v51  ;;  %v9465_v54 = vpop.f32.mrb[213].mxu0 }
0x2e74   :  { %v7302_v60 = vpop.f32.mrb[214].mxu0 }
0x2e75   :  { %v11772_v61 = vadd.f32 %v10055_v52, %v7305_v59  ;;  %v9466_v63 = vpop.f32.mrb[215].mxu0 }
0x2e77   :  { %v7307_v1 = vsel %vm325_vm6, %v11772_v61, -inf }
0x2e78   :  { %7308 = vmax.xlane.f32.xlu1 %v7307_v1 }
0x2e7a   :  { %v7413_v2 = vpop.f32.mrb[216].mxu0 }
0x2e7b   :  { %v7419_v55 = vmul.f32 0.35355338, %v7413_v2  ;;  %v9477_v62 = vpop.f32.mrb[217].mxu0  ;;  %v6846_v28 = vpop.xlane.xlu1 %6845 }
0x2e7c   :  { %v7416_v5 = vpop.f32.mrb[218].mxu0  ;;  %v6847_v32 = vsub.f32 %v6843_v25, %v6846_v28 }
0x2e7d   :  { %v7420_v47 = vadd.f32 %v10055_v52, %v7419_v55  ;;  %v9478_v11 = vpop.f32.mrb[219].mxu0 }
0x2e7e   :  { %v6848_v27 = vmul.f32 1.442695, %v6847_v32 }
0x2e7f   :  { %v7421_v12 = vsel %vm325_vm6, %v7420_v47, -inf }
0x2e80   :  { %7422 = vmax.xlane.f32.xlu0 %v7421_v12  ;;  %9988 = vpow2.f32 %v6848_v27 }
0x2e82   :  { %v7525_v58 = vpop.f32.mrb[220].mxu0 }
0x2e83   :  { %v7531_v13 = vmul.f32 0.35355338, %v7525_v58  ;;  %v9489_v33 = vpop.f32.mrb[221].mxu0 }
0x2e84   :  { %v7528_v14 = vpop.f32.mrb[222].mxu0 }
0x2e85   :  { %v7532_v21 = vadd.f32 %v10055_v52, %v7531_v13  ;;  %v9490_v18 = vpop.f32.mrb[223].mxu0 }
0x2e87   :  { %v7533_v36 = vsel %vm325_vm6, %v7532_v21, -inf }
0x2e88   :  { %7534 = vmax.xlane.f32.xlu1 %v7533_v36 }
0x2e8a   :  { %v7637_v24 = vpop.f32.mrb[224].mxu0  ;;  %v11783_v4 = vpop.eup %9988 }
0x2e8b   :  { %v9501_v17 = vpop.f32.mrb[225].mxu0  ;;  %v7643_v26 = vmul.f32 0.35355338, %v7637_v24  ;;  %v6850_v10 = vsel %vm325_vm6, %v11783_v4, 0.0 }
0x2e8c   :  { %v7640_v7 = vpop.f32.mrb[226].mxu0 }
0x2e8d   :  { %v9502_v31 = vpop.f32.mrb[227].mxu0  ;;  %v7644_v0 = vadd.f32 %v10055_v52, %v7643_v26 }
0x2e8f   :  { %v7645_v38 = vsel %vm325_vm6, %v7644_v0, -inf }
0x2e96   :  { %6970 = vrot.lane.b32.xlu0 %v11680_v23, %s10125_s0 }
0x2e99   :  { %6857 = vrot.lane.b32.xlu1 %v11680_v23, %s10126_s4 }
0x2eb5   :  { %7646 = vmax.xlane.f32.xlu0 %v7645_v38 }
0x2ebd   :  { %6851 = vadd.xlane.f32.xlu1 %v6850_v10 }
0x2eed   :  { %v6960_v29 = vpop.xlane.xlu0 %6959 }
0x2eee   :  { %v6961_v35 = vsub.f32 %v11762_v30, %v6960_v29 }
0x2ef0   :  { %v6962_v39 = vmul.f32 1.442695, %v6961_v35 }
0x2ef2   :  { %9990 = vpow2.f32 %v6962_v39 }
0x2ef5   :  { %v7072_v37 = vpop.xlane.xlu0 %7071 }
0x2ef6   :  { %v7073_v25 = vsub.f32 %v7069_v20, %v7072_v37 }
0x2ef8   :  { %v7074_v40 = vmul.f32 1.442695, %v7073_v25 }
0x2efa   :  { %9992 = vpow2.f32 %v7074_v40 }
0x2efc   :  { %v11788_v41 = vpop.eup %9990 }
0x2efd   :  { %v6964_v22 = vsel %vm325_vm6, %v11788_v41, 0.0  ;;  %v7184_v45 = vpop.xlane.xlu0 %7183 }
0x2efe   :  { %6965 = vadd.xlane.f32.xlu0 %v6964_v22  ;;  %v7185_v20 = vsub.f32 %v11767_v53, %v7184_v45 }
0x2f00   :  { %v7186_v46 = vmul.f32 1.442695, %v7185_v20 }
0x2f02   :  { %9994 = vpow2.f32 %v7186_v46 }
0x2f04   :  { %v11792_v43 = vpop.eup %9992 }
0x2f05   :  { %v7076_v44 = vsel %vm325_vm6, %v11792_v43, 0.0  ;;  %v7309_v16 = vpop.xlane.xlu1 %7308 }
0x2f06   :  { %7077 = vadd.xlane.f32.xlu1 %v7076_v44  ;;  %v7310_v48 = vsub.f32 %v11772_v61, %v7309_v16 }
0x2f08   :  { %v7311_v42 = vmul.f32 1.442695, %v7310_v48 }
0x2f0a   :  { %9996 = vpow2.f32 %v7311_v42 }
0x2f0c   :  { %v9995_v57 = vpop.eup %9994 }
0x2f0d   :  { %v7423_v50 = vpop.xlane.xlu0 %7422  ;;  %v7188_v51 = vsel %vm325_vm6, %v9995_v57, 0.0 }
0x2f0e   :  { %v7424_v34 = vsub.f32 %v7420_v47, %v7423_v50 }
0x2f10   :  { %v7425_v56 = vmul.f32 1.442695, %v7424_v34 }
0x2f11   :  { %v6971_v63 = vpop.permute.xlu0 %6970 }
0x2f12   :  { %9998 = vpow2.f32 %v7425_v56  ;;  %v6976_v13 = vsel %vm391_vm7, %v6971_v63, 0 }
0x2f14   :  { %7082 = vrot.lane.b32.xlu0 %v11680_v23, %s10129_s1  ;;  %v11805_v59 = vpop.eup %9996 }
0x2f15   :  { %v7535_v30 = vpop.xlane.xlu1 %7534  ;;  %v7313_v54 = vsel %vm325_vm6, %v11805_v59, 0.0 }
0x2f16   :  { %v7536_v49 = vsub.f32 %v7532_v21, %v7535_v30 }
0x2f17   :  { %7194 = vrot.lane.b32.xlu1 %v11680_v23, %s12026_s21 }
0x2f18   :  { %v7537_v23 = vmul.f32 1.442695, %v7536_v49 }
0x2f19   :  { %v6858_v6 = vpop.permute.xlu1 %6857 }
0x2f1a   :  { %v6863_v19 = vsel %vm391_vm7, %v6858_v6, 0  ;;  %10000 = vpow2.f32 %v7537_v23 }
0x2f1b   :  { %9420 = vmatpush3.bf16.msra.mxu1 %v6863_v19 }
0x2f1c   :  { %9431 = vmatprep.subr.bf16.mxu1 %v10123_v15  ;;  %v11807_v53 = vpop.eup %9998 }
0x2f1d   :  { %v7427_v52 = vsel %vm325_vm6, %v11807_v53, 0.0 }
0x2f24   :  { %v11811_v60 = vpop.eup %10000 }
0x2f25   :  { %v7539_v61 = vsel %vm325_vm6, %v11811_v60, 0.0 }
0x2f33   :  { %7189 = vadd.xlane.f32.xlu0 %v7188_v51 }
0x2f37   :  { %7314 = vadd.xlane.f32.xlu0 %v7313_v54 }
0x2f3b   :  { %7428 = vadd.xlane.f32.xlu1 %v7427_v52  ;;  %7540 = vadd.xlane.f32.xlu0 %v7539_v61 }
0x2f42   :  { %v7647_v1 = vpop.xlane.xlu0 %7646 }
0x2f43   :  { %v7648_v2 = vsub.f32 %v7644_v0, %v7647_v1 }
0x2f45   :  { %v7649_v55 = vmul.f32 1.442695, %v7648_v2 }
0x2f47   :  { %10002 = vpow2.f32 %v7649_v55 }
0x2f4a   :  { %v6852_v62 = vpop.xlane.xlu1 %6851 }
0x2f4b   :  { %10004 = vrcp.f32 %v6852_v62 }
0x2f4c   :  { %7433 = vrot.lane.b32.xlu1 %v11715_v8, %s10125_s0 }
0x2f50   :  { %7545 = vrot.lane.b32.xlu1 %v11715_v8, %s10129_s1 }
0x2f51   :  { %v11821_v5 = vpop.eup %10002 }
0x2f52   :  { %v7651_v47 = vsel %vm325_vm6, %v11821_v5, 0.0 }
0x2f53   :  { %7652 = vadd.xlane.f32.xlu0 %v7651_v47 }
0x2f54   :  { %7657 = vrot.lane.b32.xlu1 %v11715_v8, %s12026_s21 }
0x2f55   :  { %v10005_v11 = vpop.eup %10004 }
0x2f56   :  { %v6854_v12 = vmul.f32 %v10005_v11, %v11783_v4 }
0x2f58   :  { %v6855_v58 = vpack.c.bf16 %v6854_v12, %v6854_v12 }
0x2f5a   :  { %9422 = vmatmul.mubr.msk.bf16.vlgmr.msra.gmra.mrb[200].mxu1 %vm325_vm6, %v6855_v58 }
0x2f5b   :  { %9432 = vmatpush3.bf16.msra.mxu1 %v6976_v13  ;;  %9433 = vmatprep.mubr.msk.bf16.mxu1 %vm10124_vm1, %v10123_v15 }
0x2f5c   :  { %9443 = vmatprep.subr.bf16.mxu1 %v10123_v15 }
0x2f69   :  { %7320 = vrot.lane.b32.xlu0 %v11715_v8, %s10126_s4 }
0x2f8b   :  { %v6966_v33 = vpop.xlane.xlu0 %6965 }
0x2f8c   :  { %10006 = vrcp.f32 %v6966_v33  ;;  %v9738_v33 = vld [vmem:[%s12018_s16 + $0x10] sm:$0xff]  }
0x2f8d   :  { %9510 = vmatpush3.bf16.msra.mxu0 %v9738_v33 }
0x2f8e   :  { %9511 = vmatprep.subr.bf16.mxu0 %v10123_v15 }
0x2f8f   :  { %v7083_v36 = vpop.permute.xlu0 %7082 }
0x2f90   :  { %v7088_v17 = vsel %vm391_vm7, %v7083_v36, 0 }
0x2f93   :  { %v7078_v14 = vpop.xlane.xlu1 %7077 }
0x2f94   :  { %10008 = vrcp.f32 %v7078_v14 }
0x2f96   :  { %v10007_v21 = vpop.eup %10006 }
0x2f97   :  { %v6968_v18 = vmul.f32 %v10007_v21, %v11788_v41  ;;  %v7195_v31 = vpop.permute.xlu1 %7194 }
0x2f98   :  { %v7200_v32 = vsel %vm391_vm7, %v7195_v31, 0 }
0x2f99   :  { %v6969_v24 = vpack.c.bf16 %v6968_v18, %v6968_v18 }
0x2f9b   :  { %9434 = vmatmul.mubr.msk.bf16.vlgmr.msra.gmra.mrb[204].mxu1 %vm325_vm6, %v6969_v24 }
0x2f9c   :  { %9444 = vmatpush3.bf16.msra.mxu1 %v7088_v17  ;;  %9445 = vmatprep.mubr.msk.bf16.mxu1 %vm10124_vm1, %v10123_v15  ;;  %v9739_v17 = vld [vmem:[%s12018_s16 + $0x18] sm:$0xff]  }
0x2f9d   :  { %9455 = vmatprep.subr.bf16.mxu1 %v10123_v15  ;;  %9512 = vmatpush3.bf16.msra.mxu0 %v9739_v17 }
0x2f9e   :  { %v10009_v8 = vpop.eup %10008  ;;  %9525 = vmatprep.subr.bf16.mxu0 %v10123_v15 }
0x2f9f   :  { %v7080_v7 = vmul.f32 %v10009_v8, %v11792_v43 }
0x2fa1   :  { %v7081_v28 = vpack.c.bf16 %v7080_v7, %v7080_v7 }
0x2fa3   :  { %9446 = vmatmul.mubr.msk.bf16.vlgmr.msra.gmra.mrb[208].mxu1 %vm325_vm6, %v7081_v28 }
0x2fa4   :  { %9456 = vmatpush3.bf16.msra.mxu1 %v7200_v32  ;;  %9457 = vmatprep.mubr.msk.bf16.mxu1 %vm10124_vm1, %v10123_v15 }
0x2fa5   :  { %9467 = vmatprep.subr.bf16.mxu1 %v10123_v15 }
0x2fc0   :  { %v7190_v27 = vpop.xlane.xlu0 %7189 }
0x2fc1   :  { %10010 = vrcp.f32 %v7190_v27 }
0x2fc4   :  { %v7315_v4 = vpop.xlane.xlu0 %7314 }
0x2fc5   :  { %10012 = vrcp.f32 %v7315_v4 }
0x2fc8   :  { %v7429_v10 = vpop.xlane.xlu1 %7428  ;;  %v7541_v29 = vpop.xlane.xlu0 %7540 }
0x2fc9   :  { %10014 = vrcp.f32 %v7429_v10 }
0x2fca   :  { %10016 = vrcp.f32 %v7541_v29 }
0x2fcb   :  { %v10011_v26 = vpop.eup %10010 }
0x2fcc   :  { %v7192_v0 = vmul.f32 %v10011_v26, %v9995_v57  ;;  %v7434_v41 = vpop.permute.xlu1 %7433 }
0x2fcd   :  { %v7439_v44 = vsel %vm391_vm7, %v7434_v41, 0 }
0x2fce   :  { %v7193_v38 = vpack.c.bf16 %v7192_v0, %v7192_v0 }
0x2fcf   :  { %v10013_v35 = vpop.eup %10012 }
0x2fd0   :  { %9458 = vmatmul.mubr.msk.bf16.vlgmr.msra.gmra.mrb[212].mxu1 %vm325_vm6, %v7193_v38  ;;  %v7317_v37 = vmul.f32 %v10013_v35, %v11805_v59  ;;  %v7546_v30 = vpop.permute.xlu1 %7545 }
0x2fd1   :  { %9469 = vmatprep.mubr.msk.bf16.mxu1 %vm10124_vm1, %v10123_v15  ;;  %v7551_v19 = vsel %vm391_vm7, %v7546_v30, 0 }
0x2fd2   :  { %v7318_v22 = vpack.c.bf16 %v7317_v37, %v7317_v37 }
0x2fd3   :  { %v10015_v43 = vpop.eup %10014 }
0x2fd4   :  { %v7431_v16 = vmul.f32 %v10015_v43, %v11807_v53  ;;  %v10017_v45 = vpop.eup %10016  ;;  %v7658_v46 = vpop.permute.xlu1 %7657 }
0x2fd5   :  { %v7543_v20 = vmul.f32 %v10017_v45, %v11811_v60  ;;  %v7663_v34 = vsel %vm391_vm7, %v7658_v46, 0 }
0x2fd6   :  { %v7432_v6 = vpack.c.bf16 %v7431_v16, %v7431_v16 }
0x2fd7   :  { %v7544_v48 = vpack.c.bf16 %v7543_v20, %v7543_v20 }
0x2fe0   :  { %v7653_v39 = vpop.xlane.xlu0 %7652 }
0x2fe1   :  { %10018 = vrcp.f32 %v7653_v39 }
0x2fe4   :  { %v7321_v25 = vpop.permute.xlu0 %7320 }
0x2fe5   :  { %v7326_v40 = vsel %vm391_vm7, %v7321_v25, 0 }
0x2fe6   :  { %9468 = vmatpush3.bf16.msra.mxu1 %v7326_v40 }
0x2fe7   :  { %9479 = vmatprep.subr.bf16.mxu1 %v10123_v15 }
0x2fe9   :  { %9470 = vmatmul.mubr.msk.bf16.vlgmr.msra.gmra.mrb[216].mxu1 %vm325_vm6, %v7318_v22 }
0x2fea   :  { %9480 = vmatpush3.bf16.msra.mxu1 %v7439_v44  ;;  %9481 = vmatprep.mubr.msk.bf16.mxu1 %vm10124_vm1, %v10123_v15 }
0x2feb   :  { %9491 = vmatprep.subr.bf16.mxu1 %v10123_v15  ;;  %v10019_v50 = vpop.eup %10018 }
0x2fec   :  { %v7655_v42 = vmul.f32 %v10019_v50, %v11821_v5 }
0x2fee   :  { %v7656_v49 = vpack.c.bf16 %v7655_v42, %v7655_v42 }
0x2ff1   :  { %9482 = vmatmul.mubr.msk.bf16.vlgmr.msra.gmra.mrb[220].mxu1 %vm325_vm6, %v7432_v6 }
0x2ff2   :  { %9492 = vmatpush3.bf16.msra.mxu1 %v7551_v19  ;;  %9493 = vmatprep.mubr.msk.bf16.mxu1 %vm10124_vm1, %v10123_v15  ;;  %v8462_v19 = vld [vmem:[%s12019_s18 + $0x1] ss:$0 sm:$0xff] }
0x2ff3   :  { %9503 = vmatprep.subr.bf16.mxu1 %v10123_v15 }
0x2ff9   :  { %9494 = vmatmul.mubr.msk.bf16.vlgmr.msra.gmra.mrb[224].mxu1 %vm325_vm6, %v7544_v48 }
0x2ffa   :  { %9504 = vmatpush3.bf16.msra.mxu1 %v7663_v34  ;;  %9505 = vmatprep.mubr.msk.bf16.mxu1 %vm10124_vm1, %v10123_v15 }
0x2ffb   :  { %9517 = vmatprep.subr.bf16.mxu1 %v10123_v15 }
0x3001   :  { %9506 = vmatmul.mubr.msk.bf16.vlgmr.msra.gmra.mrb[228].mxu1 %vm325_vm6, %v7656_v49 }
0x3002   :  { %9521 = vmatprep.mubr.msk.bf16.mxu1 %vm10124_vm1, %v10123_v15 }
0x302d   :  { %v6899_v56 = vpop.f32.mrb[200].mxu1 }
0x302e   :  { %v9423_v23 = vpop.f32.mrb[201].mxu1 }
0x302f   :  { %v6902_v57 = vpop.f32.mrb[202].mxu1 }
0x3030   :  { %v9424_v51 = vpop.f32.mrb[203].mxu1 }
0x306e   :  { %v7012_v59 = vpop.f32.mrb[204].mxu1 }
0x306f   :  { %v9435_v53 = vpop.f32.mrb[205].mxu1 }
0x3070   :  { %v7015_v54 = vpop.f32.mrb[206].mxu1 }
0x3071   :  { %v9436_v60 = vpop.f32.mrb[207].mxu1 }
0x3076   :  { %v7124_v52 = vpop.f32.mrb[208].mxu1 }
0x3077   :  { %v9447_v61 = vpop.f32.mrb[209].mxu1 }
0x3078   :  { %v7127_v63 = vpop.f32.mrb[210].mxu1 }
0x3079   :  { %v9448_v1 = vpop.f32.mrb[211].mxu1 }
0x307a   :  { %v9740_v1 = vld [vmem:[%s12020_s23 + $0x10] sm:$0xff]  }
0x307b   :  { %9518 = vmatpush3.bf16.msra.mxu1 %v9740_v1 }
0x307c   :  { %9519 = vmatprep.subr.bf16.mxu1 %v10123_v15 }
0x30a3   :  { %v7236_v2 = vpop.f32.mrb[212].mxu1 }
0x30a4   :  { %v9459_v55 = vpop.f32.mrb[213].mxu1 }
0x30a5   :  { %v7239_v62 = vpop.f32.mrb[214].mxu1  ;;  %v9742_v55 = vld [vmem:[%s12021_s22 + $0x20] sm:$0xff]  }
0x30a6   :  { %v9460_v5 = vpop.f32.mrb[215].mxu1  ;;  %v9743_v62 = vld [vmem:[%s12021_s22 + $0x28] sm:$0xff]  }
0x30bc   :  { %v7362_v47 = vpop.f32.mrb[216].mxu1 }
0x30bd   :  { %v9471_v11 = vpop.f32.mrb[217].mxu1 }
0x30be   :  { %v7365_v12 = vpop.f32.mrb[218].mxu1 }
0x30bf   :  { %v9472_v58 = vpop.f32.mrb[219].mxu1 }
0x30c4   :  { %v7475_v13 = vpop.f32.mrb[220].mxu1 }
0x30c5   :  { %v9679_v14 = vpack.i.bf16 %v7475_v13, %v7012_v59  ;;  %v9483_v21 = vpop.f32.mrb[221].mxu1 }
0x30c6   :  { %v7478_v18 = vpop.f32.mrb[222].mxu1 }
0x30c7   :  { %9680 = vrot.lane.b32.xlu1 %v9679_v14, %s12031_s25  ;;  %v9484_v36 = vpop.f32.mrb[223].mxu1 }
0x30cc   :  { %v7587_v24 = vpop.f32.mrb[224].mxu1 }
0x30cd   :  { %v9684_v8 = vpack.i.bf16 %v7587_v24, %v7124_v52  ;;  %v9495_v7 = vpop.f32.mrb[225].mxu1 }
0x30ce   :  { %v7590_v31 = vpop.f32.mrb[226].mxu1 }
0x30cf   :  { %9685 = vrot.lane.b32.xlu1 %v9684_v8, %s12032_s29  ;;  %v9496_v28 = vpop.f32.mrb[227].mxu1 }
0x30d4   :  { %v7699_v32 = vpop.f32.mrb[228].mxu1 }
0x30d5   :  { %v9689_v27 = vpack.i.bf16 %v7699_v32, %v7236_v2  ;;  %v9507_v26 = vpop.f32.mrb[229].mxu1  ;;  %v9741_v2 = vld [vmem:[%s12020_s23 + $0x18] sm:$0xff]  }
0x30d6   :  { %v7702_v0 = vpop.f32.mrb[230].mxu1  ;;  %9520 = vmatpush3.bf16.msra.mxu1 %v9741_v2  ;;  %v9746_v2 = vld [vmem:[%s10347_s27] sm:$0xff]  }
0x30d7   :  { %9690 = vrot.lane.b32.xlu1 %v9689_v27, %s12033_s3  ;;  %v9508_v38 = vpop.f32.mrb[231].mxu1  ;;  %9537 = vmatprep.subr.bf16.mxu1 %v10123_v15  ;;  %v8468_v27 = vld [vmem:[%s12022_s15 + $0x1] ss:$0 sm:$0xff] }
0x3139   :  { %v9681_v4 = vpop.permute.xlu1 %9680 }
0x313a   :  { %v9683_v29 = vunpack.i.h.bf16 %v9681_v4  ;;  %v9682_v35 = vunpack.i.l.bf16 %v9681_v4  ;;  %v8469_v4 = vld [vmem:[%s12023_s11 + $0x1] ss:$0 sm:$0xff] }
0x313c   :  { %v7717_v40 = vsel %vm325_vm6, %v7362_v47, %v9683_v29  ;;  %v7254_v41 = vsel %vm325_vm6, %v6899_v56, %v9682_v35 }
0x3141   :  { %v9686_v10 = vpop.permute.xlu1 %9685 }
0x3142   :  { %v9688_v39 = vunpack.i.h.bf16 %v9686_v10  ;;  %v9687_v37 = vunpack.i.l.bf16 %v9686_v10 }
0x3144   :  { %v7718_v44 = vsel %vm784_vm8, %v7717_v40, %v9688_v39  ;;  %v7255_v16 = vsel %vm784_vm8, %v7254_v41, %v9687_v37  ;;  %v9744_v37 = vld [vmem:[%s12021_s22 + $0x30] sm:$0xff]   ;;  %v8475_v40 = vld [vmem:[%s12024_s7 + $0x1] ss:$0 sm:$0xff] }
0x3149   :  { %v9691_v25 = vpop.permute.xlu1 %9690 }
0x314a   :  { %v9693_v22 = vunpack.i.h.bf16 %v9691_v25  ;;  %v9692_v43 = vunpack.i.l.bf16 %v9691_v25  ;;  %v9745_v25 = vld [vmem:[%s12021_s22 + $0x38] sm:$0xff]  }
0x314c   :  { %v7719_v30 = vsel %vm786_vm9, %v7718_v44, %v9693_v22  ;;  %v7256_v6 = vsel %vm786_vm9, %v7255_v16, %v9692_v43 }
0x314d   :  { %v7727_v45 = vpack.c.bf16 %v7719_v30, %v7256_v6 }
0x314f   :  { %9514 = vmatmul.mubr.msk.bf16.vlgmr.msra.gmra.mrb[228].mxu0 %vm195_vm0, %v7727_v45 }
0x3150   :  { %9533 = vmatprep.mubr.msk.bf16.mxu0 %vm10124_vm1, %v10123_v15  ;;  %9526 = vmatpush3.bf16.msra.mxu0 %v9742_v55  ;;  %v9747_v55 = vld [vmem:[%s10347_s27 + $0x8] sm:$0xff]  }
0x3151   :  { %9527 = vmatprep.subr.bf16.mxu0 %v10123_v15 }
0x3154   :  { %9528 = vmatpush3.bf16.msra.mxu0 %v9743_v62 }
0x3155   :  { %9529 = vmatprep.subr.bf16.mxu0 %v10123_v15 }
0x3158   :  { %9530 = vmatpush3.bf16.msra.mxu0 %v9744_v37 }
0x3159   :  { %9531 = vmatprep.subr.bf16.mxu0 %v10123_v15 }
0x315c   :  { %9532 = vmatpush3.bf16.msra.mxu0 %v9745_v25 }
0x3222   :  { %v7783_v20 = vpop.f32.mrb[228].mxu0 }
0x3223   :  { %v7784_v46 = vadd.f32 %v8462_v19, %v7783_v20  ;;  %v9515_v48 = vpop.f32.mrb[229].mxu0  ;;  %v8488_v20 = vld [vmem:[%s12025_s10 + $0x1] ss:$0 sm:$0xff] }
0x3224   :  { %v7786_v50 = vpop.f32.mrb[230].mxu0 }
0x3225   :  { %v11892_v34 = vadd.f32 %v7784_v46, %v11668_v3  ;;  %v7787_v42 = vadd.f32 %v8462_v19, %v7786_v50  ;;  %v9516_v49 = vpop.f32.mrb[231].mxu0 }
0x3227   :  { %v11895_v56 = vadd.f32 %v7787_v42, %v11671_v9  ;;  %v7796_v23 = vsel %vm195_vm0, %v11892_v34, 0.0 }
0x3228   :  { %7797 = vadd.xlane.f32.xlu0 %v7796_v23 }
0x3229   :  { %v7799_v57 = vsel %vm195_vm0, %v11895_v56, 0.0 }
0x322a   :  { %7800 = vadd.xlane.f32.xlu1 %v7799_v57 }
0x32b5   :  { %v7798_v51 = vpop.xlane.xlu0 %7797 }
0x32b6   :  { %v7802_v59 = vmul.f32 0.03125, %v7798_v51 }
0x32b7   :  { %v7801_v53 = vpop.xlane.xlu1 %7800 }
0x32b8   :  { %v7804_v3 = vsub.f32 %v11892_v34, %v7802_v59  ;;  %v7803_v54 = vmul.f32 0.03125, %v7801_v53 }
0x32ba   :  { %v7805_v9 = vsub.f32 %v11895_v56, %v7803_v54  ;;  %v7806_v60 = vmul.f32 %v7804_v3, %v7804_v3 }
0x32bc   :  { %v7808_v52 = vsel %vm195_vm0, %v7806_v60, 0.0  ;;  %v7807_v61 = vmul.f32 %v7805_v9, %v7805_v9 }
0x32bd   :  { %7809 = vadd.xlane.f32.xlu0 %v7808_v52 }
0x32be   :  { %v7811_v63 = vsel %vm195_vm0, %v7807_v61, 0.0 }
0x32c1   :  { %7812 = vadd.xlane.f32.xlu0 %v7811_v63 }
0x334a   :  { %v7810_v5 = vpop.xlane.xlu0 %7809 }
0x334b   :  { %v7814_v47 = vmul.f32 0.03125, %v7810_v5 }
0x334d   :  { %v7816_v11 = vadd.f32 1e-06, %v7814_v47 }
0x334e   :  { %v7813_v12 = vpop.xlane.xlu0 %7812 }
0x334f   :  { %10020 = vrsqrt.f32 %v7816_v11  ;;  %v7815_v58 = vmul.f32 0.03125, %v7813_v12  ;;  %vm7820_vm6 = vcmp.eq.f32.partialorder %v7816_v11, inf  ;;  %v7823_v21 = vand.u32 2147483648, %v7816_v11 }
0x3350   :  { %vm7822_vm7 = vcmp.eq.f32.partialorder %v7816_v11, 0.0 }
0x3351   :  { %v7817_v13 = vadd.f32 1e-06, %v7815_v58 }
0x3353   :  { %10022 = vrsqrt.f32 %v7817_v13  ;;  %vm7827_vm8 = vcmp.eq.f32.partialorder %v7817_v13, inf  ;;  %v7830_v8 = vand.u32 2147483648, %v7817_v13  ;;  %vm7829_vm9 = vcmp.eq.f32.partialorder %v7817_v13, 0.0 }
0x3359   :  { %v10021_v33 = vpop.eup %10020 }
0x335a   :  { %v7819_v14 = vmul.f32 %v10021_v33, %v7816_v11 }
0x335c   :  { %v7821_v18 = vsel %vm7820_vm6, %v7816_v11, %v7819_v14 }
0x335d   :  { %v7824_v36 = vsel %vm7822_vm7, %v7823_v21, %v7821_v18  ;;  %v10023_v24 = vpop.eup %10022 }
0x335e   :  { %10024 = vrcp.f32 %v7824_v36  ;;  %v7826_v17 = vmul.f32 %v10023_v24, %v7817_v13 }
0x3360   :  { %v7828_v7 = vsel %vm7827_vm8, %v7817_v13, %v7826_v17 }
0x3361   :  { %v7831_v31 = vsel %vm7829_vm9, %v7830_v8, %v7828_v7 }
0x3362   :  { %10026 = vrcp.f32 %v7831_v31  ;;  %v8494_v31 = vld [vmem:[%s12034_s13] ss:$0 sm:$0xff] }
0x3368   :  { %v10025_v28 = vpop.eup %10024 }
0x3369   :  { %v7833_v32 = vmul.f32 %v10025_v28, %v7804_v3 }
0x336b   :  { %v7842_v38 = vmul.f32 %v8468_v27, %v7833_v32 }
0x336c   :  { %v10027_v26 = vpop.eup %10026 }
0x336d   :  { %v7835_v0 = vmul.f32 %v10027_v26, %v7805_v9  ;;  %v7850_v29 = vadd.f32 %v8469_v4, %v7842_v38 }
0x336f   :  { %v7843_v10 = vmul.f32 %v8468_v27, %v7835_v0  ;;  %v8495_v0 = vld [vmem:[%s10342_s9] ss:$0 sm:$0xff] }
0x3371   :  { %v7851_v35 = vadd.f32 %v8469_v4, %v7843_v10 }
0x3373   :  { %v7859_v39 = vpack.c.bf16 %v7851_v35, %v7850_v29  ;;  %v8496_v35 = vld [vmem:[#allocation2] ss:$0 sm:$0xff] }
0x3375   :  { %9522 = vmatmul.mubr.msk.bf16.vlgmr.msra.gmra.mrb[232].mxu1 %vm195_vm0, %v7859_v39 }
0x3376   :  { %9541 = vmatprep.mubr.msk.bf16.mxu1 %vm10124_vm1, %v10123_v15  ;;  %9538 = vmatpush3.bf16.msra.mxu1 %v9746_v2 }
0x3377   :  { %9539 = vmatprep.subr.bf16.mxu1 %v10123_v15 }
0x337a   :  { %9540 = vmatpush3.bf16.msra.mxu1 %v9747_v55 }
0x3448   :  { %v7915_v41 = vpop.f32.mrb[232].mxu1 }
0x3449   :  { %v7916_v22 = vadd.f32 %v8475_v40, %v7915_v41  ;;  %v9523_v43 = vpop.f32.mrb[233].mxu1 }
0x344a   :  { %v7918_v44 = vpop.f32.mrb[234].mxu1 }
0x344b   :  { %v7919_v16 = vadd.f32 %v8475_v40, %v7918_v44  ;;  %v9524_v30 = vpop.f32.mrb[235].mxu1  ;;  %v7922_v6 = vmax.f32 %v7916_v22, 0.0 }
0x344d   :  { %v7923_v45 = vmax.f32 %v7919_v16, 0.0 }
0x344f   :  { %v7935_v19 = vpack.c.bf16 %v7923_v45, %v7922_v6 }
0x3451   :  { %9534 = vmatmul.mubr.msk.bf16.vlgmr.msra.gmra.mrb[232].mxu0 %vm1489_vm14, %v7935_v19 }
0x3524   :  { %v8003_v46 = vpop.f32.mrb[232].mxu0 }
0x3525   :  { %v8004_v48 = vadd.f32 %v8488_v20, %v8003_v46  ;;  %v9535_v50 = vpop.f32.mrb[233].mxu0 }
0x3526   :  { %v8006_v42 = vpop.f32.mrb[234].mxu0 }
0x3527   :  { %v8010_v49 = vadd.f32 %v8004_v48, %v11892_v34  ;;  %v8007_v23 = vadd.f32 %v8488_v20, %v8006_v42  ;;  %v9536_v57 = vpop.f32.mrb[235].mxu0 }
0x3529   :  { %v8011_v51 = vadd.f32 %v8007_v23, %v11895_v56  ;;  %v8014_v59 = vsel %vm195_vm0, %v8010_v49, 0.0 }
0x352a   :  { %8015 = vadd.xlane.f32.xlu0 %v8014_v59 }
0x352b   :  { %v8017_v53 = vsel %vm195_vm0, %v8011_v51, 0.0 }
0x352c   :  { %8018 = vadd.xlane.f32.xlu1 %v8017_v53 }
0x35b7   :  { %v8016_v3 = vpop.xlane.xlu0 %8015 }
0x35b8   :  { %v8020_v54 = vmul.f32 0.03125, %v8016_v3 }
0x35b9   :  { %v8019_v9 = vpop.xlane.xlu1 %8018 }
0x35ba   :  { %v8022_v60 = vsub.f32 %v8010_v49, %v8020_v54  ;;  %v8021_v52 = vmul.f32 0.03125, %v8019_v9 }
0x35bc   :  { %v8023_v61 = vsub.f32 %v8011_v51, %v8021_v52  ;;  %v8024_v63 = vmul.f32 %v8022_v60, %v8022_v60 }
0x35be   :  { %v8026_v34 = vsel %vm195_vm0, %v8024_v63, 0.0  ;;  %v8025_v1 = vmul.f32 %v8023_v61, %v8023_v61 }
0x35bf   :  { %8027 = vadd.xlane.f32.xlu0 %v8026_v34 }
0x35c0   :  { %v8029_v56 = vsel %vm195_vm0, %v8025_v1, 0.0 }
0x35c1   :  { %8030 = vadd.xlane.f32.xlu1 %v8029_v56 }
0x364c   :  { %v8028_v62 = vpop.xlane.xlu0 %8027 }
0x364d   :  { %v8032_v5 = vmul.f32 0.03125, %v8028_v62 }
0x364e   :  { %v8031_v47 = vpop.xlane.xlu1 %8030 }
0x364f   :  { %v8034_v11 = vadd.f32 1e-06, %v8032_v5  ;;  %v8033_v12 = vmul.f32 0.03125, %v8031_v47 }
0x3651   :  { %10028 = vrsqrt.f32 %v8034_v11  ;;  %v8035_v58 = vadd.f32 1e-06, %v8033_v12  ;;  %vm8038_vm1 = vcmp.eq.f32.partialorder %v8034_v11, inf  ;;  %v8041_v14 = vand.u32 2147483648, %v8034_v11 }
0x3652   :  { %vm8040_vm14 = vcmp.eq.f32.partialorder %v8034_v11, 0.0 }
0x3653   :  { %10030 = vrsqrt.f32 %v8035_v58  ;;  %vm8045_vm10 = vcmp.eq.f32.partialorder %v8035_v58, inf  ;;  %v8048_v24 = vand.u32 2147483648, %v8035_v58  ;;  %vm8047_vm11 = vcmp.eq.f32.partialorder %v8035_v58, 0.0 }
0x365b   :  { %v10029_v13 = vpop.eup %10028 }
0x365c   :  { %v8037_v33 = vmul.f32 %v10029_v13, %v8034_v11 }
0x365d   :  { %v10031_v21 = vpop.eup %10030 }
0x365e   :  { %v8039_v18 = vsel %vm8038_vm1, %v8034_v11, %v8037_v33  ;;  %v8044_v15 = vmul.f32 %v10031_v21, %v8035_v58 }
0x365f   :  { %v8042_v36 = vsel %vm8040_vm14, %v8041_v14, %v8039_v18 }
0x3660   :  { %10032 = vrcp.f32 %v8042_v36  ;;  %v8046_v17 = vsel %vm8045_vm10, %v8035_v58, %v8044_v15 }
0x3661   :  { %v8049_v8 = vsel %vm8047_vm11, %v8048_v24, %v8046_v17 }
0x3662   :  { %10034 = vrcp.f32 %v8049_v8 }
0x366a   :  { %v10033_v7 = vpop.eup %10032 }
0x366b   :  { %v8051_v28 = vmul.f32 %v10033_v7, %v8022_v60 }
0x366c   :  { %v10035_v32 = vpop.eup %10034 }
0x366d   :  { %v8053_v27 = vmul.f32 %v10035_v32, %v8023_v61  ;;  %v8060_v26 = vmul.f32 %v8494_v31, %v8051_v28 }
0x366f   :  { %v8061_v38 = vmul.f32 %v8494_v31, %v8053_v27  ;;  %v8068_v4 = vadd.f32 %v8495_v0, %v8060_v26 }
0x3671   :  { %v8069_v10 = vadd.f32 %v8495_v0, %v8061_v38 }
0x3673   :  { %v8070_v29 = vpack.c.bf16 %v8069_v10, %v8068_v4 }
0x3675   :  { %9542 = vmatmul.mubr.msk.bf16.vlgmr.msra.gmra.mrb[236].mxu1 %vm195_vm0, %v8070_v29 }
0x3748   :  { %v8131_v39 = vpop.f32.mrb[236].mxu1 }
0x3749   :  { %v8132_v37 = vadd.f32 %v8496_v35, %v8131_v39  ;;  %v9543_v25 = vpop.f32.mrb[237].mxu1 }
0x374a   :  { %v8134_v40 = vpop.f32.mrb[238].mxu1 }
0x374b   :  { %v8135_v41 = vadd.f32 %v8496_v35, %v8134_v40  ;;  %8138 = vmax.xlane.f32.xlu0 %v8132_v37  ;;  %v9544_v22 = vpop.f32.mrb[239].mxu1 }
0x374d   :  { %8140 = vmax.xlane.f32.xlu1 %v8135_v41 }
0x37d8   :  { %v8139_v43 = vpop.xlane.xlu0 %8138 }
0x37d9   :  { %v8142_v44 = vsub.f32 %v8132_v37, %v8139_v43 }
0x37da   :  { %v8141_v16 = vpop.xlane.xlu1 %8140 }
0x37db   :  { %v8144_v30 = vmul.f32 1.442695, %v8142_v44  ;;  %v8143_v6 = vsub.f32 %v8135_v41, %v8141_v16 }
0x37dd   :  { %10036 = vpow2.f32 %v8144_v30  ;;  %v8146_v45 = vmul.f32 1.442695, %v8143_v6 }
0x37df   :  { %10038 = vpow2.f32 %v8146_v45 }
0x37e7   :  { %v10037_v19 = vpop.eup %10036 }
0x37e8   :  { %8148 = vadd.xlane.f32.xlu0 %v10037_v19 }
0x37e9   :  { %v10039_v20 = vpop.eup %10038 }
0x37ea   :  { %8150 = vadd.xlane.f32.xlu1 %v10039_v20 }
0x3875   :  { %v8149_v46 = vpop.xlane.xlu0 %8148 }
0x3876   :  { %10040 = vlog2.f32 %v8149_v46 }
0x3877   :  { %v8151_v48 = vpop.xlane.xlu1 %8150 }
0x3878   :  { %10042 = vlog2.f32 %v8151_v48 }
0x3880   :  { %v10041_v50 = vpop.eup %10040 }
0x3881   :  { %v8153_v42 = vmul.f32 0.6931472, %v10041_v50 }
0x3882   :  { %v10043_v49 = vpop.eup %10042 }
0x3883   :  { %v8156_v23 = vsub.f32 %v8142_v44, %v8153_v42  ;;  %v8155_v57 = vmul.f32 0.6931472, %v10043_v49 }
0x3885   :  { %8158 = vst [vmem:[%s10355_s17] sm:$0xff] %v8156_v23  ;;  %v8157_v51 = vsub.f32 %v8143_v6, %v8155_v57 }
0x3887   :  { %8159 = vst [vmem:[%s10355_s17 + $0x8] sm:$0xff] %v8157_v51 }
0x3888   :  { %8164 = vsyncpa [#allocation3], 1 }

</bundles_post_ra>
